<compile_context>
chip_gen: v5e
topology: v5e:2x2
jax: 0.10.0
libtpu: 0.0.40
codegen_flags: <defaults>
</compile_context>

<pallas_src>
import numpy as np

import jax
import jax.numpy as jnp
from jax.experimental import pallas as pl
from jax.experimental.pallas import tpu as pltpu


_TB_DEFAULT = 32   # images per grid step (keep nb >= 2 on v7x for large batches)


# ----------------------------------------------------------------------------
# Fused whole-network kernel
# ----------------------------------------------------------------------------
def _net_kernel(x_ref, w1_ref, w2_ref, b2_ref, wfc1_ref, bfc1_ref, wfc2_ref,
                bfc2_ref, o_ref, y1_ref, p1_ref, y2_ref):
    """Whole Net forward for a block of TB images.

    x_ref:    (TB, 32, 29)  rows 0..27 = image rows, lane 28 = 1.0 (bias lane),
                            rows 28..31 zero padding.
    w1_ref:   (5, 29, 240)  conv1 Toeplitz weights (one matrix per kernel row);
                            N = (ow%2)*120 + (ow//2)*10 + c_out.  Row 28 of the
                            di=0 slab carries the conv1 bias.
    w2_ref:   (5, 120, 160) conv2 Toeplitz weights; K = j*10 + c_in,
                            N = (ow2%2)*80 + (ow2//2)*20 + c_out.
    b2_ref:   (1, 80)       conv2 bias tiled per pooled column (pw*20 + c_out).
    wfc1_ref: (4, 80, 128)  fc1 weights regrouped per pooled row ph.
    bfc1_ref: (1, 128); wfc2_ref: (128, E_pad); bfc2_ref: (1, E_pad).
    o_ref:    (TB, E_pad)   embedding output (lane-dense).
    y1_ref / p1_ref / y2_ref: VMEM scratch (TB,24,240), (TB,12,120), (TB,8,160).
    """
    tb = x_ref.shape[0]

    # ---- conv1 (+ bias via ones lane) as 5 row-shifted matmuls ----
    for di in range(5):
        lhs = x_ref[:, di:di + 24, :].reshape(tb * 24, 29)
        z = jnp.dot(lhs, w1_ref[di], preferred_element_type=jnp.float32)
        z = z.reshape(tb, 24, 240)
        if di == 0:
            y1_ref[...] = z
        else:
            y1_ref[...] += z

    # ---- 2x2 maxpool + ReLU -> p1 (TB, 12, 120), lane = j*10 + c_in ----
    for i in range(12):
        r0, r1 = 2 * i, 2 * i + 1
        v = jnp.maximum(
            jnp.maximum(y1_ref[:, r0, 0:120], y1_ref[:, r0, 120:240]),
            jnp.maximum(y1_ref[:, r1, 0:120], y1_ref[:, r1, 120:240]))
        p1_ref[:, i, :] = jnp.maximum(v, 0.0)

    # ---- conv2 as 5 row-shifted matmuls ----
    for di in range(5):
        lhs = p1_ref[:, di:di + 8, :].reshape(tb * 8, 120)
        z = jnp.dot(lhs, w2_ref[di], preferred_element_type=jnp.float32)
        z = z.reshape(tb, 8, 160)
        if di == 0:
            y2_ref[...] = z
        else:
            y2_ref[...] += z

    # ---- conv2 bias + 2x2 maxpool + ReLU, fc1 accumulated per pooled row ----
    nfc1 = wfc1_ref.shape[2]
    b2 = jnp.broadcast_to(b2_ref[...], (tb, 80))          # hoisted broadcast
    h = jnp.broadcast_to(bfc1_ref[...], (tb, nfc1))       # fc1 bias as init
    for ph in range(4):
        r0, r1 = 2 * ph, 2 * ph + 1
        row = jnp.maximum(
            jnp.maximum(y2_ref[:, r0, 0:80], y2_ref[:, r0, 80:160]),
            jnp.maximum(y2_ref[:, r1, 0:80], y2_ref[:, r1, 80:160]))
        row = jnp.maximum(row + b2, 0.0)                   # (TB, 80)
        h = h + jnp.dot(row, wfc1_ref[ph], preferred_element_type=jnp.float32)
    h = jnp.maximum(h, 0.0)                                # fc1 + ReLU

    # TODO(synk): F.dropout / Dropout2d omitted (eval-mode forward).
    out = jnp.dot(h, wfc2_ref[...], preferred_element_type=jnp.float32) + bfc2_ref[...]
    o_ref[...] = out.astype(o_ref.dtype)


# ----------------------------------------------------------------------------
# Weight repacking (tiny, param-shape-only index math done in numpy)
# ----------------------------------------------------------------------------
def _build_constants(params, e_pad):
    f32 = jnp.float32
    w1 = params["conv1_w"].reshape(10, 5, 5).astype(f32)
    b1 = params["conv1_b"].astype(f32)
    w2 = params["conv2_w"].astype(f32)            # (20, 10, 5, 5)
    b2 = params["conv2_b"].astype(f32)
    fc1_w = params["fc1_w"].astype(f32)           # (50, 320)  PyTorch (out, in)
    fc1_b = params["fc1_b"].astype(f32)
    fc2_w = params["fc2_w"].astype(f32)           # (E, 50)
    fc2_b = params["fc2_b"].astype(f32)
    E = fc2_w.shape[0]

    # conv1: w1t[di, ow+dj, (ow%2)*120 + (ow//2)*10 + c] = w1[c, di, dj]
    di_g, dj_g, ow_g, c_g = np.meshgrid(np.arange(5), np.arange(5),
                                        np.arange(24), np.arange(10), indexing="ij")
    w1t = jnp.zeros((5, 29, 240), f32)
    w1t = w1t.at[di_g, ow_g + dj_g,
                 (ow_g % 2) * 120 + (ow_g // 2) * 10 + c_g].set(w1[c_g, di_g, dj_g])
    ow_b, c_b = np.meshgrid(np.arange(24), np.arange(10), indexing="ij")
    w1t = w1t.at[0, 28, (ow_b % 2) * 120 + (ow_b // 2) * 10 + c_b].set(b1[c_b])

    # conv2: w2t[di, (ow2+dj)*10 + ci, (ow2%2)*80 + (ow2//2)*20 + co] = w2[co, ci, di, dj]
    di_g, dj_g, ow_g, ci_g, co_g = np.meshgrid(
        np.arange(5), np.arange(5), np.arange(8), np.arange(10), np.arange(20),
        indexing="ij")
    w2t = jnp.zeros((5, 120, 160), f32)
    w2t = w2t.at[di_g, (ow_g + dj_g) * 10 + ci_g,
                 (ow_g % 2) * 80 + (ow_g // 2) * 20 + co_g].set(
                     w2[co_g, ci_g, di_g, dj_g])

    b2t = jnp.tile(b2, 4).reshape(1, 80)          # lane = pw*20 + c_out

    # fc1 regrouped per pooled row: wfc1[ph, pw*20 + co, k] = fc1_w[k, co*16 + ph*4 + pw]
    ph_g, pw_g, co_g, k_g = np.meshgrid(np.arange(4), np.arange(4),
                                        np.arange(20), np.arange(50), indexing="ij")
    wfc1 = jnp.zeros((4, 80, 128), f32)
    wfc1 = wfc1.at[ph_g, pw_g * 20 + co_g, k_g].set(
        fc1_w[k_g, co_g * 16 + ph_g * 4 + pw_g])
    bfc1 = jnp.zeros((1, 128), f32).at[0, :50].set(fc1_b)

    wfc2 = jnp.zeros((128, e_pad), f32).at[:50, :E].set(fc2_w.T)
    bfc2 = jnp.zeros((1, e_pad), f32).at[0, :E].set(fc2_b)
    return w1t, w2t, b2t, wfc1, bfc1, wfc2, bfc2


# ----------------------------------------------------------------------------
# The Net forward pass
# ----------------------------------------------------------------------------
def net_forward(params, x, tb=_TB_DEFAULT):
    # x: (B, 1, 28, 28) float32 NCHW (PyTorch convention)
    B = x.shape[0]
    E = params["fc2_w"].shape[0]
    e_pad = ((E + 127) // 128) * 128

    # Don't over-pad tiny batches; default TB=32 for throughput batches.
    tb = max(8, min(tb, 8 * ((B + 7) // 8)))
    b_pad = ((B + tb - 1) // tb) * tb
    nb = b_pad // tb

    x = x.reshape(B, 28, 28).astype(jnp.float32)
    # Append a constant ones lane (consumed by the conv1-bias row of w1t),
    # zero-pad height 28->32 and batch -> b_pad.
    xo = jnp.concatenate([x, jnp.ones((B, 28, 1), jnp.float32)], axis=2)
    xp = jnp.pad(xo, ((0, b_pad - B), (0, 4), (0, 0)))       # (b_pad, 32, 29)

    w1t, w2t, b2t, wfc1, bfc1, wfc2, bfc2 = _build_constants(params, e_pad)

    flops = nb * (2 * tb * 24 * 29 * 240 * 5 + 2 * tb * 8 * 120 * 160 * 5
                  + 2 * tb * 80 * 128 * 4 + 2 * tb * 128 * e_pad)
    bytes_accessed = 4 * (xp.size + w1t.size + w2t.size + wfc1.size + wfc2.size
                          + b_pad * e_pad)

    out = pl.pallas_call(
        _net_kernel,
        out_shape=jax.ShapeDtypeStruct((b_pad, e_pad), jnp.float32),
        grid=(nb,),
        in_specs=[
            pl.BlockSpec((tb, 32, 29), lambda i: (i, 0, 0)),       # image block
            pl.BlockSpec((5, 29, 240), lambda i: (0, 0, 0)),       # conv1 (resident)
            pl.BlockSpec((5, 120, 160), lambda i: (0, 0, 0)),      # conv2 (resident)
            pl.BlockSpec((1, 80), lambda i: (0, 0)),               # conv2 bias
            pl.BlockSpec((4, 80, 128), lambda i: (0, 0, 0)),       # fc1 weights
            pl.BlockSpec((1, 128), lambda i: (0, 0)),              # fc1 bias
            pl.BlockSpec((128, e_pad), lambda i: (0, 0)),          # fc2 weights
            pl.BlockSpec((1, e_pad), lambda i: (0, 0)),            # fc2 bias
        ],
        out_specs=pl.BlockSpec((tb, e_pad), lambda i: (i, 0)),
        scratch_shapes=[
            pltpu.VMEM((tb, 24, 240), jnp.float32),   # conv1 pre-pool accumulator
            pltpu.VMEM((tb, 12, 120), jnp.float32),   # pooled conv1 activations
            pltpu.VMEM((tb, 8, 160), jnp.float32),    # conv2 pre-pool accumulator
        ],
        compiler_params=pltpu.CompilerParams(dimension_semantics=("parallel",)),
        cost_estimate=pl.CostEstimate(flops=flops, transcendentals=0,
                                      bytes_accessed=bytes_accessed),
    )(xp, w1t, w2t, b2t, wfc1, bfc1, wfc2, bfc2)
    return out[:B, :E]


# ----------------------------------------------------------------------------
# Parameter init + pure-JAX reference for the correctness check
# ----------------------------------------------------------------------------
def init_params(embedding_size, seed=0):
    key = jax.random.PRNGKey(seed)
    ks = jax.random.split(key, 8)

    def unif(k, shape, fan_in):
        bound = 1.0 / np.sqrt(fan_in)
        return jax.random.uniform(k, shape, jnp.float32, -bound, bound)

    return {
        "conv1_w": unif(ks[0], (10, 1, 5, 5), 1 * 5 * 5),
        "conv1_b": unif(ks[1], (10,), 1 * 5 * 5),
        "conv2_w": unif(ks[2], (20, 10, 5, 5), 10 * 5 * 5),
        "conv2_b": unif(ks[3], (20,), 10 * 5 * 5),
        "fc1_w": unif(ks[4], (50, 320), 320),   # PyTorch Linear: (out, in)
        "fc1_b": unif(ks[5], (50,), 320),
        "fc2_w": unif(ks[6], (embedding_size, 50), 50),
        "fc2_b": unif(ks[7], (embedding_size,), 50),
    }


def net_forward_ref(params, x):
    y = jax.lax.conv_general_dilated(
        x, params["conv1_w"], (1, 1), "VALID",
        dimension_numbers=("NCHW", "OIHW", "NCHW"))
    y = y + params["conv1_b"].reshape(1, -1, 1, 1)
    y = jax.nn.relu(jax.lax.reduce_window(
        y, -jnp.inf, jax.lax.max, (1, 1, 2, 2), (1, 1, 2, 2), "VALID"))
    y = jax.lax.conv_general_dilated(
        y, params["conv2_w"], (1, 1), "VALID",
        dimension_numbers=("NCHW", "OIHW", "NCHW"))
    y = y + params["conv2_b"].reshape(1, -1, 1, 1)
    y = jax.nn.relu(jax.lax.reduce_window(
        y, -jnp.inf, jax.lax.max, (1, 1, 2, 2), (1, 1, 2, 2), "VALID"))
    y = y.reshape(-1, 320)
    y = jax.nn.relu(y @ params["fc1_w"].T + params["fc1_b"])
    y = y @ params["fc2_w"].T + params["fc2_b"]
    return y


if __name__ == "__main__":
    embedding_size = 32
    batch = 2

    params = init_params(embedding_size, seed=0)
    x = jax.random.normal(jax.random.PRNGKey(0), (batch, 1, 28, 28),
                          dtype=jnp.float32)

    fwd = jax.jit(net_forward, static_argnames=("tb",))
    out = jax.block_until_ready(fwd(params, x))
    assert out.shape == (batch, embedding_size), out.shape

    ref = jax.block_until_ready(net_forward_ref(params, x))
    np.testing.assert_allclose(np.asarray(out), np.asarray(ref),
                               rtol=1e-3, atol=1e-3)

    print("KERNEL_OK")
</pallas_src>

<mosaic_0001>
module attributes {stable_mosaic.version = 11 : i64} {
  func.func @_net_kernel(%arg0: i32, %arg1: memref<8x32x29xf32, #tpu.memory_space<vmem>>, %arg2: memref<5x29x240xf32, #tpu.memory_space<vmem>>, %arg3: memref<5x120x160xf32, #tpu.memory_space<vmem>>, %arg4: memref<1x80xf32, #tpu.memory_space<vmem>>, %arg5: memref<4x80x128xf32, #tpu.memory_space<vmem>>, %arg6: memref<1x128xf32, #tpu.memory_space<vmem>>, %arg7: memref<128x128xf32, #tpu.memory_space<vmem>>, %arg8: memref<1x128xf32, #tpu.memory_space<vmem>>, %arg9: memref<8x128xf32, #tpu.memory_space<vmem>>, %arg10: memref<8x24x240xf32, #tpu.memory_space<vmem>>, %arg11: memref<8x12x120xf32, #tpu.memory_space<vmem>>, %arg12: memref<8x8x160xf32, #tpu.memory_space<vmem>>) attributes {dimension_semantics = [#tpu.dimension_semantics<parallel>], iteration_bounds = array<i64: 1>, scalar_prefetch = 0 : i64, scratch_operands = 3 : i64, tpu.core_type = #tpu.core_type<tc>, window_params = [{transform_indices = @transform_0, window_bounds = array<i64: 8, 32, 29>}, {pipeline_mode = #tpu.pipeline_mode<synchronous>, transform_indices = @transform_1, window_bounds = array<i64: 5, 29, 240>}, {pipeline_mode = #tpu.pipeline_mode<synchronous>, transform_indices = @transform_2, window_bounds = array<i64: 5, 120, 160>}, {pipeline_mode = #tpu.pipeline_mode<synchronous>, transform_indices = @transform_3, window_bounds = array<i64: 1, 80>}, {pipeline_mode = #tpu.pipeline_mode<synchronous>, transform_indices = @transform_4, window_bounds = array<i64: 4, 80, 128>}, {pipeline_mode = #tpu.pipeline_mode<synchronous>, transform_indices = @transform_5, window_bounds = array<i64: 1, 128>}, {pipeline_mode = #tpu.pipeline_mode<synchronous>, transform_indices = @transform_6, window_bounds = array<i64: 128, 128>}, {pipeline_mode = #tpu.pipeline_mode<synchronous>, transform_indices = @transform_7, window_bounds = array<i64: 1, 128>}, {transform_indices = @transform_8, window_bounds = array<i64: 8, 128>}]} {
    %c0 = arith.constant 0 : index
    %c0_0 = arith.constant 0 : index
    %c0_1 = arith.constant 0 : index
    %0 = vector.load %arg1[%c0, %c0_0, %c0_1] : memref<8x32x29xf32, #tpu.memory_space<vmem>>, vector<8x24x29xf32>
    %1 = vector.shape_cast %0 : vector<8x24x29xf32> to vector<192x29xf32>
    %c0_2 = arith.constant 0 : index
    %c0_3 = arith.constant 0 : index
    %c0_4 = arith.constant 0 : index
    %2 = vector.load %arg2[%c0_2, %c0_3, %c0_4] : memref<5x29x240xf32, #tpu.memory_space<vmem>>, vector<1x29x240xf32>
    %3 = vector.shape_cast %2 : vector<1x29x240xf32> to vector<29x240xf32>
    %cst = arith.constant dense<0.000000e+00> : vector<192x240xf32>
    %4 = tpu.matmul %1, %3, %cst {dimension_numbers = #tpu.dot_dimension_numbers<[1], [0], [0], [1], [0, 0, 1, 1], [], []>} : vector<192x29xf32>, vector<29x240xf32>, vector<192x240xf32> -> vector<192x240xf32>
    %5 = vector.shape_cast %4 : vector<192x240xf32> to vector<8x24x240xf32>
    %c0_5 = arith.constant 0 : index
    %c0_6 = arith.constant 0 : index
    %c0_7 = arith.constant 0 : index
    %6 = vector.load %arg10[%c0_5, %c0_6, %c0_7] : memref<8x24x240xf32, #tpu.memory_space<vmem>>, vector<8x24x240xf32>
    tpu.vector_store %arg10[%c0_5, %c0_6, %c0_7], %5 {strides = array<i32>} : memref<8x24x240xf32, #tpu.memory_space<vmem>>, vector<8x24x240xf32>,
    %c0_8 = arith.constant 0 : index
    %c1 = arith.constant 1 : index
    %c0_9 = arith.constant 0 : index
    %7 = vector.load %arg1[%c0_8, %c1, %c0_9] : memref<8x32x29xf32, #tpu.memory_space<vmem>>, vector<8x24x29xf32>
    %8 = vector.shape_cast %7 : vector<8x24x29xf32> to vector<192x29xf32>
    %c1_10 = arith.constant 1 : index
    %c0_11 = arith.constant 0 : index
    %c0_12 = arith.constant 0 : index
    %9 = vector.load %arg2[%c1_10, %c0_11, %c0_12] : memref<5x29x240xf32, #tpu.memory_space<vmem>>, vector<1x29x240xf32>
    %10 = vector.shape_cast %9 : vector<1x29x240xf32> to vector<29x240xf32>
    %cst_13 = arith.constant dense<0.000000e+00> : vector<192x240xf32>
    %11 = tpu.matmul %8, %10, %cst_13 {dimension_numbers = #tpu.dot_dimension_numbers<[1], [0], [0], [1], [0, 0, 1, 1], [], []>} : vector<192x29xf32>, vector<29x240xf32>, vector<192x240xf32> -> vector<192x240xf32>
    %12 = vector.shape_cast %11 : vector<192x240xf32> to vector<8x24x240xf32>
    %c0_14 = arith.constant 0 : index
    %c0_15 = arith.constant 0 : index
    %c0_16 = arith.constant 0 : index
    %13 = vector.load %arg10[%c0_14, %c0_15, %c0_16] : memref<8x24x240xf32, #tpu.memory_space<vmem>>, vector<8x24x240xf32>
    %14 = arith.addf %13, %12 : vector<8x24x240xf32>
    %c0_17 = arith.constant 0 : index
    %c0_18 = arith.constant 0 : index
    %c0_19 = arith.constant 0 : index
    %15 = vector.load %arg10[%c0_17, %c0_18, %c0_19] : memref<8x24x240xf32, #tpu.memory_space<vmem>>, vector<8x24x240xf32>
    tpu.vector_store %arg10[%c0_17, %c0_18, %c0_19], %14 {strides = array<i32>} : memref<8x24x240xf32, #tpu.memory_space<vmem>>, vector<8x24x240xf32>,
    %c0_20 = arith.constant 0 : index
    %c2 = arith.constant 2 : index
    %c0_21 = arith.constant 0 : index
    %16 = vector.load %arg1[%c0_20, %c2, %c0_21] : memref<8x32x29xf32, #tpu.memory_space<vmem>>, vector<8x24x29xf32>
    %17 = vector.shape_cast %16 : vector<8x24x29xf32> to vector<192x29xf32>
    %c2_22 = arith.constant 2 : index
    %c0_23 = arith.constant 0 : index
    %c0_24 = arith.constant 0 : index
    %18 = vector.load %arg2[%c2_22, %c0_23, %c0_24] : memref<5x29x240xf32, #tpu.memory_space<vmem>>, vector<1x29x240xf32>
    %19 = vector.shape_cast %18 : vector<1x29x240xf32> to vector<29x240xf32>
    %cst_25 = arith.constant dense<0.000000e+00> : vector<192x240xf32>
    %20 = tpu.matmul %17, %19, %cst_25 {dimension_numbers = #tpu.dot_dimension_numbers<[1], [0], [0], [1], [0, 0, 1, 1], [], []>} : vector<192x29xf32>, vector<29x240xf32>, vector<192x240xf32> -> vector<192x240xf32>
    %21 = vector.shape_cast %20 : vector<192x240xf32> to vector<8x24x240xf32>
    %c0_26 = arith.constant 0 : index
    %c0_27 = arith.constant 0 : index
    %c0_28 = arith.constant 0 : index
    %22 = vector.load %arg10[%c0_26, %c0_27, %c0_28] : memref<8x24x240xf32, #tpu.memory_space<vmem>>, vector<8x24x240xf32>
    %23 = arith.addf %22, %21 : vector<8x24x240xf32>
    %c0_29 = arith.constant 0 : index
    %c0_30 = arith.constant 0 : index
    %c0_31 = arith.constant 0 : index
    %24 = vector.load %arg10[%c0_29, %c0_30, %c0_31] : memref<8x24x240xf32, #tpu.memory_space<vmem>>, vector<8x24x240xf32>
    tpu.vector_store %arg10[%c0_29, %c0_30, %c0_31], %23 {strides = array<i32>} : memref<8x24x240xf32, #tpu.memory_space<vmem>>, vector<8x24x240xf32>,
    %c0_32 = arith.constant 0 : index
    %c3 = arith.constant 3 : index
    %c0_33 = arith.constant 0 : index
    %25 = vector.load %arg1[%c0_32, %c3, %c0_33] : memref<8x32x29xf32, #tpu.memory_space<vmem>>, vector<8x24x29xf32>
    %26 = vector.shape_cast %25 : vector<8x24x29xf32> to vector<192x29xf32>
    %c3_34 = arith.constant 3 : index
    %c0_35 = arith.constant 0 : index
    %c0_36 = arith.constant 0 : index
    %27 = vector.load %arg2[%c3_34, %c0_35, %c0_36] : memref<5x29x240xf32, #tpu.memory_space<vmem>>, vector<1x29x240xf32>
    %28 = vector.shape_cast %27 : vector<1x29x240xf32> to vector<29x240xf32>
    %cst_37 = arith.constant dense<0.000000e+00> : vector<192x240xf32>
    %29 = tpu.matmul %26, %28, %cst_37 {dimension_numbers = #tpu.dot_dimension_numbers<[1], [0], [0], [1], [0, 0, 1, 1], [], []>} : vector<192x29xf32>, vector<29x240xf32>, vector<192x240xf32> -> vector<192x240xf32>
    %30 = vector.shape_cast %29 : vector<192x240xf32> to vector<8x24x240xf32>
    %c0_38 = arith.constant 0 : index
    %c0_39 = arith.constant 0 : index
    %c0_40 = arith.constant 0 : index
    %31 = vector.load %arg10[%c0_38, %c0_39, %c0_40] : memref<8x24x240xf32, #tpu.memory_space<vmem>>, vector<8x24x240xf32>
    %32 = arith.addf %31, %30 : vector<8x24x240xf32>
    %c0_41 = arith.constant 0 : index
    %c0_42 = arith.constant 0 : index
    %c0_43 = arith.constant 0 : index
    %33 = vector.load %arg10[%c0_41, %c0_42, %c0_43] : memref<8x24x240xf32, #tpu.memory_space<vmem>>, vector<8x24x240xf32>
    tpu.vector_store %arg10[%c0_41, %c0_42, %c0_43], %32 {strides = array<i32>} : memref<8x24x240xf32, #tpu.memory_space<vmem>>, vector<8x24x240xf32>,
    %c0_44 = arith.constant 0 : index
    %c4 = arith.constant 4 : index
    %c0_45 = arith.constant 0 : index
    %34 = vector.load %arg1[%c0_44, %c4, %c0_45] : memref<8x32x29xf32, #tpu.memory_space<vmem>>, vector<8x24x29xf32>
    %35 = vector.shape_cast %34 : vector<8x24x29xf32> to vector<192x29xf32>
    %c4_46 = arith.constant 4 : index
    %c0_47 = arith.constant 0 : index
    %c0_48 = arith.constant 0 : index
    %36 = vector.load %arg2[%c4_46, %c0_47, %c0_48] : memref<5x29x240xf32, #tpu.memory_space<vmem>>, vector<1x29x240xf32>
    %37 = vector.shape_cast %36 : vector<1x29x240xf32> to vector<29x240xf32>
    %cst_49 = arith.constant dense<0.000000e+00> : vector<192x240xf32>
    %38 = tpu.matmul %35, %37, %cst_49 {dimension_numbers = #tpu.dot_dimension_numbers<[1], [0], [0], [1], [0, 0, 1, 1], [], []>} : vector<192x29xf32>, vector<29x240xf32>, vector<192x240xf32> -> vector<192x240xf32>
    %39 = vector.shape_cast %38 : vector<192x240xf32> to vector<8x24x240xf32>
    %c0_50 = arith.constant 0 : index
    %c0_51 = arith.constant 0 : index
    %c0_52 = arith.constant 0 : index
    %40 = vector.load %arg10[%c0_50, %c0_51, %c0_52] : memref<8x24x240xf32, #tpu.memory_space<vmem>>, vector<8x24x240xf32>
    %41 = arith.addf %40, %39 : vector<8x24x240xf32>
    %c0_53 = arith.constant 0 : index
    %c0_54 = arith.constant 0 : index
    %c0_55 = arith.constant 0 : index
    %42 = vector.load %arg10[%c0_53, %c0_54, %c0_55] : memref<8x24x240xf32, #tpu.memory_space<vmem>>, vector<8x24x240xf32>
    tpu.vector_store %arg10[%c0_53, %c0_54, %c0_55], %41 {strides = array<i32>} : memref<8x24x240xf32, #tpu.memory_space<vmem>>, vector<8x24x240xf32>,
    %c0_56 = arith.constant 0 : index
    %c0_57 = arith.constant 0 : index
    %c0_58 = arith.constant 0 : index
    %43 = vector.load %arg10[%c0_56, %c0_57, %c0_58] : memref<8x24x240xf32, #tpu.memory_space<vmem>>, vector<8x1x120xf32>
    %44 = vector.shape_cast %43 : vector<8x1x120xf32> to vector<8x120xf32>
    %c0_59 = arith.constant 0 : index
    %c0_60 = arith.constant 0 : index
    %c120 = arith.constant 120 : index
    %45 = vector.load %arg10[%c0_59, %c0_60, %c120] : memref<8x24x240xf32, #tpu.memory_space<vmem>>, vector<8x1x120xf32>
    %46 = vector.shape_cast %45 : vector<8x1x120xf32> to vector<8x120xf32>
    %47 = arith.maximumf %44, %46 : vector<8x120xf32>
    %c0_61 = arith.constant 0 : index
    %c1_62 = arith.constant 1 : index
    %c0_63 = arith.constant 0 : index
    %48 = vector.load %arg10[%c0_61, %c1_62, %c0_63] : memref<8x24x240xf32, #tpu.memory_space<vmem>>, vector<8x1x120xf32>
    %49 = vector.shape_cast %48 : vector<8x1x120xf32> to vector<8x120xf32>
    %c0_64 = arith.constant 0 : index
    %c1_65 = arith.constant 1 : index
    %c120_66 = arith.constant 120 : index
    %50 = vector.load %arg10[%c0_64, %c1_65, %c120_66] : memref<8x24x240xf32, #tpu.memory_space<vmem>>, vector<8x1x120xf32>
    %51 = vector.shape_cast %50 : vector<8x1x120xf32> to vector<8x120xf32>
    %52 = arith.maximumf %49, %51 : vector<8x120xf32>
    %53 = arith.maximumf %47, %52 : vector<8x120xf32>
    %cst_67 = arith.constant 0.000000e+00 : f32
    %54 = vector.broadcast %cst_67 : f32 to vector<8x120xf32>
    %55 = arith.maximumf %53, %54 : vector<8x120xf32>
    %c0_68 = arith.constant 0 : index
    %c0_69 = arith.constant 0 : index
    %c0_70 = arith.constant 0 : index
    %56 = vector.load %arg11[%c0_68, %c0_69, %c0_70] : memref<8x12x120xf32, #tpu.memory_space<vmem>>, vector<8x1x120xf32>
    %57 = vector.shape_cast %56 : vector<8x1x120xf32> to vector<8x120xf32>
    %58 = vector.shape_cast %55 : vector<8x120xf32> to vector<8x1x120xf32>
    tpu.vector_store %arg11[%c0_68, %c0_69, %c0_70], %58 {strides = array<i32>} : memref<8x12x120xf32, #tpu.memory_space<vmem>>, vector<8x1x120xf32>,
    %c0_71 = arith.constant 0 : index
    %c2_72 = arith.constant 2 : index
    %c0_73 = arith.constant 0 : index
    %59 = vector.load %arg10[%c0_71, %c2_72, %c0_73] : memref<8x24x240xf32, #tpu.memory_space<vmem>>, vector<8x1x120xf32>
    %60 = vector.shape_cast %59 : vector<8x1x120xf32> to vector<8x120xf32>
    %c0_74 = arith.constant 0 : index
    %c2_75 = arith.constant 2 : index
    %c120_76 = arith.constant 120 : index
    %61 = vector.load %arg10[%c0_74, %c2_75, %c120_76] : memref<8x24x240xf32, #tpu.memory_space<vmem>>, vector<8x1x120xf32>
    %62 = vector.shape_cast %61 : vector<8x1x120xf32> to vector<8x120xf32>
    %63 = arith.maximumf %60, %62 : vector<8x120xf32>
    %c0_77 = arith.constant 0 : index
    %c3_78 = arith.constant 3 : index
    %c0_79 = arith.constant 0 : index
    %64 = vector.load %arg10[%c0_77, %c3_78, %c0_79] : memref<8x24x240xf32, #tpu.memory_space<vmem>>, vector<8x1x120xf32>
    %65 = vector.shape_cast %64 : vector<8x1x120xf32> to vector<8x120xf32>
    %c0_80 = arith.constant 0 : index
    %c3_81 = arith.constant 3 : index
    %c120_82 = arith.constant 120 : index
    %66 = vector.load %arg10[%c0_80, %c3_81, %c120_82] : memref<8x24x240xf32, #tpu.memory_space<vmem>>, vector<8x1x120xf32>
    %67 = vector.shape_cast %66 : vector<8x1x120xf32> to vector<8x120xf32>
    %68 = arith.maximumf %65, %67 : vector<8x120xf32>
    %69 = arith.maximumf %63, %68 : vector<8x120xf32>
    %cst_83 = arith.constant 0.000000e+00 : f32
    %70 = vector.broadcast %cst_83 : f32 to vector<8x120xf32>
    %71 = arith.maximumf %69, %70 : vector<8x120xf32>
    %c0_84 = arith.constant 0 : index
    %c1_85 = arith.constant 1 : index
    %c0_86 = arith.constant 0 : index
    %72 = vector.load %arg11[%c0_84, %c1_85, %c0_86] : memref<8x12x120xf32, #tpu.memory_space<vmem>>, vector<8x1x120xf32>
    %73 = vector.shape_cast %72 : vector<8x1x120xf32> to vector<8x120xf32>
    %74 = vector.shape_cast %71 : vector<8x120xf32> to vector<8x1x120xf32>
    tpu.vector_store %arg11[%c0_84, %c1_85, %c0_86], %74 {strides = array<i32>} : memref<8x12x120xf32, #tpu.memory_space<vmem>>, vector<8x1x120xf32>,
    %c0_87 = arith.constant 0 : index
    %c4_88 = arith.constant 4 : index
    %c0_89 = arith.constant 0 : index
    %75 = vector.load %arg10[%c0_87, %c4_88, %c0_89] : memref<8x24x240xf32, #tpu.memory_space<vmem>>, vector<8x1x120xf32>
    %76 = vector.shape_cast %75 : vector<8x1x120xf32> to vector<8x120xf32>
    %c0_90 = arith.constant 0 : index
    %c4_91 = arith.constant 4 : index
    %c120_92 = arith.constant 120 : index
    %77 = vector.load %arg10[%c0_90, %c4_91, %c120_92] : memref<8x24x240xf32, #tpu.memory_space<vmem>>, vector<8x1x120xf32>
    %78 = vector.shape_cast %77 : vector<8x1x120xf32> to vector<8x120xf32>
    %79 = arith.maximumf %76, %78 : vector<8x120xf32>
    %c0_93 = arith.constant 0 : index
    %c5 = arith.constant 5 : index
    %c0_94 = arith.constant 0 : index
    %80 = vector.load %arg10[%c0_93, %c5, %c0_94] : memref<8x24x240xf32, #tpu.memory_space<vmem>>, vector<8x1x120xf32>
    %81 = vector.shape_cast %80 : vector<8x1x120xf32> to vector<8x120xf32>
    %c0_95 = arith.constant 0 : index
    %c5_96 = arith.constant 5 : index
    %c120_97 = arith.constant 120 : index
    %82 = vector.load %arg10[%c0_95, %c5_96, %c120_97] : memref<8x24x240xf32, #tpu.memory_space<vmem>>, vector<8x1x120xf32>
    %83 = vector.shape_cast %82 : vector<8x1x120xf32> to vector<8x120xf32>
    %84 = arith.maximumf %81, %83 : vector<8x120xf32>
    %85 = arith.maximumf %79, %84 : vector<8x120xf32>
    %cst_98 = arith.constant 0.000000e+00 : f32
    %86 = vector.broadcast %cst_98 : f32 to vector<8x120xf32>
    %87 = arith.maximumf %85, %86 : vector<8x120xf32>
    %c0_99 = arith.constant 0 : index
    %c2_100 = arith.constant 2 : index
    %c0_101 = arith.constant 0 : index
    %88 = vector.load %arg11[%c0_99, %c2_100, %c0_101] : memref<8x12x120xf32, #tpu.memory_space<vmem>>, vector<8x1x120xf32>
    %89 = vector.shape_cast %88 : vector<8x1x120xf32> to vector<8x120xf32>
    %90 = vector.shape_cast %87 : vector<8x120xf32> to vector<8x1x120xf32>
    tpu.vector_store %arg11[%c0_99, %c2_100, %c0_101], %90 {strides = array<i32>} : memref<8x12x120xf32, #tpu.memory_space<vmem>>, vector<8x1x120xf32>,
    %c0_102 = arith.constant 0 : index
    %c6 = arith.constant 6 : index
    %c0_103 = arith.constant 0 : index
    %91 = vector.load %arg10[%c0_102, %c6, %c0_103] : memref<8x24x240xf32, #tpu.memory_space<vmem>>, vector<8x1x120xf32>
    %92 = vector.shape_cast %91 : vector<8x1x120xf32> to vector<8x120xf32>
    %c0_104 = arith.constant 0 : index
    %c6_105 = arith.constant 6 : index
    %c120_106 = arith.constant 120 : index
    %93 = vector.load %arg10[%c0_104, %c6_105, %c120_106] : memref<8x24x240xf32, #tpu.memory_space<vmem>>, vector<8x1x120xf32>
    %94 = vector.shape_cast %93 : vector<8x1x120xf32> to vector<8x120xf32>
    %95 = arith.maximumf %92, %94 : vector<8x120xf32>
    %c0_107 = arith.constant 0 : index
    %c7 = arith.constant 7 : index
    %c0_108 = arith.constant 0 : index
    %96 = vector.load %arg10[%c0_107, %c7, %c0_108] : memref<8x24x240xf32, #tpu.memory_space<vmem>>, vector<8x1x120xf32>
    %97 = vector.shape_cast %96 : vector<8x1x120xf32> to vector<8x120xf32>
    %c0_109 = arith.constant 0 : index
    %c7_110 = arith.constant 7 : index
    %c120_111 = arith.constant 120 : index
    %98 = vector.load %arg10[%c0_109, %c7_110, %c120_111] : memref<8x24x240xf32, #tpu.memory_space<vmem>>, vector<8x1x120xf32>
    %99 = vector.shape_cast %98 : vector<8x1x120xf32> to vector<8x120xf32>
    %100 = arith.maximumf %97, %99 : vector<8x120xf32>
    %101 = arith.maximumf %95, %100 : vector<8x120xf32>
    %cst_112 = arith.constant 0.000000e+00 : f32
    %102 = vector.broadcast %cst_112 : f32 to vector<8x120xf32>
    %103 = arith.maximumf %101, %102 : vector<8x120xf32>
    %c0_113 = arith.constant 0 : index
    %c3_114 = arith.constant 3 : index
    %c0_115 = arith.constant 0 : index
    %104 = vector.load %arg11[%c0_113, %c3_114, %c0_115] : memref<8x12x120xf32, #tpu.memory_space<vmem>>, vector<8x1x120xf32>
    %105 = vector.shape_cast %104 : vector<8x1x120xf32> to vector<8x120xf32>
    %106 = vector.shape_cast %103 : vector<8x120xf32> to vector<8x1x120xf32>
    tpu.vector_store %arg11[%c0_113, %c3_114, %c0_115], %106 {strides = array<i32>} : memref<8x12x120xf32, #tpu.memory_space<vmem>>, vector<8x1x120xf32>,
    %c0_116 = arith.constant 0 : index
    %c8 = arith.constant 8 : index
    %c0_117 = arith.constant 0 : index
    %107 = vector.load %arg10[%c0_116, %c8, %c0_117] : memref<8x24x240xf32, #tpu.memory_space<vmem>>, vector<8x1x120xf32>
    %108 = vector.shape_cast %107 : vector<8x1x120xf32> to vector<8x120xf32>
    %c0_118 = arith.constant 0 : index
    %c8_119 = arith.constant 8 : index
    %c120_120 = arith.constant 120 : index
    %109 = vector.load %arg10[%c0_118, %c8_119, %c120_120] : memref<8x24x240xf32, #tpu.memory_space<vmem>>, vector<8x1x120xf32>
    %110 = vector.shape_cast %109 : vector<8x1x120xf32> to vector<8x120xf32>
    %111 = arith.maximumf %108, %110 : vector<8x120xf32>
    %c0_121 = arith.constant 0 : index
    %c9 = arith.constant 9 : index
    %c0_122 = arith.constant 0 : index
    %112 = vector.load %arg10[%c0_121, %c9, %c0_122] : memref<8x24x240xf32, #tpu.memory_space<vmem>>, vector<8x1x120xf32>
    %113 = vector.shape_cast %112 : vector<8x1x120xf32> to vector<8x120xf32>
    %c0_123 = arith.constant 0 : index
    %c9_124 = arith.constant 9 : index
    %c120_125 = arith.constant 120 : index
    %114 = vector.load %arg10[%c0_123, %c9_124, %c120_125] : memref<8x24x240xf32, #tpu.memory_space<vmem>>, vector<8x1x120xf32>
    %115 = vector.shape_cast %114 : vector<8x1x120xf32> to vector<8x120xf32>
    %116 = arith.maximumf %113, %115 : vector<8x120xf32>
    %117 = arith.maximumf %111, %116 : vector<8x120xf32>
    %cst_126 = arith.constant 0.000000e+00 : f32
    %118 = vector.broadcast %cst_126 : f32 to vector<8x120xf32>
    %119 = arith.maximumf %117, %118 : vector<8x120xf32>
    %c0_127 = arith.constant 0 : index
    %c4_128 = arith.constant 4 : index
    %c0_129 = arith.constant 0 : index
    %120 = vector.load %arg11[%c0_127, %c4_128, %c0_129] : memref<8x12x120xf32, #tpu.memory_space<vmem>>, vector<8x1x120xf32>
    %121 = vector.shape_cast %120 : vector<8x1x120xf32> to vector<8x120xf32>
    %122 = vector.shape_cast %119 : vector<8x120xf32> to vector<8x1x120xf32>
    tpu.vector_store %arg11[%c0_127, %c4_128, %c0_129], %122 {strides = array<i32>} : memref<8x12x120xf32, #tpu.memory_space<vmem>>, vector<8x1x120xf32>,
    %c0_130 = arith.constant 0 : index
    %c10 = arith.constant 10 : index
    %c0_131 = arith.constant 0 : index
    %123 = vector.load %arg10[%c0_130, %c10, %c0_131] : memref<8x24x240xf32, #tpu.memory_space<vmem>>, vector<8x1x120xf32>
    %124 = vector.shape_cast %123 : vector<8x1x120xf32> to vector<8x120xf32>
    %c0_132 = arith.constant 0 : index
    %c10_133 = arith.constant 10 : index
    %c120_134 = arith.constant 120 : index
    %125 = vector.load %arg10[%c0_132, %c10_133, %c120_134] : memref<8x24x240xf32, #tpu.memory_space<vmem>>, vector<8x1x120xf32>
    %126 = vector.shape_cast %125 : vector<8x1x120xf32> to vector<8x120xf32>
    %127 = arith.maximumf %124, %126 : vector<8x120xf32>
    %c0_135 = arith.constant 0 : index
    %c11 = arith.constant 11 : index
    %c0_136 = arith.constant 0 : index
    %128 = vector.load %arg10[%c0_135, %c11, %c0_136] : memref<8x24x240xf32, #tpu.memory_space<vmem>>, vector<8x1x120xf32>
    %129 = vector.shape_cast %128 : vector<8x1x120xf32> to vector<8x120xf32>
    %c0_137 = arith.constant 0 : index
    %c11_138 = arith.constant 11 : index
    %c120_139 = arith.constant 120 : index
    %130 = vector.load %arg10[%c0_137, %c11_138, %c120_139] : memref<8x24x240xf32, #tpu.memory_space<vmem>>, vector<8x1x120xf32>
    %131 = vector.shape_cast %130 : vector<8x1x120xf32> to vector<8x120xf32>
    %132 = arith.maximumf %129, %131 : vector<8x120xf32>
    %133 = arith.maximumf %127, %132 : vector<8x120xf32>
    %cst_140 = arith.constant 0.000000e+00 : f32
    %134 = vector.broadcast %cst_140 : f32 to vector<8x120xf32>
    %135 = arith.maximumf %133, %134 : vector<8x120xf32>
    %c0_141 = arith.constant 0 : index
    %c5_142 = arith.constant 5 : index
    %c0_143 = arith.constant 0 : index
    %136 = vector.load %arg11[%c0_141, %c5_142, %c0_143] : memref<8x12x120xf32, #tpu.memory_space<vmem>>, vector<8x1x120xf32>
    %137 = vector.shape_cast %136 : vector<8x1x120xf32> to vector<8x120xf32>
    %138 = vector.shape_cast %135 : vector<8x120xf32> to vector<8x1x120xf32>
    tpu.vector_store %arg11[%c0_141, %c5_142, %c0_143], %138 {strides = array<i32>} : memref<8x12x120xf32, #tpu.memory_space<vmem>>, vector<8x1x120xf32>,
    %c0_144 = arith.constant 0 : index
    %c12 = arith.constant 12 : index
    %c0_145 = arith.constant 0 : index
    %139 = vector.load %arg10[%c0_144, %c12, %c0_145] : memref<8x24x240xf32, #tpu.memory_space<vmem>>, vector<8x1x120xf32>
    %140 = vector.shape_cast %139 : vector<8x1x120xf32> to vector<8x120xf32>
    %c0_146 = arith.constant 0 : index
    %c12_147 = arith.constant 12 : index
    %c120_148 = arith.constant 120 : index
    %141 = vector.load %arg10[%c0_146, %c12_147, %c120_148] : memref<8x24x240xf32, #tpu.memory_space<vmem>>, vector<8x1x120xf32>
    %142 = vector.shape_cast %141 : vector<8x1x120xf32> to vector<8x120xf32>
    %143 = arith.maximumf %140, %142 : vector<8x120xf32>
    %c0_149 = arith.constant 0 : index
    %c13 = arith.constant 13 : index
    %c0_150 = arith.constant 0 : index
    %144 = vector.load %arg10[%c0_149, %c13, %c0_150] : memref<8x24x240xf32, #tpu.memory_space<vmem>>, vector<8x1x120xf32>
    %145 = vector.shape_cast %144 : vector<8x1x120xf32> to vector<8x120xf32>
    %c0_151 = arith.constant 0 : index
    %c13_152 = arith.constant 13 : index
    %c120_153 = arith.constant 120 : index
    %146 = vector.load %arg10[%c0_151, %c13_152, %c120_153] : memref<8x24x240xf32, #tpu.memory_space<vmem>>, vector<8x1x120xf32>
    %147 = vector.shape_cast %146 : vector<8x1x120xf32> to vector<8x120xf32>
    %148 = arith.maximumf %145, %147 : vector<8x120xf32>
    %149 = arith.maximumf %143, %148 : vector<8x120xf32>
    %cst_154 = arith.constant 0.000000e+00 : f32
    %150 = vector.broadcast %cst_154 : f32 to vector<8x120xf32>
    %151 = arith.maximumf %149, %150 : vector<8x120xf32>
    %c0_155 = arith.constant 0 : index
    %c6_156 = arith.constant 6 : index
    %c0_157 = arith.constant 0 : index
    %152 = vector.load %arg11[%c0_155, %c6_156, %c0_157] : memref<8x12x120xf32, #tpu.memory_space<vmem>>, vector<8x1x120xf32>
    %153 = vector.shape_cast %152 : vector<8x1x120xf32> to vector<8x120xf32>
    %154 = vector.shape_cast %151 : vector<8x120xf32> to vector<8x1x120xf32>
    tpu.vector_store %arg11[%c0_155, %c6_156, %c0_157], %154 {strides = array<i32>} : memref<8x12x120xf32, #tpu.memory_space<vmem>>, vector<8x1x120xf32>,
    %c0_158 = arith.constant 0 : index
    %c14 = arith.constant 14 : index
    %c0_159 = arith.constant 0 : index
    %155 = vector.load %arg10[%c0_158, %c14, %c0_159] : memref<8x24x240xf32, #tpu.memory_space<vmem>>, vector<8x1x120xf32>
    %156 = vector.shape_cast %155 : vector<8x1x120xf32> to vector<8x120xf32>
    %c0_160 = arith.constant 0 : index
    %c14_161 = arith.constant 14 : index
    %c120_162 = arith.constant 120 : index
    %157 = vector.load %arg10[%c0_160, %c14_161, %c120_162] : memref<8x24x240xf32, #tpu.memory_space<vmem>>, vector<8x1x120xf32>
    %158 = vector.shape_cast %157 : vector<8x1x120xf32> to vector<8x120xf32>
    %159 = arith.maximumf %156, %158 : vector<8x120xf32>
    %c0_163 = arith.constant 0 : index
    %c15 = arith.constant 15 : index
    %c0_164 = arith.constant 0 : index
    %160 = vector.load %arg10[%c0_163, %c15, %c0_164] : memref<8x24x240xf32, #tpu.memory_space<vmem>>, vector<8x1x120xf32>
    %161 = vector.shape_cast %160 : vector<8x1x120xf32> to vector<8x120xf32>
    %c0_165 = arith.constant 0 : index
    %c15_166 = arith.constant 15 : index
    %c120_167 = arith.constant 120 : index
    %162 = vector.load %arg10[%c0_165, %c15_166, %c120_167] : memref<8x24x240xf32, #tpu.memory_space<vmem>>, vector<8x1x120xf32>
    %163 = vector.shape_cast %162 : vector<8x1x120xf32> to vector<8x120xf32>
    %164 = arith.maximumf %161, %163 : vector<8x120xf32>
    %165 = arith.maximumf %159, %164 : vector<8x120xf32>
    %cst_168 = arith.constant 0.000000e+00 : f32
    %166 = vector.broadcast %cst_168 : f32 to vector<8x120xf32>
    %167 = arith.maximumf %165, %166 : vector<8x120xf32>
    %c0_169 = arith.constant 0 : index
    %c7_170 = arith.constant 7 : index
    %c0_171 = arith.constant 0 : index
    %168 = vector.load %arg11[%c0_169, %c7_170, %c0_171] : memref<8x12x120xf32, #tpu.memory_space<vmem>>, vector<8x1x120xf32>
    %169 = vector.shape_cast %168 : vector<8x1x120xf32> to vector<8x120xf32>
    %170 = vector.shape_cast %167 : vector<8x120xf32> to vector<8x1x120xf32>
    tpu.vector_store %arg11[%c0_169, %c7_170, %c0_171], %170 {strides = array<i32>} : memref<8x12x120xf32, #tpu.memory_space<vmem>>, vector<8x1x120xf32>,
    %c0_172 = arith.constant 0 : index
    %c16 = arith.constant 16 : index
    %c0_173 = arith.constant 0 : index
    %171 = vector.load %arg10[%c0_172, %c16, %c0_173] : memref<8x24x240xf32, #tpu.memory_space<vmem>>, vector<8x1x120xf32>
    %172 = vector.shape_cast %171 : vector<8x1x120xf32> to vector<8x120xf32>
    %c0_174 = arith.constant 0 : index
    %c16_175 = arith.constant 16 : index
    %c120_176 = arith.constant 120 : index
    %173 = vector.load %arg10[%c0_174, %c16_175, %c120_176] : memref<8x24x240xf32, #tpu.memory_space<vmem>>, vector<8x1x120xf32>
    %174 = vector.shape_cast %173 : vector<8x1x120xf32> to vector<8x120xf32>
    %175 = arith.maximumf %172, %174 : vector<8x120xf32>
    %c0_177 = arith.constant 0 : index
    %c17 = arith.constant 17 : index
    %c0_178 = arith.constant 0 : index
    %176 = vector.load %arg10[%c0_177, %c17, %c0_178] : memref<8x24x240xf32, #tpu.memory_space<vmem>>, vector<8x1x120xf32>
    %177 = vector.shape_cast %176 : vector<8x1x120xf32> to vector<8x120xf32>
    %c0_179 = arith.constant 0 : index
    %c17_180 = arith.constant 17 : index
    %c120_181 = arith.constant 120 : index
    %178 = vector.load %arg10[%c0_179, %c17_180, %c120_181] : memref<8x24x240xf32, #tpu.memory_space<vmem>>, vector<8x1x120xf32>
    %179 = vector.shape_cast %178 : vector<8x1x120xf32> to vector<8x120xf32>
    %180 = arith.maximumf %177, %179 : vector<8x120xf32>
    %181 = arith.maximumf %175, %180 : vector<8x120xf32>
    %cst_182 = arith.constant 0.000000e+00 : f32
    %182 = vector.broadcast %cst_182 : f32 to vector<8x120xf32>
    %183 = arith.maximumf %181, %182 : vector<8x120xf32>
    %c0_183 = arith.constant 0 : index
    %c8_184 = arith.constant 8 : index
    %c0_185 = arith.constant 0 : index
    %184 = vector.load %arg11[%c0_183, %c8_184, %c0_185] : memref<8x12x120xf32, #tpu.memory_space<vmem>>, vector<8x1x120xf32>
    %185 = vector.shape_cast %184 : vector<8x1x120xf32> to vector<8x120xf32>
    %186 = vector.shape_cast %183 : vector<8x120xf32> to vector<8x1x120xf32>
    tpu.vector_store %arg11[%c0_183, %c8_184, %c0_185], %186 {strides = array<i32>} : memref<8x12x120xf32, #tpu.memory_space<vmem>>, vector<8x1x120xf32>,
    %c0_186 = arith.constant 0 : index
    %c18 = arith.constant 18 : index
    %c0_187 = arith.constant 0 : index
    %187 = vector.load %arg10[%c0_186, %c18, %c0_187] : memref<8x24x240xf32, #tpu.memory_space<vmem>>, vector<8x1x120xf32>
    %188 = vector.shape_cast %187 : vector<8x1x120xf32> to vector<8x120xf32>
    %c0_188 = arith.constant 0 : index
    %c18_189 = arith.constant 18 : index
    %c120_190 = arith.constant 120 : index
    %189 = vector.load %arg10[%c0_188, %c18_189, %c120_190] : memref<8x24x240xf32, #tpu.memory_space<vmem>>, vector<8x1x120xf32>
    %190 = vector.shape_cast %189 : vector<8x1x120xf32> to vector<8x120xf32>
    %191 = arith.maximumf %188, %190 : vector<8x120xf32>
    %c0_191 = arith.constant 0 : index
    %c19 = arith.constant 19 : index
    %c0_192 = arith.constant 0 : index
    %192 = vector.load %arg10[%c0_191, %c19, %c0_192] : memref<8x24x240xf32, #tpu.memory_space<vmem>>, vector<8x1x120xf32>
    %193 = vector.shape_cast %192 : vector<8x1x120xf32> to vector<8x120xf32>
    %c0_193 = arith.constant 0 : index
    %c19_194 = arith.constant 19 : index
    %c120_195 = arith.constant 120 : index
    %194 = vector.load %arg10[%c0_193, %c19_194, %c120_195] : memref<8x24x240xf32, #tpu.memory_space<vmem>>, vector<8x1x120xf32>
    %195 = vector.shape_cast %194 : vector<8x1x120xf32> to vector<8x120xf32>
    %196 = arith.maximumf %193, %195 : vector<8x120xf32>
    %197 = arith.maximumf %191, %196 : vector<8x120xf32>
    %cst_196 = arith.constant 0.000000e+00 : f32
    %198 = vector.broadcast %cst_196 : f32 to vector<8x120xf32>
    %199 = arith.maximumf %197, %198 : vector<8x120xf32>
    %c0_197 = arith.constant 0 : index
    %c9_198 = arith.constant 9 : index
    %c0_199 = arith.constant 0 : index
    %200 = vector.load %arg11[%c0_197, %c9_198, %c0_199] : memref<8x12x120xf32, #tpu.memory_space<vmem>>, vector<8x1x120xf32>
    %201 = vector.shape_cast %200 : vector<8x1x120xf32> to vector<8x120xf32>
    %202 = vector.shape_cast %199 : vector<8x120xf32> to vector<8x1x120xf32>
    tpu.vector_store %arg11[%c0_197, %c9_198, %c0_199], %202 {strides = array<i32>} : memref<8x12x120xf32, #tpu.memory_space<vmem>>, vector<8x1x120xf32>,
    %c0_200 = arith.constant 0 : index
    %c20 = arith.constant 20 : index
    %c0_201 = arith.constant 0 : index
    %203 = vector.load %arg10[%c0_200, %c20, %c0_201] : memref<8x24x240xf32, #tpu.memory_space<vmem>>, vector<8x1x120xf32>
    %204 = vector.shape_cast %203 : vector<8x1x120xf32> to vector<8x120xf32>
    %c0_202 = arith.constant 0 : index
    %c20_203 = arith.constant 20 : index
    %c120_204 = arith.constant 120 : index
    %205 = vector.load %arg10[%c0_202, %c20_203, %c120_204] : memref<8x24x240xf32, #tpu.memory_space<vmem>>, vector<8x1x120xf32>
    %206 = vector.shape_cast %205 : vector<8x1x120xf32> to vector<8x120xf32>
    %207 = arith.maximumf %204, %206 : vector<8x120xf32>
    %c0_205 = arith.constant 0 : index
    %c21 = arith.constant 21 : index
    %c0_206 = arith.constant 0 : index
    %208 = vector.load %arg10[%c0_205, %c21, %c0_206] : memref<8x24x240xf32, #tpu.memory_space<vmem>>, vector<8x1x120xf32>
    %209 = vector.shape_cast %208 : vector<8x1x120xf32> to vector<8x120xf32>
    %c0_207 = arith.constant 0 : index
    %c21_208 = arith.constant 21 : index
    %c120_209 = arith.constant 120 : index
    %210 = vector.load %arg10[%c0_207, %c21_208, %c120_209] : memref<8x24x240xf32, #tpu.memory_space<vmem>>, vector<8x1x120xf32>
    %211 = vector.shape_cast %210 : vector<8x1x120xf32> to vector<8x120xf32>
    %212 = arith.maximumf %209, %211 : vector<8x120xf32>
    %213 = arith.maximumf %207, %212 : vector<8x120xf32>
    %cst_210 = arith.constant 0.000000e+00 : f32
    %214 = vector.broadcast %cst_210 : f32 to vector<8x120xf32>
    %215 = arith.maximumf %213, %214 : vector<8x120xf32>
    %c0_211 = arith.constant 0 : index
    %c10_212 = arith.constant 10 : index
    %c0_213 = arith.constant 0 : index
    %216 = vector.load %arg11[%c0_211, %c10_212, %c0_213] : memref<8x12x120xf32, #tpu.memory_space<vmem>>, vector<8x1x120xf32>
    %217 = vector.shape_cast %216 : vector<8x1x120xf32> to vector<8x120xf32>
    %218 = vector.shape_cast %215 : vector<8x120xf32> to vector<8x1x120xf32>
    tpu.vector_store %arg11[%c0_211, %c10_212, %c0_213], %218 {strides = array<i32>} : memref<8x12x120xf32, #tpu.memory_space<vmem>>, vector<8x1x120xf32>,
    %c0_214 = arith.constant 0 : index
    %c22 = arith.constant 22 : index
    %c0_215 = arith.constant 0 : index
    %219 = vector.load %arg10[%c0_214, %c22, %c0_215] : memref<8x24x240xf32, #tpu.memory_space<vmem>>, vector<8x1x120xf32>
    %220 = vector.shape_cast %219 : vector<8x1x120xf32> to vector<8x120xf32>
    %c0_216 = arith.constant 0 : index
    %c22_217 = arith.constant 22 : index
    %c120_218 = arith.constant 120 : index
    %221 = vector.load %arg10[%c0_216, %c22_217, %c120_218] : memref<8x24x240xf32, #tpu.memory_space<vmem>>, vector<8x1x120xf32>
    %222 = vector.shape_cast %221 : vector<8x1x120xf32> to vector<8x120xf32>
    %223 = arith.maximumf %220, %222 : vector<8x120xf32>
    %c0_219 = arith.constant 0 : index
    %c23 = arith.constant 23 : index
    %c0_220 = arith.constant 0 : index
    %224 = vector.load %arg10[%c0_219, %c23, %c0_220] : memref<8x24x240xf32, #tpu.memory_space<vmem>>, vector<8x1x120xf32>
    %225 = vector.shape_cast %224 : vector<8x1x120xf32> to vector<8x120xf32>
    %c0_221 = arith.constant 0 : index
    %c23_222 = arith.constant 23 : index
    %c120_223 = arith.constant 120 : index
    %226 = vector.load %arg10[%c0_221, %c23_222, %c120_223] : memref<8x24x240xf32, #tpu.memory_space<vmem>>, vector<8x1x120xf32>
    %227 = vector.shape_cast %226 : vector<8x1x120xf32> to vector<8x120xf32>
    %228 = arith.maximumf %225, %227 : vector<8x120xf32>
    %229 = arith.maximumf %223, %228 : vector<8x120xf32>
    %cst_224 = arith.constant 0.000000e+00 : f32
    %230 = vector.broadcast %cst_224 : f32 to vector<8x120xf32>
    %231 = arith.maximumf %229, %230 : vector<8x120xf32>
    %c0_225 = arith.constant 0 : index
    %c11_226 = arith.constant 11 : index
    %c0_227 = arith.constant 0 : index
    %232 = vector.load %arg11[%c0_225, %c11_226, %c0_227] : memref<8x12x120xf32, #tpu.memory_space<vmem>>, vector<8x1x120xf32>
    %233 = vector.shape_cast %232 : vector<8x1x120xf32> to vector<8x120xf32>
    %234 = vector.shape_cast %231 : vector<8x120xf32> to vector<8x1x120xf32>
    tpu.vector_store %arg11[%c0_225, %c11_226, %c0_227], %234 {strides = array<i32>} : memref<8x12x120xf32, #tpu.memory_space<vmem>>, vector<8x1x120xf32>,
    %c0_228 = arith.constant 0 : index
    %c0_229 = arith.constant 0 : index
    %c0_230 = arith.constant 0 : index
    %235 = vector.load %arg11[%c0_228, %c0_229, %c0_230] : memref<8x12x120xf32, #tpu.memory_space<vmem>>, vector<8x8x120xf32>
    %236 = vector.shape_cast %235 : vector<8x8x120xf32> to vector<64x120xf32>
    %c0_231 = arith.constant 0 : index
    %c0_232 = arith.constant 0 : index
    %c0_233 = arith.constant 0 : index
    %237 = vector.load %arg3[%c0_231, %c0_232, %c0_233] : memref<5x120x160xf32, #tpu.memory_space<vmem>>, vector<1x120x160xf32>
    %238 = vector.shape_cast %237 : vector<1x120x160xf32> to vector<120x160xf32>
    %cst_234 = arith.constant dense<0.000000e+00> : vector<64x160xf32>
    %239 = tpu.matmul %236, %238, %cst_234 {dimension_numbers = #tpu.dot_dimension_numbers<[1], [0], [0], [1], [0, 0, 1, 1], [], []>} : vector<64x120xf32>, vector<120x160xf32>, vector<64x160xf32> -> vector<64x160xf32>
    %240 = vector.shape_cast %239 : vector<64x160xf32> to vector<8x8x160xf32>
    %c0_235 = arith.constant 0 : index
    %c0_236 = arith.constant 0 : index
    %c0_237 = arith.constant 0 : index
    %241 = vector.load %arg12[%c0_235, %c0_236, %c0_237] : memref<8x8x160xf32, #tpu.memory_space<vmem>>, vector<8x8x160xf32>
    tpu.vector_store %arg12[%c0_235, %c0_236, %c0_237], %240 {strides = array<i32>} : memref<8x8x160xf32, #tpu.memory_space<vmem>>, vector<8x8x160xf32>,
    %c0_238 = arith.constant 0 : index
    %c1_239 = arith.constant 1 : index
    %c0_240 = arith.constant 0 : index
    %242 = vector.load %arg11[%c0_238, %c1_239, %c0_240] : memref<8x12x120xf32, #tpu.memory_space<vmem>>, vector<8x8x120xf32>
    %243 = vector.shape_cast %242 : vector<8x8x120xf32> to vector<64x120xf32>
    %c1_241 = arith.constant 1 : index
    %c0_242 = arith.constant 0 : index
    %c0_243 = arith.constant 0 : index
    %244 = vector.load %arg3[%c1_241, %c0_242, %c0_243] : memref<5x120x160xf32, #tpu.memory_space<vmem>>, vector<1x120x160xf32>
    %245 = vector.shape_cast %244 : vector<1x120x160xf32> to vector<120x160xf32>
    %cst_244 = arith.constant dense<0.000000e+00> : vector<64x160xf32>
    %246 = tpu.matmul %243, %245, %cst_244 {dimension_numbers = #tpu.dot_dimension_numbers<[1], [0], [0], [1], [0, 0, 1, 1], [], []>} : vector<64x120xf32>, vector<120x160xf32>, vector<64x160xf32> -> vector<64x160xf32>
    %247 = vector.shape_cast %246 : vector<64x160xf32> to vector<8x8x160xf32>
    %c0_245 = arith.constant 0 : index
    %c0_246 = arith.constant 0 : index
    %c0_247 = arith.constant 0 : index
    %248 = vector.load %arg12[%c0_245, %c0_246, %c0_247] : memref<8x8x160xf32, #tpu.memory_space<vmem>>, vector<8x8x160xf32>
    %249 = arith.addf %248, %247 : vector<8x8x160xf32>
    %c0_248 = arith.constant 0 : index
    %c0_249 = arith.constant 0 : index
    %c0_250 = arith.constant 0 : index
    %250 = vector.load %arg12[%c0_248, %c0_249, %c0_250] : memref<8x8x160xf32, #tpu.memory_space<vmem>>, vector<8x8x160xf32>
    tpu.vector_store %arg12[%c0_248, %c0_249, %c0_250], %249 {strides = array<i32>} : memref<8x8x160xf32, #tpu.memory_space<vmem>>, vector<8x8x160xf32>,
    %c0_251 = arith.constant 0 : index
    %c2_252 = arith.constant 2 : index
    %c0_253 = arith.constant 0 : index
    %251 = vector.load %arg11[%c0_251, %c2_252, %c0_253] : memref<8x12x120xf32, #tpu.memory_space<vmem>>, vector<8x8x120xf32>
    %252 = vector.shape_cast %251 : vector<8x8x120xf32> to vector<64x120xf32>
    %c2_254 = arith.constant 2 : index
    %c0_255 = arith.constant 0 : index
    %c0_256 = arith.constant 0 : index
    %253 = vector.load %arg3[%c2_254, %c0_255, %c0_256] : memref<5x120x160xf32, #tpu.memory_space<vmem>>, vector<1x120x160xf32>
    %254 = vector.shape_cast %253 : vector<1x120x160xf32> to vector<120x160xf32>
    %cst_257 = arith.constant dense<0.000000e+00> : vector<64x160xf32>
    %255 = tpu.matmul %252, %254, %cst_257 {dimension_numbers = #tpu.dot_dimension_numbers<[1], [0], [0], [1], [0, 0, 1, 1], [], []>} : vector<64x120xf32>, vector<120x160xf32>, vector<64x160xf32> -> vector<64x160xf32>
    %256 = vector.shape_cast %255 : vector<64x160xf32> to vector<8x8x160xf32>
    %c0_258 = arith.constant 0 : index
    %c0_259 = arith.constant 0 : index
    %c0_260 = arith.constant 0 : index
    %257 = vector.load %arg12[%c0_258, %c0_259, %c0_260] : memref<8x8x160xf32, #tpu.memory_space<vmem>>, vector<8x8x160xf32>
    %258 = arith.addf %257, %256 : vector<8x8x160xf32>
    %c0_261 = arith.constant 0 : index
    %c0_262 = arith.constant 0 : index
    %c0_263 = arith.constant 0 : index
    %259 = vector.load %arg12[%c0_261, %c0_262, %c0_263] : memref<8x8x160xf32, #tpu.memory_space<vmem>>, vector<8x8x160xf32>
    tpu.vector_store %arg12[%c0_261, %c0_262, %c0_263], %258 {strides = array<i32>} : memref<8x8x160xf32, #tpu.memory_space<vmem>>, vector<8x8x160xf32>,
    %c0_264 = arith.constant 0 : index
    %c3_265 = arith.constant 3 : index
    %c0_266 = arith.constant 0 : index
    %260 = vector.load %arg11[%c0_264, %c3_265, %c0_266] : memref<8x12x120xf32, #tpu.memory_space<vmem>>, vector<8x8x120xf32>
    %261 = vector.shape_cast %260 : vector<8x8x120xf32> to vector<64x120xf32>
    %c3_267 = arith.constant 3 : index
    %c0_268 = arith.constant 0 : index
    %c0_269 = arith.constant 0 : index
    %262 = vector.load %arg3[%c3_267, %c0_268, %c0_269] : memref<5x120x160xf32, #tpu.memory_space<vmem>>, vector<1x120x160xf32>
    %263 = vector.shape_cast %262 : vector<1x120x160xf32> to vector<120x160xf32>
    %cst_270 = arith.constant dense<0.000000e+00> : vector<64x160xf32>
    %264 = tpu.matmul %261, %263, %cst_270 {dimension_numbers = #tpu.dot_dimension_numbers<[1], [0], [0], [1], [0, 0, 1, 1], [], []>} : vector<64x120xf32>, vector<120x160xf32>, vector<64x160xf32> -> vector<64x160xf32>
    %265 = vector.shape_cast %264 : vector<64x160xf32> to vector<8x8x160xf32>
    %c0_271 = arith.constant 0 : index
    %c0_272 = arith.constant 0 : index
    %c0_273 = arith.constant 0 : index
    %266 = vector.load %arg12[%c0_271, %c0_272, %c0_273] : memref<8x8x160xf32, #tpu.memory_space<vmem>>, vector<8x8x160xf32>
    %267 = arith.addf %266, %265 : vector<8x8x160xf32>
    %c0_274 = arith.constant 0 : index
    %c0_275 = arith.constant 0 : index
    %c0_276 = arith.constant 0 : index
    %268 = vector.load %arg12[%c0_274, %c0_275, %c0_276] : memref<8x8x160xf32, #tpu.memory_space<vmem>>, vector<8x8x160xf32>
    tpu.vector_store %arg12[%c0_274, %c0_275, %c0_276], %267 {strides = array<i32>} : memref<8x8x160xf32, #tpu.memory_space<vmem>>, vector<8x8x160xf32>,
    %c0_277 = arith.constant 0 : index
    %c4_278 = arith.constant 4 : index
    %c0_279 = arith.constant 0 : index
    %269 = vector.load %arg11[%c0_277, %c4_278, %c0_279] : memref<8x12x120xf32, #tpu.memory_space<vmem>>, vector<8x8x120xf32>
    %270 = vector.shape_cast %269 : vector<8x8x120xf32> to vector<64x120xf32>
    %c4_280 = arith.constant 4 : index
    %c0_281 = arith.constant 0 : index
    %c0_282 = arith.constant 0 : index
    %271 = vector.load %arg3[%c4_280, %c0_281, %c0_282] : memref<5x120x160xf32, #tpu.memory_space<vmem>>, vector<1x120x160xf32>
    %272 = vector.shape_cast %271 : vector<1x120x160xf32> to vector<120x160xf32>
    %cst_283 = arith.constant dense<0.000000e+00> : vector<64x160xf32>
    %273 = tpu.matmul %270, %272, %cst_283 {dimension_numbers = #tpu.dot_dimension_numbers<[1], [0], [0], [1], [0, 0, 1, 1], [], []>} : vector<64x120xf32>, vector<120x160xf32>, vector<64x160xf32> -> vector<64x160xf32>
    %274 = vector.shape_cast %273 : vector<64x160xf32> to vector<8x8x160xf32>
    %c0_284 = arith.constant 0 : index
    %c0_285 = arith.constant 0 : index
    %c0_286 = arith.constant 0 : index
    %275 = vector.load %arg12[%c0_284, %c0_285, %c0_286] : memref<8x8x160xf32, #tpu.memory_space<vmem>>, vector<8x8x160xf32>
    %276 = arith.addf %275, %274 : vector<8x8x160xf32>
    %c0_287 = arith.constant 0 : index
    %c0_288 = arith.constant 0 : index
    %c0_289 = arith.constant 0 : index
    %277 = vector.load %arg12[%c0_287, %c0_288, %c0_289] : memref<8x8x160xf32, #tpu.memory_space<vmem>>, vector<8x8x160xf32>
    tpu.vector_store %arg12[%c0_287, %c0_288, %c0_289], %276 {strides = array<i32>} : memref<8x8x160xf32, #tpu.memory_space<vmem>>, vector<8x8x160xf32>,
    %c0_290 = arith.constant 0 : index
    %c0_291 = arith.constant 0 : index
    %278 = vector.load %arg4[%c0_290, %c0_291] : memref<1x80xf32, #tpu.memory_space<vmem>>, vector<1x80xf32>
    %279 = vector.shape_cast %278 : vector<1x80xf32> to vector<1x80xf32>
    %280 = vector.broadcast %279 : vector<1x80xf32> to vector<8x80xf32>
    %c0_292 = arith.constant 0 : index
    %c0_293 = arith.constant 0 : index
    %281 = vector.load %arg6[%c0_292, %c0_293] : memref<1x128xf32, #tpu.memory_space<vmem>>, vector<1x128xf32>
    %282 = vector.shape_cast %281 : vector<1x128xf32> to vector<1x128xf32>
    %283 = vector.broadcast %282 : vector<1x128xf32> to vector<8x128xf32>
    %c0_294 = arith.constant 0 : index
    %c0_295 = arith.constant 0 : index
    %c0_296 = arith.constant 0 : index
    %284 = vector.load %arg12[%c0_294, %c0_295, %c0_296] : memref<8x8x160xf32, #tpu.memory_space<vmem>>, vector<8x1x80xf32>
    %285 = vector.shape_cast %284 : vector<8x1x80xf32> to vector<8x80xf32>
    %c0_297 = arith.constant 0 : index
    %c0_298 = arith.constant 0 : index
    %c80 = arith.constant 80 : index
    %286 = vector.load %arg12[%c0_297, %c0_298, %c80] : memref<8x8x160xf32, #tpu.memory_space<vmem>>, vector<8x1x80xf32>
    %287 = vector.shape_cast %286 : vector<8x1x80xf32> to vector<8x80xf32>
    %288 = arith.maximumf %285, %287 : vector<8x80xf32>
    %c0_299 = arith.constant 0 : index
    %c1_300 = arith.constant 1 : index
    %c0_301 = arith.constant 0 : index
    %289 = vector.load %arg12[%c0_299, %c1_300, %c0_301] : memref<8x8x160xf32, #tpu.memory_space<vmem>>, vector<8x1x80xf32>
    %290 = vector.shape_cast %289 : vector<8x1x80xf32> to vector<8x80xf32>
    %c0_302 = arith.constant 0 : index
    %c1_303 = arith.constant 1 : index
    %c80_304 = arith.constant 80 : index
    %291 = vector.load %arg12[%c0_302, %c1_303, %c80_304] : memref<8x8x160xf32, #tpu.memory_space<vmem>>, vector<8x1x80xf32>
    %292 = vector.shape_cast %291 : vector<8x1x80xf32> to vector<8x80xf32>
    %293 = arith.maximumf %290, %292 : vector<8x80xf32>
    %294 = arith.maximumf %288, %293 : vector<8x80xf32>
    %295 = arith.addf %294, %280 : vector<8x80xf32>
    %cst_305 = arith.constant 0.000000e+00 : f32
    %296 = vector.broadcast %cst_305 : f32 to vector<8x80xf32>
    %297 = arith.maximumf %295, %296 : vector<8x80xf32>
    %c0_306 = arith.constant 0 : index
    %c0_307 = arith.constant 0 : index
    %c0_308 = arith.constant 0 : index
    %298 = vector.load %arg5[%c0_306, %c0_307, %c0_308] : memref<4x80x128xf32, #tpu.memory_space<vmem>>, vector<1x80x128xf32>
    %299 = vector.shape_cast %298 : vector<1x80x128xf32> to vector<80x128xf32>
    %cst_309 = arith.constant dense<0.000000e+00> : vector<8x128xf32>
    %300 = tpu.matmul %297, %299, %cst_309 {dimension_numbers = #tpu.dot_dimension_numbers<[1], [0], [0], [1], [0, 0, 1, 1], [], []>} : vector<8x80xf32>, vector<80x128xf32>, vector<8x128xf32> -> vector<8x128xf32>
    %301 = arith.addf %283, %300 : vector<8x128xf32>
    %c0_310 = arith.constant 0 : index
    %c2_311 = arith.constant 2 : index
    %c0_312 = arith.constant 0 : index
    %302 = vector.load %arg12[%c0_310, %c2_311, %c0_312] : memref<8x8x160xf32, #tpu.memory_space<vmem>>, vector<8x1x80xf32>
    %303 = vector.shape_cast %302 : vector<8x1x80xf32> to vector<8x80xf32>
    %c0_313 = arith.constant 0 : index
    %c2_314 = arith.constant 2 : index
    %c80_315 = arith.constant 80 : index
    %304 = vector.load %arg12[%c0_313, %c2_314, %c80_315] : memref<8x8x160xf32, #tpu.memory_space<vmem>>, vector<8x1x80xf32>
    %305 = vector.shape_cast %304 : vector<8x1x80xf32> to vector<8x80xf32>
    %306 = arith.maximumf %303, %305 : vector<8x80xf32>
    %c0_316 = arith.constant 0 : index
    %c3_317 = arith.constant 3 : index
    %c0_318 = arith.constant 0 : index
    %307 = vector.load %arg12[%c0_316, %c3_317, %c0_318] : memref<8x8x160xf32, #tpu.memory_space<vmem>>, vector<8x1x80xf32>
    %308 = vector.shape_cast %307 : vector<8x1x80xf32> to vector<8x80xf32>
    %c0_319 = arith.constant 0 : index
    %c3_320 = arith.constant 3 : index
    %c80_321 = arith.constant 80 : index
    %309 = vector.load %arg12[%c0_319, %c3_320, %c80_321] : memref<8x8x160xf32, #tpu.memory_space<vmem>>, vector<8x1x80xf32>
    %310 = vector.shape_cast %309 : vector<8x1x80xf32> to vector<8x80xf32>
    %311 = arith.maximumf %308, %310 : vector<8x80xf32>
    %312 = arith.maximumf %306, %311 : vector<8x80xf32>
    %313 = arith.addf %312, %280 : vector<8x80xf32>
    %cst_322 = arith.constant 0.000000e+00 : f32
    %314 = vector.broadcast %cst_322 : f32 to vector<8x80xf32>
    %315 = arith.maximumf %313, %314 : vector<8x80xf32>
    %c1_323 = arith.constant 1 : index
    %c0_324 = arith.constant 0 : index
    %c0_325 = arith.constant 0 : index
    %316 = vector.load %arg5[%c1_323, %c0_324, %c0_325] : memref<4x80x128xf32, #tpu.memory_space<vmem>>, vector<1x80x128xf32>
    %317 = vector.shape_cast %316 : vector<1x80x128xf32> to vector<80x128xf32>
    %cst_326 = arith.constant dense<0.000000e+00> : vector<8x128xf32>
    %318 = tpu.matmul %315, %317, %cst_326 {dimension_numbers = #tpu.dot_dimension_numbers<[1], [0], [0], [1], [0, 0, 1, 1], [], []>} : vector<8x80xf32>, vector<80x128xf32>, vector<8x128xf32> -> vector<8x128xf32>
    %319 = arith.addf %301, %318 : vector<8x128xf32>
    %c0_327 = arith.constant 0 : index
    %c4_328 = arith.constant 4 : index
    %c0_329 = arith.constant 0 : index
    %320 = vector.load %arg12[%c0_327, %c4_328, %c0_329] : memref<8x8x160xf32, #tpu.memory_space<vmem>>, vector<8x1x80xf32>
    %321 = vector.shape_cast %320 : vector<8x1x80xf32> to vector<8x80xf32>
    %c0_330 = arith.constant 0 : index
    %c4_331 = arith.constant 4 : index
    %c80_332 = arith.constant 80 : index
    %322 = vector.load %arg12[%c0_330, %c4_331, %c80_332] : memref<8x8x160xf32, #tpu.memory_space<vmem>>, vector<8x1x80xf32>
    %323 = vector.shape_cast %322 : vector<8x1x80xf32> to vector<8x80xf32>
    %324 = arith.maximumf %321, %323 : vector<8x80xf32>
    %c0_333 = arith.constant 0 : index
    %c5_334 = arith.constant 5 : index
    %c0_335 = arith.constant 0 : index
    %325 = vector.load %arg12[%c0_333, %c5_334, %c0_335] : memref<8x8x160xf32, #tpu.memory_space<vmem>>, vector<8x1x80xf32>
    %326 = vector.shape_cast %325 : vector<8x1x80xf32> to vector<8x80xf32>
    %c0_336 = arith.constant 0 : index
    %c5_337 = arith.constant 5 : index
    %c80_338 = arith.constant 80 : index
    %327 = vector.load %arg12[%c0_336, %c5_337, %c80_338] : memref<8x8x160xf32, #tpu.memory_space<vmem>>, vector<8x1x80xf32>
    %328 = vector.shape_cast %327 : vector<8x1x80xf32> to vector<8x80xf32>
    %329 = arith.maximumf %326, %328 : vector<8x80xf32>
    %330 = arith.maximumf %324, %329 : vector<8x80xf32>
    %331 = arith.addf %330, %280 : vector<8x80xf32>
    %cst_339 = arith.constant 0.000000e+00 : f32
    %332 = vector.broadcast %cst_339 : f32 to vector<8x80xf32>
    %333 = arith.maximumf %331, %332 : vector<8x80xf32>
    %c2_340 = arith.constant 2 : index
    %c0_341 = arith.constant 0 : index
    %c0_342 = arith.constant 0 : index
    %334 = vector.load %arg5[%c2_340, %c0_341, %c0_342] : memref<4x80x128xf32, #tpu.memory_space<vmem>>, vector<1x80x128xf32>
    %335 = vector.shape_cast %334 : vector<1x80x128xf32> to vector<80x128xf32>
    %cst_343 = arith.constant dense<0.000000e+00> : vector<8x128xf32>
    %336 = tpu.matmul %333, %335, %cst_343 {dimension_numbers = #tpu.dot_dimension_numbers<[1], [0], [0], [1], [0, 0, 1, 1], [], []>} : vector<8x80xf32>, vector<80x128xf32>, vector<8x128xf32> -> vector<8x128xf32>
    %337 = arith.addf %319, %336 : vector<8x128xf32>
    %c0_344 = arith.constant 0 : index
    %c6_345 = arith.constant 6 : index
    %c0_346 = arith.constant 0 : index
    %338 = vector.load %arg12[%c0_344, %c6_345, %c0_346] : memref<8x8x160xf32, #tpu.memory_space<vmem>>, vector<8x1x80xf32>
    %339 = vector.shape_cast %338 : vector<8x1x80xf32> to vector<8x80xf32>
    %c0_347 = arith.constant 0 : index
    %c6_348 = arith.constant 6 : index
    %c80_349 = arith.constant 80 : index
    %340 = vector.load %arg12[%c0_347, %c6_348, %c80_349] : memref<8x8x160xf32, #tpu.memory_space<vmem>>, vector<8x1x80xf32>
    %341 = vector.shape_cast %340 : vector<8x1x80xf32> to vector<8x80xf32>
    %342 = arith.maximumf %339, %341 : vector<8x80xf32>
    %c0_350 = arith.constant 0 : index
    %c7_351 = arith.constant 7 : index
    %c0_352 = arith.constant 0 : index
    %343 = vector.load %arg12[%c0_350, %c7_351, %c0_352] : memref<8x8x160xf32, #tpu.memory_space<vmem>>, vector<8x1x80xf32>
    %344 = vector.shape_cast %343 : vector<8x1x80xf32> to vector<8x80xf32>
    %c0_353 = arith.constant 0 : index
    %c7_354 = arith.constant 7 : index
    %c80_355 = arith.constant 80 : index
    %345 = vector.load %arg12[%c0_353, %c7_354, %c80_355] : memref<8x8x160xf32, #tpu.memory_space<vmem>>, vector<8x1x80xf32>
    %346 = vector.shape_cast %345 : vector<8x1x80xf32> to vector<8x80xf32>
    %347 = arith.maximumf %344, %346 : vector<8x80xf32>
    %348 = arith.maximumf %342, %347 : vector<8x80xf32>
    %349 = arith.addf %348, %280 : vector<8x80xf32>
    %cst_356 = arith.constant 0.000000e+00 : f32
    %350 = vector.broadcast %cst_356 : f32 to vector<8x80xf32>
    %351 = arith.maximumf %349, %350 : vector<8x80xf32>
    %c3_357 = arith.constant 3 : index
    %c0_358 = arith.constant 0 : index
    %c0_359 = arith.constant 0 : index
    %352 = vector.load %arg5[%c3_357, %c0_358, %c0_359] : memref<4x80x128xf32, #tpu.memory_space<vmem>>, vector<1x80x128xf32>
    %353 = vector.shape_cast %352 : vector<1x80x128xf32> to vector<80x128xf32>
    %cst_360 = arith.constant dense<0.000000e+00> : vector<8x128xf32>
    %354 = tpu.matmul %351, %353, %cst_360 {dimension_numbers = #tpu.dot_dimension_numbers<[1], [0], [0], [1], [0, 0, 1, 1], [], []>} : vector<8x80xf32>, vector<80x128xf32>, vector<8x128xf32> -> vector<8x128xf32>
    %355 = arith.addf %337, %354 : vector<8x128xf32>
    %cst_361 = arith.constant 0.000000e+00 : f32
    %356 = vector.broadcast %cst_361 : f32 to vector<8x128xf32>
    %357 = arith.maximumf %355, %356 : vector<8x128xf32>
    %c0_362 = arith.constant 0 : index
    %c0_363 = arith.constant 0 : index
    %358 = vector.load %arg7[%c0_362, %c0_363] : memref<128x128xf32, #tpu.memory_space<vmem>>, vector<128x128xf32>
    %cst_364 = arith.constant dense<0.000000e+00> : vector<8x128xf32>
    %359 = tpu.matmul %357, %358, %cst_364 {dimension_numbers = #tpu.dot_dimension_numbers<[1], [0], [0], [1], [0, 0, 1, 1], [], []>} : vector<8x128xf32>, vector<128x128xf32>, vector<8x128xf32> -> vector<8x128xf32>
    %c0_365 = arith.constant 0 : index
    %c0_366 = arith.constant 0 : index
    %360 = vector.load %arg8[%c0_365, %c0_366] : memref<1x128xf32, #tpu.memory_space<vmem>>, vector<1x128xf32>
    %361 = vector.broadcast %360 : vector<1x128xf32> to vector<8x128xf32>
    %362 = arith.addf %359, %361 : vector<8x128xf32>
    %c0_367 = arith.constant 0 : index
    %c0_368 = arith.constant 0 : index
    %363 = vector.load %arg9[%c0_367, %c0_368] : memref<8x128xf32, #tpu.memory_space<vmem>>, vector<8x128xf32>
    tpu.vector_store %arg9[%c0_367, %c0_368], %362 {strides = array<i32>} : memref<8x128xf32, #tpu.memory_space<vmem>>, vector<8x128xf32>,
    return
  }
  func.func @transform_0(%arg0: i32) -> (i32, i32, i32) {
    %c0_i32 = arith.constant 0 : i32
    %c0_i32_0 = arith.constant 0 : i32
    %c0_i32_1 = arith.constant 0 : i32
    return %arg0, %c0_i32, %c0_i32_0 : i32, i32, i32
  }
  func.func @transform_1(%arg0: i32) -> (i32, i32, i32) {
    %c0_i32 = arith.constant 0 : i32
    %c0_i32_0 = arith.constant 0 : i32
    %c0_i32_1 = arith.constant 0 : i32
    %c0_i32_2 = arith.constant 0 : i32
    return %c0_i32, %c0_i32_0, %c0_i32_1 : i32, i32, i32
  }
  func.func @transform_2(%arg0: i32) -> (i32, i32, i32) {
    %c0_i32 = arith.constant 0 : i32
    %c0_i32_0 = arith.constant 0 : i32
    %c0_i32_1 = arith.constant 0 : i32
    %c0_i32_2 = arith.constant 0 : i32
    return %c0_i32, %c0_i32_0, %c0_i32_1 : i32, i32, i32
  }
  func.func @transform_3(%arg0: i32) -> (i32, i32) {
    %c0_i32 = arith.constant 0 : i32
    %c0_i32_0 = arith.constant 0 : i32
    %c0_i32_1 = arith.constant 0 : i32
    return %c0_i32, %c0_i32_0 : i32, i32
  }
  func.func @transform_4(%arg0: i32) -> (i32, i32, i32) {
    %c0_i32 = arith.constant 0 : i32
    %c0_i32_0 = arith.constant 0 : i32
    %c0_i32_1 = arith.constant 0 : i32
    %c0_i32_2 = arith.constant 0 : i32
    return %c0_i32, %c0_i32_0, %c0_i32_1 : i32, i32, i32
  }
  func.func @transform_5(%arg0: i32) -> (i32, i32) {
    %c0_i32 = arith.constant 0 : i32
    %c0_i32_0 = arith.constant 0 : i32
    %c0_i32_1 = arith.constant 0 : i32
    return %c0_i32, %c0_i32_0 : i32, i32
  }
  func.func @transform_6(%arg0: i32) -> (i32, i32) {
    %c0_i32 = arith.constant 0 : i32
    %c0_i32_0 = arith.constant 0 : i32
    %c0_i32_1 = arith.constant 0 : i32
    return %c0_i32, %c0_i32_0 : i32, i32
  }
  func.func @transform_7(%arg0: i32) -> (i32, i32) {
    %c0_i32 = arith.constant 0 : i32
    %c0_i32_0 = arith.constant 0 : i32
    %c0_i32_1 = arith.constant 0 : i32
    return %c0_i32, %c0_i32_0 : i32, i32
  }
  func.func @transform_8(%arg0: i32) -> (i32, i32) {
    %c0_i32 = arith.constant 0 : i32
    %c0_i32_0 = arith.constant 0 : i32
    return %arg0, %c0_i32 : i32, i32
  }
}

</mosaic_0001>

<bundles_post_ra>
// kernel: tile.8
= control target key start
LH: loop header
LB: loop body
LE: loop exit
PB: predicated region body
PF: predicated region fallthrough
CT: control target
= control target key end

     0   :  { %s22_s0 = inlined_call_operand.vmem [shape: f32[20], index: 0, kind: input, shape index: {}]   ;;  %s23_s1 = inlined_call_operand.vmem [shape: f32[4,20], index: 1, kind: output, shape index: {}]  }
   0x1   :  { %v4_v0 = vld [vmem:[%s22_s0] ss:$0 sm:$0xff] }
   0x2   :  { %5 = vst [vmem:[%s23_s1] sm:$0xf] %v4_v0 }

// kernel: tile.9
= control target key start
LH: loop header
LB: loop body
LE: loop exit
PB: predicated region body
PF: predicated region fallthrough
CT: control target
= control target key end

     0   :  { %s37_s8 = smov 20   ;;  %s38_s9 = smov 40   ;;  %vm7_vm0 = vcmask 162816   ;;  %vm13_vm1 = vcmask 654816   ;;  %vm19_vm2 = vcmask 490816   ;;  %vm25_vm3 = vcmask 326816   ;;  %s55_s0 = inlined_call_operand.vmem [shape: f32[4,20], index: 0, kind: input, shape index: {}]   ;;  %s56_s1 = inlined_call_operand.vmem [shape: f32[1,80], index: 1, kind: output, shape index: {}]  }
   0x1   :  { %v4_v0 = vld [vmem:[%s55_s0] sm:$0xf]  ;;  %s36_s0 = smov 60  }
   0x2   :  { %5 = vst [vmem:[#allocation1] sm:$0xf] %v4_v0 }
   0x9   :  { %v10_v1 = vld [vmem:[#allocation1 + $0x3] sm:$0x1]   ;;  %v22_v2 = vld [vmem:[#allocation1 + $0x1] sm:$0x1]   ;;  %v16_v3 = vld [vmem:[#allocation1 + $0x2] sm:$0x1]  }
   0xa   :  { %11 = vrot.lane.b32.xlu0 %v10_v1, %s36_s0  ;;  %23 = vrot.lane.b32.xlu1 %v22_v2, %s37_s8  ;;  %v6_v4 = vld [vmem:[#allocation1] sm:$0x1]  }
   0xb   :  { %8 = vst.msk [vmem:[#allocation0] sm:$0x1] %vm7_vm0, %v6_v4  }
  0x12   :  { %17 = vrot.lane.b32.xlu0 %v16_v3, %s38_s9 }
  0x7c   :  { %v12_v5 = vpop.permute.xlu0 %11   ;;  %v24_v6 = vpop.permute.xlu1 %23  }
  0x7d   :  { %14 = vst.msk [vmem:[#allocation0] sm:$0x1] %vm13_vm1, %v12_v5  }
  0x84   :  { %v18_v7 = vpop.permute.xlu0 %17  }
  0x85   :  { %20 = vst.msk [vmem:[#allocation0] sm:$0x1] %vm19_vm2, %v18_v7  }
  0x86   :  { %26 = vst.msk [vmem:[#allocation0] sm:$0x1] %vm25_vm3, %v24_v6  }
  0x8d   :  { %v29_v8 = vld [vmem:[#allocation0] sm:$0x1] }
  0x8e   :  { %32 = vst [vmem:[%s56_s1] sm:$0x1] %v29_v8 }

// kernel: net_forward.1
= control target key start
LH: loop header
LB: loop body
LE: loop exit
PB: predicated region body
PF: predicated region fallthrough
CT: control target
= control target key end

     0   :  { %vm134_vm0 = vcmask 1044480   ;;  %vm61_vm1 = vcmask 236544   ;;  %vm320_vm2 = vcmask 916480   ;;  %s7061_s24 = smov 8   ;;  %vm2164_vm3 = vcmask 64512   ;;  %s11532_s1 = inlined_call_operand.vmem [shape: f32[5,29,240], index: 1, kind: input, shape index: {}]   ;;  %s11533_s0 = inlined_call_operand.vmem [shape: f32[8,32,29], index: 0, kind: input, shape index: {}]   ;;  %s11534_s2 = inlined_call_operand.vmem [shape: f32[5,120,160], index: 2, kind: input, shape index: {}]   ;;  %s11535_s3 = inlined_call_operand.vmem [shape: f32[1,80], index: 3, kind: input, shape index: {}]   ;;  %s11536_s4 = inlined_call_operand.vmem [shape: f32[4,80,128], index: 4, kind: input, shape index: {}]   ;;  %s11537_s5 = inlined_call_operand.vmem [shape: f32[1,128], index: 5, kind: input, shape index: {}]   ;;  %s11538_s7 = inlined_call_operand.vmem [shape: f32[1,128], index: 7, kind: input, shape index: {}]   ;;  %s11539_s6 = inlined_call_operand.vmem [shape: f32[128,128], index: 6, kind: input, shape index: {}]   ;;  %s11540_s8 = inlined_call_operand.vmem [shape: f32[8,128], index: 8, kind: output, shape index: {}]  }
   0x1   :  { %v59_v0 = vld [vmem:[%s11532_s1 + $0x30] sm:$0x1f]  ;;  %v60_v1 = vld [vmem:[%s11532_s1 + $0x38] sm:$0x1f]  ;;  %v57_v3 = vld [vmem:[%s11532_s1 + $0x20] sm:$0xff]  ;;  %vm2293_vm4 = vcmask 974848  }
   0x2   :  { %v6579_v2 = vld [vmem:[%s11532_s1 + $0x78] sm:$0x1f]  ;;  %6522 = vmatpush.msk.msra.mxu0 %vm134_vm0, %v59_v0  ;;  %7038 = vmatpush.msk.msra.mxu1 %vm134_vm0, %v60_v1  ;;  %v58_v4 = vld [vmem:[%s11532_s1 + $0x28] sm:$0xff]  ;;  %v55_v6 = vld [vmem:[%s11532_s1 + $0x10] sm:$0xff]  ;;  %vm4540_vm5 = vcmask 982016   ;;  %vm4648_vm6 = vcmask 261120  }
   0x3   :  { %v6577_v5 = vld [vmem:[%s11532_s1 + $0x68] sm:$0xff]  ;;  %6605 = vmatpush.msk.msra.mxu3 %vm134_vm0, %v6579_v2  ;;  %v56_v7 = vld [vmem:[%s11532_s1 + $0x18] sm:$0xff]  ;;  %v53_v9 = vld [vmem:[%s11532_s1] sm:$0xff]  ;;  %vm5508_vm7 = vcmask 392192   ;;  %vm5664_vm8 = vcmask 1041409   ;;  %vm5667_vm9 = vcmask 1042434  }
   0x4   :  { %154 = vmatpush.msra.mxu0 %v57_v3  ;;  %7039 = vmatpush.msra.mxu1 %v58_v4  ;;  %v6575_v8 = vld [vmem:[%s11532_s1 + $0x58] sm:$0xff]  ;;  %v54_v10 = vld [vmem:[%s11532_s1 + $0x8] sm:$0xff]  ;;  %v7150_v12 = vld [vmem:[%s11533_s0] sm:$0xff]  ;;  %vm5670_vm10 = vcmask 1043459   ;;  %vm5673_vm11 = vcmask 1044484   ;;  %vm5676_vm12 = vcmask 1045509  }
   0x5   :  { %581 = vmatpush.msra.mxu3 %v6577_v5  ;;  %v6573_v11 = vld [vmem:[%s11532_s1 + $0x48] sm:$0xff]  ;;  %v6578_v13 = vld [vmem:[%s11532_s1 + $0x70] sm:$0x1f]  ;;  %v6637_v16 = vld [vmem:[%s11532_s1 + $0xb8] sm:$0x1f]  ;;  %vm5679_vm13 = vcmask 1046534  }
   0x6   :  { %155 = vmatpush.msra.mxu0 %v55_v6  ;;  %7040 = vmatpush.msra.mxu1 %v56_v7  ;;  %v30_v14 = vld [vmem:[%s11533_s0 + $0x8] sm:$0xff]  ;;  %v6576_v17 = vld [vmem:[%s11532_s1 + $0x60] sm:$0xff]  ;;  %v6574_v18 = vld [vmem:[%s11532_s1 + $0x50] sm:$0xff]  ;;  %vm5682_vm14 = vcmask 1047559   ;;  %vm5684_vm15 = vcmask 654336  }
   0x7   :  { %582 = vmatpush.msra.mxu3 %v6575_v8  ;;  %v368_v15 = vld [vmem:[%s11533_s0 + $0x1] sm:$0xff]  ;;  %6580 = vmatpush.msk.msra.mxu2 %vm134_vm0, %v6578_v13  ;;  %v31_v20 = vld [vmem:[%s11533_s0 + $0x10] sm:$0xff]  ;;  %v6633_v35 = vld [vmem:[%s11532_s1 + $0x98] sm:$0xff] }
   0x8   :  { %156 = vmatpush.msra.mxu0 %v53_v9  ;;  %7041 = vmatpush.msra.mxu1 %v54_v10  ;;  %v6572_v19 = vld [vmem:[%s11532_s1 + $0x40] sm:$0xff]  ;;  %v369_v21 = vld [vmem:[%s11533_s0 + $0x9] sm:$0xff]  ;;  %v370_v24 = vld [vmem:[%s11533_s0 + $0x11] sm:$0xff] }
   0x9   :  { %583 = vmatpush.msra.mxu3 %v6573_v11  ;;  %6523 = vmatmul.msk.f32.vlgmr.msra.gmra.mxu0 %vm61_vm1, %v7150_v12  ;;  %v6635_v22 = vld [vmem:[%s11532_s1 + $0xa8] sm:$0xff]  ;;  %v32_v23 = vld [vmem:[%s11533_s0 + $0x20] sm:$0xff]  ;;  %v34_v27 = vld [vmem:[%s11533_s0 + $0x30] sm:$0xff] }
   0xa   :  { %6549 = vmatmul.msk.f32.vlgmr.msra.gmra.mxu1 %vm61_vm1, %v30_v14  ;;  %6606 = vmatmul.msk.f32.vlgmr.msra.gmra.mxu3 %vm61_vm1, %v368_v15  ;;  %v33_v25 = vld [vmem:[%s11533_s0 + $0x28] sm:$0xff]  ;;  %v35_v29 = vld [vmem:[%s11533_s0 + $0x40] sm:$0xff]  ;;  %v373_v30 = vld [vmem:[%s11533_s0 + $0x31] sm:$0xff] }
   0xb   :  { %6663 = vmatpush.msk.msrb.mxu1 %vm134_vm0, %v6637_v16  ;;  %492 = vmatpush.msra.mxu2 %v6576_v17  ;;  %v371_v26 = vld [vmem:[%s11533_s0 + $0x21] sm:$0xff]  ;;  %v372_v28 = vld [vmem:[%s11533_s0 + $0x29] sm:$0xff]  ;;  %v376_v37 = vld [vmem:[%s11533_s0 + $0x51] sm:$0xff] }
   0xc   :  { %6547 = vmatpush.msk.msrb.mxu0 %vm134_vm0, %v60_v1  ;;  %v36_v31 = vld [vmem:[%s11533_s0 + $0x48] sm:$0xff]  ;;  %v37_v33 = vld [vmem:[%s11533_s0 + $0x50] sm:$0xff]  ;;  %v38_v36 = vld [vmem:[%s11533_s0 + $0x60] sm:$0xff] }
   0xd   :  { %493 = vmatpush.msra.mxu2 %v6574_v18  ;;  %1014 = vmatpush.msrb.mxu1 %v6635_v22  ;;  %v374_v32 = vld [vmem:[%s11533_s0 + $0x41] sm:$0xff]  ;;  %v375_v34 = vld [vmem:[%s11533_s0 + $0x49] sm:$0xff]  ;;  %v379_v43 = vld [vmem:[%s11533_s0 + $0x71] sm:$0xff] }
   0xe   :  { %243 = vmatpush.msrb.mxu0 %v58_v4  ;;  %v39_v38 = vld [vmem:[%s11533_s0 + $0x68] sm:$0xff]  ;;  %v40_v40 = vld [vmem:[%s11533_s0 + $0x70] sm:$0xff]  ;;  %v41_v42 = vld [vmem:[%s11533_s0 + $0x80] sm:$0xff] }
   0xf   :  { %494 = vmatpush.msra.mxu2 %v6572_v19  ;;  %1015 = vmatpush.msrb.mxu1 %v6633_v35  ;;  %v377_v39 = vld [vmem:[%s11533_s0 + $0x61] sm:$0xff]  ;;  %v378_v41 = vld [vmem:[%s11533_s0 + $0x69] sm:$0xff]  ;;  %v382_v50 = vld [vmem:[%s11533_s0 + $0x91] sm:$0xff] }
  0x10   :  { %6581 = vmatmul.msk.f32.vlgmr.msra.gmra.mxu2 %vm61_vm1, %v368_v15  ;;  %244 = vmatpush.msrb.mxu0 %v56_v7  ;;  %v42_v44 = vld [vmem:[%s11533_s0 + $0x88] sm:$0xff]  ;;  %v43_v46 = vld [vmem:[%s11533_s0 + $0x90] sm:$0xff]  ;;  %v44_v49 = vld [vmem:[%s11533_s0 + $0xa0] sm:$0xff] }
  0x11   :  { %6524 = vmatmul.msk.f32.gmra.mxu0 %vm61_vm1, %v30_v14  ;;  %v380_v45 = vld [vmem:[%s11533_s0 + $0x81] sm:$0xff]  ;;  %v381_v47 = vld [vmem:[%s11533_s0 + $0x89] sm:$0xff]  ;;  %v385_v61 = vld [vmem:[%s11533_s0 + $0xb1] sm:$0xff] }
  0x12   :  { %6550 = vmatmul.msk.f32.gmra.mxu1 %vm61_vm1, %v31_v20  ;;  %6607 = vmatmul.msk.f32.gmra.mxu3 %vm61_vm1, %v369_v21  ;;  %v6631_v48 = vld [vmem:[%s11532_s1 + $0x88] sm:$0xff]  ;;  %v46_v55 = vld [vmem:[%s11533_s0 + $0xb0] sm:$0xff]  ;;  %v47_v60 = vld [vmem:[%s11533_s0 + $0xc0] sm:$0xff] }
  0x13   :  { %245 = vmatpush.msrb.mxu0 %v54_v10  ;;  %1016 = vmatpush.msrb.mxu1 %v6631_v48  ;;  %v45_v51 = vld [vmem:[%s11533_s0 + $0xa8] sm:$0xff]  ;;  %v6695_v62 = vld [vmem:[%s11532_s1 + $0xf8] sm:$0x1f]  ;;  %v49_v16 = vld [vmem:[%s11533_s0 + $0xd0] sm:$0xff] }
  0x14   :  { %v383_v52 = vld [vmem:[%s11533_s0 + $0xa1] sm:$0xff]  ;;  %v384_v56 = vld [vmem:[%s11533_s0 + $0xa9] sm:$0xff]  ;;  %6721 = vmatpush.msk.msrb.mxu3 %vm134_vm0, %v6695_v62  ;;  %v6753_v18 = vld [vmem:[%s11532_s1 + $0x138] sm:$0x1f] }
  0x15   :  { %v48_v6 = vld [vmem:[%s11533_s0 + $0xc8] sm:$0xff]  ;;  %6779 = vmatpush.msk.msra.mxu1 %vm134_vm0, %v6753_v18 }
  0x16   :  { %v386_v7 = vld [vmem:[%s11533_s0 + $0xc1] sm:$0xff]  ;;  %v387_v17 = vld [vmem:[%s11533_s0 + $0xc9] sm:$0xff] }
  0x18   :  { %6582 = vmatmul.msk.f32.gmra.mxu2 %vm61_vm1, %v369_v21 }
  0x19   :  { %6525 = vmatmul.msk.f32.gmra.mxu0 %vm61_vm1, %v31_v20 }
  0x1a   :  { %6551 = vmatmul.msk.f32.gmra.mxu1 %vm61_vm1, %v32_v23  ;;  %6608 = vmatmul.msk.f32.gmra.mxu3 %vm61_vm1, %v370_v24 }
  0x20   :  { %6583 = vmatmul.msk.f32.gmra.mxu2 %vm61_vm1, %v370_v24 }
  0x21   :  { %6526 = vmatmul.msk.f32.gmra.mxu0 %vm61_vm1, %v32_v23 }
  0x22   :  { %6552 = vmatmul.msk.f32.gmra.mxu1 %vm61_vm1, %v33_v25  ;;  %6609 = vmatmul.msk.f32.gmra.mxu3 %vm61_vm1, %v371_v26 }
  0x28   :  { %6584 = vmatmul.msk.f32.gmra.mxu2 %vm61_vm1, %v371_v26 }
  0x29   :  { %6527 = vmatmul.msk.f32.gmra.mxu0 %vm61_vm1, %v33_v25  ;;  %v6693_v25 = vld [vmem:[%s11532_s1 + $0xe8] sm:$0xff] }
  0x2a   :  { %6553 = vmatmul.msk.f32.gmra.mxu1 %vm61_vm1, %v34_v27  ;;  %6610 = vmatmul.msk.f32.gmra.mxu3 %vm61_vm1, %v372_v28 }
  0x2b   :  { %1447 = vmatpush.msrb.mxu3 %v6693_v25  ;;  %v6751_v25 = vld [vmem:[%s11532_s1 + $0x128] sm:$0xff] }
  0x2c   :  { %1880 = vmatpush.msra.mxu1 %v6751_v25  ;;  %v1241_v25 = vld [vmem:[%s11533_s0 + $0x4b] sm:$0xff] }
  0x30   :  { %6585 = vmatmul.msk.f32.gmra.mxu2 %vm61_vm1, %v372_v28  ;;  %v388_v28 = vld [vmem:[%s11533_s0 + $0xd1] sm:$0xff] }
  0x31   :  { %6528 = vmatmul.msk.f32.gmra.mxu0 %vm61_vm1, %v34_v27  ;;  %v50_v27 = vld [vmem:[%s11533_s0 + $0xe0] sm:$0xff] }
  0x32   :  { %6554 = vmatmul.msk.f32.gmra.mxu1 %vm61_vm1, %v35_v29  ;;  %6611 = vmatmul.msk.f32.gmra.mxu3 %vm61_vm1, %v373_v30 }
  0x38   :  { %6586 = vmatmul.msk.f32.gmra.mxu2 %vm61_vm1, %v373_v30  ;;  %v6689_v30 = vld [vmem:[%s11532_s1 + $0xc8] sm:$0xff] }
  0x39   :  { %6529 = vmatmul.msk.f32.gmra.mxu0 %vm61_vm1, %v35_v29  ;;  %v6691_v29 = vld [vmem:[%s11532_s1 + $0xd8] sm:$0xff] }
  0x3a   :  { %6555 = vmatmul.msk.f32.gmra.mxu1 %vm61_vm1, %v36_v31  ;;  %6612 = vmatmul.msk.f32.gmra.mxu3 %vm61_vm1, %v374_v32 }
  0x3b   :  { %1448 = vmatpush.msrb.mxu3 %v6691_v29 }
  0x3d   :  { %1449 = vmatpush.msrb.mxu3 %v6689_v30 }
  0x40   :  { %6587 = vmatmul.msk.f32.gmra.mxu2 %vm61_vm1, %v374_v32  ;;  %v6636_v32 = vld [vmem:[%s11532_s1 + $0xb0] sm:$0x1f] }
  0x41   :  { %6530 = vmatmul.msk.f32.gmra.mxu0 %vm61_vm1, %v36_v31  ;;  %v6694_v31 = vld [vmem:[%s11532_s1 + $0xf0] sm:$0x1f] }
  0x42   :  { %6556 = vmatmul.msk.f32.gmra.mxu1 %vm61_vm1, %v37_v33  ;;  %6613 = vmatmul.msk.f32.gmra.mxu3 %vm61_vm1, %v375_v34 }
  0x43   :  { %6638 = vmatpush.msk.msra.mxu0 %vm134_vm0, %v6636_v32  ;;  %6696 = vmatpush.msk.msrb.mxu2 %vm134_vm0, %v6694_v31 }
  0x48   :  { %6588 = vmatmul.msk.f32.gmra.mxu2 %vm61_vm1, %v375_v34  ;;  %v6692_v34 = vld [vmem:[%s11532_s1 + $0xe0] sm:$0xff] }
  0x49   :  { %6531 = vmatmul.msk.f32.gmra.mxu0 %vm61_vm1, %v37_v33  ;;  %1358 = vmatpush.msrb.mxu2 %v6692_v34  ;;  %v1236_v34 = vld [vmem:[%s11533_s0 + $0x13] sm:$0xff] }
  0x4a   :  { %6557 = vmatmul.msk.f32.gmra.mxu1 %vm61_vm1, %v38_v36  ;;  %6614 = vmatmul.msk.f32.gmra.mxu3 %vm61_vm1, %v376_v37 }
  0x50   :  { %6589 = vmatmul.msk.f32.gmra.mxu2 %vm61_vm1, %v376_v37 }
  0x51   :  { %6532 = vmatmul.msk.f32.gmra.mxu0 %vm61_vm1, %v38_v36 }
  0x52   :  { %6558 = vmatmul.msk.f32.gmra.mxu1 %vm61_vm1, %v39_v38  ;;  %6615 = vmatmul.msk.f32.gmra.mxu3 %vm61_vm1, %v377_v39 }
  0x58   :  { %6590 = vmatmul.msk.f32.gmra.mxu2 %vm61_vm1, %v377_v39 }
  0x59   :  { %6533 = vmatmul.msk.f32.gmra.mxu0 %vm61_vm1, %v39_v38 }
  0x5a   :  { %6559 = vmatmul.msk.f32.gmra.mxu1 %vm61_vm1, %v40_v40  ;;  %6616 = vmatmul.msk.f32.gmra.mxu3 %vm61_vm1, %v378_v41 }
  0x60   :  { %6591 = vmatmul.msk.f32.gmra.mxu2 %vm61_vm1, %v378_v41  ;;  %v6690_v41 = vld [vmem:[%s11532_s1 + $0xd0] sm:$0xff] }
  0x61   :  { %6534 = vmatmul.msk.f32.gmra.mxu0 %vm61_vm1, %v40_v40  ;;  %v6634_v40 = vld [vmem:[%s11532_s1 + $0xa0] sm:$0xff]  ;;  %1359 = vmatpush.msrb.mxu2 %v6690_v41 }
  0x62   :  { %6560 = vmatmul.msk.f32.gmra.mxu1 %vm61_vm1, %v41_v42  ;;  %6617 = vmatmul.msk.f32.gmra.mxu3 %vm61_vm1, %v379_v43 }
  0x63   :  { %925 = vmatpush.msra.mxu0 %v6634_v40 }
  0x68   :  { %6592 = vmatmul.msk.f32.gmra.mxu2 %vm61_vm1, %v379_v43  ;;  %v51_v43 = vld [vmem:[%s11533_s0 + $0xe8] sm:$0xff] }
  0x69   :  { %6535 = vmatmul.msk.f32.gmra.mxu0 %vm61_vm1, %v41_v42 }
  0x6a   :  { %6561 = vmatmul.msk.f32.gmra.mxu1 %vm61_vm1, %v42_v44  ;;  %6618 = vmatmul.msk.f32.gmra.mxu3 %vm61_vm1, %v380_v45 }
  0x70   :  { %6593 = vmatmul.msk.f32.gmra.mxu2 %vm61_vm1, %v380_v45  ;;  %v6632_v45 = vld [vmem:[%s11532_s1 + $0x90] sm:$0xff] }
  0x71   :  { %6536 = vmatmul.msk.f32.gmra.mxu0 %vm61_vm1, %v42_v44  ;;  %v389_v44 = vld [vmem:[%s11533_s0 + $0xe1] sm:$0xff] }
  0x72   :  { %6562 = vmatmul.msk.f32.gmra.mxu1 %vm61_vm1, %v43_v46  ;;  %6619 = vmatmul.msk.f32.gmra.mxu3 %vm61_vm1, %v381_v47 }
  0x73   :  { %926 = vmatpush.msra.mxu0 %v6632_v45 }
  0x78   :  { %6594 = vmatmul.msk.f32.gmra.mxu2 %vm61_vm1, %v381_v47  ;;  %v6630_v47 = vld [vmem:[%s11532_s1 + $0x80] sm:$0xff] }
  0x79   :  { %6537 = vmatmul.msk.f32.gmra.mxu0 %vm61_vm1, %v43_v46  ;;  %v6688_v46 = vld [vmem:[%s11532_s1 + $0xc0] sm:$0xff] }
  0x7a   :  { %6563 = vmatmul.msk.f32.gmra.mxu1 %vm61_vm1, %v44_v49  ;;  %6620 = vmatmul.msk.f32.gmra.mxu3 %vm61_vm1, %v382_v50 }
  0x7b   :  { %1360 = vmatpush.msrb.mxu2 %v6688_v46  ;;  %927 = vmatpush.msra.mxu0 %v6630_v47 }
  0x80   :  { %6595 = vmatmul.msk.f32.gmra.mxu2 %vm61_vm1, %v382_v50 }
  0x81   :  { %6538 = vmatmul.msk.f32.gmra.mxu0 %vm61_vm1, %v44_v49 }
  0x82   :  { %6564 = vmatmul.msk.f32.gmra.mxu1 %vm61_vm1, %v45_v51  ;;  %6621 = vmatmul.msk.f32.gmra.mxu3 %vm61_vm1, %v383_v52 }
  0x86   :  { %v158_v53 = vpop.f32.mrf.mxu0 }
  0x87   :  { %v250_v54 = vpop.f32.mrf.mxu1 }
  0x88   :  { %323 = vst.msk [vmem:[#allocation2 + $0x18] sm:$0xff] %vm320_vm2, %v250_v54  ;;  %6596 = vmatmul.msk.f32.gmra.mxu2 %vm61_vm1, %v383_v52 }
  0x89   :  { %6539 = vmatmul.msk.f32.gmra.mxu0 %vm61_vm1, %v45_v51 }
  0x8a   :  { %6565 = vmatmul.msk.f32.gmra.mxu1 %vm61_vm1, %v46_v55  ;;  %6622 = vmatmul.msk.f32.gmra.mxu3 %vm61_vm1, %v384_v56 }
  0x8d   :  { %v7350_v57 = vpop.f32.mrf.mxu3 }
  0x8e   :  { %v161_v58 = vpop.f32.mrf.mxu0 }
  0x8f   :  { %v253_v59 = vpop.f32.mrf.mxu1  ;;  %v660_v2 = vld [vmem:[#allocation2 + $0x18] sm:$0xff] }
  0x90   :  { %325 = vst.msk [vmem:[#allocation2 + $0x28] sm:$0xff] %vm320_vm2, %v253_v59  ;;  %6597 = vmatmul.msk.f32.gmra.mxu2 %vm61_vm1, %v384_v56  ;;  %v390_v56 = vld [vmem:[%s11533_s0 + $0xe9] sm:$0xff] }
  0x91   :  { %6540 = vmatmul.msk.f32.gmra.mxu0 %vm61_vm1, %v46_v55  ;;  %v52_v55 = vld [vmem:[%s11533_s0 + $0xf0] sm:$0xff] }
  0x92   :  { %6566 = vmatmul.msk.f32.gmra.mxu1 %vm61_vm1, %v47_v60  ;;  %6623 = vmatmul.msk.f32.gmra.mxu3 %vm61_vm1, %v385_v61 }
  0x93   :  { %v496_v63 = vpop.f32.mrf.mxu2 }
  0x94   :  { %v7367_v0 = vadd.f32 %v496_v63, %v158_v53 }
  0x95   :  { %v588_v1 = vpop.f32.mrf.mxu3 }
  0x96   :  { %v708_v3 = vadd.f32 %v660_v2, %v588_v1  ;;  %v164_v4 = vpop.f32.mrf.mxu0  ;;  %v391_v2 = vld [vmem:[%s11533_s0 + $0xf1] sm:$0xff] }
  0x97   :  { %v256_v5 = vpop.f32.mrf.mxu1  ;;  %v662_v11 = vld [vmem:[#allocation2 + $0x28] sm:$0xff] }
  0x98   :  { %756 = vst.msk [vmem:[#allocation2 + $0x18] sm:$0xff] %vm320_vm2, %v708_v3  ;;  %6598 = vmatmul.msk.f32.gmra.mxu2 %vm61_vm1, %v385_v61  ;;  %v801_v3 = vld [vmem:[%s11533_s0 + $0x2] sm:$0xff] }
  0x99   :  { %327 = vst.msk [vmem:[#allocation2 + $0x38] sm:$0xff] %vm320_vm2, %v256_v5  ;;  %6541 = vmatmul.msk.f32.gmra.mxu0 %vm61_vm1, %v47_v60 }
  0x9a   :  { %6567 = vmatmul.msk.f32.gmra.mxu1 %vm61_vm1, %v48_v6  ;;  %6624 = vmatmul.msk.f32.gmra.mxu3 %vm61_vm1, %v386_v7 }
  0x9b   :  { %v499_v8 = vpop.f32.mrf.mxu2 }
  0x9c   :  { %v7381_v9 = vadd.f32 %v499_v8, %v161_v58 }
  0x9d   :  { %v591_v10 = vpop.f32.mrf.mxu3 }
  0x9e   :  { %v710_v13 = vadd.f32 %v662_v11, %v591_v10  ;;  %v167_v14 = vpop.f32.mrf.mxu0 }
  0x9f   :  { %v259_v15 = vpop.f32.mrf.mxu1 }
  0xa0   :  { %758 = vst.msk [vmem:[#allocation2 + $0x28] sm:$0xff] %vm320_vm2, %v710_v13  ;;  %6599 = vmatmul.msk.f32.gmra.mxu2 %vm61_vm1, %v386_v7  ;;  %v664_v22 = vld [vmem:[#allocation2 + $0x38] sm:$0xff]  ;;  %v802_v13 = vld [vmem:[%s11533_s0 + $0xa] sm:$0xff] }
  0xa1   :  { %329 = vst.msk [vmem:[#allocation2 + $0x48] sm:$0xff] %vm320_vm2, %v259_v15  ;;  %6542 = vmatmul.msk.f32.gmra.mxu0 %vm61_vm1, %v48_v6  ;;  %v6752_v15 = vld [vmem:[%s11532_s1 + $0x130] sm:$0x1f] }
  0xa2   :  { %6568 = vmatmul.msk.f32.gmra.mxu1 %vm61_vm1, %v49_v16  ;;  %6625 = vmatmul.msk.f32.gmra.mxu3 %vm61_vm1, %v387_v17 }
  0xa3   :  { %v502_v19 = vpop.f32.mrf.mxu2 }
  0xa4   :  { %v7399_v20 = vadd.f32 %v502_v19, %v164_v4 }
  0xa5   :  { %v594_v21 = vpop.f32.mrf.mxu3 }
  0xa6   :  { %v712_v23 = vadd.f32 %v664_v22, %v594_v21  ;;  %v170_v24 = vpop.f32.mrf.mxu0 }
  0xa7   :  { %v262_v26 = vpop.f32.mrf.mxu1 }
  0xa8   :  { %760 = vst.msk [vmem:[#allocation2 + $0x38] sm:$0xff] %vm320_vm2, %v712_v23  ;;  %6600 = vmatmul.msk.f32.gmra.mxu2 %vm61_vm1, %v387_v17  ;;  %v666_v37 = vld [vmem:[#allocation2 + $0x48] sm:$0xff] }
  0xa9   :  { %331 = vst.msk [vmem:[#allocation2 + $0x58] sm:$0xff] %vm320_vm2, %v262_v26  ;;  %6543 = vmatmul.msk.f32.gmra.mxu0 %vm61_vm1, %v49_v16 }
  0xaa   :  { %6569 = vmatmul.msk.f32.gmra.mxu1 %vm61_vm1, %v50_v27  ;;  %6626 = vmatmul.msk.f32.gmra.mxu3 %vm61_vm1, %v388_v28 }
  0xab   :  { %v505_v33 = vpop.f32.mrf.mxu2 }
  0xac   :  { %v7432_v35 = vadd.f32 %v505_v33, %v167_v14  ;;  %v1234_v14 = vld [vmem:[%s11533_s0 + $0x3] sm:$0xff] }
  0xad   :  { %v597_v36 = vpop.f32.mrf.mxu3  ;;  %v804_v33 = vld [vmem:[%s11533_s0 + $0x22] sm:$0xff] }
  0xae   :  { %v714_v38 = vadd.f32 %v666_v37, %v597_v36  ;;  %v173_v39 = vpop.f32.mrf.mxu0 }
  0xaf   :  { %v265_v42 = vpop.f32.mrf.mxu1 }
  0xb0   :  { %762 = vst.msk [vmem:[#allocation2 + $0x48] sm:$0xff] %vm320_vm2, %v714_v38  ;;  %6601 = vmatmul.msk.f32.gmra.mxu2 %vm61_vm1, %v388_v28  ;;  %v668_v51 = vld [vmem:[#allocation2 + $0x58] sm:$0xff] }
  0xb1   :  { %333 = vst.msk [vmem:[#allocation2 + $0x68] sm:$0xff] %vm320_vm2, %v265_v42  ;;  %6544 = vmatmul.msk.f32.gmra.mxu0 %vm61_vm1, %v50_v27 }
  0xb2   :  { %6570 = vmatmul.msk.f32.gmra.mxu1 %vm61_vm1, %v51_v43  ;;  %6627 = vmatmul.msk.f32.gmra.mxu3 %vm61_vm1, %v389_v44 }
  0xb3   :  { %v508_v48 = vpop.f32.mrf.mxu2 }
  0xb4   :  { %v7462_v49 = vadd.f32 %v508_v48, %v170_v24  ;;  %v1235_v24 = vld [vmem:[%s11533_s0 + $0xb] sm:$0xff] }
  0xb5   :  { %v600_v50 = vpop.f32.mrf.mxu3 }
  0xb6   :  { %v716_v52 = vadd.f32 %v668_v51, %v600_v50  ;;  %v176_v53 = vpop.f32.mrf.mxu0 }
  0xb7   :  { %v268_v54 = vpop.f32.mrf.mxu1 }
  0xb8   :  { %764 = vst.msk [vmem:[#allocation2 + $0x58] sm:$0xff] %vm320_vm2, %v716_v52  ;;  %6602 = vmatmul.msk.f32.gmra.mxu2 %vm61_vm1, %v389_v44  ;;  %v670_v61 = vld [vmem:[#allocation2 + $0x68] sm:$0xff] }
  0xb9   :  { %335 = vst.msk [vmem:[#allocation2 + $0x78] sm:$0xff] %vm320_vm2, %v268_v54  ;;  %6545 = vmatmul.msk.f32.gmra.mxu0 %vm61_vm1, %v51_v43  ;;  %v805_v43 = vld [vmem:[%s11533_s0 + $0x2a] sm:$0xff] }
  0xba   :  { %6571 = vmatmul.msk.f32.gmra.mxu1 %vm61_vm1, %v52_v55  ;;  %6628 = vmatmul.msk.f32.gmra.mxu3 %vm61_vm1, %v390_v56  ;;  %v1237_v44 = vld [vmem:[%s11533_s0 + $0x23] sm:$0xff]  ;;  %v1238_v54 = vld [vmem:[%s11533_s0 + $0x2b] sm:$0xff] }
  0xbb   :  { %v511_v58 = vpop.f32.mrf.mxu2 }
  0xbc   :  { %v7476_v59 = vadd.f32 %v511_v58, %v173_v39 }
  0xbd   :  { %v603_v60 = vpop.f32.mrf.mxu3 }
  0xbe   :  { %v718_v62 = vadd.f32 %v670_v61, %v603_v60  ;;  %v179_v63 = vpop.f32.mrf.mxu0 }
  0xbf   :  { %v271_v1 = vpop.f32.mrf.mxu1 }
  0xc0   :  { %766 = vst.msk [vmem:[#allocation2 + $0x68] sm:$0xff] %vm320_vm2, %v718_v62  ;;  %6603 = vmatmul.msk.f32.gmra.mxu2 %vm61_vm1, %v390_v56  ;;  %v672_v7 = vld [vmem:[#allocation2 + $0x78] sm:$0xff] }
  0xc1   :  { %337 = vst.msk [vmem:[#allocation2 + $0x88] sm:$0xff] %vm320_vm2, %v271_v1  ;;  %6546 = vmatmul.msk.f32.gmra.mxu0 %vm61_vm1, %v52_v55  ;;  %v807_v1 = vld [vmem:[%s11533_s0 + $0x42] sm:$0xff] }
  0xc2   :  { %6629 = vmatmul.msk.f32.gmra.mxu3 %vm61_vm1, %v391_v2  ;;  %6664 = vmatmul.msk.f32.vlgmr.msrb.gmra.mxu1 %vm61_vm1, %v801_v3 }
  0xc3   :  { %v514_v4 = vpop.f32.mrf.mxu2 }
  0xc4   :  { %v7490_v5 = vadd.f32 %v514_v4, %v176_v53  ;;  %v806_v53 = vld [vmem:[%s11533_s0 + $0x32] sm:$0xff] }
  0xc5   :  { %v606_v6 = vpop.f32.mrf.mxu3 }
  0xc6   :  { %v720_v8 = vadd.f32 %v672_v7, %v606_v6  ;;  %v182_v10 = vpop.f32.mrf.mxu0 }
  0xc7   :  { %v274_v11 = vpop.f32.mrf.mxu1 }
  0xc8   :  { %768 = vst.msk [vmem:[#allocation2 + $0x78] sm:$0xff] %vm320_vm2, %v720_v8  ;;  %6604 = vmatmul.msk.f32.gmra.mxu2 %vm61_vm1, %v391_v2  ;;  %v674_v19 = vld [vmem:[#allocation2 + $0x88] sm:$0xff]  ;;  %v1239_v2 = vld [vmem:[%s11533_s0 + $0x33] sm:$0xff] }
  0xc9   :  { %339 = vst.msk [vmem:[#allocation2 + $0x98] sm:$0xff] %vm320_vm2, %v274_v11  ;;  %6548 = vmatmul.msk.f32.vlgmr.msrb.gmra.mxu0 %vm61_vm1, %v7150_v12  ;;  %v803_v12 = vld [vmem:[%s11533_s0 + $0x12] sm:$0xff] }
  0xca   :  { %6665 = vmatmul.msk.f32.gmra.mxu1 %vm61_vm1, %v802_v13  ;;  %6722 = vmatmul.msk.f32.vlgmr.msrb.gmra.mxu3 %vm61_vm1, %v1234_v14 }
  0xcb   :  { %v517_v16 = vpop.f32.mrf.mxu2  ;;  %6754 = vmatpush.msk.msrb.mxu0 %vm134_vm0, %v6752_v15  ;;  %v6750_v15 = vld [vmem:[%s11532_s1 + $0x120] sm:$0xff] }
  0xcc   :  { %v7509_v17 = vadd.f32 %v517_v16, %v179_v63 }
  0xcd   :  { %v609_v18 = vpop.f32.mrf.mxu3  ;;  %1791 = vmatpush.msrb.mxu0 %v6750_v15 }
  0xce   :  { %v722_v21 = vadd.f32 %v674_v19, %v609_v18  ;;  %v185_v22 = vpop.f32.mrf.mxu0 }
  0xcf   :  { %v277_v23 = vpop.f32.mrf.mxu1 }
  0xd0   :  { %770 = vst.msk [vmem:[#allocation2 + $0x88] sm:$0xff] %vm320_vm2, %v722_v21  ;;  %6697 = vmatmul.msk.f32.vlgmr.msrb.gmra.mxu2 %vm61_vm1, %v1234_v14  ;;  %v676_v29 = vld [vmem:[#allocation2 + $0x98] sm:$0xff]  ;;  %v1240_v14 = vld [vmem:[%s11533_s0 + $0x43] sm:$0xff] }
  0xd1   :  { %341 = vst.msk [vmem:[#allocation2 + $0xa8] sm:$0xff] %vm320_vm2, %v277_v23  ;;  %6639 = vmatmul.msk.f32.vlgmr.msra.gmra.mxu0 %vm61_vm1, %v801_v3 }
  0xd2   :  { %6666 = vmatmul.msk.f32.gmra.mxu1 %vm61_vm1, %v803_v12  ;;  %6723 = vmatmul.msk.f32.gmra.mxu3 %vm61_vm1, %v1235_v24 }
  0xd3   :  { %v520_v26 = vpop.f32.mrf.mxu2 }
  0xd4   :  { %v7526_v27 = vadd.f32 %v520_v26, %v182_v10  ;;  %v6749_v26 = vld [vmem:[%s11532_s1 + $0x118] sm:$0xff] }
  0xd5   :  { %v612_v28 = vpop.f32.mrf.mxu3  ;;  %1881 = vmatpush.msra.mxu1 %v6749_v26 }
  0xd6   :  { %v724_v30 = vadd.f32 %v676_v29, %v612_v28  ;;  %v188_v31 = vpop.f32.mrf.mxu0 }
  0xd7   :  { %v280_v32 = vpop.f32.mrf.mxu1 }
  0xd8   :  { %772 = vst.msk [vmem:[#allocation2 + $0x98] sm:$0xff] %vm320_vm2, %v724_v30  ;;  %6698 = vmatmul.msk.f32.gmra.mxu2 %vm61_vm1, %v1235_v24  ;;  %v678_v39 = vld [vmem:[#allocation2 + $0xa8] sm:$0xff]  ;;  %v809_v24 = vld [vmem:[%s11533_s0 + $0x52] sm:$0xff] }
  0xd9   :  { %343 = vst.msk [vmem:[#allocation2 + $0xb8] sm:$0xff] %vm320_vm2, %v280_v32  ;;  %6640 = vmatmul.msk.f32.gmra.mxu0 %vm61_vm1, %v802_v13  ;;  %v808_v13 = vld [vmem:[%s11533_s0 + $0x4a] sm:$0xff] }
  0xda   :  { %6667 = vmatmul.msk.f32.gmra.mxu1 %vm61_vm1, %v804_v33  ;;  %6724 = vmatmul.msk.f32.gmra.mxu3 %vm61_vm1, %v1236_v34 }
  0xdb   :  { %v523_v36 = vpop.f32.mrf.mxu2 }
  0xdc   :  { %v7540_v37 = vadd.f32 %v523_v36, %v185_v22  ;;  %v810_v36 = vld [vmem:[%s11533_s0 + $0x62] sm:$0xff] }
  0xdd   :  { %v615_v38 = vpop.f32.mrf.mxu3 }
  0xde   :  { %v726_v40 = vadd.f32 %v678_v39, %v615_v38  ;;  %v191_v41 = vpop.f32.mrf.mxu0  ;;  %v1242_v38 = vld [vmem:[%s11533_s0 + $0x53] sm:$0xff] }
  0xdf   :  { %v283_v42 = vpop.f32.mrf.mxu1 }
  0xe0   :  { %774 = vst.msk [vmem:[#allocation2 + $0xa8] sm:$0xff] %vm320_vm2, %v726_v40  ;;  %6699 = vmatmul.msk.f32.gmra.mxu2 %vm61_vm1, %v1236_v34  ;;  %v680_v48 = vld [vmem:[#allocation2 + $0xb8] sm:$0xff] }
  0xe1   :  { %345 = vst.msk [vmem:[#allocation2 + $0xc8] sm:$0xff] %vm320_vm2, %v283_v42  ;;  %6641 = vmatmul.msk.f32.gmra.mxu0 %vm61_vm1, %v803_v12 }
  0xe2   :  { %6668 = vmatmul.msk.f32.gmra.mxu1 %vm61_vm1, %v805_v43  ;;  %6725 = vmatmul.msk.f32.gmra.mxu3 %vm61_vm1, %v1237_v44 }
  0xe3   :  { %v526_v45 = vpop.f32.mrf.mxu2 }
  0xe4   :  { %v7554_v46 = vadd.f32 %v526_v45, %v188_v31 }
  0xe5   :  { %v618_v47 = vpop.f32.mrf.mxu3 }
  0xe6   :  { %v728_v50 = vadd.f32 %v680_v48, %v618_v47  ;;  %v194_v51 = vpop.f32.mrf.mxu0  ;;  %v811_v47 = vld [vmem:[%s11533_s0 + $0x6a] sm:$0xff] }
  0xe7   :  { %v286_v52 = vpop.f32.mrf.mxu1  ;;  %v1243_v48 = vld [vmem:[%s11533_s0 + $0x63] sm:$0xff] }
  0xe8   :  { %776 = vst.msk [vmem:[#allocation2 + $0xb8] sm:$0xff] %vm320_vm2, %v728_v50  ;;  %6700 = vmatmul.msk.f32.gmra.mxu2 %vm61_vm1, %v1237_v44  ;;  %v682_v60 = vld [vmem:[#allocation2 + $0xc8] sm:$0xff] }
  0xe9   :  { %347 = vst.msk [vmem:[#allocation2 + $0xd8] sm:$0xff] %vm320_vm2, %v286_v52  ;;  %6642 = vmatmul.msk.f32.gmra.mxu0 %vm61_vm1, %v804_v33 }
  0xea   :  { %6669 = vmatmul.msk.f32.gmra.mxu1 %vm61_vm1, %v806_v53  ;;  %6726 = vmatmul.msk.f32.gmra.mxu3 %vm61_vm1, %v1238_v54 }
  0xeb   :  { %v529_v55 = vpop.f32.mrf.mxu2 }
  0xec   :  { %v7568_v56 = vadd.f32 %v529_v55, %v191_v41 }
  0xed   :  { %v621_v58 = vpop.f32.mrf.mxu3 }
  0xee   :  { %v730_v61 = vadd.f32 %v682_v60, %v621_v58  ;;  %v197_v62 = vpop.f32.mrf.mxu0  ;;  %v812_v60 = vld [vmem:[%s11533_s0 + $0x72] sm:$0xff] }
  0xef   :  { %v289_v63 = vpop.f32.mrf.mxu1 }
  0xf0   :  { %778 = vst.msk [vmem:[#allocation2 + $0xc8] sm:$0xff] %vm320_vm2, %v730_v61  ;;  %6701 = vmatmul.msk.f32.gmra.mxu2 %vm61_vm1, %v1238_v54  ;;  %v684_v7 = vld [vmem:[#allocation2 + $0xd8] sm:$0xff]  ;;  %v1244_v61 = vld [vmem:[%s11533_s0 + $0x6b] sm:$0xff] }
  0xf1   :  { %349 = vst.msk [vmem:[#allocation2 + $0xe8] sm:$0xff] %vm320_vm2, %v289_v63  ;;  %6643 = vmatmul.msk.f32.gmra.mxu0 %vm61_vm1, %v805_v43 }
  0xf2   :  { %6670 = vmatmul.msk.f32.gmra.mxu1 %vm61_vm1, %v807_v1  ;;  %6727 = vmatmul.msk.f32.gmra.mxu3 %vm61_vm1, %v1239_v2 }
  0xf3   :  { %v532_v3 = vpop.f32.mrf.mxu2 }
  0xf4   :  { %v7582_v4 = vadd.f32 %v532_v3, %v194_v51 }
  0xf5   :  { %v624_v6 = vpop.f32.mrf.mxu3 }
  0xf6   :  { %v732_v8 = vadd.f32 %v684_v7, %v624_v6  ;;  %v200_v10 = vpop.f32.mrf.mxu0 }
  0xf7   :  { %v292_v11 = vpop.f32.mrf.mxu1 }
  0xf8   :  { %780 = vst.msk [vmem:[#allocation2 + $0xd8] sm:$0xff] %vm320_vm2, %v732_v8  ;;  %6702 = vmatmul.msk.f32.gmra.mxu2 %vm61_vm1, %v1239_v2  ;;  %v686_v21 = vld [vmem:[#allocation2 + $0xe8] sm:$0xff] }
  0xf9   :  { %351 = vst.msk [vmem:[#allocation2 + $0xf8] sm:$0xff] %vm320_vm2, %v292_v11  ;;  %6644 = vmatmul.msk.f32.gmra.mxu0 %vm61_vm1, %v806_v53  ;;  %v813_v8 = vld [vmem:[%s11533_s0 + $0x82] sm:$0xff] }
  0xfa   :  { %6671 = vmatmul.msk.f32.gmra.mxu1 %vm61_vm1, %v808_v13  ;;  %6728 = vmatmul.msk.f32.gmra.mxu3 %vm61_vm1, %v1240_v14 }
  0xfb   :  { %v535_v16 = vpop.f32.mrf.mxu2 }
  0xfc   :  { %v7599_v18 = vadd.f32 %v535_v16, %v197_v62 }
  0xfd   :  { %v627_v19 = vpop.f32.mrf.mxu3 }
  0xfe   :  { %v734_v22 = vadd.f32 %v686_v21, %v627_v19  ;;  %v203_v23 = vpop.f32.mrf.mxu0 }
  0xff   :  { %v295_v12 = vpop.f32.mrf.mxu1 }
 0x100   :  { %782 = vst.msk [vmem:[#allocation2 + $0xe8] sm:$0xff] %vm320_vm2, %v734_v22  ;;  %6703 = vmatmul.msk.f32.gmra.mxu2 %vm61_vm1, %v1240_v14  ;;  %v688_v31 = vld [vmem:[#allocation2 + $0xf8] sm:$0xff]  ;;  %v814_v22 = vld [vmem:[%s11533_s0 + $0x8a] sm:$0xff] }
 0x101   :  { %353 = vst.msk [vmem:[#allocation2 + $0x108] sm:$0xff] %vm320_vm2, %v295_v12  ;;  %6645 = vmatmul.msk.f32.gmra.mxu0 %vm61_vm1, %v807_v1 }
 0x102   :  { %6672 = vmatmul.msk.f32.gmra.mxu1 %vm61_vm1, %v809_v24  ;;  %6729 = vmatmul.msk.f32.gmra.mxu3 %vm61_vm1, %v1241_v25 }
 0x103   :  { %v538_v28 = vpop.f32.mrf.mxu2 }
 0x104   :  { %v7616_v29 = vadd.f32 %v538_v28, %v200_v10  ;;  %v1245_v10 = vld [vmem:[%s11533_s0 + $0x73] sm:$0xff] }
 0x105   :  { %v630_v30 = vpop.f32.mrf.mxu3 }
 0x106   :  { %v736_v32 = vadd.f32 %v688_v31, %v630_v30  ;;  %v206_v33 = vpop.f32.mrf.mxu0 }
 0x107   :  { %v298_v34 = vpop.f32.mrf.mxu1 }
 0x108   :  { %784 = vst.msk [vmem:[#allocation2 + $0xf8] sm:$0xff] %vm320_vm2, %v736_v32  ;;  %6704 = vmatmul.msk.f32.gmra.mxu2 %vm61_vm1, %v1241_v25  ;;  %v690_v42 = vld [vmem:[#allocation2 + $0x108] sm:$0xff]  ;;  %v815_v32 = vld [vmem:[%s11533_s0 + $0x92] sm:$0xff] }
 0x109   :  { %355 = vst.msk [vmem:[#allocation2 + $0x118] sm:$0xff] %vm320_vm2, %v298_v34  ;;  %6646 = vmatmul.msk.f32.gmra.mxu0 %vm61_vm1, %v808_v13 }
 0x10a   :  { %6673 = vmatmul.msk.f32.gmra.mxu1 %vm61_vm1, %v810_v36  ;;  %6730 = vmatmul.msk.f32.gmra.mxu3 %vm61_vm1, %v1242_v38 }
 0x10b   :  { %v541_v39 = vpop.f32.mrf.mxu2 }
 0x10c   :  { %v7630_v40 = vadd.f32 %v541_v39, %v203_v23  ;;  %v1246_v23 = vld [vmem:[%s11533_s0 + $0x83] sm:$0xff] }
 0x10d   :  { %v633_v41 = vpop.f32.mrf.mxu3 }
 0x10e   :  { %v738_v43 = vadd.f32 %v690_v42, %v633_v41  ;;  %v209_v44 = vpop.f32.mrf.mxu0 }
 0x10f   :  { %v301_v45 = vpop.f32.mrf.mxu1 }
 0x110   :  { %786 = vst.msk [vmem:[#allocation2 + $0x108] sm:$0xff] %vm320_vm2, %v738_v43  ;;  %6705 = vmatmul.msk.f32.gmra.mxu2 %vm61_vm1, %v1242_v38  ;;  %v692_v53 = vld [vmem:[#allocation2 + $0x118] sm:$0xff] }
 0x111   :  { %357 = vst.msk [vmem:[#allocation2 + $0x128] sm:$0xff] %vm320_vm2, %v301_v45  ;;  %6647 = vmatmul.msk.f32.gmra.mxu0 %vm61_vm1, %v809_v24  ;;  %v1248_v45 = vld [vmem:[%s11533_s0 + $0x93] sm:$0xff] }
 0x112   :  { %6674 = vmatmul.msk.f32.gmra.mxu1 %vm61_vm1, %v811_v47  ;;  %6731 = vmatmul.msk.f32.gmra.mxu3 %vm61_vm1, %v1243_v48 }
 0x113   :  { %v544_v50 = vpop.f32.mrf.mxu2 }
 0x114   :  { %v7644_v51 = vadd.f32 %v544_v50, %v206_v33  ;;  %v1247_v33 = vld [vmem:[%s11533_s0 + $0x8b] sm:$0xff] }
 0x115   :  { %v636_v52 = vpop.f32.mrf.mxu3 }
 0x116   :  { %v740_v54 = vadd.f32 %v692_v53, %v636_v52  ;;  %v212_v55 = vpop.f32.mrf.mxu0 }
 0x117   :  { %v304_v58 = vpop.f32.mrf.mxu1 }
 0x118   :  { %788 = vst.msk [vmem:[#allocation2 + $0x118] sm:$0xff] %vm320_vm2, %v740_v54  ;;  %6706 = vmatmul.msk.f32.gmra.mxu2 %vm61_vm1, %v1243_v48  ;;  %v694_v2 = vld [vmem:[#allocation2 + $0x128] sm:$0xff]  ;;  %v6748_v48 = vld [vmem:[%s11532_s1 + $0x110] sm:$0xff] }
 0x119   :  { %359 = vst.msk [vmem:[#allocation2 + $0x138] sm:$0xff] %vm320_vm2, %v304_v58  ;;  %6648 = vmatmul.msk.f32.gmra.mxu0 %vm61_vm1, %v810_v36 }
 0x11a   :  { %6675 = vmatmul.msk.f32.gmra.mxu1 %vm61_vm1, %v812_v60  ;;  %6732 = vmatmul.msk.f32.gmra.mxu3 %vm61_vm1, %v1244_v61 }
 0x11b   :  { %v547_v62 = vpop.f32.mrf.mxu2  ;;  %1792 = vmatpush.msrb.mxu0 %v6748_v48  ;;  %v6746_v48 = vld [vmem:[%s11532_s1 + $0x100] sm:$0xff] }
 0x11c   :  { %v7658_v63 = vadd.f32 %v547_v62, %v209_v44  ;;  %v816_v44 = vld [vmem:[%s11533_s0 + $0xa2] sm:$0xff] }
 0x11d   :  { %v639_v1 = vpop.f32.mrf.mxu3  ;;  %1793 = vmatpush.msrb.mxu0 %v6746_v48 }
 0x11e   :  { %v742_v3 = vadd.f32 %v694_v2, %v639_v1  ;;  %v215_v6 = vpop.f32.mrf.mxu0 }
 0x11f   :  { %v307_v7 = vpop.f32.mrf.mxu1 }
 0x120   :  { %790 = vst.msk [vmem:[#allocation2 + $0x128] sm:$0xff] %vm320_vm2, %v742_v3  ;;  %6707 = vmatmul.msk.f32.gmra.mxu2 %vm61_vm1, %v1244_v61  ;;  %v696_v15 = vld [vmem:[#allocation2 + $0x138] sm:$0xff]  ;;  %v1249_v61 = vld [vmem:[%s11533_s0 + $0xa3] sm:$0xff] }
 0x121   :  { %361 = vst.msk [vmem:[#allocation2 + $0x148] sm:$0xff] %vm320_vm2, %v307_v7  ;;  %6649 = vmatmul.msk.f32.gmra.mxu0 %vm61_vm1, %v811_v47 }
 0x122   :  { %6676 = vmatmul.msk.f32.gmra.mxu1 %vm61_vm1, %v813_v8  ;;  %6733 = vmatmul.msk.f32.gmra.mxu3 %vm61_vm1, %v1245_v10 }
 0x123   :  { %v550_v11 = vpop.f32.mrf.mxu2 }
 0x124   :  { %v7672_v13 = vadd.f32 %v550_v11, %v212_v55  ;;  %v1093_v11 = vld [vmem:[#allocation2 + $0x18] sm:$0xff] }
 0x125   :  { %v642_v14 = vpop.f32.mrf.mxu3 }
 0x126   :  { %v744_v16 = vadd.f32 %v696_v15, %v642_v14  ;;  %v218_v19 = vpop.f32.mrf.mxu0  ;;  %v818_v14 = vld [vmem:[%s11533_s0 + $0xb2] sm:$0xff] }
 0x127   :  { %v310_v21 = vpop.f32.mrf.mxu1  ;;  %v1250_v15 = vld [vmem:[%s11533_s0 + $0xab] sm:$0xff] }
 0x128   :  { %792 = vst.msk [vmem:[#allocation2 + $0x138] sm:$0xff] %vm320_vm2, %v744_v16  ;;  %6708 = vmatmul.msk.f32.gmra.mxu2 %vm61_vm1, %v1245_v10  ;;  %v698_v26 = vld [vmem:[#allocation2 + $0x148] sm:$0xff] }
 0x129   :  { %363 = vst.msk [vmem:[#allocation2 + $0x158] sm:$0xff] %vm320_vm2, %v310_v21  ;;  %6650 = vmatmul.msk.f32.gmra.mxu0 %vm61_vm1, %v812_v60  ;;  %v817_v60 = vld [vmem:[%s11533_s0 + $0xaa] sm:$0xff] }
 0x12a   :  { %6677 = vmatmul.msk.f32.gmra.mxu1 %vm61_vm1, %v814_v22  ;;  %6734 = vmatmul.msk.f32.gmra.mxu3 %vm61_vm1, %v1246_v23 }
 0x12b   :  { %v553_v12 = vpop.f32.mrf.mxu2 }
 0x12c   :  { %v7686_v24 = vadd.f32 %v553_v12, %v215_v6  ;;  %v6747_v6 = vld [vmem:[%s11532_s1 + $0x108] sm:$0xff] }
 0x12d   :  { %v645_v25 = vpop.f32.mrf.mxu3  ;;  %1882 = vmatpush.msra.mxu1 %v6747_v6 }
 0x12e   :  { %v746_v28 = vadd.f32 %v698_v26, %v645_v25  ;;  %v221_v30 = vpop.f32.mrf.mxu0 }
 0x12f   :  { %v313_v31 = vpop.f32.mrf.mxu1 }
 0x130   :  { %794 = vst.msk [vmem:[#allocation2 + $0x148] sm:$0xff] %vm320_vm2, %v746_v28  ;;  %6709 = vmatmul.msk.f32.gmra.mxu2 %vm61_vm1, %v1246_v23  ;;  %v700_v39 = vld [vmem:[#allocation2 + $0x158] sm:$0xff]  ;;  %v1095_v28 = vld [vmem:[#allocation2 + $0x28] sm:$0xff] }
 0x131   :  { %365 = vst.msk [vmem:[#allocation2 + $0x168] sm:$0xff] %vm320_vm2, %v313_v31  ;;  %6651 = vmatmul.msk.f32.gmra.mxu0 %vm61_vm1, %v813_v8  ;;  %v1251_v31 = vld [vmem:[%s11533_s0 + $0xb3] sm:$0xff] }
 0x132   :  { %6678 = vmatmul.msk.f32.gmra.mxu1 %vm61_vm1, %v815_v32  ;;  %6735 = vmatmul.msk.f32.gmra.mxu3 %vm61_vm1, %v1247_v33 }
 0x133   :  { %v556_v34 = vpop.f32.mrf.mxu2 }
 0x134   :  { %v7700_v36 = vadd.f32 %v556_v34, %v218_v19 }
 0x135   :  { %v648_v38 = vpop.f32.mrf.mxu3 }
 0x136   :  { %v748_v41 = vadd.f32 %v700_v39, %v648_v38  ;;  %v224_v42 = vpop.f32.mrf.mxu0 }
 0x137   :  { %v316_v43 = vpop.f32.mrf.mxu1 }
 0x138   :  { %796 = vst.msk [vmem:[#allocation2 + $0x158] sm:$0xff] %vm320_vm2, %v748_v41  ;;  %6710 = vmatmul.msk.f32.gmra.mxu2 %vm61_vm1, %v1247_v33  ;;  %v702_v53 = vld [vmem:[#allocation2 + $0x168] sm:$0xff]  ;;  %v1097_v41 = vld [vmem:[#allocation2 + $0x38] sm:$0xff] }
 0x139   :  { %367 = vst.msk [vmem:[#allocation2 + $0x178] sm:$0xff] %vm320_vm2, %v316_v43  ;;  %6652 = vmatmul.msk.f32.gmra.mxu0 %vm61_vm1, %v814_v22  ;;  %v1252_v43 = vld [vmem:[%s11533_s0 + $0xc3] sm:$0xff] }
 0x13a   :  { %6679 = vmatmul.msk.f32.gmra.mxu1 %vm61_vm1, %v816_v44  ;;  %6736 = vmatmul.msk.f32.gmra.mxu3 %vm61_vm1, %v1248_v45 }
 0x13b   :  { %v559_v47 = vpop.f32.mrf.mxu2 }
 0x13c   :  { %v7717_v50 = vadd.f32 %v559_v47, %v221_v30  ;;  %v819_v30 = vld [vmem:[%s11533_s0 + $0xc2] sm:$0xff] }
 0x13d   :  { %v651_v52 = vpop.f32.mrf.mxu3 }
 0x13e   :  { %v750_v54 = vadd.f32 %v702_v53, %v651_v52  ;;  %v227_v55 = vpop.f32.mrf.mxu0 }
 0x13f   :  { %v1018_v58 = vpop.f32.mrf.mxu1 }
 0x140   :  { %798 = vst.msk [vmem:[#allocation2 + $0x168] sm:$0xff] %vm320_vm2, %v750_v54  ;;  %6711 = vmatmul.msk.f32.gmra.mxu2 %vm61_vm1, %v1248_v45  ;;  %v704_v3 = vld [vmem:[#allocation2 + $0x178] sm:$0xff] }
 0x141   :  { %6653 = vmatmul.msk.f32.gmra.mxu0 %vm61_vm1, %v815_v32 }
 0x142   :  { %6680 = vmatmul.msk.f32.gmra.mxu1 %vm61_vm1, %v817_v60  ;;  %6737 = vmatmul.msk.f32.gmra.mxu3 %vm61_vm1, %v1249_v61 }
 0x143   :  { %v562_v62 = vpop.f32.mrf.mxu2 }
 0x144   :  { %v7730_v1 = vadd.f32 %v562_v62, %v224_v42  ;;  %v820_v42 = vld [vmem:[%s11533_s0 + $0xca] sm:$0xff] }
 0x145   :  { %v654_v2 = vpop.f32.mrf.mxu3  ;;  %v1253_v62 = vld [vmem:[%s11533_s0 + $0xcb] sm:$0xff] }
 0x146   :  { %v752_v7 = vadd.f32 %v704_v3, %v654_v2  ;;  %v247_v8 = vpop.f32.mrf.mxu0 }
 0x147   :  { %321 = vst.msk [vmem:[#allocation2 + $0x8] sm:$0xff] %vm320_vm2, %v247_v8  ;;  %v1021_v10 = vpop.f32.mrf.mxu1 }
 0x148   :  { %800 = vst.msk [vmem:[#allocation2 + $0x178] sm:$0xff] %vm320_vm2, %v752_v7  ;;  %v1141_v16 = vadd.f32 %v1093_v11, %v1021_v10  ;;  %6712 = vmatmul.msk.f32.gmra.mxu2 %vm61_vm1, %v1249_v61  ;;  %v821_v61 = vld [vmem:[%s11533_s0 + $0xd2] sm:$0xff] }
 0x149   :  { %6654 = vmatmul.msk.f32.gmra.mxu0 %vm61_vm1, %v816_v44 }
 0x14a   :  { %1189 = vst.msk [vmem:[#allocation2 + $0x18] sm:$0xff] %vm320_vm2, %v1141_v16  ;;  %6681 = vmatmul.msk.f32.gmra.mxu1 %vm61_vm1, %v818_v14  ;;  %6738 = vmatmul.msk.f32.gmra.mxu3 %vm61_vm1, %v1250_v15  ;;  %v822_v16 = vld [vmem:[%s11533_s0 + $0xe2] sm:$0xff] }
 0x14b   :  { %v565_v19 = vpop.f32.mrf.mxu2 }
 0x14c   :  { %v7748_v21 = vadd.f32 %v565_v19, %v227_v55  ;;  %v1254_v19 = vld [vmem:[%s11533_s0 + $0xd3] sm:$0xff] }
 0x14d   :  { %v1451_v22 = vpop.f32.mrf.mxu3 }
 0x14e   :  { %11541 = vst [vmem:[#allocation5_spill] sm:$0xff] %v7748_v21  ;;  %v658_v23 = vld [vmem:[#allocation2 + $0x8] sm:$0xff]  ;;  %v7750_v12 = vpop.f32.mrf.mxu0 }
 0x14f   :  { %v706_v25 = vadd.f32 %v658_v23, %v7350_v57  ;;  %v1024_v26 = vpop.f32.mrf.mxu1 }
 0x150   :  { %v1143_v32 = vadd.f32 %v1095_v28, %v1024_v26  ;;  %6713 = vmatmul.msk.f32.gmra.mxu2 %vm61_vm1, %v1250_v15  ;;  %v1101_v15 = vld [vmem:[#allocation2 + $0x58] sm:$0xff] }
 0x151   :  { %754 = vst.msk [vmem:[#allocation2 + $0x8] sm:$0xff] %vm320_vm2, %v706_v25  ;;  %6655 = vmatmul.msk.f32.gmra.mxu0 %vm61_vm1, %v817_v60  ;;  %v1526_v33 = vld [vmem:[#allocation2 + $0x18] sm:$0xff]  ;;  %v1099_v60 = vld [vmem:[#allocation2 + $0x48] sm:$0xff] }
 0x152   :  { %1191 = vst.msk [vmem:[#allocation2 + $0x28] sm:$0xff] %vm320_vm2, %v1143_v32  ;;  %6682 = vmatmul.msk.f32.gmra.mxu1 %vm61_vm1, %v819_v30  ;;  %6739 = vmatmul.msk.f32.gmra.mxu3 %vm61_vm1, %v1251_v31  ;;  %v823_v32 = vld [vmem:[%s11533_s0 + $0xea] sm:$0xff] }
 0x155   :  { %v1454_v57 = vpop.f32.mrf.mxu3 }
 0x156   :  { %v1574_v34 = vadd.f32 %v1526_v33, %v1454_v57  ;;  %v7765_v38 = vpop.f32.mrf.mxu0  ;;  %v1255_v57 = vld [vmem:[%s11533_s0 + $0xe3] sm:$0xff] }
 0x157   :  { %v1027_v39 = vpop.f32.mrf.mxu1 }
 0x158   :  { %v1091_v44 = vld [vmem:[#allocation2 + $0x8] sm:$0xff]  ;;  %1622 = vst.msk [vmem:[#allocation2 + $0x18] sm:$0xff] %vm320_vm2, %v1574_v34  ;;  %v1145_v45 = vadd.f32 %v1097_v41, %v1027_v39  ;;  %6714 = vmatmul.msk.f32.gmra.mxu2 %vm61_vm1, %v1251_v31 }
 0x159   :  { %v1139_v47 = vadd.f32 %v1091_v44, %v1018_v58  ;;  %6656 = vmatmul.msk.f32.gmra.mxu0 %vm61_vm1, %v818_v14  ;;  %v1528_v53 = vld [vmem:[#allocation2 + $0x28] sm:$0xff]  ;;  %v1105_v44 = vld [vmem:[#allocation2 + $0x78] sm:$0xff] }
 0x15a   :  { %1193 = vst.msk [vmem:[#allocation2 + $0x38] sm:$0xff] %vm320_vm2, %v1145_v45  ;;  %6683 = vmatmul.msk.f32.gmra.mxu1 %vm61_vm1, %v820_v42  ;;  %6740 = vmatmul.msk.f32.gmra.mxu3 %vm61_vm1, %v1252_v43  ;;  %v1103_v31 = vld [vmem:[#allocation2 + $0x68] sm:$0xff]  ;;  %v824_v45 = vld [vmem:[%s11533_s0 + $0xf2] sm:$0xff] }
 0x15b   :  { %1187 = vst.msk [vmem:[#allocation2 + $0x8] sm:$0xff] %vm320_vm2, %v1139_v47  ;;  %v1256_v47 = vld [vmem:[%s11533_s0 + $0xeb] sm:$0xff] }
 0x15d   :  { %v1457_v52 = vpop.f32.mrf.mxu3 }
 0x15e   :  { %v1576_v54 = vadd.f32 %v1528_v53, %v1457_v52  ;;  %v7783_v55 = vpop.f32.mrf.mxu0 }
 0x15f   :  { %v1030_v58 = vpop.f32.mrf.mxu1  ;;  %v1959_v21 = vld [vmem:[#allocation2 + $0x18] sm:$0xff] }
 0x160   :  { %1624 = vst.msk [vmem:[#allocation2 + $0x28] sm:$0xff] %vm320_vm2, %v1576_v54  ;;  %v1147_v2 = vadd.f32 %v1099_v60, %v1030_v58  ;;  %6715 = vmatmul.msk.f32.gmra.mxu2 %vm61_vm1, %v1252_v43 }
 0x161   :  { %6657 = vmatmul.msk.f32.gmra.mxu0 %vm61_vm1, %v819_v30  ;;  %v1530_v8 = vld [vmem:[#allocation2 + $0x38] sm:$0xff] }
 0x162   :  { %v1524_v3 = vld [vmem:[#allocation2 + $0x8] sm:$0xff]  ;;  %1195 = vst.msk [vmem:[#allocation2 + $0x48] sm:$0xff] %vm320_vm2, %v1147_v2  ;;  %6684 = vmatmul.msk.f32.gmra.mxu1 %vm61_vm1, %v821_v61  ;;  %6741 = vmatmul.msk.f32.gmra.mxu3 %vm61_vm1, %v1253_v62 }
 0x163   :  { %v1572_v6 = vadd.f32 %v1524_v3, %v1451_v22  ;;  %v1667_v2 = vld [vmem:[%s11533_s0 + $0x4] sm:$0xff] }
 0x165   :  { %1620 = vst.msk [vmem:[#allocation2 + $0x8] sm:$0xff] %vm320_vm2, %v1572_v6  ;;  %v1460_v7 = vpop.f32.mrf.mxu3 }
 0x166   :  { %v1578_v10 = vadd.f32 %v1530_v8, %v1460_v7  ;;  %v7798_v11 = vpop.f32.mrf.mxu0 }
 0x167   :  { %v1033_v14 = vpop.f32.mrf.mxu1 }
 0x168   :  { %1626 = vst.msk [vmem:[#allocation2 + $0x38] sm:$0xff] %vm320_vm2, %v1578_v10  ;;  %v1149_v22 = vadd.f32 %v1101_v15, %v1033_v14  ;;  %6716 = vmatmul.msk.f32.gmra.mxu2 %vm61_vm1, %v1253_v62  ;;  %v1257_v62 = vld [vmem:[%s11533_s0 + $0xf3] sm:$0xff] }
 0x169   :  { %6658 = vmatmul.msk.f32.gmra.mxu0 %vm61_vm1, %v820_v42  ;;  %v1532_v25 = vld [vmem:[#allocation2 + $0x48] sm:$0xff]  ;;  %v1109_v15 = vld [vmem:[#allocation2 + $0x98] sm:$0xff] }
 0x16a   :  { %1197 = vst.msk [vmem:[#allocation2 + $0x58] sm:$0xff] %vm320_vm2, %v1149_v22  ;;  %6685 = vmatmul.msk.f32.gmra.mxu1 %vm61_vm1, %v822_v16  ;;  %6742 = vmatmul.msk.f32.gmra.mxu3 %vm61_vm1, %v1254_v19 }
 0x16d   :  { %v1463_v23 = vpop.f32.mrf.mxu3 }
 0x16e   :  { %v1580_v26 = vadd.f32 %v1532_v25, %v1463_v23  ;;  %v7812_v28 = vpop.f32.mrf.mxu0 }
 0x16f   :  { %v1036_v30 = vpop.f32.mrf.mxu1 }
 0x170   :  { %1628 = vst.msk [vmem:[#allocation2 + $0x48] sm:$0xff] %vm320_vm2, %v1580_v26  ;;  %v1151_v33 = vadd.f32 %v1103_v31, %v1036_v30  ;;  %6717 = vmatmul.msk.f32.gmra.mxu2 %vm61_vm1, %v1254_v19  ;;  %v1111_v31 = vld [vmem:[#allocation2 + $0xa8] sm:$0xff] }
 0x171   :  { %6659 = vmatmul.msk.f32.gmra.mxu0 %vm61_vm1, %v821_v61  ;;  %v1534_v39 = vld [vmem:[#allocation2 + $0x58] sm:$0xff]  ;;  %v1107_v61 = vld [vmem:[#allocation2 + $0x88] sm:$0xff] }
 0x172   :  { %1199 = vst.msk [vmem:[#allocation2 + $0x68] sm:$0xff] %vm320_vm2, %v1151_v33  ;;  %6686 = vmatmul.msk.f32.gmra.mxu1 %vm61_vm1, %v823_v32  ;;  %6743 = vmatmul.msk.f32.gmra.mxu3 %vm61_vm1, %v1255_v57 }
 0x175   :  { %v1466_v34 = vpop.f32.mrf.mxu3 }
 0x176   :  { %v1582_v41 = vadd.f32 %v1534_v39, %v1466_v34  ;;  %v7826_v42 = vpop.f32.mrf.mxu0 }
 0x177   :  { %v1039_v43 = vpop.f32.mrf.mxu1 }
 0x178   :  { %1630 = vst.msk [vmem:[#allocation2 + $0x58] sm:$0xff] %vm320_vm2, %v1582_v41  ;;  %v1153_v48 = vadd.f32 %v1105_v44, %v1039_v43  ;;  %6718 = vmatmul.msk.f32.gmra.mxu2 %vm61_vm1, %v1255_v57  ;;  %v1113_v44 = vld [vmem:[#allocation2 + $0xb8] sm:$0xff] }
 0x179   :  { %6660 = vmatmul.msk.f32.gmra.mxu0 %vm61_vm1, %v822_v16  ;;  %v1536_v53 = vld [vmem:[#allocation2 + $0x68] sm:$0xff] }
 0x17a   :  { %1201 = vst.msk [vmem:[#allocation2 + $0x78] sm:$0xff] %vm320_vm2, %v1153_v48  ;;  %6687 = vmatmul.msk.f32.gmra.mxu1 %vm61_vm1, %v824_v45  ;;  %6744 = vmatmul.msk.f32.gmra.mxu3 %vm61_vm1, %v1256_v47  ;;  %v1668_v16 = vld [vmem:[%s11533_s0 + $0xc] sm:$0xff] }
 0x17d   :  { %v1469_v52 = vpop.f32.mrf.mxu3 }
 0x17e   :  { %v1584_v54 = vadd.f32 %v1536_v53, %v1469_v52  ;;  %v7840_v58 = vpop.f32.mrf.mxu0 }
 0x17f   :  { %v1042_v60 = vpop.f32.mrf.mxu1 }
 0x180   :  { %1632 = vst.msk [vmem:[#allocation2 + $0x68] sm:$0xff] %vm320_vm2, %v1584_v54  ;;  %v1155_v3 = vadd.f32 %v1107_v61, %v1042_v60  ;;  %6719 = vmatmul.msk.f32.gmra.mxu2 %vm61_vm1, %v1256_v47  ;;  %v1115_v61 = vld [vmem:[#allocation2 + $0xc8] sm:$0xff] }
 0x181   :  { %6661 = vmatmul.msk.f32.gmra.mxu0 %vm61_vm1, %v823_v32  ;;  %v1538_v7 = vld [vmem:[#allocation2 + $0x78] sm:$0xff] }
 0x182   :  { %1203 = vst.msk [vmem:[#allocation2 + $0x88] sm:$0xff] %vm320_vm2, %v1155_v3  ;;  %6745 = vmatmul.msk.f32.gmra.mxu3 %vm61_vm1, %v1257_v62  ;;  %6780 = vmatmul.msk.f32.vlgmr.msra.gmra.mxu1 %vm61_vm1, %v1667_v2  ;;  %v1669_v32 = vld [vmem:[%s11533_s0 + $0x14] sm:$0xff] }
 0x185   :  { %v1472_v6 = vpop.f32.mrf.mxu3 }
 0x186   :  { %v1586_v8 = vadd.f32 %v1538_v7, %v1472_v6  ;;  %v7854_v10 = vpop.f32.mrf.mxu0 }
 0x187   :  { %v1045_v14 = vpop.f32.mrf.mxu1 }
 0x188   :  { %1634 = vst.msk [vmem:[#allocation2 + $0x78] sm:$0xff] %vm320_vm2, %v1586_v8  ;;  %v1157_v19 = vadd.f32 %v1109_v15, %v1045_v14  ;;  %6720 = vmatmul.msk.f32.gmra.mxu2 %vm61_vm1, %v1257_v62  ;;  %v1671_v62 = vld [vmem:[%s11533_s0 + $0x2c] sm:$0xff]  ;;  %v1117_v15 = vld [vmem:[#allocation2 + $0xd8] sm:$0xff] }
 0x189   :  { %6662 = vmatmul.msk.f32.gmra.mxu0 %vm61_vm1, %v824_v45  ;;  %v1540_v23 = vld [vmem:[#allocation2 + $0x88] sm:$0xff] }
 0x18a   :  { %1205 = vst.msk [vmem:[#allocation2 + $0x98] sm:$0xff] %vm320_vm2, %v1157_v19  ;;  %6781 = vmatmul.msk.f32.gmra.mxu1 %vm61_vm1, %v1668_v16  ;;  %v1670_v45 = vld [vmem:[%s11533_s0 + $0x24] sm:$0xff] }
 0x18d   :  { %v1475_v22 = vpop.f32.mrf.mxu3 }
 0x18e   :  { %v1588_v25 = vadd.f32 %v1540_v23, %v1475_v22  ;;  %v7864_v26 = vpop.f32.mrf.mxu0 }
 0x18f   :  { %v1048_v30 = vpop.f32.mrf.mxu1 }
 0x190   :  { %1636 = vst.msk [vmem:[#allocation2 + $0x88] sm:$0xff] %vm320_vm2, %v1588_v25  ;;  %v1159_v57 = vadd.f32 %v1111_v31, %v1048_v30 }
 0x191   :  { %6755 = vmatmul.msk.f32.vlgmr.msrb.gmra.mxu0 %vm61_vm1, %v1667_v2  ;;  %v1542_v34 = vld [vmem:[#allocation2 + $0x98] sm:$0xff] }
 0x192   :  { %1207 = vst.msk [vmem:[#allocation2 + $0xa8] sm:$0xff] %vm320_vm2, %v1159_v57  ;;  %6782 = vmatmul.msk.f32.gmra.mxu1 %vm61_vm1, %v1669_v32  ;;  %v1673_v57 = vld [vmem:[%s11533_s0 + $0x44] sm:$0xff] }
 0x195   :  { %v1478_v33 = vpop.f32.mrf.mxu3 }
 0x196   :  { %v1590_v39 = vadd.f32 %v1542_v34, %v1478_v33  ;;  %v7873_v41 = vpop.f32.mrf.mxu0 }
 0x197   :  { %v1051_v43 = vpop.f32.mrf.mxu1 }
 0x198   :  { %1638 = vst.msk [vmem:[#allocation2 + $0x98] sm:$0xff] %vm320_vm2, %v1590_v39  ;;  %v1161_v47 = vadd.f32 %v1113_v44, %v1051_v43 }
 0x199   :  { %6756 = vmatmul.msk.f32.gmra.mxu0 %vm61_vm1, %v1668_v16  ;;  %v1544_v52 = vld [vmem:[#allocation2 + $0xa8] sm:$0xff]  ;;  %v1672_v16 = vld [vmem:[%s11533_s0 + $0x34] sm:$0xff] }
 0x19a   :  { %1209 = vst.msk [vmem:[#allocation2 + $0xb8] sm:$0xff] %vm320_vm2, %v1161_v47  ;;  %6783 = vmatmul.msk.f32.gmra.mxu1 %vm61_vm1, %v1670_v45  ;;  %v1121_v47 = vld [vmem:[#allocation2 + $0xf8] sm:$0xff] }
 0x19d   :  { %v1481_v48 = vpop.f32.mrf.mxu3 }
 0x19e   :  { %v1592_v53 = vadd.f32 %v1544_v52, %v1481_v48  ;;  %v7882_v54 = vpop.f32.mrf.mxu0  ;;  %v1674_v48 = vld [vmem:[%s11533_s0 + $0x4c] sm:$0xff] }
 0x19f   :  { %v1054_v60 = vpop.f32.mrf.mxu1 }
 0x1a0   :  { %1640 = vst.msk [vmem:[#allocation2 + $0xa8] sm:$0xff] %vm320_vm2, %v1592_v53  ;;  %v1163_v2 = vadd.f32 %v1115_v61, %v1054_v60 }
 0x1a1   :  { %6757 = vmatmul.msk.f32.gmra.mxu0 %vm61_vm1, %v1669_v32  ;;  %v1546_v6 = vld [vmem:[#allocation2 + $0xb8] sm:$0xff]  ;;  %v1119_v32 = vld [vmem:[#allocation2 + $0xe8] sm:$0xff] }
 0x1a2   :  { %1211 = vst.msk [vmem:[#allocation2 + $0xc8] sm:$0xff] %vm320_vm2, %v1163_v2  ;;  %6784 = vmatmul.msk.f32.gmra.mxu1 %vm61_vm1, %v1671_v62 }
 0x1a5   :  { %v1484_v3 = vpop.f32.mrf.mxu3 }
 0x1a6   :  { %v1594_v7 = vadd.f32 %v1546_v6, %v1484_v3  ;;  %v7891_v8 = vpop.f32.mrf.mxu0  ;;  %v1123_v3 = vld [vmem:[#allocation2 + $0x108] sm:$0xff]  ;;  %v1675_v6 = vld [vmem:[%s11533_s0 + $0x54] sm:$0xff] }
 0x1a7   :  { %v1057_v14 = vpop.f32.mrf.mxu1 }
 0x1a8   :  { %1642 = vst.msk [vmem:[#allocation2 + $0xb8] sm:$0xff] %vm320_vm2, %v1594_v7  ;;  %v1165_v19 = vadd.f32 %v1117_v15, %v1057_v14 }
 0x1a9   :  { %6758 = vmatmul.msk.f32.gmra.mxu0 %vm61_vm1, %v1670_v45  ;;  %v1548_v23 = vld [vmem:[#allocation2 + $0xc8] sm:$0xff] }
 0x1aa   :  { %1213 = vst.msk [vmem:[#allocation2 + $0xd8] sm:$0xff] %vm320_vm2, %v1165_v19  ;;  %6785 = vmatmul.msk.f32.gmra.mxu1 %vm61_vm1, %v1672_v16 }
 0x1ad   :  { %v1487_v22 = vpop.f32.mrf.mxu3 }
 0x1ae   :  { %v1596_v25 = vadd.f32 %v1548_v23, %v1487_v22  ;;  %v7900_v30 = vpop.f32.mrf.mxu0  ;;  %v1125_v23 = vld [vmem:[#allocation2 + $0x118] sm:$0xff] }
 0x1af   :  { %v1060_v31 = vpop.f32.mrf.mxu1 }
 0x1b0   :  { %1644 = vst.msk [vmem:[#allocation2 + $0xc8] sm:$0xff] %vm320_vm2, %v1596_v25  ;;  %v1167_v33 = vadd.f32 %v1119_v32, %v1060_v31  ;;  %v1676_v25 = vld [vmem:[%s11533_s0 + $0x64] sm:$0xff] }
 0x1b1   :  { %6759 = vmatmul.msk.f32.gmra.mxu0 %vm61_vm1, %v1671_v62  ;;  %v1550_v39 = vld [vmem:[#allocation2 + $0xd8] sm:$0xff] }
 0x1b2   :  { %1215 = vst.msk [vmem:[#allocation2 + $0xe8] sm:$0xff] %vm320_vm2, %v1167_v33  ;;  %6786 = vmatmul.msk.f32.gmra.mxu1 %vm61_vm1, %v1673_v57 }
 0x1b5   :  { %v1490_v34 = vpop.f32.mrf.mxu3 }
 0x1b6   :  { %v1598_v43 = vadd.f32 %v1550_v39, %v1490_v34  ;;  %v7909_v44 = vpop.f32.mrf.mxu0 }
 0x1b7   :  { %v1063_v45 = vpop.f32.mrf.mxu1 }
 0x1b8   :  { %1646 = vst.msk [vmem:[#allocation2 + $0xd8] sm:$0xff] %vm320_vm2, %v1598_v43  ;;  %v1169_v52 = vadd.f32 %v1121_v47, %v1063_v45  ;;  %v1127_v43 = vld [vmem:[#allocation2 + $0x128] sm:$0xff] }
 0x1b9   :  { %6760 = vmatmul.msk.f32.gmra.mxu0 %vm61_vm1, %v1672_v16  ;;  %v1552_v60 = vld [vmem:[#allocation2 + $0xe8] sm:$0xff] }
 0x1ba   :  { %1217 = vst.msk [vmem:[#allocation2 + $0xf8] sm:$0xff] %vm320_vm2, %v1169_v52  ;;  %6787 = vmatmul.msk.f32.gmra.mxu1 %vm61_vm1, %v1674_v48  ;;  %v1677_v45 = vld [vmem:[%s11533_s0 + $0x6c] sm:$0xff] }
 0x1bd   :  { %v1493_v53 = vpop.f32.mrf.mxu3 }
 0x1be   :  { %v1600_v61 = vadd.f32 %v1552_v60, %v1493_v53  ;;  %v7918_v62 = vpop.f32.mrf.mxu0 }
 0x1bf   :  { %v1066_v2 = vpop.f32.mrf.mxu1 }
 0x1c0   :  { %1648 = vst.msk [vmem:[#allocation2 + $0xe8] sm:$0xff] %vm320_vm2, %v1600_v61  ;;  %v1171_v7 = vadd.f32 %v1123_v3, %v1066_v2  ;;  %v1129_v2 = vld [vmem:[#allocation2 + $0x138] sm:$0xff] }
 0x1c1   :  { %6761 = vmatmul.msk.f32.gmra.mxu0 %vm61_vm1, %v1673_v57  ;;  %v1554_v15 = vld [vmem:[#allocation2 + $0xf8] sm:$0xff] }
 0x1c2   :  { %1219 = vst.msk [vmem:[#allocation2 + $0x108] sm:$0xff] %vm320_vm2, %v1171_v7  ;;  %6788 = vmatmul.msk.f32.gmra.mxu1 %vm61_vm1, %v1675_v6  ;;  %v1678_v3 = vld [vmem:[%s11533_s0 + $0x74] sm:$0xff] }
 0x1c5   :  { %v1496_v14 = vpop.f32.mrf.mxu3 }
 0x1c6   :  { %v1602_v16 = vadd.f32 %v1554_v15, %v1496_v14  ;;  %v7927_v19 = vpop.f32.mrf.mxu0 }
 0x1c7   :  { %v1069_v22 = vpop.f32.mrf.mxu1 }
 0x1c8   :  { %1650 = vst.msk [vmem:[#allocation2 + $0xf8] sm:$0xff] %vm320_vm2, %v1602_v16  ;;  %v1173_v31 = vadd.f32 %v1125_v23, %v1069_v22 }
 0x1c9   :  { %6762 = vmatmul.msk.f32.gmra.mxu0 %vm61_vm1, %v1674_v48  ;;  %v1556_v57 = vld [vmem:[#allocation2 + $0x108] sm:$0xff] }
 0x1ca   :  { %1221 = vst.msk [vmem:[#allocation2 + $0x118] sm:$0xff] %vm320_vm2, %v1173_v31  ;;  %6789 = vmatmul.msk.f32.gmra.mxu1 %vm61_vm1, %v1676_v25  ;;  %v1131_v31 = vld [vmem:[#allocation2 + $0x148] sm:$0xff] }
 0x1cd   :  { %v1499_v32 = vpop.f32.mrf.mxu3 }
 0x1ce   :  { %v1604_v33 = vadd.f32 %v1556_v57, %v1499_v32  ;;  %v7936_v34 = vpop.f32.mrf.mxu0  ;;  %v1679_v32 = vld [vmem:[%s11533_s0 + $0x84] sm:$0xff] }
 0x1cf   :  { %v1072_v39 = vpop.f32.mrf.mxu1 }
 0x1d0   :  { %1652 = vst.msk [vmem:[#allocation2 + $0x108] sm:$0xff] %vm320_vm2, %v1604_v33  ;;  %v1175_v47 = vadd.f32 %v1127_v43, %v1072_v39 }
 0x1d1   :  { %6763 = vmatmul.msk.f32.gmra.mxu0 %vm61_vm1, %v1675_v6  ;;  %v1558_v52 = vld [vmem:[#allocation2 + $0x118] sm:$0xff]  ;;  %v7954_v6 = vpop.f32.mrf.mxu2 }
 0x1d2   :  { %1223 = vst.msk [vmem:[#allocation2 + $0x128] sm:$0xff] %vm320_vm2, %v1175_v47  ;;  %6790 = vmatmul.msk.f32.gmra.mxu1 %vm61_vm1, %v1677_v45 }
 0x1d5   :  { %v1502_v48 = vpop.f32.mrf.mxu3 }
 0x1d6   :  { %v1606_v53 = vadd.f32 %v1558_v52, %v1502_v48  ;;  %v7945_v60 = vpop.f32.mrf.mxu0  ;;  %v1133_v52 = vld [vmem:[#allocation2 + $0x158] sm:$0xff] }
 0x1d7   :  { %v1075_v61 = vpop.f32.mrf.mxu1 }
 0x1d8   :  { %1654 = vst.msk [vmem:[#allocation2 + $0x118] sm:$0xff] %vm320_vm2, %v1606_v53  ;;  %v1177_v7 = vadd.f32 %v1129_v2, %v1075_v61  ;;  %v1680_v53 = vld [vmem:[%s11533_s0 + $0x8c] sm:$0xff] }
 0x1d9   :  { %6764 = vmatmul.msk.f32.gmra.mxu0 %vm61_vm1, %v1676_v25  ;;  %v1560_v15 = vld [vmem:[#allocation2 + $0x128] sm:$0xff]  ;;  %v7965_v39 = vpop.f32.mrf.mxu2 }
 0x1da   :  { %1225 = vst.msk [vmem:[#allocation2 + $0x138] sm:$0xff] %vm320_vm2, %v1177_v7  ;;  %6791 = vmatmul.msk.f32.gmra.mxu1 %vm61_vm1, %v1678_v3 }
 0x1dd   :  { %v1505_v14 = vpop.f32.mrf.mxu3 }
 0x1de   :  { %v1608_v16 = vadd.f32 %v1560_v15, %v1505_v14  ;;  %v7956_v22 = vpop.f32.mrf.mxu0 }
 0x1df   :  { %v1078_v23 = vpop.f32.mrf.mxu1 }
 0x1e0   :  { %1656 = vst.msk [vmem:[#allocation2 + $0x128] sm:$0xff] %vm320_vm2, %v1608_v16  ;;  %v1179_v25 = vadd.f32 %v1131_v31, %v1078_v23  ;;  %v1135_v16 = vld [vmem:[#allocation2 + $0x168] sm:$0xff]  ;;  %v1681_v23 = vld [vmem:[%s11533_s0 + $0x94] sm:$0xff] }
 0x1e1   :  { %6765 = vmatmul.msk.f32.gmra.mxu0 %vm61_vm1, %v1677_v45  ;;  %v1562_v33 = vld [vmem:[#allocation2 + $0x138] sm:$0xff]  ;;  %v7981_v31 = vpop.f32.mrf.mxu2 }
 0x1e2   :  { %1227 = vst.msk [vmem:[#allocation2 + $0x148] sm:$0xff] %vm320_vm2, %v1179_v25  ;;  %6792 = vmatmul.msk.f32.gmra.mxu1 %vm61_vm1, %v1679_v32 }
 0x1e5   :  { %v1508_v57 = vpop.f32.mrf.mxu3 }
 0x1e6   :  { %v1610_v43 = vadd.f32 %v1562_v33, %v1508_v57  ;;  %v7967_v47 = vpop.f32.mrf.mxu0 }
 0x1e7   :  { %v1081_v48 = vpop.f32.mrf.mxu1 }
 0x1e8   :  { %1658 = vst.msk [vmem:[#allocation2 + $0x138] sm:$0xff] %vm320_vm2, %v1610_v43  ;;  %v1181_v45 = vadd.f32 %v1133_v52, %v1081_v48  ;;  %v1137_v52 = vld [vmem:[#allocation2 + $0x178] sm:$0xff] }
 0x1e9   :  { %6766 = vmatmul.msk.f32.gmra.mxu0 %vm61_vm1, %v1678_v3  ;;  %v1564_v2 = vld [vmem:[#allocation2 + $0x148] sm:$0xff] }
 0x1ea   :  { %1229 = vst.msk [vmem:[#allocation2 + $0x158] sm:$0xff] %vm320_vm2, %v1181_v45  ;;  %6793 = vmatmul.msk.f32.gmra.mxu1 %vm61_vm1, %v1680_v53  ;;  %v1682_v45 = vld [vmem:[%s11533_s0 + $0xa4] sm:$0xff] }
 0x1ed   :  { %v1511_v61 = vpop.f32.mrf.mxu3 }
 0x1ee   :  { %v1612_v7 = vadd.f32 %v1564_v2, %v1511_v61  ;;  %v7976_v14 = vpop.f32.mrf.mxu0 }
 0x1ef   :  { %v1084_v15 = vpop.f32.mrf.mxu1 }
 0x1f0   :  { %1660 = vst.msk [vmem:[#allocation2 + $0x148] sm:$0xff] %vm320_vm2, %v1612_v7  ;;  %v1183_v3 = vadd.f32 %v1135_v16, %v1084_v15 }
 0x1f1   :  { %6767 = vmatmul.msk.f32.gmra.mxu0 %vm61_vm1, %v1679_v32  ;;  %v1566_v57 = vld [vmem:[#allocation2 + $0x158] sm:$0xff]  ;;  %v7994_v32 = vpop.f32.mrf.mxu2 }
 0x1f2   :  { %1231 = vst.msk [vmem:[#allocation2 + $0x168] sm:$0xff] %vm320_vm2, %v1183_v3  ;;  %6794 = vmatmul.msk.f32.gmra.mxu1 %vm61_vm1, %v1681_v23 }
 0x1f5   :  { %v1514_v25 = vpop.f32.mrf.mxu3 }
 0x1f6   :  { %v1614_v33 = vadd.f32 %v1566_v57, %v1514_v25  ;;  %v7987_v43 = vpop.f32.mrf.mxu0  ;;  %v1957_v25 = vld [vmem:[#allocation2 + $0x8] sm:$0xff] }
 0x1f7   :  { %v1087_v48 = vpop.f32.mrf.mxu1  ;;  %v1683_v57 = vld [vmem:[%s11533_s0 + $0xac] sm:$0xff] }
 0x1f8   :  { %1662 = vst.msk [vmem:[#allocation2 + $0x158] sm:$0xff] %vm320_vm2, %v1614_v33  ;;  %v1185_v61 = vadd.f32 %v1137_v52, %v1087_v48 }
 0x1f9   :  { %6768 = vmatmul.msk.f32.gmra.mxu0 %vm61_vm1, %v1680_v53  ;;  %v1568_v7 = vld [vmem:[#allocation2 + $0x168] sm:$0xff]  ;;  %v8007_v33 = vpop.f32.mrf.mxu2 }
 0x1fa   :  { %1233 = vst.msk [vmem:[#allocation2 + $0x178] sm:$0xff] %vm320_vm2, %v1185_v61  ;;  %6795 = vmatmul.msk.f32.gmra.mxu1 %vm61_vm1, %v1682_v45 }
 0x1fd   :  { %v1517_v2 = vpop.f32.mrf.mxu3 }
 0x1fe   :  { %v1616_v15 = vadd.f32 %v1568_v7, %v1517_v2  ;;  %v7998_v16 = vpop.f32.mrf.mxu0 }
 0x1ff   :  { %11542 = vst [vmem:[#allocation6_spill] sm:$0xff] %v7998_v16  ;;  %v1884_v3 = vpop.f32.mrf.mxu1 }
 0x200   :  { %1664 = vst.msk [vmem:[#allocation2 + $0x168] sm:$0xff] %vm320_vm2, %v1616_v15  ;;  %v2005_v53 = vadd.f32 %v1957_v25, %v1884_v3  ;;  %v1684_v15 = vld [vmem:[%s11533_s0 + $0xb4] sm:$0xff]  ;;  %v1138_v3 = vadd.f32 %v7750_v12, %v7367_v0 }
 0x201   :  { %6769 = vmatmul.msk.f32.gmra.mxu0 %vm61_vm1, %v1681_v23  ;;  %v1570_v52 = vld [vmem:[#allocation2 + $0x178] sm:$0xff] }
 0x202   :  { %2053 = vst.msk [vmem:[#allocation2 + $0x8] sm:$0xff] %vm320_vm2, %v2005_v53  ;;  %6796 = vmatmul.msk.f32.gmra.mxu1 %vm61_vm1, %v1683_v57 }
 0x205   :  { %v1520_v48 = vpop.f32.mrf.mxu3 }
 0x206   :  { %v1618_v61 = vadd.f32 %v1570_v52, %v1520_v48  ;;  %v8009_v2 = vpop.f32.mrf.mxu0  ;;  %v8024_v48 = vpop.f32.mrf.mxu2  ;;  %v1961_v52 = vld [vmem:[#allocation2 + $0x28] sm:$0xff] }
 0x207   :  { %v1887_v7 = vpop.f32.mrf.mxu1 }
 0x208   :  { %1666 = vst.msk [vmem:[#allocation2 + $0x178] sm:$0xff] %vm320_vm2, %v1618_v61  ;;  %v2007_v23 = vadd.f32 %v1959_v21, %v1887_v7  ;;  %v1571_v21 = vadd.f32 %v7954_v6, %v1138_v3  ;;  %v1685_v61 = vld [vmem:[%s11533_s0 + $0xc4] sm:$0xff] }
 0x209   :  { %6770 = vmatmul.msk.f32.gmra.mxu0 %vm61_vm1, %v1682_v45  ;;  %v2398_v25 = vld [vmem:[#allocation2 + $0xb] ss:$0 sm:$0xff]  ;;  %v2197_v53 = vld [vmem:[#allocation2 + $0x9] ss:$0 sm:$0xff]  ;;  %v2108_v16 = vld [vmem:[#allocation2 + $0x8] ss:$0 sm:$0xff] }
 0x20a   :  { %2055 = vst.msk [vmem:[#allocation2 + $0x18] sm:$0xff] %vm320_vm2, %v2007_v23  ;;  %6797 = vmatmul.msk.f32.gmra.mxu1 %vm61_vm1, %v1684_v15  ;;  %2424 = vrot.lane.b32.xlu1 %v2398_v25, %s7061_s24  ;;  %v1140_v23 = vadd.f32 %v7765_v38, %v7381_v9  ;;  %v2510_v6 = vld [vmem:[#allocation2 + $0xc] ss:$0 sm:$0xff]  ;;  %v2310_v3 = vld [vmem:[#allocation2 + $0xa] ss:$0 sm:$0xff] }
 0x20b   :  { %2223 = vrot.lane.b32.xlu2 %v2197_v53, %s7061_s24  ;;  %2134 = vrot.lane.b32.xlu0 %v2108_v16, %s7061_s24  ;;  %v2710_v16 = vld [vmem:[#allocation2 + $0xe] ss:$0 sm:$0xff] }
 0x20c   :  { %v1573_v25 = vadd.f32 %v7965_v39, %v1140_v23  ;;  %v2798_v39 = vld [vmem:[#allocation2 + $0xf] ss:$0 sm:$0xff] }
 0x20e   :  { %v1795_v0 = vpop.f32.mrf.mxu0 }
 0x20f   :  { %v2004_v12 = vadd.f32 %v1795_v0, %v1571_v21  ;;  %v1890_v45 = vpop.f32.mrf.mxu1  ;;  %v1963_v21 = vld [vmem:[#allocation2 + $0x38] sm:$0xff]  ;;  %v8041_v0 = vpop.f32.mrf.mxu2 }
 0x210   :  { %v2009_v7 = vadd.f32 %v1961_v52, %v1890_v45  ;;  %v1142_v45 = vadd.f32 %v7783_v55, %v7399_v20 }
 0x211   :  { %2052 = vst [vmem:[#allocation2] sm:$0xff] %v2004_v12  ;;  %6771 = vmatmul.msk.f32.gmra.mxu0 %vm61_vm1, %v1683_v57  ;;  %v1686_v57 = vld [vmem:[%s11533_s0 + $0xcc] sm:$0xff]  ;;  %v2998_v52 = vld [vmem:[#allocation2 + $0x19] ss:$0 sm:$0xff] }
 0x212   :  { %2057 = vst.msk [vmem:[#allocation2 + $0x28] sm:$0xff] %vm320_vm2, %v2009_v7  ;;  %6798 = vmatmul.msk.f32.gmra.mxu1 %vm61_vm1, %v1685_v61  ;;  %2736 = vrot.lane.b32.xlu1 %v2710_v16, %s7061_s24  ;;  %v2598_v7 = vld [vmem:[#allocation2 + $0xd] ss:$0 sm:$0xff]  ;;  %v1575_v23 = vadd.f32 %v7981_v31, %v1142_v45  ;;  %v3110_v31 = vld [vmem:[#allocation2 + $0x1a] ss:$0 sm:$0xff]  ;;  %v1688_v45 = vld [vmem:[%s11533_s0 + $0xe4] sm:$0xff] }
 0x213   :  { %2536 = vrot.lane.b32.xlu2 %v2510_v6, %s7061_s24  ;;  %2336 = vrot.lane.b32.xlu0 %v2310_v3, %s7061_s24  ;;  %v1965_v6 = vld [vmem:[#allocation2 + $0x48] sm:$0xff] }
 0x216   :  { %v1798_v53 = vpop.f32.mrf.mxu0 }
 0x217   :  { %v2006_v9 = vadd.f32 %v1798_v53, %v1573_v25  ;;  %v1893_v38 = vpop.f32.mrf.mxu1  ;;  %v1144_v25 = vadd.f32 %v7798_v11, %v7432_v35  ;;  %v3310_v53 = vld [vmem:[#allocation2 + $0x1c] ss:$0 sm:$0xff] }
 0x218   :  { %v2011_v12 = vadd.f32 %v1963_v21, %v1893_v38  ;;  %v2910_v38 = vld [vmem:[#allocation2 + $0x18] ss:$0 sm:$0xff] }
 0x219   :  { %2054 = vst [vmem:[#allocation2 + $0x10] sm:$0xff] %v2006_v9  ;;  %6772 = vmatmul.msk.f32.gmra.mxu0 %vm61_vm1, %v1684_v15  ;;  %v1687_v15 = vld [vmem:[%s11533_s0 + $0xd4] sm:$0xff]  ;;  %v8058_v9 = vpop.f32.mrf.mxu2  ;;  %v1577_v35 = vadd.f32 %v7994_v32, %v1144_v25  ;;  %v3398_v32 = vld [vmem:[#allocation2 + $0x1d] ss:$0 sm:$0xff]  ;;  %v1148_v25 = vadd.f32 %v7826_v42, %v7476_v59 }
 0x21a   :  { %2059 = vst.msk [vmem:[#allocation2 + $0x38] sm:$0xff] %vm320_vm2, %v2011_v12  ;;  %6799 = vmatmul.msk.f32.gmra.mxu1 %vm61_vm1, %v1686_v57  ;;  %3024 = vrot.lane.b32.xlu1 %v2998_v52, %s7061_s24  ;;  %v1967_v12 = vld [vmem:[#allocation2 + $0x58] sm:$0xff] }
 0x21b   :  { %2824 = vrot.lane.b32.xlu2 %v2798_v39, %s7061_s24  ;;  %2624 = vrot.lane.b32.xlu0 %v2598_v7, %s7061_s24  ;;  %v1146_v39 = vadd.f32 %v7812_v28, %v7462_v49  ;;  %v3598_v7 = vld [vmem:[#allocation2 + $0x1f] ss:$0 sm:$0xff]  ;;  %v1581_v59 = vadd.f32 %v8024_v48, %v1148_v25  ;;  %v8112_v48 = vld [vmem:[#allocation2 + $0x5] ss:$0 sm:$0xff] }
 0x21d   :  { %v1579_v49 = vadd.f32 %v8007_v33, %v1146_v39  ;;  %v8092_v33 = vld [vmem:[#allocation2 + $0x2] ss:$0 sm:$0xff]  ;;  %v8114_v39 = vld [vmem:[#allocation2] ss:$0 sm:$0xff] }
 0x21e   :  { %v1801_v16 = vpop.f32.mrf.mxu0 }
 0x21f   :  { %v2008_v20 = vadd.f32 %v1801_v16, %v1575_v23  ;;  %v1896_v55 = vpop.f32.mrf.mxu1  ;;  %v3198_v23 = vld [vmem:[#allocation2 + $0x1b] ss:$0 sm:$0xff] }
 0x220   :  { %v2013_v3 = vadd.f32 %v1965_v6, %v1896_v55  ;;  %v1969_v55 = vld [vmem:[#allocation2 + $0x68] sm:$0xff] }
 0x221   :  { %2056 = vst [vmem:[#allocation2 + $0x20] sm:$0xff] %v2008_v20  ;;  %6773 = vmatmul.msk.f32.gmra.mxu0 %vm61_vm1, %v1685_v61  ;;  %v8077_v16 = vpop.f32.mrf.mxu2  ;;  %v1689_v6 = vld [vmem:[%s11533_s0 + $0xec] sm:$0xff] }
 0x222   :  { %2061 = vst.msk [vmem:[#allocation2 + $0x48] sm:$0xff] %vm320_vm2, %v2013_v3  ;;  %6800 = vmatmul.msk.f32.gmra.mxu1 %vm61_vm1, %v1687_v15  ;;  %3336 = vrot.lane.b32.xlu1 %v3310_v53, %s7061_s24  ;;  %v8086_v53 = vld [vmem:[#allocation2 + $0x1] ss:$0 sm:$0xff] }
 0x223   :  { %3136 = vrot.lane.b32.xlu2 %v3110_v31, %s7061_s24  ;;  %2936 = vrot.lane.b32.xlu0 %v2910_v38, %s7061_s24  ;;  %v3510_v31 = vld [vmem:[#allocation2 + $0x1e] ss:$0 sm:$0xff] }
 0x226   :  { %v1804_v11 = vpop.f32.mrf.mxu0 }
 0x227   :  { %v2010_v21 = vadd.f32 %v1804_v11, %v1577_v35  ;;  %v1899_v61 = vpop.f32.mrf.mxu1  ;;  %v1971_v11 = vld [vmem:[#allocation2 + $0x78] sm:$0xff] }
 0x228   :  { %v2015_v52 = vadd.f32 %v1967_v12, %v1899_v61  ;;  %v1150_v12 = vadd.f32 %v7840_v58, %v7490_v5 }
 0x229   :  { %2058 = vst [vmem:[#allocation2 + $0x30] sm:$0xff] %v2010_v21  ;;  %6774 = vmatmul.msk.f32.gmra.mxu0 %vm61_vm1, %v1686_v57  ;;  %v8098_v42 = vpop.f32.mrf.mxu2  ;;  %v1690_v21 = vld [vmem:[%s11533_s0 + $0xf4] sm:$0xff] }
 0x22a   :  { %2063 = vst.msk [vmem:[#allocation2 + $0x58] sm:$0xff] %vm320_vm2, %v2015_v52  ;;  %6801 = vmatmul.msk.f32.gmra.mxu1 %vm61_vm1, %v1688_v45  ;;  %3624 = vrot.lane.b32.xlu1 %v3598_v7, %s7061_s24  ;;  %v8106_v52 = vld [vmem:[#allocation2 + $0x4] ss:$0 sm:$0xff]  ;;  %v1583_v5 = vadd.f32 %v8041_v0, %v1150_v12  ;;  %v3710_v0 = vld [vmem:[#allocation2 + $0x28] ss:$0 sm:$0xff]  ;;  %v1156_v12 = vadd.f32 %v7873_v41, %v7540_v37 }
 0x22b   :  { %3424 = vrot.lane.b32.xlu2 %v3398_v32, %s7061_s24  ;;  %3224 = vrot.lane.b32.xlu0 %v3198_v23, %s7061_s24  ;;  %v1973_v32 = vld [vmem:[#allocation2 + $0x88] sm:$0xff]  ;;  %v1158_v41 = vadd.f32 %v7882_v54, %v7554_v46 }
 0x22c   :  { %v1981_v46 = vld [vmem:[#allocation2 + $0xc8] sm:$0xff] }
 0x22e   :  { %v1807_v28 = vpop.f32.mrf.mxu0 }
 0x22f   :  { %v2012_v20 = vadd.f32 %v1807_v28, %v1579_v49  ;;  %v1902_v57 = vpop.f32.mrf.mxu1  ;;  %v1152_v28 = vadd.f32 %v7854_v10, %v7509_v17 }
 0x230   :  { %v2017_v3 = vadd.f32 %v1969_v55, %v1902_v57  ;;  %v8129_v57 = vld [vmem:[#allocation2 + $0x3] ss:$0 sm:$0xff] }
 0x231   :  { %2060 = vst [vmem:[#allocation2 + $0x40] sm:$0xff] %v2012_v20  ;;  %6775 = vmatmul.msk.f32.gmra.mxu0 %vm61_vm1, %v1687_v15  ;;  %v1392_v23 = vpop.f32.mrf.mxu2  ;;  %v8124_v20 = vld [vmem:[#allocation2 + $0x7] ss:$0 sm:$0xff]  ;;  %v1585_v17 = vadd.f32 %v8058_v9, %v1152_v28 }
 0x232   :  { %2065 = vst.msk [vmem:[#allocation2 + $0x68] sm:$0xff] %vm320_vm2, %v2017_v3  ;;  %6802 = vmatmul.msk.f32.gmra.mxu1 %vm61_vm1, %v1689_v6  ;;  %2221 = vrot.lane.b32.xlu1 %v8086_v53, %s7061_s24  ;;  %v1975_v3 = vld [vmem:[#allocation2 + $0x98] sm:$0xff] }
 0x233   :  { %2334 = vrot.lane.b32.xlu2 %v8092_v33, %s7061_s24  ;;  %3536 = vrot.lane.b32.xlu0 %v3510_v31, %s7061_s24  ;;  %v1154_v31 = vadd.f32 %v7864_v26, %v7526_v27 }
 0x235   :  { %v1587_v9 = vadd.f32 %v8077_v16, %v1154_v31 }
 0x236   :  { %v1810_v15 = vpop.f32.mrf.mxu0 }
 0x237   :  { %v2014_v38 = vadd.f32 %v1810_v15, %v1581_v59  ;;  %v1905_v35 = vpop.f32.mrf.mxu1  ;;  %v2109_v59 = vld [vmem:[#allocation2 + $0x38] ss:$0 sm:$0xff] }
 0x238   :  { %v2019_v61 = vadd.f32 %v1971_v11, %v1905_v35  ;;  %v8140_v35 = vld [vmem:[#allocation2 + $0x6] ss:$0 sm:$0xff] }
 0x239   :  { %2062 = vst [vmem:[#allocation2 + $0x50] sm:$0xff] %v2014_v38  ;;  %6776 = vmatmul.msk.f32.gmra.mxu0 %vm61_vm1, %v1688_v45  ;;  %v1395_v15 = vpop.f32.mrf.mxu2  ;;  %v2311_v38 = vld [vmem:[#allocation2 + $0x3a] ss:$0 sm:$0xff] }
 0x23a   :  { %2067 = vst.msk [vmem:[#allocation2 + $0x78] sm:$0xff] %vm320_vm2, %v2019_v61  ;;  %6803 = vmatmul.msk.f32.gmra.mxu1 %vm61_vm1, %v1690_v21  ;;  %2534 = vrot.lane.b32.xlu1 %v8106_v52, %s7061_s24 }
 0x23b   :  { %2622 = vrot.lane.b32.xlu2 %v8112_v48, %s7061_s24  ;;  %2132 = vrot.lane.b32.xlu0 %v8114_v39, %s7061_s24 }
 0x23e   :  { %v1813_v58 = vpop.f32.mrf.mxu0 }
 0x23f   :  { %v2016_v45 = vadd.f32 %v1813_v58, %v1583_v5  ;;  %v1908_v7 = vpop.f32.mrf.mxu1  ;;  %v2198_v5 = vld [vmem:[#allocation2 + $0x39] ss:$0 sm:$0xff]  ;;  %v2599_v58 = vld [vmem:[#allocation2 + $0x3d] ss:$0 sm:$0xff] }
 0x240   :  { %v2021_v49 = vadd.f32 %v1973_v32, %v1908_v7  ;;  %v1589_v7 = vadd.f32 %v8098_v42, %v1156_v12  ;;  %v1591_v42 = vadd.f32 %v1392_v23, %v1158_v41  ;;  %v8195_v41 = vld [vmem:[#allocation2 + $0x15] ss:$0 sm:$0xff] }
 0x241   :  { %2064 = vst [vmem:[#allocation2 + $0x60] sm:$0xff] %v2016_v45  ;;  %6777 = vmatmul.msk.f32.gmra.mxu0 %vm61_vm1, %v1689_v6  ;;  %v2399_v45 = vld [vmem:[#allocation2 + $0x3b] ss:$0 sm:$0xff]  ;;  %v1398_v16 = vpop.f32.mrf.mxu2 }
 0x242   :  { %2069 = vst.msk [vmem:[#allocation2 + $0x88] sm:$0xff] %vm320_vm2, %v2021_v49  ;;  %2822 = vrot.lane.b32.xlu1 %v8124_v20, %s7061_s24 }
 0x243   :  { %3736 = vrot.lane.b32.xlu2 %v3710_v0, %s7061_s24  ;;  %2422 = vrot.lane.b32.xlu0 %v8129_v57, %s7061_s24  ;;  %v1979_v0 = vld [vmem:[#allocation2 + $0xb8] sm:$0xff] }
 0x246   :  { %v1816_v10 = vpop.f32.mrf.mxu0 }
 0x247   :  { %v2018_v55 = vadd.f32 %v1816_v10, %v1585_v17  ;;  %v1911_v6 = vpop.f32.mrf.mxu1  ;;  %v2511_v17 = vld [vmem:[#allocation2 + $0x3c] ss:$0 sm:$0xff]  ;;  %v8157_v10 = vld [vmem:[#allocation2 + $0x10] ss:$0 sm:$0xff] }
 0x248   :  { %v2023_v25 = vadd.f32 %v1975_v3, %v1911_v6 }
 0x249   :  { %2066 = vst [vmem:[#allocation2 + $0x70] sm:$0xff] %v2018_v55  ;;  %6778 = vmatmul.msk.f32.gmra.mxu0 %vm61_vm1, %v1690_v21  ;;  %v1977_v21 = vld [vmem:[#allocation2 + $0xa8] sm:$0xff]  ;;  %v2711_v55 = vld [vmem:[#allocation2 + $0x3e] ss:$0 sm:$0xff]  ;;  %v1401_v6 = vpop.f32.mrf.mxu2 }
 0x24a   :  { %2071 = vst.msk [vmem:[#allocation2 + $0x98] sm:$0xff] %vm320_vm2, %v2023_v25  ;;  %2138 = vrot.lane.b32.xlu1 %v2109_v59, %s7061_s24  ;;  %v1160_v59 = vadd.f32 %v7891_v8, %v7568_v56 }
 0x24b   :  { %2340 = vrot.lane.b32.xlu2 %v2311_v38, %s7061_s24  ;;  %2734 = vrot.lane.b32.xlu0 %v8140_v35, %s7061_s24  ;;  %v2799_v38 = vld [vmem:[#allocation2 + $0x3f] ss:$0 sm:$0xff] }
 0x24c   :  { %v1593_v23 = vadd.f32 %v1395_v15, %v1160_v59  ;;  %v8183_v15 = vld [vmem:[#allocation2 + $0x16] ss:$0 sm:$0xff]  ;;  %v3111_v59 = vld [vmem:[#allocation2 + $0x4a] ss:$0 sm:$0xff] }
 0x24e   :  { %v1819_v27 = vpop.f32.mrf.mxu0 }
 0x24f   :  { %v2020_v26 = vadd.f32 %v1819_v27, %v1587_v9  ;;  %v1914_v11 = vpop.f32.mrf.mxu1  ;;  %v8166_v9 = vld [vmem:[#allocation2 + $0x13] ss:$0 sm:$0xff]  ;;  %v8168_v27 = vld [vmem:[#allocation2 + $0x11] ss:$0 sm:$0xff] }
 0x250   :  { %v2025_v61 = vadd.f32 %v1977_v21, %v1914_v11  ;;  %v1983_v21 = vld [vmem:[#allocation2 + $0xd8] sm:$0xff] }
 0x251   :  { %2068 = vst [vmem:[#allocation2 + $0x80] sm:$0xff] %v2020_v26 }
 0x252   :  { %2073 = vst.msk [vmem:[#allocation2 + $0xa8] sm:$0xff] %vm320_vm2, %v2025_v61  ;;  %2227 = vrot.lane.b32.xlu1 %v2198_v5, %s7061_s24  ;;  %v1404_v61 = vpop.f32.mrf.mxu2  ;;  %v1162_v5 = vadd.f32 %v7900_v30, %v7582_v4 }
 0x253   :  { %2628 = vrot.lane.b32.xlu2 %v2599_v58, %s7061_s24  ;;  %2428 = vrot.lane.b32.xlu0 %v2399_v45, %s7061_s24  ;;  %v8178_v58 = vld [vmem:[#allocation2 + $0x12] ss:$0 sm:$0xff]  ;;  %v8185_v45 = vld [vmem:[#allocation2 + $0x14] ss:$0 sm:$0xff] }
 0x256   :  { %v1822_v32 = vpop.f32.mrf.mxu0 }
 0x257   :  { %v2022_v49 = vadd.f32 %v1822_v32, %v1589_v7  ;;  %v1917_v28 = vpop.f32.mrf.mxu1  ;;  %v1595_v7 = vadd.f32 %v1398_v16, %v1162_v5  ;;  %v2911_v16 = vld [vmem:[#allocation2 + $0x48] ss:$0 sm:$0xff] }
 0x258   :  { %v2027_v37 = vadd.f32 %v1979_v0, %v1917_v28  ;;  %v1985_v28 = vld [vmem:[#allocation2 + $0xe8] sm:$0xff] }
 0x259   :  { %2070 = vst [vmem:[#allocation2 + $0x90] sm:$0xff] %v2022_v49  ;;  %v1989_v5 = vld [vmem:[#allocation2 + $0x108] sm:$0xff] }
 0x25a   :  { %2075 = vst.msk [vmem:[#allocation2 + $0xb8] sm:$0xff] %vm320_vm2, %v2027_v37  ;;  %2540 = vrot.lane.b32.xlu1 %v2511_v17, %s7061_s24  ;;  %v1164_v37 = vadd.f32 %v7909_v44, %v7599_v18  ;;  %v1407_v17 = vpop.f32.mrf.mxu2 }
 0x25b   :  { %2934 = vrot.lane.b32.xlu2 %v8157_v10, %s7061_s24  ;;  %2740 = vrot.lane.b32.xlu0 %v2711_v55, %s7061_s24  ;;  %v8200_v55 = vld [vmem:[#allocation2 + $0x17] ss:$0 sm:$0xff] }
 0x25e   :  { %v1825_v3 = vpop.f32.mrf.mxu0 }
 0x25f   :  { %v2024_v25 = vadd.f32 %v1825_v3, %v1591_v42  ;;  %v1920_v31 = vpop.f32.mrf.mxu1  ;;  %v1597_v42 = vadd.f32 %v1401_v6, %v1164_v37 }
 0x260   :  { %v2029_v54 = vadd.f32 %v1981_v46, %v1920_v31  ;;  %v1987_v31 = vld [vmem:[#allocation2 + $0xf8] sm:$0xff] }
 0x261   :  { %2072 = vst [vmem:[#allocation2 + $0xa0] sm:$0xff] %v2024_v25 }
 0x262   :  { %2077 = vst.msk [vmem:[#allocation2 + $0xc8] sm:$0xff] %vm320_vm2, %v2029_v54  ;;  %2828 = vrot.lane.b32.xlu1 %v2799_v38, %s7061_s24  ;;  %v1166_v54 = vadd.f32 %v7918_v62, %v7616_v29  ;;  %v3199_v38 = vld [vmem:[#allocation2 + $0x4b] ss:$0 sm:$0xff]  ;;  %v1410_v6 = vpop.f32.mrf.mxu2 }
 0x263   :  { %3222 = vrot.lane.b32.xlu2 %v8166_v9, %s7061_s24  ;;  %3022 = vrot.lane.b32.xlu0 %v8168_v27, %s7061_s24 }
 0x265   :  { %v8174_v26 = vpop.permute.xlu2 %2223 }
 0x266   :  { %v1828_v56 = vpop.f32.mrf.mxu0 }
 0x267   :  { %v2026_v8 = vadd.f32 %v1828_v56, %v1593_v23  ;;  %v1923_v11 = vpop.f32.mrf.mxu1  ;;  %v2999_v23 = vld [vmem:[#allocation2 + $0x49] ss:$0 sm:$0xff] }
 0x268   :  { %v2031_v12 = vadd.f32 %v1983_v21, %v1923_v11 }
 0x269   :  { %2074 = vst [vmem:[#allocation2 + $0xb0] sm:$0xff] %v2026_v8  ;;  %v1599_v8 = vadd.f32 %v1404_v61, %v1166_v54  ;;  %v3311_v61 = vld [vmem:[#allocation2 + $0x4c] ss:$0 sm:$0xff]  ;;  %v3599_v54 = vld [vmem:[#allocation2 + $0x4f] ss:$0 sm:$0xff] }
 0x26a   :  { %2079 = vst.msk [vmem:[#allocation2 + $0xd8] sm:$0xff] %vm320_vm2, %v2031_v12  ;;  %3134 = vrot.lane.b32.xlu1 %v8178_v58, %s7061_s24 }
 0x26b   :  { %3534 = vrot.lane.b32.xlu2 %v8183_v15, %s7061_s24  ;;  %3334 = vrot.lane.b32.xlu0 %v8185_v45, %s7061_s24 }
 0x26d   :  { %v8191_v4 = vpop.permute.xlu2 %2536 }
 0x26e   :  { %v1831_v30 = vpop.f32.mrf.mxu0 }
 0x26f   :  { %v2028_v32 = vadd.f32 %v1831_v30, %v1595_v7  ;;  %v1926_v49 = vpop.f32.mrf.mxu1  ;;  %v1168_v30 = vadd.f32 %v7927_v19, %v7630_v40  ;;  %v1413_v40 = vpop.f32.mrf.mxu2 }
 0x270   :  { %v2033_v0 = vadd.f32 %v1985_v28, %v1926_v49  ;;  %v3511_v49 = vld [vmem:[#allocation2 + $0x4e] ss:$0 sm:$0xff] }
 0x271   :  { %2076 = vst [vmem:[#allocation2 + $0xc0] sm:$0xff] %v2028_v32  ;;  %v3399_v32 = vld [vmem:[#allocation2 + $0x4d] ss:$0 sm:$0xff] }
 0x272   :  { %2081 = vst.msk [vmem:[#allocation2 + $0xe8] sm:$0xff] %vm320_vm2, %v2033_v0  ;;  %3422 = vrot.lane.b32.xlu1 %v8195_v41, %s7061_s24  ;;  %v1601_v0 = vadd.f32 %v1407_v17, %v1168_v30  ;;  %v8235_v17 = vld [vmem:[#allocation2 + $0x33] ss:$0 sm:$0xff]  ;;  %v8248_v30 = vld [vmem:[#allocation2 + $0x30] ss:$0 sm:$0xff] }
 0x273   :  { %2940 = vrot.lane.b32.xlu2 %v2911_v16, %s7061_s24  ;;  %3622 = vrot.lane.b32.xlu0 %v8200_v55, %s7061_s24 }
 0x275   :  { %v8205_v3 = vpop.permute.xlu2 %2824 }
 0x276   :  { %v1834_v18 = vpop.f32.mrf.mxu0 }
 0x277   :  { %v2030_v44 = vadd.f32 %v1834_v18, %v1597_v42  ;;  %v1929_v25 = vpop.f32.mrf.mxu1 }
 0x278   :  { %v2035_v46 = vadd.f32 %v1987_v31, %v1929_v25  ;;  %v1170_v31 = vadd.f32 %v7936_v34, %v7644_v51 }
 0x279   :  { %2078 = vst [vmem:[#allocation2 + $0xd0] sm:$0xff] %v2030_v44  ;;  %v1991_v44 = vld [vmem:[#allocation2 + $0x118] sm:$0xff] }
 0x27a   :  { %2083 = vst.msk [vmem:[#allocation2 + $0xf8] sm:$0xff] %vm320_vm2, %v2035_v46  ;;  %3140 = vrot.lane.b32.xlu1 %v3111_v59, %s7061_s24  ;;  %v3702_v46 = vld [vmem:[#allocation2 + $0x20] ss:$0 sm:$0xff] }
 0x27b   :  { %3228 = vrot.lane.b32.xlu2 %v3199_v38, %s7061_s24  ;;  %3028 = vrot.lane.b32.xlu0 %v2999_v23, %s7061_s24  ;;  %v1603_v38 = vadd.f32 %v1410_v6, %v1170_v31  ;;  %v8253_v6 = vld [vmem:[#allocation2 + $0x36] ss:$0 sm:$0xff]  ;;  %v8267_v31 = vld [vmem:[#allocation2 + $0x32] ss:$0 sm:$0xff] }
 0x27c   :  { %v8213_v56 = vpop.permute.xlu1 %2424 }
 0x27d   :  { %v8215_v11 = vpop.permute.xlu2 %3136  ;;  %v8217_v21 = vpop.permute.xlu0 %2134 }
 0x27e   :  { %v1837_v29 = vpop.f32.mrf.mxu0 }
 0x27f   :  { %v2032_v62 = vadd.f32 %v1837_v29, %v1599_v8  ;;  %v1932_v12 = vpop.f32.mrf.mxu1 }
 0x280   :  { %v2037_v7 = vadd.f32 %v1989_v5, %v1932_v12  ;;  %v1416_v12 = vpop.f32.mrf.mxu2 }
 0x281   :  { %2080 = vst [vmem:[#allocation2 + $0xe0] sm:$0xff] %v2032_v62  ;;  %v1993_v62 = vld [vmem:[#allocation2 + $0x128] sm:$0xff] }
 0x282   :  { %2085 = vst.msk [vmem:[#allocation2 + $0x108] sm:$0xff] %vm320_vm2, %v2037_v7  ;;  %3428 = vrot.lane.b32.xlu1 %v3399_v32, %s7061_s24  ;;  %v1172_v7 = vadd.f32 %v7945_v60, %v7658_v63  ;;  %v8255_v32 = vld [vmem:[#allocation2 + $0x31] ss:$0 sm:$0xff] }
 0x283   :  { %3540 = vrot.lane.b32.xlu2 %v3511_v49, %s7061_s24  ;;  %3340 = vrot.lane.b32.xlu0 %v3311_v61, %s7061_s24 }
 0x284   :  { %v8225_v28 = vpop.permute.xlu1 %2736  ;;  %v1605_v63 = vadd.f32 %v1413_v40, %v1172_v7  ;;  %v2110_v40 = vld [vmem:[#allocation2 + $0x68] ss:$0 sm:$0xff] }
 0x285   :  { %v8227_v37 = vpop.permute.xlu2 %3424  ;;  %v8229_v16 = vpop.permute.xlu0 %2336 }
 0x286   :  { %v1840_v19 = vpop.f32.mrf.mxu0 }
 0x287   :  { %v2034_v42 = vadd.f32 %v1840_v19, %v1601_v0  ;;  %v1935_v18 = vpop.f32.mrf.mxu1 }
 0x288   :  { %v2039_v25 = vadd.f32 %v1991_v44, %v1935_v18  ;;  %v1995_v18 = vld [vmem:[#allocation2 + $0x138] sm:$0xff] }
 0x289   :  { %2082 = vst [vmem:[#allocation2 + $0xf0] sm:$0xff] %v2034_v42 }
 0x28a   :  { %2087 = vst.msk [vmem:[#allocation2 + $0x118] sm:$0xff] %vm320_vm2, %v2039_v25  ;;  %3734 = vrot.lane.b32.xlu1 %v3702_v46, %s7061_s24  ;;  %v1174_v25 = vadd.f32 %v7956_v22, %v7672_v13  ;;  %v1419_v46 = vpop.f32.mrf.mxu2 }
 0x28b   :  { %2426 = vrot.lane.b32.xlu2 %v8235_v17, %s7061_s24  ;;  %3628 = vrot.lane.b32.xlu0 %v3599_v54, %s7061_s24  ;;  %v8272_v54 = vld [vmem:[#allocation2 + $0x34] ss:$0 sm:$0xff] }
 0x28c   :  { %v8240_v59 = vpop.permute.xlu1 %3024  ;;  %v1607_v13 = vadd.f32 %v1416_v12, %v1174_v25  ;;  %v2400_v12 = vld [vmem:[#allocation2 + $0x6b] ss:$0 sm:$0xff] }
 0x28d   :  { %v8242_v23 = vpop.permute.xlu2 %2334  ;;  %v8244_v51 = vpop.permute.xlu0 %2624 }
 0x28e   :  { %v1843_v34 = vpop.f32.mrf.mxu0 }
 0x28f   :  { %v2036_v8 = vadd.f32 %v1843_v34, %v1603_v38  ;;  %v1938_v29 = vpop.f32.mrf.mxu1 }
 0x290   :  { %v2041_v5 = vadd.f32 %v1993_v62, %v1938_v29 }
 0x291   :  { %2084 = vst [vmem:[#allocation2 + $0x100] sm:$0xff] %v2036_v8 }
 0x292   :  { %2089 = vst.msk [vmem:[#allocation2 + $0x128] sm:$0xff] %vm320_vm2, %v2041_v5  ;;  %2136 = vrot.lane.b32.xlu1 %v8248_v30, %s7061_s24  ;;  %v1997_v5 = vld [vmem:[#allocation2 + $0x148] sm:$0xff] }
 0x293   :  { %2738 = vrot.lane.b32.xlu2 %v8253_v6, %s7061_s24  ;;  %2225 = vrot.lane.b32.xlu0 %v8255_v32, %s7061_s24 }
 0x294   :  { %v8261_v49 = vpop.permute.xlu1 %3336 }
 0x295   :  { %v2623_v60 = vpop.permute.xlu2 %2622  ;;  %v8263_v61 = vpop.permute.xlu0 %2936 }
 0x296   :  { %v1846_v0 = vpop.f32.mrf.mxu0 }
 0x297   :  { %v2038_v19 = vadd.f32 %v1846_v0, %v1605_v63  ;;  %v1941_v42 = vpop.f32.mrf.mxu1  ;;  %v1176_v63 = vadd.f32 %v7967_v47, %v7686_v24  ;;  %v8285_v0 = vld [vmem:[#allocation2 + $0x35] ss:$0 sm:$0xff] }
 0x298   :  { %v2043_v44 = vadd.f32 %v1995_v18, %v1941_v42  ;;  %v1422_v42 = vpop.f32.mrf.mxu2 }
 0x299   :  { %2086 = vst [vmem:[#allocation2 + $0x110] sm:$0xff] %v2038_v19  ;;  %v8290_v19 = vld [vmem:[#allocation2 + $0x37] ss:$0 sm:$0xff] }
 0x29a   :  { %2091 = vst.msk [vmem:[#allocation2 + $0x138] sm:$0xff] %vm320_vm2, %v2043_v44  ;;  %2338 = vrot.lane.b32.xlu1 %v8267_v31, %s7061_s24  ;;  %v1609_v44 = vadd.f32 %v1419_v46, %v1176_v63  ;;  %v2712_v46 = vld [vmem:[#allocation2 + $0x6e] ss:$0 sm:$0xff]  ;;  %v2654_v63 = vsel %vm2164_vm3, %v2623_v60, %v8244_v51 }
 0x29b   :  { %2142 = vrot.lane.b32.xlu2 %v2110_v40, %s7061_s24  ;;  %2538 = vrot.lane.b32.xlu0 %v8272_v54, %s7061_s24 }
 0x29c   :  { %v8277_v38 = vpop.permute.xlu1 %3624 }
 0x29d   :  { %v8279_v22 = vpop.permute.xlu2 %3736  ;;  %v8281_v34 = vpop.permute.xlu0 %3224 }
 0x29e   :  { %v1849_v8 = vpop.f32.mrf.mxu0 }
 0x29f   :  { %v2040_v29 = vadd.f32 %v1849_v8, %v1607_v13  ;;  %v1944_v62 = vpop.f32.mrf.mxu1  ;;  %v1999_v8 = vld [vmem:[#allocation2 + $0x158] sm:$0xff] }
 0x2a0   :  { %v2045_v7 = vadd.f32 %v1997_v5, %v1944_v62  ;;  %v1178_v62 = vadd.f32 %v7976_v14, %v7700_v36  ;;  %v3711_v5 = vld [vmem:[#allocation2 + $0x58] ss:$0 sm:$0xff] }
 0x2a1   :  { %2088 = vst [vmem:[#allocation2 + $0x120] sm:$0xff] %v2040_v29 }
 0x2a2   :  { %2093 = vst.msk [vmem:[#allocation2 + $0x148] sm:$0xff] %vm320_vm2, %v2045_v7  ;;  %2626 = vrot.lane.b32.xlu1 %v8285_v0, %s7061_s24  ;;  %v2199_v7 = vld [vmem:[#allocation2 + $0x69] ss:$0 sm:$0xff]  ;;  %v1611_v14 = vadd.f32 %v1422_v42, %v1178_v62 }
 0x2a3   :  { %2432 = vrot.lane.b32.xlu2 %v2400_v12, %s7061_s24  ;;  %2826 = vrot.lane.b32.xlu0 %v8290_v19, %s7061_s24  ;;  %v2001_v62 = vld [vmem:[#allocation2 + $0x168] sm:$0xff] }
 0x2a4   :  { %v2222_v18 = vpop.permute.xlu1 %2221 }
 0x2a5   :  { %v8295_v24 = vpop.permute.xlu2 %2340  ;;  %v8297_v47 = vpop.permute.xlu0 %3536  ;;  %v2253_v12 = vsel %vm2164_vm3, %v2222_v18, %v8174_v26 }
 0x2a6   :  { %v1852_v25 = vpop.f32.mrf.mxu0 }
 0x2a7   :  { %v2042_v40 = vadd.f32 %v1852_v25, %v1609_v44  ;;  %v1947_v13 = vpop.f32.mrf.mxu1 }
 0x2a8   :  { %v2047_v29 = vadd.f32 %v1999_v8, %v1947_v13  ;;  %v1425_v13 = vpop.f32.mrf.mxu2  ;;  %v2670_v8 = vmax.f32 %v8112_v48, %v2654_v63 }
 0x2a9   :  { %2090 = vst [vmem:[#allocation2 + $0x130] sm:$0xff] %v2042_v40 }
 0x2aa   :  { %2095 = vst.msk [vmem:[#allocation2 + $0x158] sm:$0xff] %vm320_vm2, %v2047_v29  ;;  %3740 = vrot.lane.b32.xlu1 %v3711_v5, %s7061_s24  ;;  %v2269_v5 = vmax.f32 %v8086_v53, %v2253_v12  ;;  %v8323_v53 = vld [vmem:[#allocation2 + $0x41] ss:$0 sm:$0xff] }
 0x2ab   :  { %2744 = vrot.lane.b32.xlu2 %v2712_v46, %s7061_s24  ;;  %2231 = vrot.lane.b32.xlu0 %v2199_v7, %s7061_s24  ;;  %v1180_v7 = vadd.f32 %v7987_v43, %v7717_v50  ;;  %v2366_v50 = vsel %vm2164_vm3, %v8242_v23, %v8229_v16  ;;  %v2003_v16 = vld [vmem:[#allocation2 + $0x178] sm:$0xff] }
 0x2ac   :  { %v2535_v36 = vpop.permute.xlu1 %2534 }
 0x2ad   :  { %v2566_v44 = vsel %vm2164_vm3, %v2535_v36, %v8191_v4  ;;  %v8311_v25 = vpop.permute.xlu2 %2628  ;;  %v2133_v40 = vpop.permute.xlu0 %2132  ;;  %v1613_v12 = vadd.f32 %v1425_v13, %v1180_v7  ;;  %v11543_v13 = vld [vmem:[#allocation6_spill] sm:$0xff]  ;;  %v4536_v7 = vld [vmem:[%s11534_s2 + $0xd0] sm:$0xff] }
 0x2ae   :  { %v2582_v51 = vmax.f32 %v8106_v52, %v2566_v44  ;;  %v2165_v60 = vsel %vm2164_vm3, %v2133_v40, %v8217_v21  ;;  %v1855_v29 = vpop.f32.mrf.mxu0  ;;  %v2312_v52 = vld [vmem:[#allocation2 + $0x6a] ss:$0 sm:$0xff] }
 0x2af   :  { %v2181_v26 = vmax.f32 %v8114_v39, %v2165_v60  ;;  %v2044_v42 = vadd.f32 %v1855_v29, %v1611_v14  ;;  %v1950_v18 = vpop.f32.mrf.mxu1  ;;  %v2512_v39 = vld [vmem:[#allocation2 + $0x6c] ss:$0 sm:$0xff] }
 0x2b0   :  { %v2678_v4 = vmax.f32 %v2582_v51, %v2670_v8  ;;  %v2049_v46 = vadd.f32 %v2001_v62, %v1950_v18  ;;  %v2382_v8 = vmax.f32 %v8092_v33, %v2366_v50  ;;  %v1428_v23 = vpop.f32.mrf.mxu2  ;;  %v2600_v18 = vld [vmem:[#allocation2 + $0x6d] ss:$0 sm:$0xff]  ;;  %v8341_v62 = vld [vmem:[#allocation2 + $0x44] ss:$0 sm:$0xff]  ;;  %v2800_v33 = vld [vmem:[#allocation2 + $0x6f] ss:$0 sm:$0xff] }
 0x2b1   :  { %v2277_v48 = vmax.f32 %v2181_v26, %v2269_v5  ;;  %2092 = vst [vmem:[#allocation2 + $0x140] sm:$0xff] %v2044_v42  ;;  %v1182_v26 = vadd.f32 %v11543_v13, %v7730_v1 }
 0x2b2   :  { %v2686_v63 = vmax.f32 %v2678_v4, 0.0  ;;  %2097 = vst.msk [vmem:[#allocation2 + $0x168] sm:$0xff] %vm320_vm2, %v2049_v46  ;;  %2344 = vrot.lane.b32.xlu1 %v2312_v52, %s7061_s24 }
 0x2b3   :  { %v2285_v21 = vmax.f32 %v2277_v48, 0.0  ;;  %3026 = vrot.lane.b32.xlu2 %v8323_v53, %s7061_s24  ;;  %2544 = vrot.lane.b32.xlu0 %v2512_v39, %s7061_s24  ;;  %v4537_v48 = vld [vmem:[%s11534_s2 + $0xd8] sm:$0xff]  ;;  %v1615_v52 = vadd.f32 %v1428_v23, %v1182_v26  ;;  %v4528_v26 = vld [vmem:[%s11534_s2 + $0x90] sm:$0xff] }
 0x2b4   :  { %2694 = vst.msk [vmem:[#allocation3 + $0x2] sm:$0x1] %vm2293_vm4, %v2686_v63  ;;  %v2823_v43 = vpop.permute.xlu1 %2822 }
 0x2b5   :  { %2294 = vst.msk [vmem:[#allocation3] sm:$0x1] %vm2293_vm4, %v2285_v21  ;;  %v8333_v36 = vpop.permute.xlu2 %2934  ;;  %v2423_v14 = vpop.permute.xlu0 %2422  ;;  %v2854_v1 = vsel %vm2164_vm3, %v2823_v43, %v8205_v3  ;;  %v4534_v3 = vld [vmem:[%s11534_s2 + $0xc0] sm:$0xff]  ;;  %v4535_v21 = vld [vmem:[%s11534_s2 + $0xc8] sm:$0xff] }
 0x2b6   :  { %v2454_v44 = vsel %vm2164_vm3, %v2423_v14, %v8213_v56  ;;  %v1858_v40 = vpop.f32.mrf.mxu0  ;;  %v4539_v56 = vld [vmem:[%s11534_s2 + $0xe8] sm:$0xff] }
 0x2b7   :  { %v2470_v51 = vmax.f32 %v8129_v57, %v2454_v44  ;;  %v2046_v60 = vadd.f32 %v1858_v40, %v1613_v12  ;;  %v1953_v29 = vpop.f32.mrf.mxu1  ;;  %v4538_v57 = vld [vmem:[%s11534_s2 + $0xe0] sm:$0xff]  ;;  %4607 = vmatpush.msra.mxu3 %v4539_v56  ;;  %v2870_v12 = vmax.f32 %v8124_v20, %v2854_v1  ;;  %v4532_v40 = vld [vmem:[%s11534_s2 + $0xb0] sm:$0xff]  ;;  %v4533_v20 = vld [vmem:[%s11534_s2 + $0xb8] sm:$0xff] }
 0x2b8   :  { %v2051_v5 = vadd.f32 %v2003_v16, %v1953_v29  ;;  %4566 = vmatpush.msra.mxu2 %v4538_v57  ;;  %v1431_v29 = vpop.f32.mrf.mxu2  ;;  %v8391_v16 = vld [vmem:[#allocation2 + $0x42] ss:$0 sm:$0xff]  ;;  %v4529_v57 = vld [vmem:[%s11534_s2 + $0x98] sm:$0xff] }
 0x2b9   :  { %v2478_v42 = vmax.f32 %v2382_v8, %v2470_v51  ;;  %2094 = vst [vmem:[#allocation2 + $0x150] sm:$0xff] %v2046_v60  ;;  %4608 = vmatpush.msra.mxu3 %v4537_v48  ;;  %v11544_v8 = vld [vmem:[#allocation5_spill] sm:$0xff] }
 0x2ba   :  { %2099 = vst.msk [vmem:[#allocation2 + $0x178] sm:$0xff] %vm320_vm2, %v2051_v5  ;;  %2632 = vrot.lane.b32.xlu1 %v2600_v18, %s7061_s24  ;;  %4567 = vmatpush.msra.mxu2 %v4536_v7  ;;  %v1184_v51 = vadd.f32 %v8009_v2, %v11544_v8  ;;  %v4530_v2 = vld [vmem:[%s11534_s2 + $0xa0] sm:$0xff]  ;;  %v4531_v5 = vld [vmem:[%s11534_s2 + $0xa8] sm:$0xff]  ;;  %v4521_v8 = vld [vmem:[%s11534_s2 + $0x58] sm:$0xff] }
 0x2bb   :  { %v2486_v4 = vmax.f32 %v2478_v42, 0.0  ;;  %3338 = vrot.lane.b32.xlu2 %v8341_v62, %s7061_s24  ;;  %2832 = vrot.lane.b32.xlu0 %v2800_v33, %s7061_s24  ;;  %v4526_v56 = vld [vmem:[%s11534_s2 + $0x80] sm:$0xff]  ;;  %v4527_v7 = vld [vmem:[%s11534_s2 + $0x88] sm:$0xff] }
 0x2bc   :  { %v8356_v46 = vpop.permute.xlu1 %2138  ;;  %4568 = vmatpush.msra.mxu2 %v4534_v3  ;;  %4609 = vmatpush.msra.mxu3 %v4535_v21  ;;  %v1617_v42 = vadd.f32 %v1431_v29, %v1184_v51  ;;  %v8422_v48 = vld [vmem:[#allocation2 + $0x43] ss:$0 sm:$0xff]  ;;  %v3000_v3 = vld [vmem:[#allocation2 + $0x79] ss:$0 sm:$0xff]  ;;  %v8432_v21 = vld [vmem:[#allocation2 + $0x45] ss:$0 sm:$0xff] }
 0x2bd   :  { %2494 = vst.msk [vmem:[#allocation3 + $0x1] sm:$0x1] %vm2293_vm4, %v2486_v4  ;;  %v8365_v63 = vpop.permute.xlu2 %3222  ;;  %v2735_v39 = vpop.permute.xlu0 %2734  ;;  %v4518_v51 = vld [vmem:[%s11534_s2 + $0x40] sm:$0xff]  ;;  %v4516_v29 = vld [vmem:[%s11534_s2 + $0x30] sm:$0xff] }
 0x2be   :  { %v2766_v50 = vsel %vm2164_vm3, %v2735_v39, %v8225_v28  ;;  %v1861_v43 = vpop.f32.mrf.mxu0  ;;  %v8382_v28 = vld [vmem:[#allocation2 + $0x40] ss:$0 sm:$0xff]  ;;  %4569 = vmatpush.msra.mxu2 %v4532_v40  ;;  %4610 = vmatpush.msra.mxu3 %v4533_v20  ;;  %v4525_v39 = vld [vmem:[%s11534_s2 + $0x78] sm:$0xff]  ;;  %v4520_v40 = vld [vmem:[%s11534_s2 + $0x50] sm:$0xff] }
 0x2bf   :  { %v2782_v14 = vmax.f32 %v8140_v35, %v2766_v50  ;;  %v2048_v44 = vadd.f32 %v1861_v43, %v1615_v52  ;;  %v8389_v35 = vld [vmem:[#allocation2 + $0x47] ss:$0 sm:$0xff]  ;;  %v4524_v52 = vld [vmem:[%s11534_s2 + $0x70] sm:$0xff]  ;;  %v4523_v43 = vld [vmem:[%s11534_s2 + $0x68] sm:$0xff] }
 0x2c0   :  { %4570 = vmatpush.msra.mxu2 %v4530_v2  ;;  %4611 = vmatpush.msra.mxu3 %v4531_v5  ;;  %v4522_v50 = vld [vmem:[%s11534_s2 + $0x60] sm:$0xff]  ;;  %v4519_v20 = vld [vmem:[%s11534_s2 + $0x48] sm:$0xff]  ;;  %v3312_v2 = vld [vmem:[#allocation2 + $0x7c] ss:$0 sm:$0xff] }
 0x2c1   :  { %v2878_v60 = vmax.f32 %v2782_v14, %v2870_v12  ;;  %2096 = vst [vmem:[#allocation2 + $0x160] sm:$0xff] %v2048_v44  ;;  %v4517_v5 = vld [vmem:[%s11534_s2 + $0x38] sm:$0xff] }
 0x2c2   :  { %2938 = vrot.lane.b32.xlu1 %v8382_v28, %s7061_s24  ;;  %4571 = vmatpush.msra.mxu2 %v4528_v26  ;;  %v4514_v26 = vld [vmem:[%s11534_s2 + $0x20] sm:$0xff] }
 0x2c3   :  { %v2886_v23 = vmax.f32 %v2878_v60, 0.0  ;;  %3626 = vrot.lane.b32.xlu2 %v8389_v35, %s7061_s24  ;;  %3138 = vrot.lane.b32.xlu0 %v8391_v16, %s7061_s24  ;;  %v8458_v60 = vld [vmem:[#allocation2 + $0x46] ss:$0 sm:$0xff] }
 0x2c4   :  { %v8403_v13 = vpop.permute.xlu1 %2227  ;;  %4612 = vmatpush.msra.mxu3 %v4529_v57  ;;  %4572 = vmatpush.msra.mxu2 %v4526_v56 }
 0x2c5   :  { %2894 = vst.msk [vmem:[#allocation3 + $0x3] sm:$0x1] %vm2293_vm4, %v2886_v23  ;;  %v8409_v18 = vpop.permute.xlu2 %3534  ;;  %v8411_v33 = vpop.permute.xlu0 %2428  ;;  %v3112_v23 = vld [vmem:[#allocation2 + $0x7a] ss:$0 sm:$0xff] }
 0x2c6   :  { %v1864_v4 = vpop.f32.mrf.mxu0  ;;  %4613 = vmatpush.msra.mxu3 %v4527_v7  ;;  %4573 = vmatpush.msra.mxu2 %v4524_v52  ;;  %v4512_v7 = vld [vmem:[%s11534_s2 + $0x10] sm:$0xff] }
 0x2c7   :  { %v2050_v1 = vadd.f32 %v1864_v4, %v1617_v42  ;;  %v2966_v42 = vsel %vm2164_vm3, %v8333_v36, %v8263_v61 }
 0x2c8   :  { %4614 = vmatpush.msra.mxu3 %v4525_v39  ;;  %4574 = vmatpush.msra.mxu2 %v4522_v50  ;;  %v2982_v61 = vmax.f32 %v8157_v10, %v2966_v42  ;;  %v4513_v39 = vld [vmem:[%s11534_s2 + $0x18] sm:$0xff]  ;;  %v8516_v42 = vld [vmem:[#allocation2 + $0x60] ss:$0 sm:$0xff] }
 0x2c9   :  { %2098 = vst [vmem:[#allocation2 + $0x170] sm:$0xff] %v2050_v1  ;;  %v4515_v1 = vld [vmem:[%s11534_s2 + $0x28] sm:$0xff]  ;;  %v2912_v50 = vld [vmem:[#allocation2 + $0x78] ss:$0 sm:$0xff]  ;;  %v3600_v10 = vld [vmem:[#allocation2 + $0x7f] ss:$0 sm:$0xff] }
 0x2ca   :  { %3226 = vrot.lane.b32.xlu1 %v8422_v48, %s7061_s24  ;;  %4615 = vmatpush.msra.mxu3 %v4523_v43  ;;  %v4510_v43 = vld [vmem:[%s11534_s2] sm:$0xff] }
 0x2cb   :  { %3032 = vrot.lane.b32.xlu2 %v3000_v3, %s7061_s24  ;;  %3426 = vrot.lane.b32.xlu0 %v8432_v21, %s7061_s24 }
 0x2cc   :  { %v8443_v12 = vpop.permute.xlu1 %2540  ;;  %4575 = vmatpush.msra.mxu2 %v4520_v40  ;;  %4616 = vmatpush.msra.mxu3 %v4521_v8  ;;  %v3254_v40 = vsel %vm2164_vm3, %v8365_v63, %v8281_v34 }
 0x2cd   :  { %v8445_v14 = vpop.permute.xlu2 %2940  ;;  %v8447_v44 = vpop.permute.xlu0 %2740 }
 0x2ce   :  { %4576 = vmatpush.msra.mxu2 %v4518_v51  ;;  %4617 = vmatpush.msra.mxu3 %v4519_v20 }
 0x2d0   :  { %4577 = vmatpush.msra.mxu2 %v4516_v29  ;;  %4618 = vmatpush.msra.mxu3 %v4517_v5  ;;  %v3200_v5 = vld [vmem:[#allocation2 + $0x7b] ss:$0 sm:$0xff] }
 0x2d2   :  { %3538 = vrot.lane.b32.xlu1 %v8458_v60, %s7061_s24  ;;  %4578 = vmatpush.msra.mxu2 %v4514_v26 }
 0x2d3   :  { %3344 = vrot.lane.b32.xlu2 %v3312_v2, %s7061_s24  ;;  %3144 = vrot.lane.b32.xlu0 %v3112_v23, %s7061_s24  ;;  %v3270_v23 = vmax.f32 %v8166_v9, %v3254_v40  ;;  %v3566_v9 = vsel %vm2164_vm3, %v8409_v18, %v8297_v47 }
 0x2d4   :  { %v8479_v57 = vpop.permute.xlu1 %2828  ;;  %4619 = vmatpush.msra.mxu3 %v4515_v1  ;;  %4579 = vmatpush.msra.mxu2 %v4512_v7 }
 0x2d5   :  { %v8481_v56 = vpop.permute.xlu2 %3228  ;;  %v3023_v4 = vpop.permute.xlu0 %3022 }
 0x2d6   :  { %v3054_v52 = vsel %vm2164_vm3, %v3023_v4, %v8240_v59  ;;  %v4511_v59 = vld [vmem:[%s11534_s2 + $0x8] sm:$0xff]  ;;  %4620 = vmatpush.msra.mxu3 %v4513_v39  ;;  %4580 = vmatpush.msra.mxu2 %v4510_v43  ;;  %v3703_v4 = vld [vmem:[#allocation2 + $0x50] ss:$0 sm:$0xff]  ;;  %v3582_v39 = vmax.f32 %v8183_v15, %v3566_v9  ;;  %v2313_v9 = vld [vmem:[#allocation2 + $0x9a] ss:$0 sm:$0xff] }
 0x2d7   :  { %v3070_v36 = vmax.f32 %v8168_v27, %v3054_v52  ;;  %v3400_v27 = vld [vmem:[#allocation2 + $0x7d] ss:$0 sm:$0xff] }
 0x2d8   :  { %4621 = vmatpush.msra.mxu3 %v4511_v59  ;;  %v8540_v59 = vld [vmem:[#allocation2 + $0x62] ss:$0 sm:$0xff] }
 0x2d9   :  { %v3078_v3 = vmax.f32 %v2982_v61, %v3070_v36 }
 0x2da   :  { %2944 = vrot.lane.b32.xlu1 %v2912_v50, %s7061_s24  ;;  %v3512_v50 = vld [vmem:[#allocation2 + $0x7e] ss:$0 sm:$0xff] }
 0x2db   :  { %v3086_v8 = vmax.f32 %v3078_v3, 0.0  ;;  %3632 = vrot.lane.b32.xlu2 %v3600_v10, %s7061_s24  ;;  %3432 = vrot.lane.b32.xlu0 %v3400_v27, %s7061_s24  ;;  %v8558_v10 = vld [vmem:[#allocation2 + $0x64] ss:$0 sm:$0xff]  ;;  %v8560_v27 = vld [vmem:[#allocation2 + $0x65] ss:$0 sm:$0xff] }
 0x2dc   :  { %v3135_v51 = vpop.permute.xlu1 %3134 }
 0x2dd   :  { %3094 = vst.msk [vmem:[#allocation3 + $0x4] sm:$0x1] %vm2293_vm4, %v3086_v8  ;;  %v3166_v20 = vsel %vm2164_vm3, %v3135_v51, %v8215_v11  ;;  %v8511_v29 = vpop.permute.xlu2 %3540  ;;  %v3335_v2 = vpop.permute.xlu0 %3334 }
 0x2de   :  { %v3182_v34 = vmax.f32 %v8178_v58, %v3166_v20  ;;  %v3366_v1 = vsel %vm2164_vm3, %v3335_v2, %v8261_v49  ;;  %v8574_v2 = vld [vmem:[#allocation2 + $0x66] ss:$0 sm:$0xff] }
 0x2df   :  { %v3382_v49 = vmax.f32 %v8185_v45, %v3366_v1  ;;  %v2200_v1 = vld [vmem:[#allocation2 + $0x99] ss:$0 sm:$0xff] }
 0x2e0   :  { %v3278_v63 = vmax.f32 %v3182_v34, %v3270_v23  ;;  %v8578_v23 = vld [vmem:[#allocation2 + $0x67] ss:$0 sm:$0xff]  ;;  %v3712_v34 = vld [vmem:[#allocation2 + $0x88] ss:$0 sm:$0xff] }
 0x2e2   :  { %v3286_v26 = vmax.f32 %v3278_v63, 0.0  ;;  %3232 = vrot.lane.b32.xlu1 %v3200_v5, %s7061_s24 }
 0x2e3   :  { %2140 = vrot.lane.b32.xlu2 %v8516_v42, %s7061_s24  ;;  %3738 = vrot.lane.b32.xlu0 %v3703_v4, %s7061_s24  ;;  %v2111_v4 = vld [vmem:[#allocation2 + $0x98] ss:$0 sm:$0xff] }
 0x2e4   :  { %3294 = vst.msk [vmem:[#allocation3 + $0x5] sm:$0x1] %vm2293_vm4, %v3286_v26  ;;  %v3423_v58 = vpop.permute.xlu1 %3422 }
 0x2e5   :  { %v3454_v11 = vsel %vm2164_vm3, %v3423_v58, %v8227_v37  ;;  %v8529_v7 = vpop.permute.xlu2 %2426  ;;  %v3623_v52 = vpop.permute.xlu0 %3622  ;;  %v8538_v37 = vld [vmem:[#allocation2 + $0x61] ss:$0 sm:$0xff] }
 0x2e6   :  { %v3470_v61 = vmax.f32 %v8195_v41, %v3454_v11  ;;  %v3654_v36 = vsel %vm2164_vm3, %v3623_v52, %v8277_v38  ;;  %v8554_v38 = vld [vmem:[#allocation2 + $0x63] ss:$0 sm:$0xff] }
 0x2e7   :  { %v3670_v47 = vmax.f32 %v8200_v55, %v3654_v36 }
 0x2e8   :  { %v3478_v18 = vmax.f32 %v3382_v49, %v3470_v61 }
 0x2e9   :  { %v3678_v3 = vmax.f32 %v3582_v39, %v3670_v47 }
 0x2ea   :  { %v3486_v43 = vmax.f32 %v3478_v18, 0.0  ;;  %3544 = vrot.lane.b32.xlu1 %v3512_v50, %s7061_s24  ;;  %v2401_v18 = vld [vmem:[#allocation2 + $0x9b] ss:$0 sm:$0xff]  ;;  %v2601_v50 = vld [vmem:[#allocation2 + $0x9d] ss:$0 sm:$0xff] }
 0x2eb   :  { %v3686_v45 = vmax.f32 %v3678_v3, 0.0  ;;  %2229 = vrot.lane.b32.xlu2 %v8538_v37, %s7061_s24  ;;  %2342 = vrot.lane.b32.xlu0 %v8540_v59, %s7061_s24  ;;  %v2513_v3 = vld [vmem:[#allocation2 + $0x9c] ss:$0 sm:$0xff] }
 0x2ec   :  { %3494 = vst.msk [vmem:[#allocation3 + $0x6] sm:$0x1] %vm2293_vm4, %v3486_v43  ;;  %v8547_v15 = vpop.permute.xlu1 %3140 }
 0x2ed   :  { %3694 = vst.msk [vmem:[#allocation3 + $0x7] sm:$0x1] %vm2293_vm4, %v3686_v45  ;;  %v8550_v41 = vpop.permute.xlu2 %2738  ;;  %v8552_v55 = vpop.permute.xlu0 %3028 }
 0x2f2   :  { %2430 = vrot.lane.b32.xlu1 %v8554_v38, %s7061_s24 }
 0x2f3   :  { %2542 = vrot.lane.b32.xlu2 %v8558_v10, %s7061_s24  ;;  %2630 = vrot.lane.b32.xlu0 %v8560_v27, %s7061_s24 }
 0x2f4   :  { %v8566_v40 = vpop.permute.xlu1 %3428  ;;  %v4502_v8 = vld [vmem:[#allocation3] sm:$0xff] }
 0x2f5   :  { %v8568_v51 = vpop.permute.xlu2 %2142  ;;  %6804 = vmatmul.msk.f32.vlgmr.msra.gmra.mxu2 %vm4540_vm5, %v4502_v8  ;;  %6812 = vmatmul.msk.f32.vlgmr.msra.gmra.mxu3 %vm4540_vm5, %v4502_v8  ;;  %v8572_v20 = vpop.permute.xlu0 %3340 }
 0x2fa   :  { %2742 = vrot.lane.b32.xlu1 %v8574_v2, %s7061_s24 }
 0x2fb   :  { %2830 = vrot.lane.b32.xlu2 %v8578_v23, %s7061_s24  ;;  %3744 = vrot.lane.b32.xlu0 %v3712_v34, %s7061_s24 }
 0x2fc   :  { %v8583_v63 = vpop.permute.xlu1 %3734 }
 0x2fd   :  { %v8585_v5 = vpop.permute.xlu2 %2432  ;;  %v8587_v26 = vpop.permute.xlu0 %3628 }
 0x302   :  { %2146 = vrot.lane.b32.xlu1 %v2111_v4, %s7061_s24 }
 0x303   :  { %2235 = vrot.lane.b32.xlu2 %v2200_v1, %s7061_s24  ;;  %2348 = vrot.lane.b32.xlu0 %v2313_v9, %s7061_s24  ;;  %v2713_v1 = vld [vmem:[#allocation2 + $0x9e] ss:$0 sm:$0xff]  ;;  %v8612_v9 = vld [vmem:[#allocation2 + $0x70] ss:$0 sm:$0xff] }
 0x304   :  { %v2137_v58 = vpop.permute.xlu1 %2136 }
 0x305   :  { %v2166_v11 = vsel %vm2164_vm3, %v2137_v58, %v8356_v46  ;;  %v8594_v52 = vpop.permute.xlu2 %2744  ;;  %v2226_v49 = vpop.permute.xlu0 %2225  ;;  %v2455_v46 = vsel %vm2164_vm3, %v8529_v7, %v8411_v33  ;;  %v2801_v7 = vld [vmem:[#allocation2 + $0x9f] ss:$0 sm:$0xff] }
 0x306   :  { %v2182_v61 = vmax.f32 %v8248_v30, %v2166_v11  ;;  %v2254_v36 = vsel %vm2164_vm3, %v2226_v49, %v8403_v13  ;;  %v2471_v8 = vmax.f32 %v8235_v17, %v2455_v46  ;;  %v2767_v17 = vsel %vm2164_vm3, %v8550_v41, %v8447_v44  ;;  %v8655_v46 = vld [vmem:[#allocation2 + $0x75] ss:$0 sm:$0xff] }
 0x307   :  { %v2270_v39 = vmax.f32 %v8255_v32, %v2254_v36 }
 0x309   :  { %v2278_v47 = vmax.f32 %v2182_v61, %v2270_v39  ;;  %v2783_v39 = vmax.f32 %v8253_v6, %v2767_v17  ;;  %v3401_v17 = vld [vmem:[#allocation2 + $0xad] ss:$0 sm:$0xff] }
 0x30a   :  { %2436 = vrot.lane.b32.xlu1 %v2401_v18, %s7061_s24  ;;  %v8633_v18 = vld [vmem:[#allocation2 + $0x71] ss:$0 sm:$0xff] }
 0x30b   :  { %v2286_v43 = vmax.f32 %v2278_v47, 0.0  ;;  %2548 = vrot.lane.b32.xlu2 %v2513_v3, %s7061_s24  ;;  %2636 = vrot.lane.b32.xlu0 %v2601_v50, %s7061_s24  ;;  %v8651_v50 = vld [vmem:[#allocation2 + $0x74] ss:$0 sm:$0xff] }
 0x30c   :  { %v2339_v30 = vpop.permute.xlu1 %2338 }
 0x30d   :  { %2295 = vst.msk [vmem:[#allocation3 + $0x10] sm:$0x1] %vm2293_vm4, %v2286_v43  ;;  %v2367_v32 = vsel %vm2164_vm3, %v2339_v30, %v8295_v24  ;;  %v3027_v13 = vpop.permute.xlu2 %3026  ;;  %v2539_v45 = vpop.permute.xlu0 %2538  ;;  %v8657_v43 = vld [vmem:[#allocation2 + $0x76] ss:$0 sm:$0xff] }
 0x30e   :  { %v2383_v34 = vmax.f32 %v8267_v31, %v2367_v32  ;;  %v2567_v58 = vsel %vm2164_vm3, %v2539_v45, %v8443_v12 }
 0x30f   :  { %v2583_v12 = vmax.f32 %v8272_v54, %v2567_v58  ;;  %v8639_v54 = vld [vmem:[#allocation2 + $0x73] ss:$0 sm:$0xff]  ;;  %v3001_v58 = vld [vmem:[#allocation2 + $0xa9] ss:$0 sm:$0xff] }
 0x310   :  { %v2479_v4 = vmax.f32 %v2383_v34, %v2471_v8  ;;  %v8669_v8 = vld [vmem:[#allocation2 + $0x77] ss:$0 sm:$0xff]  ;;  %v3113_v34 = vld [vmem:[#allocation2 + $0xaa] ss:$0 sm:$0xff] }
 0x312   :  { %v2487_v33 = vmax.f32 %v2479_v4, 0.0  ;;  %2748 = vrot.lane.b32.xlu1 %v2713_v1, %s7061_s24  ;;  %v2913_v4 = vld [vmem:[#allocation2 + $0xa8] ss:$0 sm:$0xff] }
 0x313   :  { %2836 = vrot.lane.b32.xlu2 %v2801_v7, %s7061_s24  ;;  %2942 = vrot.lane.b32.xlu0 %v8612_v9, %s7061_s24 }
 0x314   :  { %2495 = vst.msk [vmem:[#allocation3 + $0x11] sm:$0x1] %vm2293_vm4, %v2487_v33  ;;  %v2627_v31 = vpop.permute.xlu1 %2626 }
 0x315   :  { %v2655_v24 = vsel %vm2164_vm3, %v2627_v31, %v8311_v25  ;;  %v8625_v11 = vpop.permute.xlu2 %3338  ;;  %v2827_v49 = vpop.permute.xlu0 %2826  ;;  %v8637_v25 = vld [vmem:[#allocation2 + $0x72] ss:$0 sm:$0xff]  ;;  %v3201_v31 = vld [vmem:[#allocation2 + $0xab] ss:$0 sm:$0xff] }
 0x316   :  { %v2671_v61 = vmax.f32 %v8285_v0, %v2655_v24  ;;  %v2855_v36 = vsel %vm2164_vm3, %v2827_v49, %v8479_v57  ;;  %v3055_v24 = vsel %vm2164_vm3, %v3027_v13, %v8552_v55  ;;  %v3704_v55 = vld [vmem:[#allocation2 + $0x80] ss:$0 sm:$0xff]  ;;  %v3513_v13 = vld [vmem:[#allocation2 + $0xae] ss:$0 sm:$0xff] }
 0x317   :  { %v2871_v44 = vmax.f32 %v8290_v19, %v2855_v36 }
 0x318   :  { %v2679_v41 = vmax.f32 %v2583_v12, %v2671_v61 }
 0x319   :  { %v2879_v47 = vmax.f32 %v2783_v39, %v2871_v44  ;;  %v3071_v39 = vmax.f32 %v8323_v53, %v3055_v24  ;;  %v3367_v53 = vsel %vm2164_vm3, %v8625_v11, %v8572_v20 }
 0x31a   :  { %v2687_v3 = vmax.f32 %v2679_v41, 0.0  ;;  %3030 = vrot.lane.b32.xlu1 %v8633_v18, %s7061_s24 }
 0x31b   :  { %v2887_v0 = vmax.f32 %v2879_v47, 0.0  ;;  %3142 = vrot.lane.b32.xlu2 %v8637_v25, %s7061_s24  ;;  %3230 = vrot.lane.b32.xlu0 %v8639_v54, %s7061_s24  ;;  %v3313_v47 = vld [vmem:[#allocation2 + $0xac] ss:$0 sm:$0xff] }
 0x31c   :  { %2695 = vst.msk [vmem:[#allocation3 + $0x12] sm:$0x1] %vm2293_vm4, %v2687_v3  ;;  %v8646_v6 = vpop.permute.xlu1 %3740 }
 0x31d   :  { %2895 = vst.msk [vmem:[#allocation3 + $0x13] sm:$0x1] %vm2293_vm4, %v2887_v0  ;;  %v3627_v19 = vpop.permute.xlu2 %3626  ;;  %v8649_v57 = vpop.permute.xlu0 %2231 }
 0x322   :  { %3342 = vrot.lane.b32.xlu1 %v8651_v50, %s7061_s24 }
 0x323   :  { %3430 = vrot.lane.b32.xlu2 %v8655_v46, %s7061_s24  ;;  %3542 = vrot.lane.b32.xlu0 %v8657_v43, %s7061_s24 }
 0x324   :  { %v8663_v30 = vpop.permute.xlu1 %2344 }
 0x325   :  { %v8665_v32 = vpop.permute.xlu2 %3032  ;;  %v8667_v45 = vpop.permute.xlu0 %2544 }
 0x32a   :  { %3630 = vrot.lane.b32.xlu1 %v8669_v8, %s7061_s24 }
 0x32b   :  { %3148 = vrot.lane.b32.xlu2 %v3113_v34, %s7061_s24  ;;  %2948 = vrot.lane.b32.xlu0 %v2913_v4, %s7061_s24 }
 0x32c   :  { %v8675_v1 = vpop.permute.xlu1 %2632 }
 0x32d   :  { %v8677_v33 = vpop.permute.xlu2 %3344  ;;  %v8679_v7 = vpop.permute.xlu0 %2832 }
 0x332   :  { %3036 = vrot.lane.b32.xlu1 %v3001_v58, %s7061_s24 }
 0x333   :  { %3436 = vrot.lane.b32.xlu2 %v3401_v17, %s7061_s24  ;;  %3236 = vrot.lane.b32.xlu0 %v3201_v31, %s7061_s24  ;;  %v3383_v31 = vmax.f32 %v8341_v62, %v3367_v53  ;;  %v8752_v53 = vld [vmem:[#allocation2 + $0x94] ss:$0 sm:$0xff] }
 0x334   :  { %v2939_v49 = vpop.permute.xlu1 %2938 }
 0x335   :  { %v2967_v12 = vsel %vm2164_vm3, %v2939_v49, %v8445_v14  ;;  %v8688_v61 = vpop.permute.xlu2 %3632  ;;  %v3139_v36 = vpop.permute.xlu0 %3138  ;;  %v3601_v49 = vld [vmem:[#allocation2 + $0xaf] ss:$0 sm:$0xff] }
 0x336   :  { %v2983_v44 = vmax.f32 %v8382_v28, %v2967_v12  ;;  %v3167_v0 = vsel %vm2164_vm3, %v3139_v36, %v8547_v15  ;;  %v8712_v36 = vld [vmem:[#allocation2 + $0x90] ss:$0 sm:$0xff] }
 0x337   :  { %v3183_v58 = vmax.f32 %v8391_v16, %v3167_v0  ;;  %v3655_v16 = vsel %vm2164_vm3, %v3627_v19, %v8587_v26 }
 0x338   :  { %v3079_v41 = vmax.f32 %v2983_v44, %v3071_v39  ;;  %v3671_v19 = vmax.f32 %v8389_v35, %v3655_v16  ;;  %v8740_v35 = vld [vmem:[#allocation2 + $0x93] ss:$0 sm:$0xff]  ;;  %v2602_v16 = vld [vmem:[#allocation2 + $0xcd] ss:$0 sm:$0xff] }
 0x33a   :  { %v3087_v3 = vmax.f32 %v3079_v41, 0.0  ;;  %3348 = vrot.lane.b32.xlu1 %v3313_v47, %s7061_s24 }
 0x33b   :  { %3742 = vrot.lane.b32.xlu2 %v3704_v55, %s7061_s24  ;;  %3548 = vrot.lane.b32.xlu0 %v3513_v13, %s7061_s24  ;;  %v8734_v13 = vld [vmem:[#allocation2 + $0x91] ss:$0 sm:$0xff] }
 0x33c   :  { %3095 = vst.msk [vmem:[#allocation3 + $0x14] sm:$0x1] %vm2293_vm4, %v3087_v3  ;;  %v3227_v28 = vpop.permute.xlu1 %3226 }
 0x33d   :  { %v3255_v14 = vsel %vm2164_vm3, %v3227_v28, %v8481_v56  ;;  %v2141_v34 = vpop.permute.xlu2 %2140  ;;  %v3427_v4 = vpop.permute.xlu0 %3426  ;;  %v8710_v56 = vld [vmem:[#allocation2 + $0x92] ss:$0 sm:$0xff]  ;;  %v3713_v28 = vld [vmem:[#allocation2 + $0xb8] ss:$0 sm:$0xff] }
 0x33e   :  { %v3271_v15 = vmax.f32 %v8422_v48, %v3255_v14  ;;  %v3455_v17 = vsel %vm2164_vm3, %v3427_v4, %v8566_v40  ;;  %v2167_v62 = vsel %vm2164_vm3, %v2141_v34, %v8568_v51  ;;  %v8756_v14 = vld [vmem:[#allocation2 + $0x96] ss:$0 sm:$0xff] }
 0x33f   :  { %v3471_v24 = vmax.f32 %v8432_v21, %v3455_v17  ;;  %v2183_v47 = vmax.f32 %v8516_v42, %v2167_v62  ;;  %v8767_v17 = vld [vmem:[#allocation2 + $0x97] ss:$0 sm:$0xff] }
 0x340   :  { %v3279_v20 = vmax.f32 %v3183_v58, %v3271_v15 }
 0x341   :  { %v3479_v11 = vmax.f32 %v3383_v31, %v3471_v24  ;;  %v2314_v31 = vld [vmem:[#allocation2 + $0xca] ss:$0 sm:$0xff]  ;;  %v2112_v24 = vld [vmem:[#allocation2 + $0xc8] ss:$0 sm:$0xff] }
 0x342   :  { %v3287_v12 = vmax.f32 %v3279_v20, 0.0  ;;  %3636 = vrot.lane.b32.xlu1 %v3601_v49, %s7061_s24 }
 0x343   :  { %v3487_v48 = vmax.f32 %v3479_v11, 0.0  ;;  %2346 = vrot.lane.b32.xlu2 %v8710_v56, %s7061_s24  ;;  %2144 = vrot.lane.b32.xlu0 %v8712_v36, %s7061_s24 }
 0x344   :  { %3295 = vst.msk [vmem:[#allocation3 + $0x15] sm:$0x1] %vm2293_vm4, %v3287_v12  ;;  %v3539_v21 = vpop.permute.xlu1 %3538  ;;  %v2201_v12 = vld [vmem:[#allocation2 + $0xc9] ss:$0 sm:$0xff] }
 0x345   :  { %3495 = vst.msk [vmem:[#allocation3 + $0x16] sm:$0x1] %vm2293_vm4, %v3487_v48  ;;  %v3567_v40 = vsel %vm2164_vm3, %v3539_v21, %v8511_v29  ;;  %v2230_v39 = vpop.permute.xlu2 %2229  ;;  %v8726_v26 = vpop.permute.xlu0 %3144  ;;  %v8738_v29 = vld [vmem:[#allocation2 + $0x95] ss:$0 sm:$0xff]  ;;  %v2402_v48 = vld [vmem:[#allocation2 + $0xcb] ss:$0 sm:$0xff] }
 0x346   :  { %v3583_v44 = vmax.f32 %v8458_v60, %v3567_v40  ;;  %v2255_v41 = vsel %vm2164_vm3, %v2230_v39, %v8649_v57 }
 0x347   :  { %v2271_v51 = vmax.f32 %v8538_v37, %v2255_v41 }
 0x348   :  { %v3679_v3 = vmax.f32 %v3583_v44, %v3671_v19 }
 0x349   :  { %v2279_v55 = vmax.f32 %v2183_v47, %v2271_v51 }
 0x34a   :  { %v3687_v0 = vmax.f32 %v3679_v3, 0.0  ;;  %2233 = vrot.lane.b32.xlu1 %v8734_v13, %s7061_s24 }
 0x34b   :  { %v2287_v60 = vmax.f32 %v2279_v55, 0.0  ;;  %2634 = vrot.lane.b32.xlu2 %v8738_v29, %s7061_s24  ;;  %2434 = vrot.lane.b32.xlu0 %v8740_v35, %s7061_s24 }
 0x34c   :  { %3695 = vst.msk [vmem:[#allocation3 + $0x17] sm:$0x1] %vm2293_vm4, %v3687_v0  ;;  %v8747_v42 = vpop.permute.xlu1 %2944  ;;  %v2514_v0 = vld [vmem:[#allocation2 + $0xcc] ss:$0 sm:$0xff] }
 0x34d   :  { %2296 = vst.msk [vmem:[#allocation3 + $0x20] sm:$0x1] %vm2293_vm4, %v2287_v60  ;;  %v2543_v37 = vpop.permute.xlu2 %2542  ;;  %v8750_v57 = vpop.permute.xlu0 %3432 }
 0x34e   :  { %v2568_v21 = vsel %vm2164_vm3, %v2543_v37, %v8667_v45  ;;  %v2714_v37 = vld [vmem:[#allocation2 + $0xce] ss:$0 sm:$0xff] }
 0x34f   :  { %v2584_v51 = vmax.f32 %v8558_v10, %v2568_v21  ;;  %v8831_v21 = vld [vmem:[#allocation2 + $0xa6] ss:$0 sm:$0xff] }
 0x352   :  { %2546 = vrot.lane.b32.xlu1 %v8752_v53, %s7061_s24 }
 0x353   :  { %3748 = vrot.lane.b32.xlu2 %v3713_v28, %s7061_s24  ;;  %2746 = vrot.lane.b32.xlu0 %v8756_v14, %s7061_s24  ;;  %v4503_v34 = vld [vmem:[#allocation3 + $0x10] sm:$0xff] }
 0x354   :  { %v8761_v4 = vpop.permute.xlu1 %3232  ;;  %6805 = vmatmul.msk.f32.gmra.mxu2 %vm4540_vm5, %v4503_v34  ;;  %6813 = vmatmul.msk.f32.gmra.mxu3 %vm4540_vm5, %v4503_v34 }
 0x355   :  { %v2831_v58 = vpop.permute.xlu2 %2830  ;;  %v8765_v15 = vpop.permute.xlu0 %3738 }
 0x35a   :  { %2834 = vrot.lane.b32.xlu1 %v8767_v17, %s7061_s24 }
 0x35b   :  { %2352 = vrot.lane.b32.xlu2 %v2314_v31, %s7061_s24  ;;  %2150 = vrot.lane.b32.xlu0 %v2112_v24, %s7061_s24  ;;  %v2802_v31 = vld [vmem:[#allocation2 + $0xcf] ss:$0 sm:$0xff] }
 0x35c   :  { %v8773_v20 = vpop.permute.xlu1 %3544 }
 0x35d   :  { %v8775_v11 = vpop.permute.xlu2 %2235  ;;  %v2343_v49 = vpop.permute.xlu0 %2342 }
 0x35e   :  { %v2368_v62 = vsel %vm2164_vm3, %v2343_v49, %v8663_v30  ;;  %v8813_v49 = vld [vmem:[#allocation2 + $0xa3] ss:$0 sm:$0xff] }
 0x35f   :  { %v2384_v41 = vmax.f32 %v8540_v59, %v2368_v62  ;;  %v2856_v59 = vsel %vm2164_vm3, %v2831_v58, %v8679_v7  ;;  %v8826_v62 = vld [vmem:[#allocation2 + $0xa2] ss:$0 sm:$0xff] }
 0x360   :  { %v2872_v7 = vmax.f32 %v8578_v23, %v2856_v59 }
 0x362   :  { %2239 = vrot.lane.b32.xlu1 %v2201_v12, %s7061_s24  ;;  %v8815_v12 = vld [vmem:[#allocation2 + $0xa1] ss:$0 sm:$0xff] }
 0x363   :  { %2640 = vrot.lane.b32.xlu2 %v2602_v16, %s7061_s24  ;;  %2440 = vrot.lane.b32.xlu0 %v2402_v48, %s7061_s24 }
 0x364   :  { %v2431_v40 = vpop.permute.xlu1 %2430 }
 0x365   :  { %v2456_v39 = vsel %vm2164_vm3, %v2431_v40, %v8585_v5  ;;  %v8786_v19 = vpop.permute.xlu2 %2548  ;;  %v2631_v44 = vpop.permute.xlu0 %2630  ;;  %v8795_v5 = vld [vmem:[#allocation2 + $0xa0] ss:$0 sm:$0xff]  ;;  %v8833_v40 = vld [vmem:[#allocation2 + $0xa4] ss:$0 sm:$0xff] }
 0x366   :  { %v2472_v47 = vmax.f32 %v8554_v38, %v2456_v39  ;;  %v2656_v30 = vsel %vm2164_vm3, %v2631_v44, %v8675_v1 }
 0x367   :  { %v2672_v3 = vmax.f32 %v8560_v27, %v2656_v30  ;;  %v2914_v30 = vld [vmem:[#allocation2 + $0xd8] ss:$0 sm:$0xff] }
 0x368   :  { %v2480_v55 = vmax.f32 %v2384_v41, %v2472_v47  ;;  %v8843_v47 = vld [vmem:[#allocation2 + $0xa5] ss:$0 sm:$0xff] }
 0x369   :  { %v2680_v45 = vmax.f32 %v2584_v51, %v2672_v3  ;;  %v8847_v51 = vld [vmem:[#allocation2 + $0xa7] ss:$0 sm:$0xff] }
 0x36a   :  { %v2488_v60 = vmax.f32 %v2480_v55, 0.0  ;;  %2552 = vrot.lane.b32.xlu1 %v2514_v0, %s7061_s24  ;;  %v3114_v0 = vld [vmem:[#allocation2 + $0xda] ss:$0 sm:$0xff] }
 0x36b   :  { %v2688_v38 = vmax.f32 %v2680_v45, 0.0  ;;  %2946 = vrot.lane.b32.xlu2 %v8795_v5, %s7061_s24  ;;  %2752 = vrot.lane.b32.xlu0 %v2714_v37, %s7061_s24  ;;  %v3002_v37 = vld [vmem:[#allocation2 + $0xd9] ss:$0 sm:$0xff] }
 0x36c   :  { %2496 = vst.msk [vmem:[#allocation3 + $0x21] sm:$0x1] %vm2293_vm4, %v2488_v60  ;;  %v2743_v10 = vpop.permute.xlu1 %2742  ;;  %v3202_v60 = vld [vmem:[#allocation2 + $0xdb] ss:$0 sm:$0xff] }
 0x36d   :  { %2696 = vst.msk [vmem:[#allocation3 + $0x22] sm:$0x1] %vm2293_vm4, %v2688_v38  ;;  %v2768_v27 = vsel %vm2164_vm3, %v2743_v10, %v8594_v52  ;;  %v8806_v1 = vpop.permute.xlu2 %2836  ;;  %v8808_v28 = vpop.permute.xlu0 %3744 }
 0x36e   :  { %11545 = vst [vmem:[#allocation6_spill] sm:$0xff] %v8808_v28  ;;  %v2784_v34 = vmax.f32 %v8574_v2, %v2768_v27 }
 0x370   :  { %v2880_v58 = vmax.f32 %v2784_v34, %v2872_v7 }
 0x372   :  { %v2888_v24 = vmax.f32 %v2880_v58, 0.0  ;;  %2840 = vrot.lane.b32.xlu1 %v2802_v31, %s7061_s24 }
 0x373   :  { %3234 = vrot.lane.b32.xlu2 %v8813_v49, %s7061_s24  ;;  %3034 = vrot.lane.b32.xlu0 %v8815_v12, %s7061_s24 }
 0x374   :  { %2896 = vst.msk [vmem:[#allocation3 + $0x23] sm:$0x1] %vm2293_vm4, %v2888_v24  ;;  %v8822_v23 = vpop.permute.xlu1 %2146 }
 0x375   :  { %v3143_v2 = vpop.permute.xlu2 %3142  ;;  %v8824_v52 = vpop.permute.xlu0 %2348 }
 0x376   :  { %v3168_v38 = vsel %vm2164_vm3, %v3143_v2, %v8726_v26  ;;  %v3402_v2 = vld [vmem:[#allocation2 + $0xdd] ss:$0 sm:$0xff] }
 0x377   :  { %v3184_v24 = vmax.f32 %v8637_v25, %v3168_v38  ;;  %v8887_v38 = vld [vmem:[#allocation2 + $0xc0] ss:$0 sm:$0xff] }
 0x378   :  { %v4582_v16 = vpop.f32.mrf.mxu2  ;;  %v4623_v48 = vpop.f32.mrf.mxu3 }
 0x379   :  { %4647 = vst [vmem:[#allocation4] sm:$0xff] %v4582_v16 }
 0x37a   :  { %4649 = vst.msk [vmem:[#allocation4 + $0x8] sm:$0xff] %vm4648_vm6, %v4623_v48  ;;  %3146 = vrot.lane.b32.xlu1 %v8826_v62, %s7061_s24 }
 0x37b   :  { %3546 = vrot.lane.b32.xlu2 %v8831_v21, %s7061_s24  ;;  %3346 = vrot.lane.b32.xlu0 %v8833_v40, %s7061_s24 }
 0x37c   :  { %v8839_v39 = vpop.permute.xlu1 %2436 }
 0x37d   :  { %v3431_v44 = vpop.permute.xlu2 %3430  ;;  %v8841_v41 = vpop.permute.xlu0 %2636 }
 0x382   :  { %3434 = vrot.lane.b32.xlu1 %v8843_v47, %s7061_s24 }
 0x383   :  { %2952 = vrot.lane.b32.xlu2 %v2914_v30, %s7061_s24  ;;  %3634 = vrot.lane.b32.xlu0 %v8847_v51, %s7061_s24 }
 0x384   :  { %v8852_v3 = vpop.permute.xlu1 %2748 }
 0x385   :  { %v8854_v55 = vpop.permute.xlu2 %3148  ;;  %v2943_v45 = vpop.permute.xlu0 %2942 }
 0x386   :  { %v2968_v59 = vsel %vm2164_vm3, %v2943_v45, %v8747_v42  ;;  %v3314_v45 = vld [vmem:[#allocation2 + $0xdc] ss:$0 sm:$0xff] }
 0x387   :  { %v2984_v58 = vmax.f32 %v8612_v9, %v2968_v59  ;;  %v3456_v9 = vsel %vm2164_vm3, %v3431_v44, %v8750_v57 }
 0x38a   :  { %3152 = vrot.lane.b32.xlu1 %v3114_v0, %s7061_s24 }
 0x38b   :  { %3240 = vrot.lane.b32.xlu2 %v3202_v60, %s7061_s24  ;;  %3040 = vrot.lane.b32.xlu0 %v3002_v37, %s7061_s24  ;;  %v3472_v60 = vmax.f32 %v8655_v46, %v3456_v9  ;;  %v3705_v37 = vld [vmem:[#allocation2 + $0xb0] ss:$0 sm:$0xff] }
 0x38c   :  { %v3031_v10 = vpop.permute.xlu1 %3030 }
 0x38d   :  { %v3056_v27 = vsel %vm2164_vm3, %v3031_v10, %v8665_v32  ;;  %v8865_v7 = vpop.permute.xlu2 %3436  ;;  %v3231_v34 = vpop.permute.xlu0 %3230  ;;  %v3514_v32 = vld [vmem:[#allocation2 + $0xde] ss:$0 sm:$0xff]  ;;  %v3602_v10 = vld [vmem:[#allocation2 + $0xdf] ss:$0 sm:$0xff] }
 0x38e   :  { %v3072_v31 = vmax.f32 %v8633_v18, %v3056_v27  ;;  %v3256_v42 = vsel %vm2164_vm3, %v3231_v34, %v8761_v4 }
 0x38f   :  { %v3272_v16 = vmax.f32 %v8639_v54, %v3256_v42 }
 0x390   :  { %v3080_v48 = vmax.f32 %v2984_v58, %v3072_v31 }
 0x391   :  { %v3280_v26 = vmax.f32 %v3184_v24, %v3272_v16  ;;  %v8905_v16 = vld [vmem:[#allocation2 + $0xc3] ss:$0 sm:$0xff] }
 0x392   :  { %v3088_v30 = vmax.f32 %v3080_v48, 0.0  ;;  %3440 = vrot.lane.b32.xlu1 %v3402_v2, %s7061_s24  ;;  %v8907_v48 = vld [vmem:[#allocation2 + $0xc1] ss:$0 sm:$0xff]  ;;  %v8922_v2 = vld [vmem:[#allocation2 + $0xc6] ss:$0 sm:$0xff] }
 0x393   :  { %v3288_v0 = vmax.f32 %v3280_v26, 0.0  ;;  %3552 = vrot.lane.b32.xlu2 %v3514_v32, %s7061_s24  ;;  %3352 = vrot.lane.b32.xlu0 %v3314_v45, %s7061_s24  ;;  %v8918_v26 = vld [vmem:[#allocation2 + $0xc5] ss:$0 sm:$0xff] }
 0x394   :  { %3096 = vst.msk [vmem:[#allocation3 + $0x24] sm:$0x1] %vm2293_vm4, %v3088_v30  ;;  %v3343_v18 = vpop.permute.xlu1 %3342  ;;  %v8924_v30 = vld [vmem:[#allocation2 + $0xc4] ss:$0 sm:$0xff] }
 0x395   :  { %3296 = vst.msk [vmem:[#allocation3 + $0x25] sm:$0x1] %vm2293_vm4, %v3288_v0  ;;  %v3368_v25 = vsel %vm2164_vm3, %v3343_v18, %v8677_v33  ;;  %v8882_v54 = vpop.permute.xlu2 %3742  ;;  %v3543_v4 = vpop.permute.xlu0 %3542  ;;  %v3714_v18 = vld [vmem:[#allocation2 + $0xe8] ss:$0 sm:$0xff] }
 0x396   :  { %11546 = vst [vmem:[#allocation5_spill] sm:$0xff] %v8882_v54  ;;  %v3384_v57 = vmax.f32 %v8651_v50, %v3368_v25  ;;  %v3568_v27 = vsel %vm2164_vm3, %v3543_v4, %v8773_v20  ;;  %v8901_v20 = vld [vmem:[#allocation2 + $0xc2] ss:$0 sm:$0xff]  ;;  %v2113_v25 = vld [vmem:[#allocation2 + $0xf8] ss:$0 sm:$0xff] }
 0x397   :  { %v3584_v58 = vmax.f32 %v8657_v43, %v3568_v27  ;;  %v8939_v4 = vld [vmem:[#allocation2 + $0xc7] ss:$0 sm:$0xff] }
 0x398   :  { %v3480_v44 = vmax.f32 %v3384_v57, %v3472_v60 }
 0x39a   :  { %v3488_v59 = vmax.f32 %v3480_v44, 0.0  ;;  %3746 = vrot.lane.b32.xlu1 %v3705_v37, %s7061_s24  ;;  %v2315_v37 = vld [vmem:[#allocation2 + $0xfa] ss:$0 sm:$0xff] }
 0x39b   :  { %2148 = vrot.lane.b32.xlu2 %v8887_v38, %s7061_s24  ;;  %3640 = vrot.lane.b32.xlu0 %v3602_v10, %s7061_s24  ;;  %v2202_v10 = vld [vmem:[#allocation2 + $0xf9] ss:$0 sm:$0xff] }
 0x39c   :  { %3496 = vst.msk [vmem:[#allocation3 + $0x26] sm:$0x1] %vm2293_vm4, %v3488_v59  ;;  %v3631_v46 = vpop.permute.xlu1 %3630  ;;  %v2403_v59 = vld [vmem:[#allocation2 + $0xfb] ss:$0 sm:$0xff] }
 0x39d   :  { %v3656_v50 = vsel %vm2164_vm3, %v3631_v46, %v8688_v61  ;;  %v2347_v33 = vpop.permute.xlu2 %2346  ;;  %v8897_v34 = vpop.permute.xlu0 %2948 }
 0x39e   :  { %v3672_v31 = vmax.f32 %v8669_v8, %v3656_v50  ;;  %v2369_v46 = vsel %vm2164_vm3, %v2347_v33, %v8824_v52  ;;  %v2603_v33 = vld [vmem:[#allocation2 + $0xfd] ss:$0 sm:$0xff] }
 0x3a0   :  { %v3680_v42 = vmax.f32 %v3584_v58, %v3672_v31 }
 0x3a2   :  { %v3688_v24 = vmax.f32 %v3680_v42, 0.0  ;;  %2350 = vrot.lane.b32.xlu1 %v8901_v20, %s7061_s24 }
 0x3a3   :  { %2438 = vrot.lane.b32.xlu2 %v8905_v16, %s7061_s24  ;;  %2237 = vrot.lane.b32.xlu0 %v8907_v48, %s7061_s24 }
 0x3a4   :  { %3696 = vst.msk [vmem:[#allocation3 + $0x27] sm:$0x1] %vm2293_vm4, %v3688_v24  ;;  %v8914_v43 = vpop.permute.xlu1 %3036 }
 0x3a5   :  { %v2635_v8 = vpop.permute.xlu2 %2634  ;;  %v8916_v61 = vpop.permute.xlu0 %3236 }
 0x3aa   :  { %2638 = vrot.lane.b32.xlu1 %v8918_v26, %s7061_s24 }
 0x3ab   :  { %2750 = vrot.lane.b32.xlu2 %v8922_v2, %s7061_s24  ;;  %2550 = vrot.lane.b32.xlu0 %v8924_v30, %s7061_s24  ;;  %v4504_v32 = vld [vmem:[#allocation3 + $0x20] sm:$0xff] }
 0x3ac   :  { %v8930_v45 = vpop.permute.xlu1 %3348  ;;  %6806 = vmatmul.msk.f32.gmra.mxu2 %vm4540_vm5, %v4504_v32  ;;  %6814 = vmatmul.msk.f32.gmra.mxu3 %vm4540_vm5, %v4504_v32 }
 0x3ad   :  { %v8934_v9 = vpop.permute.xlu2 %3748  ;;  %v8936_v0 = vpop.permute.xlu0 %3548 }
 0x3ae   :  { %11547 = vst [vmem:[#allocation7_spill] sm:$0xff] %v8934_v9 }
 0x3b2   :  { %3752 = vrot.lane.b32.xlu1 %v3714_v18, %s7061_s24  ;;  %v2385_v18 = vmax.f32 %v8710_v56, %v2369_v46 }
 0x3b3   :  { %2154 = vrot.lane.b32.xlu2 %v2113_v25, %s7061_s24  ;;  %2838 = vrot.lane.b32.xlu0 %v8939_v4, %s7061_s24 }
 0x3b4   :  { %v8944_v60 = vpop.permute.xlu1 %3636 }
 0x3b5   :  { %v8946_v57 = vpop.permute.xlu2 %2352  ;;  %v2145_v44 = vpop.permute.xlu0 %2144 }
 0x3b6   :  { %v2168_v27 = vsel %vm2164_vm3, %v2145_v44, %v8822_v23 }
 0x3b7   :  { %v2184_v24 = vmax.f32 %v8712_v36, %v2168_v27  ;;  %v2657_v36 = vsel %vm2164_vm3, %v2635_v8, %v8841_v41  ;;  %v8976_v8 = vld [vmem:[#allocation2 + $0xd0] ss:$0 sm:$0xff] }
 0x3b8   :  { %v2673_v27 = vmax.f32 %v8738_v29, %v2657_v36  ;;  %v9016_v36 = vld [vmem:[#allocation2 + $0xd7] ss:$0 sm:$0xff] }
 0x3ba   :  { %2356 = vrot.lane.b32.xlu1 %v2315_v37, %s7061_s24 }
 0x3bb   :  { %2444 = vrot.lane.b32.xlu2 %v2403_v59, %s7061_s24  ;;  %2243 = vrot.lane.b32.xlu0 %v2202_v10, %s7061_s24  ;;  %v2515_v59 = vld [vmem:[#allocation2 + $0xfc] ss:$0 sm:$0xff] }
 0x3bc   :  { %v2234_v50 = vpop.permute.xlu1 %2233 }
 0x3bd   :  { %v2256_v58 = vsel %vm2164_vm3, %v2234_v50, %v8775_v11  ;;  %v8957_v31 = vpop.permute.xlu2 %2640  ;;  %v2435_v42 = vpop.permute.xlu0 %2434  ;;  %v2715_v11 = vld [vmem:[#allocation2 + $0xfe] ss:$0 sm:$0xff] }
 0x3be   :  { %v2272_v32 = vmax.f32 %v8734_v13, %v2256_v58  ;;  %v2457_v23 = vsel %vm2164_vm3, %v2435_v42, %v8839_v39  ;;  %v8980_v58 = vld [vmem:[#allocation2 + $0xd1] ss:$0 sm:$0xff]  ;;  %v2803_v42 = vld [vmem:[#allocation2 + $0xff] ss:$0 sm:$0xff] }
 0x3bf   :  { %v2473_v25 = vmax.f32 %v8740_v35, %v2457_v23 }
 0x3c0   :  { %v2280_v44 = vmax.f32 %v2184_v24, %v2272_v32 }
 0x3c1   :  { %v2481_v52 = vmax.f32 %v2385_v18, %v2473_v25 }
 0x3c2   :  { %v2288_v37 = vmax.f32 %v2280_v44, 0.0  ;;  %2644 = vrot.lane.b32.xlu1 %v2603_v33, %s7061_s24  ;;  %v9000_v33 = vld [vmem:[#allocation2 + $0xd2] ss:$0 sm:$0xff] }
 0x3c3   :  { %v2489_v10 = vmax.f32 %v2481_v52, 0.0  ;;  %2756 = vrot.lane.b32.xlu2 %v2715_v11, %s7061_s24  ;;  %2556 = vrot.lane.b32.xlu0 %v2515_v59, %s7061_s24  ;;  %v8998_v52 = vld [vmem:[#allocation2 + $0xd4] ss:$0 sm:$0xff]  ;;  %v9012_v59 = vld [vmem:[#allocation2 + $0xd6] ss:$0 sm:$0xff] }
 0x3c4   :  { %2297 = vst.msk [vmem:[#allocation3 + $0x30] sm:$0x1] %vm2293_vm4, %v2288_v37  ;;  %v2547_v56 = vpop.permute.xlu1 %2546 }
 0x3c5   :  { %2497 = vst.msk [vmem:[#allocation3 + $0x31] sm:$0x1] %vm2293_vm4, %v2489_v10  ;;  %v2569_v13 = vsel %vm2164_vm3, %v2547_v56, %v8786_v19  ;;  %v2947_v35 = vpop.permute.xlu2 %2946  ;;  %v2747_v39 = vpop.permute.xlu0 %2746  ;;  %v9018_v10 = vld [vmem:[#allocation2 + $0xd5] ss:$0 sm:$0xff] }
 0x3c6   :  { %v2585_v46 = vmax.f32 %v8752_v53, %v2569_v13  ;;  %v2769_v24 = vsel %vm2164_vm3, %v2747_v39, %v8852_v3  ;;  %v8994_v3 = vld [vmem:[#allocation2 + $0xd3] ss:$0 sm:$0xff] }
 0x3c7   :  { %v2785_v23 = vmax.f32 %v8756_v14, %v2769_v24 }
 0x3c8   :  { %v2681_v41 = vmax.f32 %v2585_v46, %v2673_v27  ;;  %v2915_v27 = vld [vmem:[#allocation2 + $0x108] ss:$0 sm:$0xff]  ;;  %v3003_v46 = vld [vmem:[#allocation2 + $0x109] ss:$0 sm:$0xff] }
 0x3ca   :  { %v2689_v50 = vmax.f32 %v2681_v41, 0.0  ;;  %2950 = vrot.lane.b32.xlu1 %v8976_v8, %s7061_s24  ;;  %v3115_v41 = vld [vmem:[#allocation2 + $0x10a] ss:$0 sm:$0xff] }
 0x3cb   :  { %3038 = vrot.lane.b32.xlu2 %v8980_v58, %s7061_s24  ;;  %2844 = vrot.lane.b32.xlu0 %v2803_v42, %s7061_s24 }
 0x3cc   :  { %2697 = vst.msk [vmem:[#allocation3 + $0x32] sm:$0x1] %vm2293_vm4, %v2689_v50  ;;  %v2835_v29 = vpop.permute.xlu1 %2834  ;;  %v2969_v50 = vsel %vm2164_vm3, %v2947_v35, %v8897_v34 }
 0x3cd   :  { %v2857_v53 = vsel %vm2164_vm3, %v2835_v29, %v8806_v1  ;;  %v3235_v19 = vpop.permute.xlu2 %3234  ;;  %v8990_v32 = vpop.permute.xlu0 %2150 }
 0x3ce   :  { %v2873_v18 = vmax.f32 %v8767_v17, %v2857_v53  ;;  %v3257_v34 = vsel %vm2164_vm3, %v3235_v19, %v8916_v61  ;;  %v3515_v61 = vld [vmem:[#allocation2 + $0x10e] ss:$0 sm:$0xff] }
 0x3d0   :  { %v2881_v25 = vmax.f32 %v2785_v23, %v2873_v18  ;;  %v2985_v23 = vmax.f32 %v8795_v5, %v2969_v50 }
 0x3d2   :  { %v2889_v44 = vmax.f32 %v2881_v25, 0.0  ;;  %3238 = vrot.lane.b32.xlu1 %v8994_v3, %s7061_s24 }
 0x3d3   :  { %3350 = vrot.lane.b32.xlu2 %v8998_v52, %s7061_s24  ;;  %3150 = vrot.lane.b32.xlu0 %v9000_v33, %s7061_s24 }
 0x3d4   :  { %2897 = vst.msk [vmem:[#allocation3 + $0x33] sm:$0x1] %vm2293_vm4, %v2889_v44  ;;  %v9007_v14 = vpop.permute.xlu1 %2239  ;;  %v3203_v44 = vld [vmem:[#allocation2 + $0x10b] ss:$0 sm:$0xff] }
 0x3d5   :  { %v3547_v17 = vpop.permute.xlu2 %3546  ;;  %v9009_v1 = vpop.permute.xlu0 %2440 }
 0x3d7   :  { %v4585_v37 = vpop.f32.mrf.mxu2  ;;  %v4626_v11 = vpop.f32.mrf.mxu3 }
 0x3d8   :  { %4650 = vst [vmem:[#allocation4 + $0x10] sm:$0xff] %v4585_v37  ;;  %v3315_v37 = vld [vmem:[#allocation2 + $0x10c] ss:$0 sm:$0xff] }
 0x3d9   :  { %4651 = vst.msk [vmem:[#allocation4 + $0x18] sm:$0xff] %vm4648_vm6, %v4626_v11  ;;  %v3403_v11 = vld [vmem:[#allocation2 + $0x10d] ss:$0 sm:$0xff] }
 0x3da   :  { %3550 = vrot.lane.b32.xlu1 %v9012_v59, %s7061_s24 }
 0x3db   :  { %3638 = vrot.lane.b32.xlu2 %v9016_v36, %s7061_s24  ;;  %3438 = vrot.lane.b32.xlu0 %v9018_v10, %s7061_s24 }
 0x3dc   :  { %v9024_v56 = vpop.permute.xlu1 %2552 }
 0x3dd   :  { %v9026_v13 = vpop.permute.xlu2 %2952  ;;  %v9028_v39 = vpop.permute.xlu0 %2752 }
 0x3e2   :  { %2956 = vrot.lane.b32.xlu1 %v2915_v27, %s7061_s24 }
 0x3e3   :  { %3044 = vrot.lane.b32.xlu2 %v3003_v46, %s7061_s24  ;;  %3156 = vrot.lane.b32.xlu0 %v3115_v41, %s7061_s24  ;;  %v3273_v46 = vmax.f32 %v8813_v49, %v3257_v34 }
 0x3e4   :  { %v9035_v42 = vpop.permute.xlu1 %2840 }
 0x3e5   :  { %v9037_v24 = vpop.permute.xlu2 %3240  ;;  %v3035_v29 = vpop.permute.xlu0 %3034 }
 0x3e6   :  { %v3057_v53 = vsel %vm2164_vm3, %v3035_v29, %v8914_v43  ;;  %v3603_v29 = vld [vmem:[#allocation2 + $0x10f] ss:$0 sm:$0xff] }
 0x3e7   :  { %v3073_v18 = vmax.f32 %v8815_v12, %v3057_v53  ;;  %v3706_v53 = vld [vmem:[#allocation2 + $0xe0] ss:$0 sm:$0xff] }
 0x3e9   :  { %v3081_v25 = vmax.f32 %v2985_v23, %v3073_v18 }
 0x3ea   :  { %3244 = vrot.lane.b32.xlu1 %v3203_v44, %s7061_s24 }
 0x3eb   :  { %v3089_v35 = vmax.f32 %v3081_v25, 0.0  ;;  %3356 = vrot.lane.b32.xlu2 %v3315_v37, %s7061_s24  ;;  %3444 = vrot.lane.b32.xlu0 %v3403_v11, %s7061_s24 }
 0x3ec   :  { %v3147_v27 = vpop.permute.xlu1 %3146 }
 0x3ed   :  { %3097 = vst.msk [vmem:[#allocation3 + $0x34] sm:$0x1] %vm2293_vm4, %v3089_v35  ;;  %v3169_v5 = vsel %vm2164_vm3, %v3147_v27, %v8854_v55  ;;  %v9051_v12 = vpop.permute.xlu2 %3552  ;;  %v3347_v43 = vpop.permute.xlu0 %3346  ;;  %v3569_v55 = vsel %vm2164_vm3, %v3547_v17, %v8936_v0  ;;  %v9071_v35 = vld [vmem:[#allocation2 + $0xf0] ss:$0 sm:$0xff] }
 0x3ee   :  { %v3185_v41 = vmax.f32 %v8826_v62, %v3169_v5  ;;  %v3369_v23 = vsel %vm2164_vm3, %v3347_v43, %v8930_v45  ;;  %v3585_v11 = vmax.f32 %v8831_v21, %v3569_v55  ;;  %v9089_v5 = vld [vmem:[#allocation2 + $0xf3] ss:$0 sm:$0xff]  ;;  %v9093_v43 = vld [vmem:[#allocation2 + $0xf4] ss:$0 sm:$0xff] }
 0x3ef   :  { %v3385_v44 = vmax.f32 %v8833_v40, %v3369_v23  ;;  %v9077_v40 = vld [vmem:[#allocation2 + $0xf2] ss:$0 sm:$0xff]  ;;  %v3715_v23 = vld [vmem:[#allocation2 + $0x118] ss:$0 sm:$0xff] }
 0x3f0   :  { %v3281_v50 = vmax.f32 %v3185_v41, %v3273_v46  ;;  %v9095_v46 = vld [vmem:[#allocation2 + $0xf5] ss:$0 sm:$0xff] }
 0x3f2   :  { %v3289_v19 = vmax.f32 %v3281_v50, 0.0  ;;  %3556 = vrot.lane.b32.xlu1 %v3515_v61, %s7061_s24 }
 0x3f3   :  { %3644 = vrot.lane.b32.xlu2 %v3603_v29, %s7061_s24  ;;  %3750 = vrot.lane.b32.xlu0 %v3706_v53, %s7061_s24  ;;  %v9107_v29 = vld [vmem:[#allocation2 + $0xf6] ss:$0 sm:$0xff]  ;;  %v9111_v53 = vld [vmem:[#allocation2 + $0xf7] ss:$0 sm:$0xff] }
 0x3f4   :  { %3297 = vst.msk [vmem:[#allocation3 + $0x35] sm:$0x1] %vm2293_vm4, %v3289_v19  ;;  %v3435_v49 = vpop.permute.xlu1 %3434 }
 0x3f5   :  { %v3457_v62 = vsel %vm2164_vm3, %v3435_v49, %v8865_v7  ;;  %v2149_v18 = vpop.permute.xlu2 %2148  ;;  %v3635_v25 = vpop.permute.xlu0 %3634  ;;  %v9075_v7 = vld [vmem:[#allocation2 + $0xf1] ss:$0 sm:$0xff] }
 0x3f6   :  { %v3473_v37 = vmax.f32 %v8843_v47, %v3457_v62  ;;  %v3657_v45 = vsel %vm2164_vm3, %v3635_v25, %v8944_v60  ;;  %v2114_v25 = vld [vmem:[#allocation2 + $0x128] ss:$0 sm:$0xff] }
 0x3f7   :  { %v3673_v34 = vmax.f32 %v8847_v51, %v3657_v45 }
 0x3f8   :  { %v3481_v0 = vmax.f32 %v3385_v44, %v3473_v37  ;;  %v2203_v44 = vld [vmem:[#allocation2 + $0x129] ss:$0 sm:$0xff]  ;;  %v2316_v37 = vld [vmem:[#allocation2 + $0x12a] ss:$0 sm:$0xff] }
 0x3f9   :  { %v3681_v17 = vmax.f32 %v3585_v11, %v3673_v34  ;;  %v2169_v11 = vsel %vm2164_vm3, %v2149_v18, %v8990_v32  ;;  %v2404_v18 = vld [vmem:[#allocation2 + $0x12b] ss:$0 sm:$0xff] }
 0x3fa   :  { %v3489_v27 = vmax.f32 %v3481_v0, 0.0  ;;  %2152 = vrot.lane.b32.xlu1 %v9071_v35, %s7061_s24 }
 0x3fb   :  { %v3689_v47 = vmax.f32 %v3681_v17, 0.0  ;;  %2241 = vrot.lane.b32.xlu2 %v9075_v7, %s7061_s24  ;;  %2354 = vrot.lane.b32.xlu0 %v9077_v40, %s7061_s24 }
 0x3fc   :  { %3497 = vst.msk [vmem:[#allocation3 + $0x36] sm:$0x1] %vm2293_vm4, %v3489_v27  ;;  %v9084_v21 = vpop.permute.xlu1 %3152 }
 0x3fd   :  { %3697 = vst.msk [vmem:[#allocation3 + $0x37] sm:$0x1] %vm2293_vm4, %v3689_v47  ;;  %v2439_v51 = vpop.permute.xlu2 %2438  ;;  %v9087_v60 = vpop.permute.xlu0 %3040 }
 0x3fe   :  { %v2458_v45 = vsel %vm2164_vm3, %v2439_v51, %v9009_v1  ;;  %v2185_v51 = vmax.f32 %v8887_v38, %v2169_v11 }
 0x3ff   :  { %v2474_v47 = vmax.f32 %v8905_v16, %v2458_v45 }
 0x402   :  { %2442 = vrot.lane.b32.xlu1 %v9089_v5, %s7061_s24 }
 0x403   :  { %2554 = vrot.lane.b32.xlu2 %v9093_v43, %s7061_s24  ;;  %2642 = vrot.lane.b32.xlu0 %v9095_v46, %s7061_s24 }
 0x404   :  { %v9101_v41 = vpop.permute.xlu1 %3440  ;;  %v4505_v50 = vld [vmem:[#allocation3 + $0x30] sm:$0xff] }
 0x405   :  { %v2751_v61 = vpop.permute.xlu2 %2750  ;;  %6807 = vmatmul.msk.f32.gmra.mxu2 %vm4540_vm5, %v4505_v50  ;;  %6815 = vmatmul.msk.f32.gmra.mxu3 %vm4540_vm5, %v4505_v50  ;;  %v9105_v19 = vpop.permute.xlu0 %3352 }
 0x40a   :  { %2754 = vrot.lane.b32.xlu1 %v9107_v29, %s7061_s24 }
 0x40b   :  { %2842 = vrot.lane.b32.xlu2 %v9111_v53, %s7061_s24  ;;  %3756 = vrot.lane.b32.xlu0 %v3715_v23, %s7061_s24 }
 0x40c   :  { %v9116_v55 = vpop.permute.xlu1 %3746 }
 0x40d   :  { %11548 = vst [vmem:[#allocation8_spill] sm:$0xff] %v9116_v55  ;;  %v9118_v49 = vpop.permute.xlu2 %2154  ;;  %v9120_v62 = vpop.permute.xlu0 %3640 }
 0x412   :  { %2158 = vrot.lane.b32.xlu1 %v2114_v25, %s7061_s24 }
 0x413   :  { %2247 = vrot.lane.b32.xlu2 %v2203_v44, %s7061_s24  ;;  %2360 = vrot.lane.b32.xlu0 %v2316_v37, %s7061_s24  ;;  %v2604_v37 = vld [vmem:[#allocation2 + $0x12d] ss:$0 sm:$0xff] }
 0x414   :  { %v2351_v34 = vpop.permute.xlu1 %2350 }
 0x415   :  { %v2370_v0 = vsel %vm2164_vm3, %v2351_v34, %v8946_v57  ;;  %v9131_v17 = vpop.permute.xlu2 %2444  ;;  %v2238_v27 = vpop.permute.xlu0 %2237  ;;  %v2516_v57 = vld [vmem:[#allocation2 + $0x12c] ss:$0 sm:$0xff] }
 0x416   :  { %v2386_v50 = vmax.f32 %v8901_v20, %v2370_v0  ;;  %v2257_v1 = vsel %vm2164_vm3, %v2238_v27, %v9007_v14  ;;  %v2716_v27 = vld [vmem:[#allocation2 + $0x12e] ss:$0 sm:$0xff] }
 0x417   :  { %v2273_v23 = vmax.f32 %v8907_v48, %v2257_v1 }
 0x418   :  { %v2482_v25 = vmax.f32 %v2386_v50, %v2474_v47  ;;  %v2804_v47 = vld [vmem:[#allocation2 + $0x12f] ss:$0 sm:$0xff]  ;;  %v9153_v50 = vld [vmem:[#allocation2 + $0x100] ss:$0 sm:$0xff] }
 0x419   :  { %v2281_v32 = vmax.f32 %v2185_v51, %v2273_v23 }
 0x41a   :  { %v2490_v44 = vmax.f32 %v2482_v25, 0.0  ;;  %2448 = vrot.lane.b32.xlu1 %v2404_v18, %s7061_s24  ;;  %v9167_v18 = vld [vmem:[#allocation2 + $0x101] ss:$0 sm:$0xff] }
 0x41b   :  { %v2289_v34 = vmax.f32 %v2281_v32, 0.0  ;;  %2560 = vrot.lane.b32.xlu2 %v2516_v57, %s7061_s24  ;;  %2648 = vrot.lane.b32.xlu0 %v2604_v37, %s7061_s24 }
 0x41c   :  { %2498 = vst.msk [vmem:[#allocation3 + $0x41] sm:$0x1] %vm2293_vm4, %v2490_v44  ;;  %v2639_v20 = vpop.permute.xlu1 %2638 }
 0x41d   :  { %2298 = vst.msk [vmem:[#allocation3 + $0x40] sm:$0x1] %vm2293_vm4, %v2289_v34  ;;  %v2658_v38 = vsel %vm2164_vm3, %v2639_v20, %v8957_v31  ;;  %v9146_v16 = vpop.permute.xlu2 %2756  ;;  %v2551_v48 = vpop.permute.xlu0 %2550  ;;  %v9185_v34 = vld [vmem:[#allocation2 + $0x104] ss:$0 sm:$0xff]  ;;  %v9189_v20 = vld [vmem:[#allocation2 + $0x105] ss:$0 sm:$0xff] }
 0x41e   :  { %v2674_v14 = vmax.f32 %v8918_v26, %v2658_v38  ;;  %v2570_v45 = vsel %vm2164_vm3, %v2551_v48, %v9024_v56  ;;  %v2770_v26 = vsel %vm2164_vm3, %v2751_v61, %v9028_v39  ;;  %v9171_v39 = vld [vmem:[#allocation2 + $0x102] ss:$0 sm:$0xff]  ;;  %v9173_v61 = vld [vmem:[#allocation2 + $0x103] ss:$0 sm:$0xff]  ;;  %v9191_v38 = vld [vmem:[#allocation2 + $0x106] ss:$0 sm:$0xff] }
 0x41f   :  { %v2586_v11 = vmax.f32 %v8924_v30, %v2570_v45  ;;  %v2786_v23 = vmax.f32 %v8922_v2, %v2770_v26 }
 0x421   :  { %v2682_v0 = vmax.f32 %v2586_v11, %v2674_v14  ;;  %v9201_v11 = vld [vmem:[#allocation2 + $0x107] ss:$0 sm:$0xff] }
 0x422   :  { %2760 = vrot.lane.b32.xlu1 %v2716_v27, %s7061_s24  ;;  %v2916_v27 = vld [vmem:[#allocation2 + $0x138] ss:$0 sm:$0xff] }
 0x423   :  { %v2690_v1 = vmax.f32 %v2682_v0, 0.0  ;;  %2848 = vrot.lane.b32.xlu2 %v2804_v47, %s7061_s24  ;;  %2954 = vrot.lane.b32.xlu0 %v9153_v50, %s7061_s24  ;;  %v3116_v0 = vld [vmem:[#allocation2 + $0x13a] ss:$0 sm:$0xff] }
 0x424   :  { %v9160_v31 = vpop.permute.xlu1 %3752 }
 0x425   :  { %11549 = vst [vmem:[#allocation9_spill] sm:$0xff] %v9160_v31  ;;  %v3039_v30 = vpop.permute.xlu2 %3038  ;;  %v2839_v56 = vpop.permute.xlu0 %2838 }
 0x426   :  { %2698 = vst.msk [vmem:[#allocation3 + $0x42] sm:$0x1] %vm2293_vm4, %v2690_v1  ;;  %v2858_v51 = vsel %vm2164_vm3, %v2839_v56, %v9035_v42  ;;  %v3058_v47 = vsel %vm2164_vm3, %v3039_v30, %v9087_v60  ;;  %v3404_v60 = vld [vmem:[#allocation2 + $0x13d] ss:$0 sm:$0xff]  ;;  %v3204_v30 = vld [vmem:[#allocation2 + $0x13b] ss:$0 sm:$0xff] }
 0x427   :  { %v2874_v25 = vmax.f32 %v8939_v4, %v2858_v51 }
 0x429   :  { %v2882_v32 = vmax.f32 %v2786_v23, %v2874_v25  ;;  %v3074_v23 = vmax.f32 %v8980_v58, %v3058_v47 }
 0x42a   :  { %3042 = vrot.lane.b32.xlu1 %v9167_v18, %s7061_s24 }
 0x42b   :  { %v2890_v44 = vmax.f32 %v2882_v32, 0.0  ;;  %3154 = vrot.lane.b32.xlu2 %v9171_v39, %s7061_s24  ;;  %3242 = vrot.lane.b32.xlu0 %v9173_v61, %s7061_s24 }
 0x42c   :  { %v9179_v2 = vpop.permute.xlu1 %2356 }
 0x42d   :  { %2898 = vst.msk [vmem:[#allocation3 + $0x43] sm:$0x1] %vm2293_vm4, %v2890_v44  ;;  %v3351_v4 = vpop.permute.xlu2 %3350  ;;  %v9182_v42 = vpop.permute.xlu0 %2243  ;;  %v3004_v44 = vld [vmem:[#allocation2 + $0x139] ss:$0 sm:$0xff] }
 0x42f   :  { %v4588_v57 = vpop.f32.mrf.mxu2  ;;  %v4629_v37 = vpop.f32.mrf.mxu3 }
 0x430   :  { %4652 = vst [vmem:[#allocation4 + $0x20] sm:$0xff] %v4588_v57 }
 0x431   :  { %4653 = vst.msk [vmem:[#allocation4 + $0x28] sm:$0xff] %vm4648_vm6, %v4629_v37 }
 0x432   :  { %3354 = vrot.lane.b32.xlu1 %v9185_v34, %s7061_s24 }
 0x433   :  { %3442 = vrot.lane.b32.xlu2 %v9189_v20, %s7061_s24  ;;  %3554 = vrot.lane.b32.xlu0 %v9191_v38, %s7061_s24 }
 0x434   :  { %v9197_v48 = vpop.permute.xlu1 %2644 }
 0x435   :  { %v3639_v14 = vpop.permute.xlu2 %3638  ;;  %v9199_v45 = vpop.permute.xlu0 %2556 }
 0x43a   :  { %3642 = vrot.lane.b32.xlu1 %v9201_v11, %s7061_s24 }
 0x43b   :  { %3160 = vrot.lane.b32.xlu2 %v3116_v0, %s7061_s24  ;;  %2960 = vrot.lane.b32.xlu0 %v2916_v27, %s7061_s24 }
 0x43c   :  { %v2951_v1 = vpop.permute.xlu1 %2950 }
 0x43d   :  { %v2970_v26 = vsel %vm2164_vm3, %v2951_v1, %v9026_v13  ;;  %v9211_v56 = vpop.permute.xlu2 %3044  ;;  %v9213_v51 = vpop.permute.xlu0 %2844 }
 0x43e   :  { %v2986_v25 = vmax.f32 %v8976_v8, %v2970_v26  ;;  %v3316_v26 = vld [vmem:[#allocation2 + $0x13c] ss:$0 sm:$0xff] }
 0x440   :  { %v3082_v32 = vmax.f32 %v2986_v25, %v3074_v23  ;;  %v3707_v23 = vld [vmem:[#allocation2 + $0x110] ss:$0 sm:$0xff]  ;;  %v3516_v25 = vld [vmem:[#allocation2 + $0x13e] ss:$0 sm:$0xff] }
 0x442   :  { %v3090_v57 = vmax.f32 %v3082_v32, 0.0  ;;  %3048 = vrot.lane.b32.xlu1 %v3004_v44, %s7061_s24  ;;  %v3658_v32 = vsel %vm2164_vm3, %v3639_v14, %v9120_v62 }
 0x443   :  { %3448 = vrot.lane.b32.xlu2 %v3404_v60, %s7061_s24  ;;  %3248 = vrot.lane.b32.xlu0 %v3204_v30, %s7061_s24  ;;  %v3674_v60 = vmax.f32 %v9016_v36, %v3658_v32  ;;  %v9280_v32 = vld [vmem:[#allocation2 + $0x124] ss:$0 sm:$0xff] }
 0x444   :  { %3098 = vst.msk [vmem:[#allocation3 + $0x44] sm:$0x1] %vm2293_vm4, %v3090_v57  ;;  %v3239_v13 = vpop.permute.xlu1 %3238 }
 0x445   :  { %v3258_v37 = vsel %vm2164_vm3, %v3239_v13, %v9037_v24  ;;  %v9223_v58 = vpop.permute.xlu2 %3356  ;;  %v3151_v8 = vpop.permute.xlu0 %3150 }
 0x446   :  { %v3274_v0 = vmax.f32 %v8994_v3, %v3258_v37  ;;  %v3170_v27 = vsel %vm2164_vm3, %v3151_v8, %v9084_v21  ;;  %v3370_v3 = vsel %vm2164_vm3, %v3351_v4, %v9105_v19  ;;  %v3604_v37 = vld [vmem:[#allocation2 + $0x13f] ss:$0 sm:$0xff] }
 0x447   :  { %v3186_v47 = vmax.f32 %v9000_v33, %v3170_v27  ;;  %v3386_v30 = vmax.f32 %v8998_v52, %v3370_v3  ;;  %v9266_v27 = vld [vmem:[#allocation2 + $0x125] ss:$0 sm:$0xff]  ;;  %v9284_v3 = vld [vmem:[#allocation2 + $0x126] ss:$0 sm:$0xff] }
 0x449   :  { %v3282_v1 = vmax.f32 %v3186_v47, %v3274_v0  ;;  %v9250_v0 = vld [vmem:[#allocation2 + $0x120] ss:$0 sm:$0xff]  ;;  %v9268_v47 = vld [vmem:[#allocation2 + $0x123] ss:$0 sm:$0xff] }
 0x44a   :  { %3360 = vrot.lane.b32.xlu1 %v3316_v26, %s7061_s24 }
 0x44b   :  { %v3290_v24 = vmax.f32 %v3282_v1, 0.0  ;;  %3754 = vrot.lane.b32.xlu2 %v3707_v23, %s7061_s24  ;;  %3560 = vrot.lane.b32.xlu0 %v3516_v25, %s7061_s24 }
 0x44c   :  { %v3551_v21 = vpop.permute.xlu1 %3550 }
 0x44d   :  { %3298 = vst.msk [vmem:[#allocation3 + $0x45] sm:$0x1] %vm2293_vm4, %v3290_v24  ;;  %v3570_v33 = vsel %vm2164_vm3, %v3551_v21, %v9051_v12  ;;  %v9239_v44 = vpop.permute.xlu2 %3644  ;;  %v3439_v57 = vpop.permute.xlu0 %3438  ;;  %v9248_v12 = vld [vmem:[#allocation2 + $0x122] ss:$0 sm:$0xff]  ;;  %v3716_v24 = vld [vmem:[#allocation2 + $0x148] ss:$0 sm:$0xff] }
 0x44e   :  { %v3586_v62 = vmax.f32 %v9012_v59, %v3570_v33  ;;  %v3458_v14 = vsel %vm2164_vm3, %v3439_v57, %v9101_v41  ;;  %v9262_v41 = vld [vmem:[#allocation2 + $0x121] ss:$0 sm:$0xff] }
 0x44f   :  { %v3474_v19 = vmax.f32 %v9018_v10, %v3458_v14  ;;  %v2115_v14 = vld [vmem:[#allocation2 + $0x158] ss:$0 sm:$0xff] }
 0x450   :  { %v3682_v4 = vmax.f32 %v3586_v62, %v3674_v60  ;;  %v9293_v60 = vld [vmem:[#allocation2 + $0x127] ss:$0 sm:$0xff]  ;;  %v2317_v62 = vld [vmem:[#allocation2 + $0x15a] ss:$0 sm:$0xff] }
 0x451   :  { %v3482_v13 = vmax.f32 %v3386_v30, %v3474_v19 }
 0x452   :  { %v3690_v8 = vmax.f32 %v3682_v4, 0.0  ;;  %3648 = vrot.lane.b32.xlu1 %v3604_v37, %s7061_s24 }
 0x453   :  { %v3490_v36 = vmax.f32 %v3482_v13, 0.0  ;;  %2358 = vrot.lane.b32.xlu2 %v9248_v12, %s7061_s24  ;;  %2156 = vrot.lane.b32.xlu0 %v9250_v0, %s7061_s24 }
 0x454   :  { %3698 = vst.msk [vmem:[#allocation3 + $0x47] sm:$0x1] %vm2293_vm4, %v3690_v8  ;;  %v9257_v52 = vpop.permute.xlu1 %2956 }
 0x455   :  { %3498 = vst.msk [vmem:[#allocation3 + $0x46] sm:$0x1] %vm2293_vm4, %v3490_v36  ;;  %v2242_v59 = vpop.permute.xlu2 %2241  ;;  %v9260_v10 = vpop.permute.xlu0 %3156 }
 0x456   :  { %v2258_v30 = vsel %vm2164_vm3, %v2242_v59, %v9182_v42  ;;  %v2605_v42 = vld [vmem:[#allocation2 + $0x15d] ss:$0 sm:$0xff]  ;;  %v2405_v59 = vld [vmem:[#allocation2 + $0x15b] ss:$0 sm:$0xff] }
 0x457   :  { %v2274_v8 = vmax.f32 %v9075_v7, %v2258_v30 }
 0x45a   :  { %2245 = vrot.lane.b32.xlu1 %v9262_v41, %s7061_s24 }
 0x45b   :  { %2646 = vrot.lane.b32.xlu2 %v9266_v27, %s7061_s24  ;;  %2446 = vrot.lane.b32.xlu0 %v9268_v47, %s7061_s24 }
 0x45c   :  { %v9274_v1 = vpop.permute.xlu1 %3244  ;;  %v4506_v26 = vld [vmem:[#allocation3 + $0x40] sm:$0xff] }
 0x45d   :  { %v2555_v23 = vpop.permute.xlu2 %2554  ;;  %6808 = vmatmul.msk.f32.gmra.mxu2 %vm4540_vm5, %v4506_v26  ;;  %6816 = vmatmul.msk.f32.gmra.mxu3 %vm4540_vm5, %v4506_v26  ;;  %v9278_v25 = vpop.permute.xlu0 %3444 }
 0x462   :  { %2558 = vrot.lane.b32.xlu1 %v9280_v32, %s7061_s24 }
 0x463   :  { %3760 = vrot.lane.b32.xlu2 %v3716_v24, %s7061_s24  ;;  %2758 = vrot.lane.b32.xlu0 %v9284_v3, %s7061_s24  ;;  %v2204_v24 = vld [vmem:[#allocation2 + $0x159] ss:$0 sm:$0xff] }
 0x464   :  { %v9289_v21 = vpop.permute.xlu1 %3556 }
 0x465   :  { %v2843_v33 = vpop.permute.xlu2 %2842  ;;  %v9291_v57 = vpop.permute.xlu0 %3750 }
 0x466   :  { %11550 = vst [vmem:[#allocation10_spill] sm:$0xff] %v9291_v57 }
 0x46a   :  { %2846 = vrot.lane.b32.xlu1 %v9293_v60, %s7061_s24 }
 0x46b   :  { %2364 = vrot.lane.b32.xlu2 %v2317_v62, %s7061_s24  ;;  %2162 = vrot.lane.b32.xlu0 %v2115_v14, %s7061_s24 }
 0x46c   :  { %v2153_v19 = vpop.permute.xlu1 %2152 }
 0x46d   :  { %v2170_v4 = vsel %vm2164_vm3, %v2153_v19, %v9118_v49  ;;  %v9303_v13 = vpop.permute.xlu2 %2247  ;;  %v2355_v37 = vpop.permute.xlu0 %2354  ;;  %v2571_v49 = vsel %vm2164_vm3, %v2555_v23, %v9199_v45 }
 0x46e   :  { %v2186_v36 = vmax.f32 %v9071_v35, %v2170_v4  ;;  %v2371_v62 = vsel %vm2164_vm3, %v2355_v37, %v9179_v2  ;;  %v2587_v37 = vmax.f32 %v9093_v43, %v2571_v49  ;;  %v9344_v49 = vld [vmem:[#allocation2 + $0x133] ss:$0 sm:$0xff] }
 0x46f   :  { %v2387_v19 = vmax.f32 %v9077_v40, %v2371_v62  ;;  %v2859_v40 = vsel %vm2164_vm3, %v2843_v33, %v9213_v51 }
 0x470   :  { %v2282_v26 = vmax.f32 %v2186_v36, %v2274_v8  ;;  %v2517_v8 = vld [vmem:[#allocation2 + $0x15c] ss:$0 sm:$0xff]  ;;  %v2875_v51 = vmax.f32 %v9111_v53, %v2859_v40 }
 0x472   :  { %v2290_v55 = vmax.f32 %v2282_v26, 0.0  ;;  %2251 = vrot.lane.b32.xlu1 %v2204_v24, %s7061_s24  ;;  %v2717_v26 = vld [vmem:[#allocation2 + $0x15e] ss:$0 sm:$0xff] }
 0x473   :  { %2652 = vrot.lane.b32.xlu2 %v2605_v42, %s7061_s24  ;;  %2452 = vrot.lane.b32.xlu0 %v2405_v59, %s7061_s24  ;;  %v2805_v59 = vld [vmem:[#allocation2 + $0x15f] ss:$0 sm:$0xff] }
 0x474   :  { %2299 = vst.msk [vmem:[#allocation3 + $0x50] sm:$0x1] %vm2293_vm4, %v2290_v55  ;;  %v2443_v35 = vpop.permute.xlu1 %2442 }
 0x475   :  { %v2459_v7 = vsel %vm2164_vm3, %v2443_v35, %v9131_v17  ;;  %v9317_v14 = vpop.permute.xlu2 %2560  ;;  %v2643_v30 = vpop.permute.xlu0 %2642  ;;  %v9326_v17 = vld [vmem:[#allocation2 + $0x130] ss:$0 sm:$0xff]  ;;  %v9346_v35 = vld [vmem:[#allocation2 + $0x131] ss:$0 sm:$0xff] }
 0x476   :  { %v2475_v2 = vmax.f32 %v9089_v5, %v2459_v7  ;;  %v2659_v4 = vsel %vm2164_vm3, %v2643_v30, %v9197_v48 }
 0x477   :  { %v2675_v45 = vmax.f32 %v9095_v46, %v2659_v4  ;;  %v9364_v4 = vld [vmem:[#allocation2 + $0x134] ss:$0 sm:$0xff] }
 0x478   :  { %v2483_v23 = vmax.f32 %v2387_v19, %v2475_v2  ;;  %v9357_v19 = vld [vmem:[#allocation2 + $0x132] ss:$0 sm:$0xff]  ;;  %v9362_v2 = vld [vmem:[#allocation2 + $0x136] ss:$0 sm:$0xff] }
 0x479   :  { %v2683_v55 = vmax.f32 %v2587_v37, %v2675_v45 }
 0x47a   :  { %v2491_v36 = vmax.f32 %v2483_v23, 0.0  ;;  %2564 = vrot.lane.b32.xlu1 %v2517_v8, %s7061_s24  ;;  %v2917_v8 = vld [vmem:[#allocation2 + $0x168] ss:$0 sm:$0xff] }
 0x47b   :  { %v2691_v5 = vmax.f32 %v2683_v55, 0.0  ;;  %2958 = vrot.lane.b32.xlu2 %v9326_v17, %s7061_s24  ;;  %2764 = vrot.lane.b32.xlu0 %v2717_v26, %s7061_s24  ;;  %v9374_v55 = vld [vmem:[#allocation2 + $0x135] ss:$0 sm:$0xff] }
 0x47c   :  { %2499 = vst.msk [vmem:[#allocation3 + $0x51] sm:$0x1] %vm2293_vm4, %v2491_v36  ;;  %v2755_v43 = vpop.permute.xlu1 %2754  ;;  %v9378_v36 = vld [vmem:[#allocation2 + $0x137] ss:$0 sm:$0xff] }
 0x47d   :  { %2699 = vst.msk [vmem:[#allocation3 + $0x52] sm:$0x1] %vm2293_vm4, %v2691_v5  ;;  %v2771_v46 = vsel %vm2164_vm3, %v2755_v43, %v9146_v16  ;;  %v9337_v48 = vpop.permute.xlu2 %2848  ;;  %v9339_v24 = vpop.permute.xlu0 %3756  ;;  %v3117_v43 = vld [vmem:[#allocation2 + $0x16a] ss:$0 sm:$0xff] }
 0x47e   :  { %11551 = vst [vmem:[#allocation11_spill] sm:$0xff] %v9339_v24  ;;  %v2787_v33 = vmax.f32 %v9107_v29, %v2771_v46  ;;  %v3205_v46 = vld [vmem:[#allocation2 + $0x16b] ss:$0 sm:$0xff] }
 0x480   :  { %v2883_v42 = vmax.f32 %v2787_v33, %v2875_v51  ;;  %v3005_v51 = vld [vmem:[#allocation2 + $0x169] ss:$0 sm:$0xff] }
 0x482   :  { %v2891_v62 = vmax.f32 %v2883_v42, 0.0  ;;  %2852 = vrot.lane.b32.xlu1 %v2805_v59, %s7061_s24 }
 0x483   :  { %3246 = vrot.lane.b32.xlu2 %v9344_v49, %s7061_s24  ;;  %3046 = vrot.lane.b32.xlu0 %v9346_v35, %s7061_s24 }
 0x484   :  { %2899 = vst.msk [vmem:[#allocation3 + $0x53] sm:$0x1] %vm2293_vm4, %v2891_v62  ;;  %v9353_v53 = vpop.permute.xlu1 %2158 }
 0x485   :  { %v3155_v29 = vpop.permute.xlu2 %3154  ;;  %v9355_v16 = vpop.permute.xlu0 %2360 }
 0x486   :  { %v3171_v42 = vsel %vm2164_vm3, %v3155_v29, %v9260_v10  ;;  %v3405_v29 = vld [vmem:[#allocation2 + $0x16d] ss:$0 sm:$0xff] }
 0x488   :  { %v4591_v7 = vpop.f32.mrf.mxu2  ;;  %v4632_v30 = vpop.f32.mrf.mxu3 }
 0x489   :  { %4654 = vst [vmem:[#allocation4 + $0x30] sm:$0xff] %v4591_v7 }
 0x48a   :  { %4655 = vst.msk [vmem:[#allocation4 + $0x38] sm:$0xff] %vm4648_vm6, %v4632_v30  ;;  %3158 = vrot.lane.b32.xlu1 %v9357_v19, %s7061_s24 }
 0x48b   :  { %3558 = vrot.lane.b32.xlu2 %v9362_v2, %s7061_s24  ;;  %3358 = vrot.lane.b32.xlu0 %v9364_v4, %s7061_s24 }
 0x48c   :  { %v9370_v37 = vpop.permute.xlu1 %2448 }
 0x48d   :  { %v3443_v45 = vpop.permute.xlu2 %3442  ;;  %v9372_v23 = vpop.permute.xlu0 %2648 }
 0x492   :  { %3446 = vrot.lane.b32.xlu1 %v9374_v55, %s7061_s24 }
 0x493   :  { %2964 = vrot.lane.b32.xlu2 %v2917_v8, %s7061_s24  ;;  %3646 = vrot.lane.b32.xlu0 %v9378_v36, %s7061_s24 }
 0x494   :  { %v9383_v26 = vpop.permute.xlu1 %2760 }
 0x495   :  { %v9385_v40 = vpop.permute.xlu2 %3160  ;;  %v2955_v5 = vpop.permute.xlu0 %2954 }
 0x496   :  { %v2971_v33 = vsel %vm2164_vm3, %v2955_v5, %v9257_v52  ;;  %v3187_v5 = vmax.f32 %v9171_v39, %v3171_v42 }
 0x497   :  { %v2987_v8 = vmax.f32 %v9153_v50, %v2971_v33  ;;  %v3459_v50 = vsel %vm2164_vm3, %v3443_v45, %v9278_v25 }
 0x498   :  { %v3475_v42 = vmax.f32 %v9189_v20, %v3459_v50  ;;  %v9453_v50 = vld [vmem:[#allocation2 + $0x156] ss:$0 sm:$0xff] }
 0x49a   :  { %3164 = vrot.lane.b32.xlu1 %v3117_v43, %s7061_s24 }
 0x49b   :  { %3252 = vrot.lane.b32.xlu2 %v3205_v46, %s7061_s24  ;;  %3052 = vrot.lane.b32.xlu0 %v3005_v51, %s7061_s24 }
 0x49c   :  { %v3043_v59 = vpop.permute.xlu1 %3042 }
 0x49d   :  { %v3059_v62 = vsel %vm2164_vm3, %v3043_v59, %v9211_v56  ;;  %v9396_v7 = vpop.permute.xlu2 %3448  ;;  %v3243_v30 = vpop.permute.xlu0 %3242  ;;  %v3517_v56 = vld [vmem:[#allocation2 + $0x16e] ss:$0 sm:$0xff]  ;;  %v3317_v59 = vld [vmem:[#allocation2 + $0x16c] ss:$0 sm:$0xff] }
 0x49e   :  { %v3075_v43 = vmax.f32 %v9167_v18, %v3059_v62  ;;  %v3259_v52 = vsel %vm2164_vm3, %v3243_v30, %v9274_v1  ;;  %v3708_v62 = vld [vmem:[#allocation2 + $0x140] ss:$0 sm:$0xff] }
 0x49f   :  { %v3275_v46 = vmax.f32 %v9173_v61, %v3259_v52 }
 0x4a0   :  { %v3083_v51 = vmax.f32 %v2987_v8, %v3075_v43  ;;  %v9418_v8 = vld [vmem:[#allocation2 + $0x150] ss:$0 sm:$0xff] }
 0x4a1   :  { %v3283_v10 = vmax.f32 %v3187_v5, %v3275_v46 }
 0x4a2   :  { %v3091_v24 = vmax.f32 %v3083_v51, 0.0  ;;  %3452 = vrot.lane.b32.xlu1 %v3405_v29, %s7061_s24  ;;  %v9436_v29 = vld [vmem:[#allocation2 + $0x153] ss:$0 sm:$0xff] }
 0x4a3   :  { %v3291_v33 = vmax.f32 %v3283_v10, 0.0  ;;  %3564 = vrot.lane.b32.xlu2 %v3517_v56, %s7061_s24  ;;  %3364 = vrot.lane.b32.xlu0 %v3317_v59, %s7061_s24  ;;  %v9438_v56 = vld [vmem:[#allocation2 + $0x151] ss:$0 sm:$0xff]  ;;  %v9449_v59 = vld [vmem:[#allocation2 + $0x155] ss:$0 sm:$0xff] }
 0x4a4   :  { %3099 = vst.msk [vmem:[#allocation3 + $0x54] sm:$0x1] %vm2293_vm4, %v3091_v24  ;;  %v3355_v18 = vpop.permute.xlu1 %3354  ;;  %v3605_v24 = vld [vmem:[#allocation2 + $0x16f] ss:$0 sm:$0xff] }
 0x4a5   :  { %3299 = vst.msk [vmem:[#allocation3 + $0x55] sm:$0x1] %vm2293_vm4, %v3291_v33  ;;  %v3371_v39 = vsel %vm2164_vm3, %v3355_v18, %v9223_v58  ;;  %v9413_v61 = vpop.permute.xlu2 %3754  ;;  %v3555_v1 = vpop.permute.xlu0 %3554  ;;  %v9455_v33 = vld [vmem:[#allocation2 + $0x154] ss:$0 sm:$0xff] }
 0x4a6   :  { %11552 = vst [vmem:[#allocation12_spill] sm:$0xff] %v9413_v61  ;;  %v3387_v25 = vmax.f32 %v9185_v34, %v3371_v39  ;;  %v3571_v43 = vsel %vm2164_vm3, %v3555_v1, %v9289_v21  ;;  %v9432_v21 = vld [vmem:[#allocation2 + $0x152] ss:$0 sm:$0xff] }
 0x4a7   :  { %v3587_v5 = vmax.f32 %v9191_v38, %v3571_v43 }
 0x4a8   :  { %v3483_v45 = vmax.f32 %v3387_v25, %v3475_v42  ;;  %v9469_v25 = vld [vmem:[#allocation2 + $0x160] ss:$0 sm:$0xff] }
 0x4aa   :  { %v3491_v30 = vmax.f32 %v3483_v45, 0.0  ;;  %3758 = vrot.lane.b32.xlu1 %v3708_v62, %s7061_s24  ;;  %v9473_v45 = vld [vmem:[#allocation2 + $0x161] ss:$0 sm:$0xff]  ;;  %v9475_v62 = vld [vmem:[#allocation2 + $0x157] ss:$0 sm:$0xff] }
 0x4ab   :  { %2160 = vrot.lane.b32.xlu2 %v9418_v8, %s7061_s24  ;;  %3652 = vrot.lane.b32.xlu0 %v3605_v24, %s7061_s24 }
 0x4ac   :  { %3499 = vst.msk [vmem:[#allocation3 + $0x56] sm:$0x1] %vm2293_vm4, %v3491_v30  ;;  %v3643_v20 = vpop.permute.xlu1 %3642 }
 0x4ad   :  { %v3659_v34 = vsel %vm2164_vm3, %v3643_v20, %v9239_v44  ;;  %v2359_v58 = vpop.permute.xlu2 %2358  ;;  %v9428_v52 = vpop.permute.xlu0 %2960  ;;  %v9485_v20 = vld [vmem:[#allocation2 + $0x163] ss:$0 sm:$0xff] }
 0x4ae   :  { %v3675_v46 = vmax.f32 %v9201_v11, %v3659_v34  ;;  %v9489_v34 = vld [vmem:[#allocation2 + $0x164] ss:$0 sm:$0xff] }
 0x4b0   :  { %v3683_v51 = vmax.f32 %v3587_v5, %v3675_v46  ;;  %v9491_v5 = vld [vmem:[#allocation2 + $0x162] ss:$0 sm:$0xff] }
 0x4b2   :  { %v3691_v10 = vmax.f32 %v3683_v51, 0.0  ;;  %2362 = vrot.lane.b32.xlu1 %v9432_v21, %s7061_s24  ;;  %v2372_v51 = vsel %vm2164_vm3, %v2359_v58, %v9355_v16  ;;  %v9511_v58 = vld [vmem:[#allocation2 + $0x166] ss:$0 sm:$0xff] }
 0x4b3   :  { %2450 = vrot.lane.b32.xlu2 %v9436_v29, %s7061_s24  ;;  %2249 = vrot.lane.b32.xlu0 %v9438_v56, %s7061_s24  ;;  %v2388_v57 = vmax.f32 %v9248_v12, %v2372_v51 }
 0x4b4   :  { %3699 = vst.msk [vmem:[#allocation3 + $0x57] sm:$0x1] %vm2293_vm4, %v3691_v10  ;;  %v9445_v38 = vpop.permute.xlu1 %3048 }
 0x4b5   :  { %v2647_v11 = vpop.permute.xlu2 %2646  ;;  %v9447_v44 = vpop.permute.xlu0 %3248 }
 0x4ba   :  { %2650 = vrot.lane.b32.xlu1 %v9449_v59, %s7061_s24 }
 0x4bb   :  { %2762 = vrot.lane.b32.xlu2 %v9453_v50, %s7061_s24  ;;  %2562 = vrot.lane.b32.xlu0 %v9455_v33, %s7061_s24  ;;  %v4507_v18 = vld [vmem:[#allocation3 + $0x50] sm:$0xff] }
 0x4bc   :  { %v9461_v39 = vpop.permute.xlu1 %3360  ;;  %6809 = vmatmul.msk.f32.gmra.mxu2 %vm4540_vm5, %v4507_v18  ;;  %6817 = vmatmul.msk.f32.gmra.mxu3 %vm4540_vm5, %v4507_v18 }
 0x4bd   :  { %v9465_v1 = vpop.permute.xlu2 %3760  ;;  %v9467_v42 = vpop.permute.xlu0 %3560 }
 0x4be   :  { %11553 = vst [vmem:[#allocation13_spill] sm:$0xff] %v9465_v1 }
 0x4c2   :  { %2962 = vrot.lane.b32.xlu1 %v9469_v25, %s7061_s24 }
 0x4c3   :  { %3050 = vrot.lane.b32.xlu2 %v9473_v45, %s7061_s24  ;;  %2850 = vrot.lane.b32.xlu0 %v9475_v62, %s7061_s24 }
 0x4c4   :  { %v9481_v30 = vpop.permute.xlu1 %3648 }
 0x4c5   :  { %v9483_v24 = vpop.permute.xlu2 %2364  ;;  %v2157_v43 = vpop.permute.xlu0 %2156 }
 0x4c6   :  { %v2171_v46 = vsel %vm2164_vm3, %v2157_v43, %v9353_v53 }
 0x4c7   :  { %v2187_v9 = vmax.f32 %v9250_v0, %v2171_v46  ;;  %v9517_v0 = vld [vmem:[#allocation2 + $0x165] ss:$0 sm:$0xff]  ;;  %v9532_v46 = vld [vmem:[#allocation2 + $0x21] ss:$0 sm:$0xff] }
 0x4ca   :  { %3250 = vrot.lane.b32.xlu1 %v9485_v20, %s7061_s24 }
 0x4cb   :  { %3362 = vrot.lane.b32.xlu2 %v9489_v34, %s7061_s24  ;;  %3162 = vrot.lane.b32.xlu0 %v9491_v5, %s7061_s24 }
 0x4cc   :  { %v2246_v10 = vpop.permute.xlu1 %2245 }
 0x4cd   :  { %v2259_v18 = vsel %vm2164_vm3, %v2246_v10, %v9303_v13  ;;  %v9503_v1 = vpop.permute.xlu2 %2652  ;;  %v2447_v61 = vpop.permute.xlu0 %2446  ;;  %v9515_v13 = vld [vmem:[#allocation2 + $0x167] ss:$0 sm:$0xff] }
 0x4ce   :  { %v2275_v53 = vmax.f32 %v9262_v41, %v2259_v18  ;;  %v2460_v43 = vsel %vm2164_vm3, %v2447_v61, %v9370_v37  ;;  %v2660_v41 = vsel %vm2164_vm3, %v2647_v11, %v9372_v23  ;;  %v3717_v61 = vld [vmem:[#allocation2 + $0x178] ss:$0 sm:$0xff] }
 0x4cf   :  { %v2476_v31 = vmax.f32 %v9268_v47, %v2460_v43  ;;  %v2676_v47 = vmax.f32 %v9266_v27, %v2660_v41  ;;  %v9549_v41 = vld [vmem:[#allocation2 + $0x51] ss:$0 sm:$0xff] }
 0x4d0   :  { %v2283_v54 = vmax.f32 %v2187_v9, %v2275_v53 }
 0x4d1   :  { %v2484_v16 = vmax.f32 %v2388_v57, %v2476_v31 }
 0x4d2   :  { %v2291_v28 = vmax.f32 %v2283_v54, 0.0  ;;  %3562 = vrot.lane.b32.xlu1 %v9511_v58, %s7061_s24 }
 0x4d3   :  { %v2492_v37 = vmax.f32 %v2484_v16, 0.0  ;;  %3650 = vrot.lane.b32.xlu2 %v9515_v13, %s7061_s24  ;;  %3450 = vrot.lane.b32.xlu0 %v9517_v0, %s7061_s24 }
 0x4d4   :  { %2300 = vst.msk [vmem:[#allocation3 + $0x60] sm:$0x1] %vm2293_vm4, %v2291_v28  ;;  %v2559_v54 = vpop.permute.xlu1 %2558  ;;  %v9534_v28 = vld [vmem:[#allocation2 + $0x170] ss:$0 sm:$0xff] }
 0x4d5   :  { %2500 = vst.msk [vmem:[#allocation3 + $0x61] sm:$0x1] %vm2293_vm4, %v2492_v37  ;;  %v2572_v9 = vsel %vm2164_vm3, %v2559_v54, %v9317_v14  ;;  %v2959_v31 = vpop.permute.xlu2 %2958  ;;  %v2759_v12 = vpop.permute.xlu0 %2758  ;;  %v3798_v54 = vld [vmem:[#allocation2 + $0x29] ss:$0 sm:$0xff] }
 0x4d6   :  { %v2588_v57 = vmax.f32 %v9280_v32, %v2572_v9  ;;  %v2772_v51 = vsel %vm2164_vm3, %v2759_v12, %v9383_v26  ;;  %v3800_v12 = vld [vmem:[#allocation2 + $0x89] ss:$0 sm:$0xff] }
 0x4d7   :  { %v2788_v18 = vmax.f32 %v9284_v3, %v2772_v51  ;;  %v9576_v51 = vld [vmem:[#allocation2 + $0xe1] ss:$0 sm:$0xff] }
 0x4d8   :  { %v2684_v23 = vmax.f32 %v2588_v57, %v2676_v47  ;;  %v9562_v47 = vld [vmem:[#allocation2 + $0xb1] ss:$0 sm:$0xff]  ;;  %v9564_v57 = vld [vmem:[#allocation2 + $0x81] ss:$0 sm:$0xff] }
 0x4da   :  { %v2692_v11 = vmax.f32 %v2684_v23, 0.0  ;;  %3764 = vrot.lane.b32.xlu1 %v3717_v61, %s7061_s24 }
 0x4db   :  { %3822 = vrot.lane.b32.xlu2 %v9532_v46, %s7061_s24  ;;  %3762 = vrot.lane.b32.xlu0 %v9534_v28, %s7061_s24 }
 0x4dc   :  { %2700 = vst.msk [vmem:[#allocation3 + $0x62] sm:$0x1] %vm2293_vm4, %v2692_v11  ;;  %v2847_v27 = vpop.permute.xlu1 %2846 }
 0x4dd   :  { %v2860_v32 = vsel %vm2164_vm3, %v2847_v27, %v9337_v48  ;;  %v3247_v14 = vpop.permute.xlu2 %3246  ;;  %v9545_v10 = vpop.permute.xlu0 %2162  ;;  %v3799_v48 = vld [vmem:[#allocation2 + $0x59] ss:$0 sm:$0xff]  ;;  %v3802_v27 = vld [vmem:[#allocation2 + $0xe9] ss:$0 sm:$0xff] }
 0x4de   :  { %v2876_v53 = vmax.f32 %v9293_v60, %v2860_v32  ;;  %v3801_v32 = vld [vmem:[#allocation2 + $0xb9] ss:$0 sm:$0xff] }
 0x4e0   :  { %v2884_v26 = vmax.f32 %v2788_v18, %v2876_v53  ;;  %v4594_v43 = vpop.f32.mrf.mxu2  ;;  %v4635_v16 = vpop.f32.mrf.mxu3  ;;  %v2972_v18 = vsel %vm2164_vm3, %v2959_v31, %v9428_v52  ;;  %v3260_v52 = vsel %vm2164_vm3, %v3247_v14, %v9447_v44 }
 0x4e1   :  { %4656 = vst [vmem:[#allocation4 + $0x40] sm:$0xff] %v4594_v43 }
 0x4e2   :  { %v2892_v37 = vmax.f32 %v2884_v26, 0.0  ;;  %4657 = vst.msk [vmem:[#allocation4 + $0x48] sm:$0xff] %vm4648_vm6, %v4635_v16  ;;  %3826 = vrot.lane.b32.xlu1 %v9549_v41, %s7061_s24 }
 0x4e3   :  { %3828 = vrot.lane.b32.xlu2 %v3799_v48, %s7061_s24  ;;  %3824 = vrot.lane.b32.xlu0 %v3798_v54, %s7061_s24 }
 0x4e4   :  { %2900 = vst.msk [vmem:[#allocation3 + $0x63] sm:$0x1] %vm2293_vm4, %v2892_v37  ;;  %v9557_v3 = vpop.permute.xlu1 %2251  ;;  %v2988_v37 = vmax.f32 %v9326_v17, %v2972_v18 }
 0x4e5   :  { %v3559_v60 = vpop.permute.xlu2 %3558  ;;  %v9559_v9 = vpop.permute.xlu0 %2452 }
 0x4ea   :  { %3832 = vrot.lane.b32.xlu1 %v3800_v12, %s7061_s24  ;;  %v3803_v12 = vld [vmem:[#allocation2 + $0x119] ss:$0 sm:$0xff] }
 0x4eb   :  { %3834 = vrot.lane.b32.xlu2 %v9562_v47, %s7061_s24  ;;  %3830 = vrot.lane.b32.xlu0 %v9564_v57, %s7061_s24 }
 0x4ec   :  { %v9570_v23 = vpop.permute.xlu1 %2564 }
 0x4ed   :  { %v9572_v61 = vpop.permute.xlu2 %2964  ;;  %v9574_v11 = vpop.permute.xlu0 %2764 }
 0x4f2   :  { %3838 = vrot.lane.b32.xlu1 %v9576_v51, %s7061_s24 }
 0x4f3   :  { %3840 = vrot.lane.b32.xlu2 %v3802_v27, %s7061_s24  ;;  %3836 = vrot.lane.b32.xlu0 %v3801_v32, %s7061_s24  ;;  %v9593_v27 = vld [vmem:[#allocation2 + $0x141] ss:$0 sm:$0xff]  ;;  %v9595_v32 = vld [vmem:[#allocation2 + $0x111] ss:$0 sm:$0xff] }
 0x4f4   :  { %v9584_v53 = vpop.permute.xlu1 %2852 }
 0x4f5   :  { %v9586_v26 = vpop.permute.xlu2 %3252  ;;  %v3047_v43 = vpop.permute.xlu0 %3046 }
 0x4f6   :  { %v3060_v16 = vsel %vm2164_vm3, %v3047_v43, %v9445_v38  ;;  %v3276_v43 = vmax.f32 %v9344_v49, %v3260_v52  ;;  %v3572_v49 = vsel %vm2164_vm3, %v3559_v60, %v9467_v42 }
 0x4f7   :  { %v3076_v48 = vmax.f32 %v9346_v35, %v3060_v16  ;;  %v9610_v16 = vld [vmem:[#allocation2 + $0x171] ss:$0 sm:$0xff] }
 0x4f9   :  { %v3084_v54 = vmax.f32 %v2988_v37, %v3076_v48  ;;  %v3805_v48 = vld [vmem:[#allocation2 + $0x179] ss:$0 sm:$0xff] }
 0x4fa   :  { %3844 = vrot.lane.b32.xlu1 %v3803_v12, %s7061_s24 }
 0x4fb   :  { %v3092_v31 = vmax.f32 %v3084_v54, 0.0  ;;  %3846 = vrot.lane.b32.xlu2 %v9593_v27, %s7061_s24  ;;  %3842 = vrot.lane.b32.xlu0 %v9595_v32, %s7061_s24  ;;  %v3804_v54 = vld [vmem:[#allocation2 + $0x149] ss:$0 sm:$0xff] }
 0x4fc   :  { %v3159_v17 = vpop.permute.xlu1 %3158 }
 0x4fd   :  { %3100 = vst.msk [vmem:[#allocation3 + $0x64] sm:$0x1] %vm2293_vm4, %v3092_v31  ;;  %v3172_v35 = vsel %vm2164_vm3, %v3159_v17, %v9385_v40  ;;  %v9606_v38 = vpop.permute.xlu2 %3564  ;;  %v3359_v18 = vpop.permute.xlu0 %3358 }
 0x4fe   :  { %v3188_v44 = vmax.f32 %v9357_v19, %v3172_v35  ;;  %v3372_v12 = vsel %vm2164_vm3, %v3359_v18, %v9461_v39  ;;  %v3588_v18 = vmax.f32 %v9362_v2, %v3572_v49 }
 0x4ff   :  { %v3388_v17 = vmax.f32 %v9364_v4, %v3372_v12 }
 0x500   :  { %v3284_v14 = vmax.f32 %v3188_v44, %v3276_v43  ;;  %v3910_v44 = vld [vmem:[#allocation2 + $0x2a] ss:$0 sm:$0xff] }
 0x502   :  { %v3292_v37 = vmax.f32 %v3284_v14, 0.0  ;;  %3850 = vrot.lane.b32.xlu1 %v9610_v16, %s7061_s24 }
 0x503   :  { %3852 = vrot.lane.b32.xlu2 %v3805_v48, %s7061_s24  ;;  %3848 = vrot.lane.b32.xlu0 %v3804_v54, %s7061_s24  ;;  %v3911_v54 = vld [vmem:[#allocation2 + $0x5a] ss:$0 sm:$0xff] }
 0x504   :  { %3300 = vst.msk [vmem:[#allocation3 + $0x65] sm:$0x1] %vm2293_vm4, %v3292_v37  ;;  %v3447_v19 = vpop.permute.xlu1 %3446  ;;  %v9632_v37 = vld [vmem:[#allocation2 + $0x22] ss:$0 sm:$0xff] }
 0x505   :  { %v3460_v40 = vsel %vm2164_vm3, %v3447_v19, %v9396_v7  ;;  %v9623_v52 = vpop.permute.xlu2 %2160  ;;  %v3647_v31 = vpop.permute.xlu0 %3646  ;;  %v3903_v7 = vld [vmem:[#allocation2 + $0x52] ss:$0 sm:$0xff] }
 0x506   :  { %v3476_v39 = vmax.f32 %v9374_v55, %v3460_v40  ;;  %v3660_v35 = vsel %vm2164_vm3, %v3647_v31, %v9481_v30  ;;  %v3912_v30 = vld [vmem:[#allocation2 + $0x8a] ss:$0 sm:$0xff]  ;;  %v6940_v31 = vld [vmem:[%s11534_s2 + $0x3b0] sm:$0xff] }
 0x507   :  { %v3676_v42 = vmax.f32 %v9378_v36, %v3660_v35  ;;  %v3904_v36 = vld [vmem:[#allocation2 + $0x82] ss:$0 sm:$0xff]  ;;  %5114 = vmatpush.msra.mxu0 %v6940_v31  ;;  %v6849_v35 = vld [vmem:[%s11534_s2 + $0x1d8] sm:$0xff]  ;;  %v2172_v31 = vsel %vm2164_vm3, %v9623_v52, %v9545_v10 }
 0x508   :  { %v3484_v60 = vmax.f32 %v3388_v17, %v3476_v39  ;;  %v6941_v17 = vld [vmem:[%s11534_s2 + $0x3b8] sm:$0xff]  ;;  %v6848_v39 = vld [vmem:[%s11534_s2 + $0x1d0] sm:$0xff]  ;;  %4769 = vmatpush.msrb.mxu3 %v6849_v35 }
 0x509   :  { %v3684_v43 = vmax.f32 %v3588_v18, %v3676_v42  ;;  %5155 = vmatpush.msrb.mxu1 %v6941_v17  ;;  %4728 = vmatpush.msrb.mxu2 %v6848_v39  ;;  %v3913_v18 = vld [vmem:[#allocation2 + $0xba] ss:$0 sm:$0xff]  ;;  %v3906_v42 = vld [vmem:[#allocation2 + $0xe2] ss:$0 sm:$0xff] }
 0x50a   :  { %v3492_v14 = vmax.f32 %v3484_v60, 0.0  ;;  %3936 = vrot.lane.b32.xlu1 %v3910_v44, %s7061_s24  ;;  %v3905_v60 = vld [vmem:[#allocation2 + $0xb2] ss:$0 sm:$0xff] }
 0x50b   :  { %v3692_v48 = vmax.f32 %v3684_v43, 0.0  ;;  %3938 = vrot.lane.b32.xlu2 %v3903_v7, %s7061_s24  ;;  %3934 = vrot.lane.b32.xlu0 %v9632_v37, %s7061_s24  ;;  %v6846_v7 = vld [vmem:[%s11534_s2 + $0x1c0] sm:$0xff] }
 0x50c   :  { %3500 = vst.msk [vmem:[#allocation3 + $0x66] sm:$0x1] %vm2293_vm4, %v3492_v14  ;;  %v9638_v2 = vpop.permute.xlu1 %3164  ;;  %4729 = vmatpush.msrb.mxu2 %v6846_v7  ;;  %v6842_v7 = vld [vmem:[%s11534_s2 + $0x1a0] sm:$0xff] }
 0x50d   :  { %3700 = vst.msk [vmem:[#allocation3 + $0x67] sm:$0x1] %vm2293_vm4, %v3692_v48  ;;  %v2451_v4 = vpop.permute.xlu2 %2450  ;;  %v9641_v55 = vpop.permute.xlu0 %3052  ;;  %v6847_v48 = vld [vmem:[%s11534_s2 + $0x1c8] sm:$0xff] }
 0x50e   :  { %4770 = vmatpush.msrb.mxu3 %v6847_v48  ;;  %v6843_v48 = vld [vmem:[%s11534_s2 + $0x1a8] sm:$0xff] }
 0x512   :  { %3942 = vrot.lane.b32.xlu1 %v3904_v36, %s7061_s24  ;;  %v3907_v36 = vld [vmem:[#allocation2 + $0x112] ss:$0 sm:$0xff] }
 0x513   :  { %3944 = vrot.lane.b32.xlu2 %v3912_v30, %s7061_s24  ;;  %3940 = vrot.lane.b32.xlu0 %v3911_v54, %s7061_s24  ;;  %v3915_v30 = vld [vmem:[#allocation2 + $0x11a] ss:$0 sm:$0xff]  ;;  %v3914_v54 = vld [vmem:[#allocation2 + $0xea] ss:$0 sm:$0xff] }
 0x514   :  { %v9646_v12 = vpop.permute.xlu1 %3452  ;;  %v4508_v49 = vld [vmem:[#allocation3 + $0x60] sm:$0xff] }
 0x515   :  { %v9648_v19 = vpop.permute.xlu2 %2762  ;;  %6810 = vmatmul.msk.f32.gmra.mxu2 %vm4540_vm5, %v4508_v49  ;;  %6818 = vmatmul.msk.f32.gmra.mxu3 %vm4540_vm5, %v4508_v49  ;;  %v9652_v40 = vpop.permute.xlu0 %3364  ;;  %v2461_v49 = vsel %vm2164_vm3, %v2451_v4, %v9559_v9  ;;  %v6845_v9 = vld [vmem:[%s11534_s2 + $0x1b8] sm:$0xff]  ;;  %v6938_v4 = vld [vmem:[%s11534_s2 + $0x3a0] sm:$0xff] }
 0x516   :  { %v2477_v10 = vmax.f32 %v9436_v29, %v2461_v49  ;;  %4771 = vmatpush.msrb.mxu3 %v6845_v9  ;;  %v2188_v29 = vmax.f32 %v9418_v8, %v2172_v31  ;;  %5115 = vmatpush.msra.mxu0 %v6938_v4  ;;  %v3908_v49 = vld [vmem:[#allocation2 + $0x142] ss:$0 sm:$0xff]  ;;  %v6841_v9 = vld [vmem:[%s11534_s2 + $0x198] sm:$0xff] }
 0x517   :  { %v6838_v4 = vld [vmem:[%s11534_s2 + $0x180] sm:$0xff] }
 0x518   :  { %4772 = vmatpush.msrb.mxu3 %v6843_v48  ;;  %v3999_v48 = vld [vmem:[#allocation2 + $0x5b] ss:$0 sm:$0xff] }
 0x51a   :  { %3948 = vrot.lane.b32.xlu1 %v3913_v18, %s7061_s24  ;;  %4773 = vmatpush.msrb.mxu3 %v6841_v9 }
 0x51b   :  { %3950 = vrot.lane.b32.xlu2 %v3906_v42, %s7061_s24  ;;  %3946 = vrot.lane.b32.xlu0 %v3905_v60, %s7061_s24  ;;  %v6844_v42 = vld [vmem:[%s11534_s2 + $0x1b0] sm:$0xff]  ;;  %v6939_v60 = vld [vmem:[%s11534_s2 + $0x3a8] sm:$0xff] }
 0x51c   :  { %v9669_v43 = vpop.permute.xlu1 %3758  ;;  %4730 = vmatpush.msrb.mxu2 %v6844_v42  ;;  %5156 = vmatpush.msrb.mxu1 %v6939_v60  ;;  %v6840_v42 = vld [vmem:[%s11534_s2 + $0x190] sm:$0xff]  ;;  %v6937_v60 = vld [vmem:[%s11534_s2 + $0x398] sm:$0xff] }
 0x51d   :  { %v9671_v44 = vpop.permute.xlu2 %3050  ;;  %v9673_v14 = vpop.permute.xlu0 %3652 }
 0x51e   :  { %4731 = vmatpush.msrb.mxu2 %v6842_v7  ;;  %5157 = vmatpush.msrb.mxu1 %v6937_v60 }
 0x520   :  { %4732 = vmatpush.msrb.mxu2 %v6840_v42 }
 0x522   :  { %3954 = vrot.lane.b32.xlu1 %v3907_v36, %s7061_s24  ;;  %4733 = vmatpush.msrb.mxu2 %v6838_v4 }
 0x523   :  { %3956 = vrot.lane.b32.xlu2 %v3915_v30, %s7061_s24  ;;  %3952 = vrot.lane.b32.xlu0 %v3914_v54, %s7061_s24  ;;  %v3998_v30 = vld [vmem:[#allocation2 + $0x2b] ss:$0 sm:$0xff] }
 0x524   :  { %v2363_v17 = vpop.permute.xlu1 %2362 }
 0x525   :  { %v2373_v39 = vsel %vm2164_vm3, %v2363_v17, %v9483_v24  ;;  %v9691_v35 = vpop.permute.xlu2 %3362  ;;  %v2250_v18 = vpop.permute.xlu0 %2249  ;;  %v9718_v17 = vld [vmem:[#allocation2 + $0x23] ss:$0 sm:$0xff] }
 0x526   :  { %v2389_v52 = vmax.f32 %v9432_v21, %v2373_v39  ;;  %v2260_v24 = vsel %vm2164_vm3, %v2250_v18, %v9557_v3 }
 0x527   :  { %v2276_v21 = vmax.f32 %v9438_v56, %v2260_v24  ;;  %v6936_v24 = vld [vmem:[%s11534_s2 + $0x390] sm:$0xff] }
 0x528   :  { %v2485_v3 = vmax.f32 %v2389_v52, %v2477_v10  ;;  %v6839_v52 = vld [vmem:[%s11534_s2 + $0x188] sm:$0xff]  ;;  %5116 = vmatpush.msra.mxu0 %v6936_v24 }
 0x529   :  { %v2284_v36 = vmax.f32 %v2188_v29, %v2276_v21  ;;  %4774 = vmatpush.msrb.mxu3 %v6839_v52  ;;  %v6837_v29 = vld [vmem:[%s11534_s2 + $0x178] sm:$0xff]  ;;  %v6834_v21 = vld [vmem:[%s11534_s2 + $0x160] sm:$0xff]  ;;  %v4000_v52 = vld [vmem:[#allocation2 + $0x8b] ss:$0 sm:$0xff] }
 0x52a   :  { %v2493_v54 = vmax.f32 %v2485_v3, 0.0  ;;  %4024 = vrot.lane.b32.xlu1 %v3998_v30, %s7061_s24  ;;  %v9763_v3 = vld [vmem:[#allocation2 + $0x53] ss:$0 sm:$0xff] }
 0x52b   :  { %v2292_v39 = vmax.f32 %v2284_v36, 0.0  ;;  %3958 = vrot.lane.b32.xlu2 %v3908_v49, %s7061_s24  ;;  %4022 = vrot.lane.b32.xlu0 %v9718_v17, %s7061_s24  ;;  %v3061_v36 = vsel %vm2164_vm3, %v9671_v44, %v9641_v55  ;;  %v2773_v49 = vsel %vm2164_vm3, %v9648_v19, %v9574_v11 }
 0x52c   :  { %2501 = vst.msk [vmem:[#allocation3 + $0x71] sm:$0x1] %vm2293_vm4, %v2493_v54  ;;  %v2651_v8 = vpop.permute.xlu1 %2650  ;;  %v6835_v54 = vld [vmem:[%s11534_s2 + $0x168] sm:$0xff]  ;;  %4775 = vmatpush.msrb.mxu3 %v6837_v29  ;;  %v2789_v11 = vmax.f32 %v9453_v50, %v2773_v49  ;;  %v9830_v49 = vld [vmem:[#allocation2 + $0x172] ss:$0 sm:$0xff] }
 0x52d   :  { %2301 = vst.msk [vmem:[#allocation3 + $0x70] sm:$0x1] %vm2293_vm4, %v2292_v39  ;;  %v2661_v56 = vsel %vm2164_vm3, %v2651_v8, %v9503_v1  ;;  %v9727_v31 = vpop.permute.xlu2 %3650  ;;  %v2563_v18 = vpop.permute.xlu0 %2562  ;;  %v6831_v29 = vld [vmem:[%s11534_s2 + $0x148] sm:$0xff] }
 0x52e   :  { %v2677_v10 = vmax.f32 %v9449_v59, %v2661_v56  ;;  %v2573_v1 = vsel %vm2164_vm3, %v2563_v18, %v9570_v23  ;;  %v6836_v59 = vld [vmem:[%s11534_s2 + $0x170] sm:$0xff]  ;;  %v3077_v56 = vmax.f32 %v9473_v45, %v3061_v36  ;;  %4776 = vmatpush.msrb.mxu3 %v6835_v54  ;;  %v6829_v36 = vld [vmem:[%s11534_s2 + $0x138] sm:$0xff] }
 0x52f   :  { %v2589_v7 = vmax.f32 %v9455_v33, %v2573_v1  ;;  %v9761_v33 = vld [vmem:[#allocation2 + $0x83] ss:$0 sm:$0xff]  ;;  %4734 = vmatpush.msrb.mxu2 %v6836_v59  ;;  %v6935_v59 = vld [vmem:[%s11534_s2 + $0x388] sm:$0xff] }
 0x530   :  { %5158 = vmatpush.msrb.mxu1 %v6935_v59 }
 0x531   :  { %v2685_v23 = vmax.f32 %v2589_v7, %v2677_v10  ;;  %4735 = vmatpush.msrb.mxu2 %v6834_v21  ;;  %v3916_v10 = vld [vmem:[#allocation2 + $0x14a] ss:$0 sm:$0xff]  ;;  %v6934_v7 = vld [vmem:[%s11534_s2 + $0x380] sm:$0xff]  ;;  %v6828_v21 = vld [vmem:[%s11534_s2 + $0x130] sm:$0xff] }
 0x532   :  { %4028 = vrot.lane.b32.xlu1 %v3999_v48, %s7061_s24  ;;  %5117 = vmatpush.msra.mxu0 %v6934_v7 }
 0x533   :  { %v2693_v30 = vmax.f32 %v2685_v23, 0.0  ;;  %4030 = vrot.lane.b32.xlu2 %v9761_v33, %s7061_s24  ;;  %4026 = vrot.lane.b32.xlu0 %v9763_v3, %s7061_s24  ;;  %v6830_v23 = vld [vmem:[%s11534_s2 + $0x140] sm:$0xff] }
 0x534   :  { %v2963_v39 = vpop.permute.xlu1 %2962 }
 0x535   :  { %2701 = vst.msk [vmem:[#allocation3 + $0x72] sm:$0x1] %vm2293_vm4, %v2693_v30  ;;  %v2973_v55 = vsel %vm2164_vm3, %v2963_v39, %v9572_v61  ;;  %v9781_v44 = vpop.permute.xlu2 %3822  ;;  %v2851_v8 = vpop.permute.xlu0 %2850  ;;  %v9790_v61 = vld [vmem:[#allocation2 + $0xb3] ss:$0 sm:$0xff]  ;;  %v4001_v39 = vld [vmem:[#allocation2 + $0xbb] ss:$0 sm:$0xff] }
 0x536   :  { %v2989_v18 = vmax.f32 %v9469_v25, %v2973_v55  ;;  %v2861_v42 = vsel %vm2164_vm3, %v2851_v8, %v9584_v53  ;;  %v6832_v25 = vld [vmem:[%s11534_s2 + $0x150] sm:$0xff]  ;;  %v9834_v55 = vld [vmem:[#allocation2 + $0xe3] ss:$0 sm:$0xff]  ;;  %v6827_v8 = vld [vmem:[%s11534_s2 + $0x128] sm:$0xff] }
 0x537   :  { %v2877_v19 = vmax.f32 %v9475_v62, %v2861_v42  ;;  %v6833_v62 = vld [vmem:[%s11534_s2 + $0x158] sm:$0xff]  ;;  %4736 = vmatpush.msrb.mxu2 %v6832_v25  ;;  %v3373_v42 = vsel %vm2164_vm3, %v9691_v35, %v9652_v40  ;;  %v6822_v40 = vld [vmem:[%s11534_s2 + $0x100] sm:$0xff]  ;;  %v6823_v35 = vld [vmem:[%s11534_s2 + $0x108] sm:$0xff] }
 0x538   :  { %v3085_v9 = vmax.f32 %v2989_v18, %v3077_v56  ;;  %4777 = vmatpush.msrb.mxu3 %v6833_v62  ;;  %v3661_v56 = vsel %vm2164_vm3, %v9727_v31, %v9673_v14  ;;  %v6825_v14 = vld [vmem:[%s11534_s2 + $0x118] sm:$0xff]  ;;  %v9883_v62 = vld [vmem:[#allocation2 + $0x113] ss:$0 sm:$0xff] }
 0x539   :  { %v2885_v4 = vmax.f32 %v2789_v11, %v2877_v19  ;;  %4737 = vmatpush.msrb.mxu2 %v6830_v23  ;;  %v6824_v19 = vld [vmem:[%s11534_s2 + $0x110] sm:$0xff] }
 0x53a   :  { %v3093_v1 = vmax.f32 %v3085_v9, 0.0  ;;  %3960 = vrot.lane.b32.xlu1 %v3916_v10, %s7061_s24  ;;  %4778 = vmatpush.msrb.mxu3 %v6831_v29  ;;  %v3677_v10 = vmax.f32 %v9515_v13, %v3661_v56  ;;  %v4004_v29 = vld [vmem:[#allocation2 + $0x14b] ss:$0 sm:$0xff]  ;;  %v7048_v56 = vld [vmem:[#allocation2 + $0x20] ss:$0 sm:$0xff] }
 0x53b   :  { %v2893_v45 = vmax.f32 %v2885_v4, 0.0  ;;  %4034 = vrot.lane.b32.xlu2 %v9790_v61, %s7061_s24  ;;  %4032 = vrot.lane.b32.xlu0 %v4000_v52, %s7061_s24 }
 0x53c   :  { %3101 = vst.msk [vmem:[#allocation3 + $0x74] sm:$0x1] %vm2293_vm4, %v3093_v1  ;;  %v3251_v50 = vpop.permute.xlu1 %3250  ;;  %4738 = vmatpush.msrb.mxu2 %v6828_v21  ;;  %4779 = vmatpush.msrb.mxu3 %v6829_v36  ;;  %v3917_v21 = vld [vmem:[#allocation2 + $0x17a] ss:$0 sm:$0xff]  ;;  %v3767_v36 = vsel %vm2164_vm3, %v8765_v15, %v8646_v6  ;;  %v6930_v15 = vld [vmem:[%s11534_s2 + $0x360] sm:$0xff] }
 0x53d   :  { %2901 = vst.msk [vmem:[#allocation3 + $0x73] sm:$0x1] %vm2293_vm4, %v2893_v45  ;;  %v3261_v53 = vsel %vm2164_vm3, %v3251_v50, %v9586_v26  ;;  %v9805_v24 = vpop.permute.xlu2 %3828  ;;  %v3163_v60 = vpop.permute.xlu0 %3162  ;;  %v6933_v45 = vld [vmem:[%s11534_s2 + $0x378] sm:$0xff]  ;;  %v3389_v50 = vmax.f32 %v9489_v34, %v3373_v42 }
 0x53e   :  { %v3277_v48 = vmax.f32 %v9485_v20, %v3261_v53  ;;  %v3173_v26 = vsel %vm2164_vm3, %v3163_v60, %v9638_v2  ;;  %4780 = vmatpush.msrb.mxu3 %v6827_v8  ;;  %5159 = vmatpush.msrb.mxu1 %v6933_v45  ;;  %v6821_v53 = vld [vmem:[%s11534_s2 + $0xf8] sm:$0xff] }
 0x53f   :  { %v3189_v30 = vmax.f32 %v9491_v5, %v3173_v26  ;;  %v4597_v20 = vpop.f32.mrf.mxu2  ;;  %v4638_v54 = vpop.f32.mrf.mxu3  ;;  %v6826_v5 = vld [vmem:[%s11534_s2 + $0x120] sm:$0xff]  ;;  %v4003_v34 = vld [vmem:[#allocation2 + $0x11b] ss:$0 sm:$0xff] }
 0x540   :  { %4658 = vst [vmem:[#allocation4 + $0x50] sm:$0xff] %v4597_v20  ;;  %4739 = vmatpush.msrb.mxu2 %v6826_v5  ;;  %4781 = vmatpush.msrb.mxu3 %v6825_v14  ;;  %v9900_v26 = vld [vmem:[#allocation2 + $0x143] ss:$0 sm:$0xff]  ;;  %v4005_v14 = vld [vmem:[#allocation2 + $0x17b] ss:$0 sm:$0xff] }
 0x541   :  { %v3285_v2 = vmax.f32 %v3189_v30, %v3277_v48  ;;  %4659 = vst.msk [vmem:[#allocation4 + $0x58] sm:$0xff] %vm4648_vm6, %v4638_v54  ;;  %v3766_v30 = vsel %vm2164_vm3, %v8583_v63, %v8279_v22  ;;  %v6931_v22 = vld [vmem:[%s11534_s2 + $0x368] sm:$0xff]  ;;  %v7047_v63 = vld [vmem:[#allocation2 + $0x50] ss:$0 sm:$0xff] }
 0x542   :  { %3962 = vrot.lane.b32.xlu1 %v9830_v49, %s7061_s24  ;;  %4740 = vmatpush.msrb.mxu2 %v6824_v19  ;;  %v3783_v5 = vmax.f32 %v7047_v63, %v3767_v36  ;;  %v6889_v36 = vld [vmem:[%s11534_s2 + $0x298] sm:$0xff] }
 0x543   :  { %v3293_v18 = vmax.f32 %v3285_v2, 0.0  ;;  %4038 = vrot.lane.b32.xlu2 %v9834_v55, %s7061_s24  ;;  %4036 = vrot.lane.b32.xlu0 %v4001_v39, %s7061_s24  ;;  %v11559_v63 = vld [vmem:[#allocation8_spill] sm:$0xff] }
 0x544   :  { %v3563_v11 = vpop.permute.xlu1 %3562  ;;  %4741 = vmatpush.msrb.mxu2 %v6822_v40  ;;  %4782 = vmatpush.msrb.mxu3 %v6823_v35  ;;  %v9931_v40 = vld [vmem:[#allocation2 + $0x173] ss:$0 sm:$0xff]  ;;  %v11555_v35 = vld [vmem:[#allocation5_spill] sm:$0xff] }
 0x545   :  { %3301 = vst.msk [vmem:[#allocation3 + $0x75] sm:$0x1] %vm2293_vm4, %v3293_v18  ;;  %v3573_v31 = vsel %vm2164_vm3, %v3563_v11, %v9606_v38  ;;  %v9860_v9 = vpop.permute.xlu2 %3834  ;;  %v3451_v4 = vpop.permute.xlu0 %3450  ;;  %v6932_v38 = vld [vmem:[%s11534_s2 + $0x370] sm:$0xff]  ;;  %5160 = vmatpush.msrb.mxu1 %v6931_v22  ;;  %v3782_v18 = vmax.f32 %v7048_v56, %v3766_v30  ;;  %v4198_v30 = vld [vmem:[#allocation2 + $0x2d] ss:$0 sm:$0xff] }
 0x546   :  { %v3589_v1 = vmax.f32 %v9511_v58, %v3573_v31  ;;  %v3461_v52 = vsel %vm2164_vm3, %v3451_v4, %v9646_v12  ;;  %v6820_v58 = vld [vmem:[%s11534_s2 + $0xf0] sm:$0xff]  ;;  %5118 = vmatpush.msra.mxu0 %v6932_v38  ;;  %4783 = vmatpush.msrb.mxu3 %v6821_v53  ;;  %v9929_v4 = vld [vmem:[#allocation2 + $0x24] ss:$0 sm:$0xff] }
 0x547   :  { %v3477_v25 = vmax.f32 %v9517_v0, %v3461_v52  ;;  %v4002_v0 = vld [vmem:[#allocation2 + $0xeb] ss:$0 sm:$0xff]  ;;  %4742 = vmatpush.msrb.mxu2 %v6820_v58  ;;  %v11558_v22 = vld [vmem:[#allocation7_spill] sm:$0xff] }
 0x548   :  { %v3685_v13 = vmax.f32 %v3589_v1, %v3677_v10  ;;  %5119 = vmatpush.msra.mxu0 %v6930_v15  ;;  %v6894_v1 = vld [vmem:[%s11534_s2 + $0x2c0] sm:$0xff]  ;;  %v6895_v52 = vld [vmem:[%s11534_s2 + $0x2c8] sm:$0xff] }
 0x549   :  { %v3485_v12 = vmax.f32 %v3389_v50, %v3477_v25  ;;  %4921 = vmatpush.msra.mxu2 %v6894_v1  ;;  %4962 = vmatpush.msra.mxu3 %v6895_v52  ;;  %v6892_v50 = vld [vmem:[%s11534_s2 + $0x2b0] sm:$0xff]  ;;  %v6893_v25 = vld [vmem:[%s11534_s2 + $0x2b8] sm:$0xff]  ;;  %v4310_v1 = vld [vmem:[#allocation2 + $0x2e] ss:$0 sm:$0xff] }
 0x54a   :  { %v3693_v60 = vmax.f32 %v3685_v13, 0.0  ;;  %4042 = vrot.lane.b32.xlu1 %v9883_v62, %s7061_s24  ;;  %v7049_v13 = vld [vmem:[#allocation2 + $0x80] ss:$0 sm:$0xff] }
 0x54b   :  { %v3493_v7 = vmax.f32 %v3485_v12, 0.0  ;;  %4044 = vrot.lane.b32.xlu2 %v4003_v34, %s7061_s24  ;;  %4040 = vrot.lane.b32.xlu0 %v4002_v0, %s7061_s24  ;;  %v6891_v34 = vld [vmem:[%s11534_s2 + $0x2a8] sm:$0xff]  ;;  %v6928_v0 = vld [vmem:[%s11534_s2 + $0x350] sm:$0xff] }
 0x54c   :  { %3701 = vst.msk [vmem:[#allocation3 + $0x77] sm:$0x1] %vm2293_vm4, %v3693_v60  ;;  %v9893_v59 = vpop.permute.xlu1 %3764  ;;  %4922 = vmatpush.msra.mxu2 %v6892_v50  ;;  %4963 = vmatpush.msra.mxu3 %v6893_v25  ;;  %v6890_v60 = vld [vmem:[%s11534_s2 + $0x2a0] sm:$0xff] }
 0x54d   :  { %3501 = vst.msk [vmem:[#allocation3 + $0x76] sm:$0x1] %vm2293_vm4, %v3493_v7  ;;  %v9896_v23 = vpop.permute.xlu2 %3840  ;;  %v9898_v48 = vpop.permute.xlu0 %3762  ;;  %5120 = vmatpush.msra.mxu0 %v6928_v0  ;;  %v6929_v7 = vld [vmem:[%s11534_s2 + $0x358] sm:$0xff]  ;;  %v10014_v50 = vld [vmem:[#allocation2 + $0x26] ss:$0 sm:$0xff] }
 0x54e   :  { %4923 = vmatpush.msra.mxu2 %v6890_v60  ;;  %4964 = vmatpush.msra.mxu3 %v6891_v34 }
 0x54f   :  { %5161 = vmatpush.msrb.mxu1 %v6929_v7 }
 0x550   :  { %4965 = vmatpush.msra.mxu3 %v6889_v36  ;;  %v7052_v36 = vld [vmem:[#allocation2 + $0x110] ss:$0 sm:$0xff] }
 0x552   :  { %4046 = vrot.lane.b32.xlu1 %v9900_v26, %s7061_s24 }
 0x553   :  { %4048 = vrot.lane.b32.xlu2 %v4004_v29, %s7061_s24  ;;  %3964 = vrot.lane.b32.xlu0 %v3917_v21, %s7061_s24  ;;  %v9970_v29 = vld [vmem:[#allocation2 + $0x25] ss:$0 sm:$0xff]  ;;  %v6888_v21 = vld [vmem:[%s11534_s2 + $0x290] sm:$0xff] }
 0x554   :  { %v3827_v20 = vpop.permute.xlu1 %3826  ;;  %v4509_v54 = vld [vmem:[#allocation3 + $0x70] sm:$0xff]  ;;  %4924 = vmatpush.msra.mxu2 %v6888_v21 }
 0x555   :  { %v3855_v2 = vsel %vm2164_vm3, %v3827_v20, %v9805_v24  ;;  %v9914_v39 = vpop.permute.xlu2 %3846  ;;  %6811 = vmatmul.msk.f32.gmra.mxu2 %vm4540_vm5, %v4509_v54  ;;  %6819 = vmatmul.msk.f32.gmra.mxu3 %vm4540_vm5, %v4509_v54  ;;  %v3825_v6 = vpop.permute.xlu0 %3824  ;;  %v4110_v20 = vld [vmem:[#allocation2 + $0x2c] ss:$0 sm:$0xff]  ;;  %v11556_v54 = vld [vmem:[#allocation9_spill] sm:$0xff] }
 0x556   :  { %v3871_v8 = vmax.f32 %v9549_v41, %v3855_v2  ;;  %v3854_v24 = vsel %vm2164_vm3, %v9781_v44, %v3825_v6  ;;  %v11554_v44 = vld [vmem:[#allocation6_spill] sm:$0xff] }
 0x557   :  { %v3870_v42 = vmax.f32 %v9532_v46, %v3854_v24  ;;  %v3768_v46 = vsel %vm2164_vm3, %v11555_v35, %v11554_v44  ;;  %v11557_v2 = vld [vmem:[#allocation10_spill] sm:$0xff] }
 0x558   :  { %v3879_v11 = vmax.f32 %v3783_v5, %v3871_v8  ;;  %v3784_v12 = vmax.f32 %v7049_v13, %v3768_v46  ;;  %v3770_v6 = vsel %vm2164_vm3, %v11557_v2, %v11556_v54  ;;  %v3769_v5 = vsel %vm2164_vm3, %v11559_v63, %v11558_v22  ;;  %v6887_v46 = vld [vmem:[%s11534_s2 + $0x288] sm:$0xff]  ;;  %v6885_v13 = vld [vmem:[%s11534_s2 + $0x278] sm:$0xff]  ;;  %v6882_v54 = vld [vmem:[%s11534_s2 + $0x260] sm:$0xff] }
 0x559   :  { %v3878_v19 = vmax.f32 %v3782_v18, %v3870_v42  ;;  %4966 = vmatpush.msra.mxu3 %v6887_v46  ;;  %v6883_v2 = vld [vmem:[%s11534_s2 + $0x268] sm:$0xff]  ;;  %v4111_v22 = vld [vmem:[#allocation2 + $0x5c] ss:$0 sm:$0xff] }
 0x55a   :  { %v3887_v31 = vmax.f32 %v3879_v11, 0.0  ;;  %4052 = vrot.lane.b32.xlu1 %v4005_v14, %s7061_s24  ;;  %v7050_v11 = vld [vmem:[#allocation2 + $0xe0] ss:$0 sm:$0xff]  ;;  %v4398_v63 = vld [vmem:[#allocation2 + $0x2f] ss:$0 sm:$0xff] }
 0x55b   :  { %v3886_v41 = vmax.f32 %v3878_v19, 0.0  ;;  %4134 = vrot.lane.b32.xlu2 %v9929_v4, %s7061_s24  ;;  %4050 = vrot.lane.b32.xlu0 %v9931_v40, %s7061_s24  ;;  %v3786_v19 = vmax.f32 %v7050_v11, %v3770_v6 }
 0x55c   :  { %3895 = vst.msk [vmem:[#allocation3 + $0x18] sm:$0x1] %vm2293_vm4, %v3887_v31  ;;  %v3833_v10 = vpop.permute.xlu1 %3832  ;;  %4967 = vmatpush.msra.mxu3 %v6885_v13  ;;  %v6877_v13 = vld [vmem:[%s11534_s2 + $0x238] sm:$0xff] }
 0x55d   :  { %3894 = vst.msk [vmem:[#allocation3 + $0x8] sm:$0x1] %vm2293_vm4, %v3886_v41  ;;  %v9948_v38 = vpop.permute.xlu2 %3852  ;;  %v3831_v45 = vpop.permute.xlu0 %3830  ;;  %v7051_v41 = vld [vmem:[#allocation2 + $0xb0] ss:$0 sm:$0xff] }
 0x55e   :  { %v3856_v58 = vsel %vm2164_vm3, %v3831_v45, %v3833_v10  ;;  %v3785_v44 = vmax.f32 %v7051_v41, %v3769_v5  ;;  %v6926_v10 = vld [vmem:[%s11534_s2 + $0x340] sm:$0xff]  ;;  %4968 = vmatpush.msra.mxu3 %v6883_v2  ;;  %v6872_v2 = vld [vmem:[%s11534_s2 + $0x210] sm:$0xff] }
 0x55f   :  { %v3872_v53 = vmax.f32 %v9564_v57, %v3856_v58  ;;  %5121 = vmatpush.msra.mxu0 %v6926_v10  ;;  %v10012_v45 = vld [vmem:[#allocation2 + $0x27] ss:$0 sm:$0xff]  ;;  %v6884_v58 = vld [vmem:[%s11534_s2 + $0x270] sm:$0xff] }
 0x561   :  { %v3880_v57 = vmax.f32 %v3784_v12, %v3872_v53  ;;  %v11560_v12 = vld [vmem:[#allocation11_spill] sm:$0xff]  ;;  %v11561_v53 = vld [vmem:[#allocation12_spill] sm:$0xff] }
 0x562   :  { %4222 = vrot.lane.b32.xlu1 %v9970_v29, %s7061_s24  ;;  %v3771_v60 = vsel %vm2164_vm3, %v11561_v53, %v11560_v12 }
 0x563   :  { %v3888_v15 = vmax.f32 %v3880_v57, 0.0  ;;  %4224 = vrot.lane.b32.xlu2 %v4198_v30, %s7061_s24  ;;  %4136 = vrot.lane.b32.xlu0 %v4110_v20, %s7061_s24  ;;  %v4665_v0 = vld [vmem:[#allocation3 + $0x11] sm:$0xff]  ;;  %v3787_v30 = vmax.f32 %v7052_v36, %v3771_v60 }
 0x564   :  { %v3839_v8 = vpop.permute.xlu1 %3838  ;;  %v4664_v24 = vld [vmem:[#allocation3 + $0x1] sm:$0xff]  ;;  %v10110_v60 = vld [vmem:[#allocation2 + $0x57] ss:$0 sm:$0xff] }
 0x565   :  { %3896 = vst.msk [vmem:[#allocation3 + $0x28] sm:$0x1] %vm2293_vm4, %v3888_v15  ;;  %v3858_v56 = vsel %vm2164_vm3, %v3839_v8, %v9896_v23  ;;  %v9991_v18 = vpop.permute.xlu2 %3938  ;;  %6850 = vmatmul.msk.f32.vlgmr.msrb.gmra.mxu2 %vm4540_vm5, %v4664_v24  ;;  %6858 = vmatmul.msk.f32.vlgmr.msrb.gmra.mxu3 %vm4540_vm5, %v4664_v24  ;;  %v3837_v42 = vpop.permute.xlu0 %3836  ;;  %v6886_v23 = vld [vmem:[%s11534_s2 + $0x280] sm:$0xff]  ;;  %v10043_v15 = vld [vmem:[#allocation2 + $0x54] ss:$0 sm:$0xff]  ;;  %v6881_v24 = vld [vmem:[%s11534_s2 + $0x258] sm:$0xff] }
 0x566   :  { %v3874_v14 = vmax.f32 %v9576_v51, %v3858_v56  ;;  %v3857_v31 = vsel %vm2164_vm3, %v9860_v9, %v3837_v42  ;;  %4925 = vmatpush.msra.mxu2 %v6886_v23  ;;  %v6927_v9 = vld [vmem:[%s11534_s2 + $0x348] sm:$0xff]  ;;  %v6880_v8 = vld [vmem:[%s11534_s2 + $0x250] sm:$0xff]  ;;  %v11562_v56 = vld [vmem:[#allocation13_spill] sm:$0xff]  ;;  %4969 = vmatpush.msra.mxu3 %v6881_v24 }
 0x567   :  { %v3873_v35 = vmax.f32 %v9562_v47, %v3857_v31  ;;  %5162 = vmatpush.msrb.mxu1 %v6927_v9  ;;  %v3772_v42 = vsel %vm2164_vm3, %v9669_v43, %v11562_v56  ;;  %v10083_v9 = vld [vmem:[#allocation2 + $0x56] ss:$0 sm:$0xff] }
 0x568   :  { %v3882_v51 = vmax.f32 %v3786_v19, %v3874_v14  ;;  %4926 = vmatpush.msra.mxu2 %v6884_v58 }
 0x569   :  { %v3881_v47 = vmax.f32 %v3785_v44, %v3873_v35  ;;  %v7053_v44 = vld [vmem:[#allocation2 + $0x140] ss:$0 sm:$0xff] }
 0x56a   :  { %v3890_v52 = vmax.f32 %v3882_v51, 0.0  ;;  %4336 = vrot.lane.b32.xlu1 %v4310_v1, %s7061_s24  ;;  %4927 = vmatpush.msra.mxu2 %v6882_v54  ;;  %v3788_v35 = vmax.f32 %v7053_v44, %v3772_v42  ;;  %v6878_v51 = vld [vmem:[%s11534_s2 + $0x240] sm:$0xff]  ;;  %v6925_v1 = vld [vmem:[%s11534_s2 + $0x338] sm:$0xff]  ;;  %v6875_v54 = vld [vmem:[%s11534_s2 + $0x228] sm:$0xff] }
 0x56b   :  { %v3889_v25 = vmax.f32 %v3881_v47, 0.0  ;;  %4422 = vrot.lane.b32.xlu2 %v10012_v45, %s7061_s24  ;;  %4334 = vrot.lane.b32.xlu0 %v10014_v50, %s7061_s24  ;;  %v6870_v42 = vld [vmem:[%s11534_s2 + $0x200] sm:$0xff]  ;;  %v6867_v44 = vld [vmem:[%s11534_s2 + $0x1e8] sm:$0xff] }
 0x56c   :  { %3898 = vst.msk [vmem:[#allocation3 + $0x48] sm:$0x1] %vm2293_vm4, %v3890_v52  ;;  %v3845_v34 = vpop.permute.xlu1 %3844  ;;  %v4666_v19 = vld [vmem:[#allocation3 + $0x21] sm:$0xff]  ;;  %4928 = vmatpush.msra.mxu2 %v6880_v8  ;;  %v6876_v52 = vld [vmem:[%s11534_s2 + $0x230] sm:$0xff]  ;;  %5163 = vmatpush.msrb.mxu1 %v6925_v1 }
 0x56d   :  { %3897 = vst.msk [vmem:[#allocation3 + $0x38] sm:$0x1] %vm2293_vm4, %v3889_v25  ;;  %v10031_v7 = vpop.permute.xlu2 %3944  ;;  %6851 = vmatmul.msk.f32.gmra.mxu2 %vm4540_vm5, %v4665_v0  ;;  %6859 = vmatmul.msk.f32.gmra.mxu3 %vm4540_vm5, %v4665_v0  ;;  %v3843_v57 = vpop.permute.xlu0 %3842  ;;  %v4311_v0 = vld [vmem:[#allocation2 + $0x5e] ss:$0 sm:$0xff]  ;;  %v10145_v8 = vld [vmem:[#allocation2 + $0x84] ss:$0 sm:$0xff] }
 0x56e   :  { %v3859_v21 = vsel %vm2164_vm3, %v3843_v57, %v3845_v34  ;;  %4929 = vmatpush.msra.mxu2 %v6878_v51  ;;  %v4399_v34 = vld [vmem:[#allocation2 + $0x5f] ss:$0 sm:$0xff] }
 0x56f   :  { %v3875_v20 = vmax.f32 %v9595_v32, %v3859_v21  ;;  %v3773_v32 = vsel %vm2164_vm3, %v9898_v48, %v9893_v59 }
 0x570   :  { %v3789_v31 = vmax.f32 %v9534_v28, %v3773_v32  ;;  %v6879_v28 = vld [vmem:[%s11534_s2 + $0x248] sm:$0xff]  ;;  %4930 = vmatpush.msra.mxu2 %v6876_v52 }
 0x571   :  { %v3883_v6 = vmax.f32 %v3787_v30, %v3875_v20  ;;  %4970 = vmatpush.msra.mxu3 %v6879_v28  ;;  %v6874_v20 = vld [vmem:[%s11534_s2 + $0x220] sm:$0xff]  ;;  %v4112_v32 = vld [vmem:[#allocation2 + $0x8c] ss:$0 sm:$0xff]  ;;  %v6920_v28 = vld [vmem:[%s11534_s2 + $0x310] sm:$0xff] }
 0x572   :  { %4138 = vrot.lane.b32.xlu1 %v10043_v15, %s7061_s24  ;;  %4931 = vmatpush.msra.mxu2 %v6874_v20  ;;  %v4400_v52 = vld [vmem:[#allocation2 + $0x8f] ss:$0 sm:$0xff] }
 0x573   :  { %v3891_v5 = vmax.f32 %v3883_v6, 0.0  ;;  %4140 = vrot.lane.b32.xlu2 %v4111_v22, %s7061_s24  ;;  %4424 = vrot.lane.b32.xlu0 %v4398_v63, %s7061_s24  ;;  %v4668_v21 = vld [vmem:[#allocation3 + $0x41] sm:$0xff]  ;;  %v6873_v6 = vld [vmem:[%s11534_s2 + $0x218] sm:$0xff] }
 0x574   :  { %v3851_v11 = vpop.permute.xlu1 %3850  ;;  %v4667_v58 = vld [vmem:[#allocation3 + $0x31] sm:$0xff]  ;;  %4971 = vmatpush.msra.mxu3 %v6877_v13  ;;  %v6922_v22 = vld [vmem:[%s11534_s2 + $0x320] sm:$0xff]  ;;  %v6923_v63 = vld [vmem:[%s11534_s2 + $0x328] sm:$0xff]  ;;  %4932 = vmatpush.msra.mxu2 %v6872_v2 }
 0x575   :  { %3899 = vst.msk [vmem:[#allocation3 + $0x58] sm:$0x1] %vm2293_vm4, %v3891_v5  ;;  %v3861_v59 = vsel %vm2164_vm3, %v3851_v11, %v9948_v38  ;;  %v10064_v48 = vpop.permute.xlu2 %3950  ;;  %6852 = vmatmul.msk.f32.gmra.mxu2 %vm4540_vm5, %v4666_v19  ;;  %6860 = vmatmul.msk.f32.gmra.mxu3 %vm4540_vm5, %v4666_v19  ;;  %v3849_v14 = vpop.permute.xlu0 %3848  ;;  %v4199_v38 = vld [vmem:[#allocation2 + $0x5d] ss:$0 sm:$0xff]  ;;  %v10143_v5 = vld [vmem:[#allocation2 + $0x85] ss:$0 sm:$0xff] }
 0x576   :  { %v3877_v43 = vmax.f32 %v9610_v16, %v3861_v59  ;;  %v3860_v41 = vsel %vm2164_vm3, %v9914_v39, %v3849_v14  ;;  %v6924_v16 = vld [vmem:[%s11534_s2 + $0x330] sm:$0xff]  ;;  %4972 = vmatpush.msra.mxu3 %v6875_v54  ;;  %5164 = vmatpush.msrb.mxu1 %v6923_v63  ;;  %v6871_v11 = vld [vmem:[%s11534_s2 + $0x208] sm:$0xff]  ;;  %v10207_v13 = vld [vmem:[#allocation2 + $0x87] ss:$0 sm:$0xff] }
 0x577   :  { %v3876_v23 = vmax.f32 %v9593_v27, %v3860_v41  ;;  %v10085_v27 = vld [vmem:[#allocation2 + $0x55] ss:$0 sm:$0xff]  ;;  %5122 = vmatpush.msra.mxu0 %v6924_v16  ;;  %4933 = vmatpush.msra.mxu2 %v6870_v42  ;;  %v10174_v41 = vld [vmem:[#allocation2 + $0x86] ss:$0 sm:$0xff]  ;;  %v6921_v16 = vld [vmem:[%s11534_s2 + $0x318] sm:$0xff] }
 0x578   :  { %v3885_v46 = vmax.f32 %v3789_v31, %v3877_v43  ;;  %4973 = vmatpush.msra.mxu3 %v6873_v6  ;;  %v6868_v14 = vld [vmem:[%s11534_s2 + $0x1f0] sm:$0xff]  ;;  %v6869_v31 = vld [vmem:[%s11534_s2 + $0x1f8] sm:$0xff]  ;;  %v6866_v43 = vld [vmem:[%s11534_s2 + $0x1e0] sm:$0xff]  ;;  %5165 = vmatpush.msrb.mxu1 %v6921_v16 }
 0x579   :  { %v3884_v10 = vmax.f32 %v3788_v35, %v3876_v23  ;;  %5123 = vmatpush.msra.mxu0 %v6922_v22  ;;  %4934 = vmatpush.msra.mxu2 %v6868_v14  ;;  %v4312_v35 = vld [vmem:[#allocation2 + $0x8e] ss:$0 sm:$0xff]  ;;  %v4200_v23 = vld [vmem:[#allocation2 + $0x8d] ss:$0 sm:$0xff]  ;;  %v6984_v2 = vld [vmem:[%s11534_s2 + $0x490] sm:$0xff] }
 0x57a   :  { %v3893_v39 = vmax.f32 %v3885_v46, 0.0  ;;  %4228 = vrot.lane.b32.xlu1 %v4199_v38, %s7061_s24  ;;  %4974 = vmatpush.msra.mxu3 %v6871_v11  ;;  %v6985_v6 = vld [vmem:[%s11534_s2 + $0x498] sm:$0xff] }
 0x57b   :  { %v3892_v47 = vmax.f32 %v3884_v10, 0.0  ;;  %4338 = vrot.lane.b32.xlu2 %v10083_v9, %s7061_s24  ;;  %4226 = vrot.lane.b32.xlu0 %v10085_v27, %s7061_s24  ;;  %v4113_v42 = vld [vmem:[#allocation2 + $0xbc] ss:$0 sm:$0xff] }
 0x57c   :  { %3901 = vst.msk [vmem:[#allocation3 + $0x78] sm:$0x1] %vm2293_vm4, %v3893_v39  ;;  %v10098_v25 = vpop.permute.xlu1 %3936  ;;  %v4669_v56 = vld [vmem:[#allocation3 + $0x51] sm:$0xff]  ;;  %4975 = vmatpush.msra.mxu3 %v6869_v31  ;;  %4935 = vmatpush.msra.mxu2 %v6866_v43  ;;  %v6986_v39 = vld [vmem:[%s11534_s2 + $0x4a0] sm:$0xff] }
 0x57d   :  { %3900 = vst.msk [vmem:[#allocation3 + $0x68] sm:$0x1] %vm2293_vm4, %v3892_v47  ;;  %v10104_v12 = vpop.permute.xlu2 %3956  ;;  %6853 = vmatmul.msk.f32.gmra.mxu2 %vm4540_vm5, %v4667_v58  ;;  %6861 = vmatmul.msk.f32.gmra.mxu3 %vm4540_vm5, %v4667_v58  ;;  %v10108_v53 = vpop.permute.xlu0 %3934  ;;  %v6987_v47 = vld [vmem:[%s11534_s2 + $0x4a8] sm:$0xff]  ;;  %v10205_v58 = vld [vmem:[#allocation2 + $0xb4] ss:$0 sm:$0xff]  ;;  %v6918_v43 = vld [vmem:[%s11534_s2 + $0x300] sm:$0xff] }
 0x57e   :  { %4976 = vmatpush.msra.mxu3 %v6867_v44  ;;  %5124 = vmatpush.msra.mxu0 %v6920_v28  ;;  %v6919_v44 = vld [vmem:[%s11534_s2 + $0x308] sm:$0xff]  ;;  %v7054_v28 = vld [vmem:[#allocation2 + $0x52] ss:$0 sm:$0xff] }
 0x57f   :  { %5307 = vmatpush.msrb.mxu2 %v6986_v39  ;;  %5166 = vmatpush.msrb.mxu1 %v6919_v44 }
 0x580   :  { %5348 = vmatpush.msrb.mxu3 %v6987_v47  ;;  %5125 = vmatpush.msra.mxu0 %v6918_v43  ;;  %v4401_v43 = vld [vmem:[#allocation2 + $0xbf] ss:$0 sm:$0xff] }
 0x581   :  { %5308 = vmatpush.msrb.mxu2 %v6984_v2  ;;  %v6978_v2 = vld [vmem:[%s11534_s2 + $0x460] sm:$0xff] }
 0x582   :  { %4426 = vrot.lane.b32.xlu1 %v10110_v60, %s7061_s24  ;;  %5349 = vmatpush.msrb.mxu3 %v6985_v6  ;;  %v6979_v6 = vld [vmem:[%s11534_s2 + $0x468] sm:$0xff] }
 0x583   :  { %4428 = vrot.lane.b32.xlu2 %v4399_v34, %s7061_s24  ;;  %4340 = vrot.lane.b32.xlu0 %v4311_v0, %s7061_s24  ;;  %v3966_v34 = vsel %vm2164_vm3, %v10108_v53, %v10098_v25 }
 0x584   :  { %v10116_v57 = vpop.permute.xlu1 %3942  ;;  %v4670_v38 = vld [vmem:[#allocation3 + $0x61] sm:$0xff]  ;;  %v3982_v25 = vmax.f32 %v9632_v37, %v3966_v34  ;;  %v10264_v34 = vld [vmem:[#allocation2 + $0xb6] ss:$0 sm:$0xff] }
 0x585   :  { %v10118_v36 = vpop.permute.xlu2 %3958  ;;  %6854 = vmatmul.msk.f32.gmra.mxu2 %vm4540_vm5, %v4668_v21  ;;  %6862 = vmatmul.msk.f32.gmra.mxu3 %vm4540_vm5, %v4668_v21  ;;  %v10122_v30 = vpop.permute.xlu0 %3940  ;;  %v4671_v21 = vld [vmem:[#allocation3 + $0x71] sm:$0xff] }
 0x586   :  { %v3967_v14 = vsel %vm2164_vm3, %v9991_v18, %v10122_v30  ;;  %v6983_v30 = vld [vmem:[%s11534_s2 + $0x488] sm:$0xff] }
 0x587   :  { %v3983_v16 = vmax.f32 %v7054_v28, %v3967_v14  ;;  %5350 = vmatpush.msrb.mxu3 %v6983_v30 }
 0x58a   :  { %4144 = vrot.lane.b32.xlu1 %v4112_v32, %s7061_s24  ;;  %v10229_v32 = vld [vmem:[#allocation2 + $0xb5] ss:$0 sm:$0xff] }
 0x58b   :  { %4230 = vrot.lane.b32.xlu2 %v10143_v5, %s7061_s24  ;;  %4142 = vrot.lane.b32.xlu0 %v10145_v8, %s7061_s24 }
 0x58c   :  { %v10151_v24 = vpop.permute.xlu1 %3948 }
 0x58d   :  { %v10159_v19 = vpop.permute.xlu2 %4030  ;;  %6855 = vmatmul.msk.f32.gmra.mxu2 %vm4540_vm5, %v4669_v56  ;;  %6863 = vmatmul.msk.f32.gmra.mxu3 %vm4540_vm5, %v4669_v56  ;;  %v10163_v59 = vpop.permute.xlu0 %3946  ;;  %v4201_v56 = vld [vmem:[#allocation2 + $0xbd] ss:$0 sm:$0xff] }
 0x592   :  { %4342 = vrot.lane.b32.xlu1 %v10174_v41, %s7061_s24 }
 0x593   :  { %4344 = vrot.lane.b32.xlu2 %v4312_v35, %s7061_s24  ;;  %4232 = vrot.lane.b32.xlu0 %v4200_v23, %s7061_s24  ;;  %v6982_v35 = vld [vmem:[%s11534_s2 + $0x480] sm:$0xff]  ;;  %v6980_v23 = vld [vmem:[%s11534_s2 + $0x470] sm:$0xff] }
 0x594   :  { %v10183_v46 = vpop.permute.xlu1 %3954  ;;  %5309 = vmatpush.msrb.mxu2 %v6982_v35 }
 0x595   :  { %v10185_v10 = vpop.permute.xlu2 %4034  ;;  %6856 = vmatmul.msk.f32.gmra.mxu2 %vm4540_vm5, %v4670_v38  ;;  %6864 = vmatmul.msk.f32.gmra.mxu3 %vm4540_vm5, %v4670_v38  ;;  %v10189_v51 = vpop.permute.xlu0 %3952  ;;  %v6981_v38 = vld [vmem:[%s11534_s2 + $0x478] sm:$0xff] }
 0x596   :  { %5310 = vmatpush.msrb.mxu2 %v6980_v23  ;;  %5351 = vmatpush.msrb.mxu3 %v6981_v38  ;;  %v6974_v38 = vld [vmem:[%s11534_s2 + $0x440] sm:$0xff] }
 0x598   :  { %v4641_v1 = vpop.f32.mrf.mxu3  ;;  %5311 = vmatpush.msrb.mxu2 %v6978_v2  ;;  %5352 = vmatpush.msrb.mxu3 %v6979_v6  ;;  %v10335_v2 = vld [vmem:[#allocation2 + $0xe5] ss:$0 sm:$0xff] }
 0x599   :  { %4661 = vst.msk [vmem:[#allocation4 + $0x68] sm:$0xff] %vm4648_vm6, %v4641_v1  ;;  %v4313_v1 = vld [vmem:[#allocation2 + $0xbe] ss:$0 sm:$0xff] }
 0x59a   :  { %4432 = vrot.lane.b32.xlu1 %v4400_v52, %s7061_s24  ;;  %v10262_v52 = vld [vmem:[#allocation2 + $0xb7] ss:$0 sm:$0xff] }
 0x59b   :  { %4146 = vrot.lane.b32.xlu2 %v10205_v58, %s7061_s24  ;;  %4430 = vrot.lane.b32.xlu0 %v10207_v13, %s7061_s24 }
 0x59c   :  { %v4025_v0 = vpop.permute.xlu1 %4024 }
 0x59d   :  { %v10216_v20 = vpop.permute.xlu2 %4038  ;;  %6857 = vmatmul.msk.f32.gmra.mxu2 %vm4540_vm5, %v4671_v21  ;;  %6865 = vmatmul.msk.f32.gmra.mxu3 %vm4540_vm5, %v4671_v21  ;;  %v4023_v54 = vpop.permute.xlu0 %4022 }
 0x59e   :  { %v4054_v22 = vsel %vm2164_vm3, %v4023_v54, %v4025_v0 }
 0x59f   :  { %v4070_v53 = vmax.f32 %v9718_v17, %v4054_v22 }
 0x5a1   :  { %v4078_v63 = vmax.f32 %v3982_v25, %v4070_v53  ;;  %v6917_v25 = vld [vmem:[%s11534_s2 + $0x2f8] sm:$0xff]  ;;  %v6976_v53 = vld [vmem:[%s11534_s2 + $0x450] sm:$0xff] }
 0x5a2   :  { %4234 = vrot.lane.b32.xlu1 %v10229_v32, %s7061_s24  ;;  %5167 = vmatpush.msrb.mxu1 %v6917_v25 }
 0x5a3   :  { %v4086_v11 = vmax.f32 %v4078_v63, 0.0  ;;  %4236 = vrot.lane.b32.xlu2 %v4201_v56, %s7061_s24  ;;  %4148 = vrot.lane.b32.xlu0 %v4113_v42, %s7061_s24  ;;  %v6977_v56 = vld [vmem:[%s11534_s2 + $0x458] sm:$0xff]  ;;  %v7055_v42 = vld [vmem:[#allocation2 + $0x82] ss:$0 sm:$0xff] }
 0x5a4   :  { %v4029_v37 = vpop.permute.xlu1 %4028  ;;  %5312 = vmatpush.msrb.mxu2 %v6976_v53  ;;  %5353 = vmatpush.msrb.mxu3 %v6977_v56 }
 0x5a5   :  { %4094 = vst.msk [vmem:[#allocation3 + $0x9] sm:$0x1] %vm2293_vm4, %v4086_v11  ;;  %v10239_v17 = vpop.permute.xlu2 %4044  ;;  %v4027_v31 = vpop.permute.xlu0 %4026 }
 0x5a6   :  { %v4055_v18 = vsel %vm2164_vm3, %v4027_v31, %v4029_v37  ;;  %v10301_v31 = vld [vmem:[#allocation2 + $0xe4] ss:$0 sm:$0xff]  ;;  %5313 = vmatpush.msrb.mxu2 %v6974_v38 }
 0x5a7   :  { %v4071_v39 = vmax.f32 %v9763_v3, %v4055_v18  ;;  %v3968_v3 = vsel %vm2164_vm3, %v10116_v57, %v10031_v7  ;;  %v6916_v57 = vld [vmem:[%s11534_s2 + $0x2f0] sm:$0xff] }
 0x5a8   :  { %v3984_v11 = vmax.f32 %v7055_v42, %v3968_v3  ;;  %5126 = vmatpush.msra.mxu0 %v6916_v57  ;;  %v4202_v3 = vld [vmem:[#allocation2 + $0xed] ss:$0 sm:$0xff] }
 0x5a9   :  { %v4079_v47 = vmax.f32 %v3983_v16, %v4071_v39  ;;  %v6973_v16 = vld [vmem:[%s11534_s2 + $0x438] sm:$0xff]  ;;  %v7056_v39 = vld [vmem:[#allocation2 + $0xb2] ss:$0 sm:$0xff] }
 0x5aa   :  { %4348 = vrot.lane.b32.xlu1 %v4313_v1, %s7061_s24 }
 0x5ab   :  { %v4087_v0 = vmax.f32 %v4079_v47, 0.0  ;;  %4434 = vrot.lane.b32.xlu2 %v10262_v52, %s7061_s24  ;;  %4346 = vrot.lane.b32.xlu0 %v10264_v34, %s7061_s24 }
 0x5ac   :  { %v10273_v21 = vpop.permute.xlu1 %3960  ;;  %v4857_v54 = vld [vmem:[#allocation3 + $0x2] sm:$0xff] }
 0x5ad   :  { %4095 = vst.msk [vmem:[#allocation3 + $0x19] sm:$0x1] %vm2293_vm4, %v4087_v0  ;;  %v10282_v22 = vpop.permute.xlu2 %4048  ;;  %6896 = vmatmul.msk.f32.vlgmr.msra.gmra.mxu2 %vm4540_vm5, %v4857_v54  ;;  %6904 = vmatmul.msk.f32.vlgmr.msra.gmra.mxu3 %vm4540_vm5, %v4857_v54  ;;  %v4033_v7 = vpop.permute.xlu0 %4032  ;;  %v10333_v54 = vld [vmem:[#allocation2 + $0xe6] ss:$0 sm:$0xff] }
 0x5ae   :  { %v4056_v63 = vsel %vm2164_vm3, %v10159_v19, %v4033_v7  ;;  %v4114_v19 = vld [vmem:[#allocation2 + $0xec] ss:$0 sm:$0xff] }
 0x5af   :  { %v4072_v14 = vmax.f32 %v9761_v33, %v4056_v63  ;;  %v3969_v33 = vsel %vm2164_vm3, %v10163_v59, %v10151_v24  ;;  %v6975_v24 = vld [vmem:[%s11534_s2 + $0x448] sm:$0xff]  ;;  %v6972_v59 = vld [vmem:[%s11534_s2 + $0x430] sm:$0xff] }
 0x5b0   :  { %5354 = vmatpush.msrb.mxu3 %v6975_v24  ;;  %v3985_v47 = vmax.f32 %v7056_v39, %v3969_v33  ;;  %5314 = vmatpush.msrb.mxu2 %v6972_v59  ;;  %v10376_v33 = vld [vmem:[#allocation2 + $0xe7] ss:$0 sm:$0xff]  ;;  %v4314_v24 = vld [vmem:[#allocation2 + $0xee] ss:$0 sm:$0xff]  ;;  %v3972_v59 = vsel %vm2164_vm3, %v10118_v36, %v10273_v21  ;;  %v6913_v39 = vld [vmem:[%s11534_s2 + $0x2d8] sm:$0xff] }
 0x5b1   :  { %v4080_v37 = vmax.f32 %v3984_v11, %v4072_v14  ;;  %v6971_v11 = vld [vmem:[%s11534_s2 + $0x428] sm:$0xff]  ;;  %v6968_v14 = vld [vmem:[%s11534_s2 + $0x410] sm:$0xff]  ;;  %v6965_v21 = vld [vmem:[%s11534_s2 + $0x3f8] sm:$0xff] }
 0x5b2   :  { %4150 = vrot.lane.b32.xlu1 %v10301_v31, %s7061_s24  ;;  %5355 = vmatpush.msrb.mxu3 %v6973_v16  ;;  %v6912_v16 = vld [vmem:[%s11534_s2 + $0x2d0] sm:$0xff] }
 0x5b3   :  { %v4088_v44 = vmax.f32 %v4080_v37, 0.0  ;;  %4152 = vrot.lane.b32.xlu2 %v4114_v19, %s7061_s24  ;;  %4436 = vrot.lane.b32.xlu0 %v4401_v43, %s7061_s24  ;;  %v6969_v37 = vld [vmem:[%s11534_s2 + $0x418] sm:$0xff]  ;;  %v7058_v19 = vld [vmem:[#allocation2 + $0xe2] ss:$0 sm:$0xff]  ;;  %v6964_v36 = vld [vmem:[%s11534_s2 + $0x3f0] sm:$0xff] }
 0x5b4   :  { %v10310_v35 = vpop.permute.xlu1 %3962  ;;  %v4858_v18 = vld [vmem:[#allocation3 + $0x12] sm:$0xff]  ;;  %5356 = vmatpush.msrb.mxu3 %v6971_v11 }
 0x5b5   :  { %4096 = vst.msk [vmem:[#allocation3 + $0x29] sm:$0x1] %vm2293_vm4, %v4088_v44  ;;  %v10313_v30 = vpop.permute.xlu2 %4134  ;;  %6897 = vmatmul.msk.f32.gmra.mxu2 %vm4540_vm5, %v4858_v18  ;;  %6905 = vmatmul.msk.f32.gmra.mxu3 %vm4540_vm5, %v4858_v18  ;;  %v4037_v23 = vpop.permute.xlu0 %4036  ;;  %v6966_v18 = vld [vmem:[%s11534_s2 + $0x400] sm:$0xff] }
 0x5b6   :  { %v4057_v28 = vsel %vm2164_vm3, %v10185_v10, %v4037_v23  ;;  %v3971_v10 = vsel %vm2164_vm3, %v10183_v46, %v10104_v12  ;;  %v6914_v46 = vld [vmem:[%s11534_s2 + $0x2e0] sm:$0xff]  ;;  %5357 = vmatpush.msrb.mxu3 %v6969_v37  ;;  %v6967_v23 = vld [vmem:[%s11534_s2 + $0x408] sm:$0xff] }
 0x5b7   :  { %v4073_v1 = vmax.f32 %v9790_v61, %v4057_v28  ;;  %v3970_v61 = vsel %vm2164_vm3, %v10064_v48, %v10189_v51  ;;  %v6915_v48 = vld [vmem:[%s11534_s2 + $0x2e8] sm:$0xff]  ;;  %v6970_v51 = vld [vmem:[%s11534_s2 + $0x420] sm:$0xff]  ;;  %5127 = vmatpush.msra.mxu0 %v6914_v46  ;;  %v10415_v46 = vld [vmem:[#allocation2 + $0x114] ss:$0 sm:$0xff] }
 0x5b8   :  { %5168 = vmatpush.msrb.mxu1 %v6915_v48  ;;  %v3986_v43 = vmax.f32 %v7058_v19, %v3970_v61  ;;  %5315 = vmatpush.msrb.mxu2 %v6970_v51 }
 0x5b9   :  { %v4081_v0 = vmax.f32 %v3985_v47, %v4073_v1  ;;  %5358 = vmatpush.msrb.mxu3 %v6967_v23  ;;  %5128 = vmatpush.msra.mxu0 %v6912_v16 }
 0x5ba   :  { %4240 = vrot.lane.b32.xlu1 %v4202_v3, %s7061_s24  ;;  %5316 = vmatpush.msrb.mxu2 %v6968_v14  ;;  %v6961_v14 = vld [vmem:[%s11534_s2 + $0x3d8] sm:$0xff] }
 0x5bb   :  { %v4089_v6 = vmax.f32 %v4081_v0, 0.0  ;;  %4350 = vrot.lane.b32.xlu2 %v10333_v54, %s7061_s24  ;;  %4238 = vrot.lane.b32.xlu0 %v10335_v2, %s7061_s24 }
 0x5bc   :  { %v4043_v7 = vpop.permute.xlu1 %4042  ;;  %v4859_v57 = vld [vmem:[#allocation3 + $0x22] sm:$0xff]  ;;  %5317 = vmatpush.msrb.mxu2 %v6966_v18  ;;  %5169 = vmatpush.msrb.mxu1 %v6913_v39  ;;  %v10466_v39 = vpop.f32.mrf.mxu2 }
 0x5bd   :  { %4097 = vst.msk [vmem:[#allocation3 + $0x39] sm:$0x1] %vm2293_vm4, %v4089_v6  ;;  %v4059_v25 = vsel %vm2164_vm3, %v4043_v7, %v10239_v17  ;;  %v10350_v53 = vpop.permute.xlu2 %4224  ;;  %6898 = vmatmul.msk.f32.gmra.mxu2 %vm4540_vm5, %v4859_v57  ;;  %6906 = vmatmul.msk.f32.gmra.mxu3 %vm4540_vm5, %v4859_v57  ;;  %v4041_v12 = vpop.permute.xlu0 %4040  ;;  %v7057_v17 = vld [vmem:[#allocation2 + $0x112] ss:$0 sm:$0xff]  ;;  %v7059_v6 = vld [vmem:[#allocation2 + $0x142] ss:$0 sm:$0xff] }
 0x5be   :  { %v3987_v63 = vmax.f32 %v7057_v17, %v3971_v10  ;;  %v4075_v56 = vmax.f32 %v9883_v62, %v4059_v25  ;;  %v4058_v42 = vsel %vm2164_vm3, %v10216_v20, %v4041_v12  ;;  %v3988_v61 = vmax.f32 %v7059_v6, %v3972_v59  ;;  %5318 = vmatpush.msrb.mxu2 %v6964_v36  ;;  %v4115_v25 = vld [vmem:[#allocation2 + $0x11c] ss:$0 sm:$0xff]  ;;  %v6959_v59 = vld [vmem:[%s11534_s2 + $0x3c8] sm:$0xff]  ;;  %v4403_v36 = vld [vmem:[#allocation2 + $0x11f] ss:$0 sm:$0xff] }
 0x5bf   :  { %v4074_v62 = vmax.f32 %v9834_v55, %v4058_v42  ;;  %v4402_v55 = vld [vmem:[#allocation2 + $0xef] ss:$0 sm:$0xff]  ;;  %5359 = vmatpush.msrb.mxu3 %v6965_v21  ;;  %v10470_v21 = vld [vmem:[#allocation2 + $0x144] ss:$0 sm:$0xff] }
 0x5c0   :  { %v4083_v20 = vmax.f32 %v3987_v63, %v4075_v56  ;;  %v6962_v56 = vld [vmem:[%s11534_s2 + $0x3e0] sm:$0xff]  ;;  %v6963_v42 = vld [vmem:[%s11534_s2 + $0x3e8] sm:$0xff] }
 0x5c1   :  { %v4082_v44 = vmax.f32 %v3986_v43, %v4074_v62  ;;  %5319 = vmatpush.msrb.mxu2 %v6962_v56  ;;  %5360 = vmatpush.msrb.mxu3 %v6963_v42  ;;  %v10443_v62 = vld [vmem:[#allocation2 + $0x116] ss:$0 sm:$0xff] }
 0x5c2   :  { %v4091_v38 = vmax.f32 %v4083_v20, 0.0  ;;  %4438 = vrot.lane.b32.xlu1 %v10376_v33, %s7061_s24  ;;  %v4315_v20 = vld [vmem:[#allocation2 + $0x11e] ss:$0 sm:$0xff] }
 0x5c3   :  { %v4090_v28 = vmax.f32 %v4082_v44, 0.0  ;;  %4440 = vrot.lane.b32.xlu2 %v4402_v55, %s7061_s24  ;;  %4352 = vrot.lane.b32.xlu0 %v4314_v24, %s7061_s24  ;;  %v4203_v44 = vld [vmem:[#allocation2 + $0x11d] ss:$0 sm:$0xff]  ;;  %v6958_v24 = vld [vmem:[%s11534_s2 + $0x3c0] sm:$0xff] }
 0x5c4   :  { %4099 = vst.msk [vmem:[#allocation3 + $0x59] sm:$0x1] %vm2293_vm4, %v4091_v38  ;;  %v4047_v47 = vpop.permute.xlu1 %4046  ;;  %v4860_v1 = vld [vmem:[#allocation3 + $0x32] sm:$0xff]  ;;  %5361 = vmatpush.msrb.mxu3 %v6961_v14 }
 0x5c5   :  { %4098 = vst.msk [vmem:[#allocation3 + $0x49] sm:$0x1] %vm2293_vm4, %v4090_v28  ;;  %v4060_v0 = vsel %vm2164_vm3, %v4047_v47, %v10282_v22  ;;  %v10407_v3 = vpop.permute.xlu2 %4422  ;;  %6899 = vmatmul.msk.f32.gmra.mxu2 %vm4540_vm5, %v4860_v1  ;;  %6907 = vmatmul.msk.f32.gmra.mxu3 %vm4540_vm5, %v4860_v1  ;;  %v3965_v10 = vpop.permute.xlu0 %3964  ;;  %v10413_v22 = vld [vmem:[#allocation2 + $0x115] ss:$0 sm:$0xff] }
 0x5c6   :  { %v4076_v7 = vmax.f32 %v9900_v26, %v4060_v0  ;;  %v3973_v26 = vsel %vm2164_vm3, %v10310_v35, %v3965_v10  ;;  %v6960_v35 = vld [vmem:[%s11534_s2 + $0x3d0] sm:$0xff]  ;;  %5362 = vmatpush.msrb.mxu3 %v6959_v59  ;;  %s7062_s2 = smov 48  }
 0x5c7   :  { %v3989_v37 = vmax.f32 %v9830_v49, %v3973_v26  ;;  %5320 = vmatpush.msrb.mxu2 %v6960_v35  ;;  %v10472_v0 = vld [vmem:[#allocation2 + $0x117] ss:$0 sm:$0xff] }
 0x5c8   :  { %v4084_v57 = vmax.f32 %v3988_v61, %v4076_v7  ;;  %v10483_v7 = vld [vmem:[#allocation2 + $0x145] ss:$0 sm:$0xff] }
 0x5c9   :  { %5321 = vmatpush.msrb.mxu2 %v6958_v24 }
 0x5ca   :  { %v4092_v12 = vmax.f32 %v4084_v57, 0.0  ;;  %4156 = vrot.lane.b32.xlu1 %v4115_v25, %s7061_s24  ;;  %v4204_v57 = vld [vmem:[#allocation2 + $0x14d] ss:$0 sm:$0xff]  ;;  %v4116_v25 = vld [vmem:[#allocation2 + $0x14c] ss:$0 sm:$0xff] }
 0x5cb   :  { %4242 = vrot.lane.b32.xlu2 %v10413_v22, %s7061_s24  ;;  %4154 = vrot.lane.b32.xlu0 %v10415_v46, %s7061_s24  ;;  %v4862_v38 = vld [vmem:[#allocation3 + $0x52] sm:$0xff] }
 0x5cc   :  { %4100 = vst.msk [vmem:[#allocation3 + $0x69] sm:$0x1] %vm2293_vm4, %v4092_v12  ;;  %v4053_v48 = vpop.permute.xlu1 %4052  ;;  %v4861_v51 = vld [vmem:[#allocation3 + $0x42] sm:$0xff] }
 0x5cd   :  { %v10424_v17 = vpop.permute.xlu2 %4140  ;;  %6900 = vmatmul.msk.f32.gmra.mxu2 %vm4540_vm5, %v4861_v51  ;;  %6908 = vmatmul.msk.f32.gmra.mxu3 %vm4540_vm5, %v4861_v51  ;;  %v4051_v63 = vpop.permute.xlu0 %4050 }
 0x5ce   :  { %v4061_v11 = vsel %vm2164_vm3, %v4051_v63, %v4053_v48 }
 0x5cf   :  { %v4077_v19 = vmax.f32 %v9931_v40, %v4061_v11 }
 0x5d1   :  { %v4085_v43 = vmax.f32 %v3989_v37, %v4077_v19  ;;  %v4810_v19 = vld [vmem:[#allocation4 + $0x8] sm:$0xff] }
 0x5d2   :  { %4354 = vrot.lane.b32.xlu1 %v10443_v62, %s7061_s24 }
 0x5d3   :  { %v4093_v18 = vmax.f32 %v4085_v43, 0.0  ;;  %4356 = vrot.lane.b32.xlu2 %v4315_v20, %s7061_s24  ;;  %4244 = vrot.lane.b32.xlu0 %v4203_v44, %s7061_s24  ;;  %v4316_v44 = vld [vmem:[#allocation2 + $0x14e] ss:$0 sm:$0xff] }
 0x5d4   :  { %v4223_v23 = vpop.permute.xlu1 %4222 }
 0x5d5   :  { %4101 = vst.msk [vmem:[#allocation3 + $0x79] sm:$0x1] %vm2293_vm4, %v4093_v18  ;;  %v4254_v49 = vsel %vm2164_vm3, %v4223_v23, %v10350_v53  ;;  %v10452_v40 = vpop.permute.xlu2 %4338  ;;  %6901 = vmatmul.msk.f32.gmra.mxu2 %vm4540_vm5, %v4862_v38  ;;  %6909 = vmatmul.msk.f32.gmra.mxu3 %vm4540_vm5, %v4862_v38  ;;  %v4137_v55 = vpop.permute.xlu0 %4136  ;;  %v10503_v18 = vld [vmem:[#allocation2 + $0x147] ss:$0 sm:$0xff]  ;;  %v10505_v23 = vld [vmem:[#allocation2 + $0x146] ss:$0 sm:$0xff] }
 0x5d6   :  { %v4270_v28 = vmax.f32 %v9970_v29, %v4254_v49  ;;  %v4166_v53 = vsel %vm2164_vm3, %v10313_v30, %v4137_v55  ;;  %v4863_v30 = vld [vmem:[#allocation3 + $0x62] sm:$0xff] }
 0x5d7   :  { %v4182_v16 = vmax.f32 %v9929_v4, %v4166_v53 }
 0x5d8   :  { %v4644_v47 = vpop.f32.mrf.mxu3  ;;  %v10481_v61 = vpop.f32.mrf.mxu2 }
 0x5d9   :  { %v4278_v1 = vmax.f32 %v4182_v16, %v4270_v28  ;;  %4663 = vst.msk [vmem:[#allocation4 + $0x78] sm:$0xff] %vm4648_vm6, %v4644_v47  ;;  %v4812_v16 = vld [vmem:[#allocation4 + $0x18] sm:$0xff] }
 0x5da   :  { %4444 = vrot.lane.b32.xlu1 %v4403_v36, %s7061_s24  ;;  %v10522_v36 = vld [vmem:[#allocation2 + $0x174] ss:$0 sm:$0xff] }
 0x5db   :  { %v4286_v29 = vmax.f32 %v4278_v1, 0.0  ;;  %4158 = vrot.lane.b32.xlu2 %v10470_v21, %s7061_s24  ;;  %4442 = vrot.lane.b32.xlu0 %v10472_v0, %s7061_s24 }
 0x5dc   :  { %v4337_v4 = vpop.permute.xlu1 %4336  ;;  %v4864_v48 = vld [vmem:[#allocation3 + $0x72] sm:$0xff] }
 0x5dd   :  { %4294 = vst.msk [vmem:[#allocation3 + $0xa] sm:$0x1] %vm2293_vm4, %v4286_v29  ;;  %v4429_v10 = vpop.permute.xlu2 %4428  ;;  %6902 = vmatmul.msk.f32.gmra.mxu2 %vm4540_vm5, %v4863_v30  ;;  %6910 = vmatmul.msk.f32.gmra.mxu3 %vm4540_vm5, %v4863_v30  ;;  %v4335_v6 = vpop.permute.xlu0 %4334  ;;  %v4404_v29 = vld [vmem:[#allocation2 + $0x14f] ss:$0 sm:$0xff] }
 0x5de   :  { %v4366_v12 = vsel %vm2164_vm3, %v4335_v6, %v4337_v4 }
 0x5df   :  { %v4382_v35 = vmax.f32 %v10014_v50, %v4366_v12 }
 0x5e2   :  { %4246 = vrot.lane.b32.xlu1 %v10483_v7, %s7061_s24 }
 0x5e3   :  { %4248 = vrot.lane.b32.xlu2 %v4204_v57, %s7061_s24  ;;  %4160 = vrot.lane.b32.xlu0 %v4116_v25, %s7061_s24 }
 0x5e4   :  { %v4139_v26 = vpop.permute.xlu1 %4138  ;;  %v5050_v51 = vld [vmem:[#allocation3 + $0x3] sm:$0xff] }
 0x5e5   :  { %v10490_v63 = vpop.permute.xlu2 %4230  ;;  %6903 = vmatmul.msk.f32.gmra.mxu2 %vm4540_vm5, %v4864_v48  ;;  %6911 = vmatmul.msk.f32.gmra.mxu3 %vm4540_vm5, %v4864_v48  ;;  %v4425_v56 = vpop.permute.xlu0 %4424 }
 0x5e6   :  { %6942 = vmatmul.msk.f32.vlgmr.msra.gmra.mxu0 %vm4540_vm5, %v5050_v51  ;;  %6950 = vmatmul.msk.f32.vlgmr.msrb.gmra.mxu1 %vm4540_vm5, %v5050_v51  ;;  %v4454_v42 = vsel %vm2164_vm3, %v10407_v3, %v4425_v56  ;;  %v4814_v56 = vld [vmem:[#allocation4 + $0x28] sm:$0xff] }
 0x5e7   :  { %v4470_v11 = vmax.f32 %v10012_v45, %v4454_v42  ;;  %v4167_v45 = vsel %vm2164_vm3, %v4139_v26, %v10424_v17  ;;  %v4117_v17 = vld [vmem:[#allocation2 + $0x17c] ss:$0 sm:$0xff] }
 0x5e8   :  { %v10500_v14 = vpop.f32.mrf.mxu2  ;;  %v4785_v37 = vpop.f32.mrf.mxu3  ;;  %v4183_v24 = vmax.f32 %v10043_v15, %v4167_v45 }
 0x5e9   :  { %v4478_v43 = vmax.f32 %v4382_v35, %v4470_v11  ;;  %v4826_v20 = vadd.f32 %v4810_v19, %v4785_v37  ;;  %v4205_v35 = vld [vmem:[#allocation2 + $0x17d] ss:$0 sm:$0xff]  ;;  %v10542_v11 = vld [vmem:[#allocation2 + $0x176] ss:$0 sm:$0xff]  ;;  %v10544_v37 = vld [vmem:[#allocation2 + $0x175] ss:$0 sm:$0xff] }
 0x5ea   :  { %4360 = vrot.lane.b32.xlu1 %v4316_v44, %s7061_s24 }
 0x5eb   :  { %v4486_v38 = vmax.f32 %v4478_v43, 0.0  ;;  %4842 = vst.msk [vmem:[#allocation4 + $0x8] sm:$0xff] %vm4648_vm6, %v4826_v20  ;;  %4446 = vrot.lane.b32.xlu2 %v10503_v18, %s7061_s24  ;;  %4358 = vrot.lane.b32.xlu0 %v10505_v23, %s7061_s24 }
 0x5ec   :  { %v4229_v50 = vpop.permute.xlu1 %4228 }
 0x5ed   :  { %4494 = vst.msk [vmem:[#allocation3 + $0xb] sm:$0x1] %vm2293_vm4, %v4486_v38  ;;  %v10515_v3 = vpop.permute.xlu2 %4344  ;;  %v4227_v49 = vpop.permute.xlu0 %4226  ;;  %v4816_v38 = vld [vmem:[#allocation4 + $0x38] sm:$0xff] }
 0x5ee   :  { %v4255_v55 = vsel %vm2164_vm3, %v4227_v49, %v4229_v50  ;;  %v10556_v50 = vld [vmem:[#allocation2 + $0x177] ss:$0 sm:$0xff]  ;;  %v4405_v49 = vld [vmem:[#allocation2 + $0x17f] ss:$0 sm:$0xff] }
 0x5ef   :  { %v4271_v59 = vmax.f32 %v10085_v27, %v4255_v55  ;;  %v4317_v55 = vld [vmem:[#allocation2 + $0x17e] ss:$0 sm:$0xff] }
 0x5f0   :  { %v10520_v28 = vpop.f32.mrf.mxu2  ;;  %v4788_v53 = vpop.f32.mrf.mxu3 }
 0x5f1   :  { %v4279_v47 = vmax.f32 %v4183_v24, %v4271_v59  ;;  %v4828_v1 = vadd.f32 %v4812_v16, %v4788_v53 }
 0x5f2   :  { %4162 = vrot.lane.b32.xlu1 %v10522_v36, %s7061_s24 }
 0x5f3   :  { %v4287_v4 = vmax.f32 %v4279_v47, 0.0  ;;  %4844 = vst.msk [vmem:[#allocation4 + $0x18] sm:$0xff] %vm4648_vm6, %v4828_v1  ;;  %4164 = vrot.lane.b32.xlu2 %v4117_v17, %s7061_s24  ;;  %4448 = vrot.lane.b32.xlu0 %v4404_v29, %s7061_s24 }
 0x5f4   :  { %v4427_v15 = vpop.permute.xlu1 %4426  ;;  %v5243_v27 = vld [vmem:[#allocation3 + $0x4] sm:$0xff] }
 0x5f5   :  { %4295 = vst.msk [vmem:[#allocation3 + $0x1a] sm:$0x1] %vm2293_vm4, %v4287_v4  ;;  %v4455_v30 = vsel %vm2164_vm3, %v4427_v15, %v4429_v10  ;;  %v10531_v6 = vpop.permute.xlu2 %4146  ;;  %6988 = vmatmul.msk.f32.vlgmr.msrb.gmra.mxu2 %vm4540_vm5, %v5243_v27  ;;  %6996 = vmatmul.msk.f32.vlgmr.msrb.gmra.mxu3 %vm4540_vm5, %v5243_v27  ;;  %v4341_v57 = vpop.permute.xlu0 %4340  ;;  %v4818_v15 = vld [vmem:[#allocation4 + $0x48] sm:$0xff] }
 0x5f6   :  { %v4471_v25 = vmax.f32 %v10110_v60, %v4455_v30  ;;  %v4367_v12 = vsel %vm2164_vm3, %v10452_v40, %v4341_v57 }
 0x5f7   :  { %v4383_v26 = vmax.f32 %v10083_v9, %v4367_v12 }
 0x5f8   :  { %v10539_v48 = vpop.f32.mrf.mxu2  ;;  %v4791_v51 = vpop.f32.mrf.mxu3 }
 0x5f9   :  { %v4479_v42 = vmax.f32 %v4383_v26, %v4471_v25  ;;  %v4830_v10 = vadd.f32 %v4814_v56, %v4791_v51 }
 0x5fa   :  { %4252 = vrot.lane.b32.xlu1 %v4205_v35, %s7061_s24 }
 0x5fb   :  { %v4487_v19 = vmax.f32 %v4479_v42, 0.0  ;;  %4846 = vst.msk [vmem:[#allocation4 + $0x28] sm:$0xff] %vm4648_vm6, %v4830_v10  ;;  %4362 = vrot.lane.b32.xlu2 %v10542_v11, %s7061_s24  ;;  %4250 = vrot.lane.b32.xlu0 %v10544_v37, %s7061_s24  ;;  %v4820_v10 = vld [vmem:[#allocation4 + $0x58] sm:$0xff] }
 0x5fc   :  { %v4145_v9 = vpop.permute.xlu1 %4144  ;;  %v5051_v60 = vld [vmem:[#allocation3 + $0x13] sm:$0xff] }
 0x5fd   :  { %4495 = vst.msk [vmem:[#allocation3 + $0x1b] sm:$0x1] %vm2293_vm4, %v4487_v19  ;;  %v4237_v40 = vpop.permute.xlu2 %4236  ;;  %6943 = vmatmul.msk.f32.gmra.mxu0 %vm4540_vm5, %v5051_v60  ;;  %6951 = vmatmul.msk.f32.gmra.mxu1 %vm4540_vm5, %v5051_v60  ;;  %v4143_v43 = vpop.permute.xlu0 %4142 }
 0x5fe   :  { %v4168_v24 = vsel %vm2164_vm3, %v4143_v43, %v4145_v9 }
 0x5ff   :  { %v4184_v17 = vmax.f32 %v10145_v8, %v4168_v24 }
 0x600   :  { %v10554_v20 = vpop.f32.mrf.mxu2  ;;  %v4794_v44 = vpop.f32.mrf.mxu3 }
 0x601   :  { %v4832_v45 = vadd.f32 %v4816_v38, %v4794_v44 }
 0x602   :  { %4450 = vrot.lane.b32.xlu1 %v10556_v50, %s7061_s24 }
 0x603   :  { %4848 = vst.msk [vmem:[#allocation4 + $0x38] sm:$0xff] %vm4648_vm6, %v4832_v45  ;;  %4452 = vrot.lane.b32.xlu2 %v4405_v49, %s7061_s24  ;;  %4364 = vrot.lane.b32.xlu0 %v4317_v55, %s7061_s24  ;;  %v4822_v55 = vld [vmem:[#allocation4 + $0x68] sm:$0xff] }
 0x604   :  { %v4343_v59 = vpop.permute.xlu1 %4342  ;;  %v5244_v53 = vld [vmem:[#allocation3 + $0x14] sm:$0xff] }
 0x605   :  { %v10564_v16 = vpop.permute.xlu2 %4434  ;;  %6989 = vmatmul.msk.f32.gmra.mxu2 %vm4540_vm5, %v5244_v53  ;;  %6997 = vmatmul.msk.f32.gmra.mxu3 %vm4540_vm5, %v5244_v53  ;;  %v4233_v47 = vpop.permute.xlu0 %4232  ;;  %v4368_v12 = vsel %vm2164_vm3, %v4343_v59, %v10515_v3 }
 0x606   :  { %v4256_v1 = vsel %vm2164_vm3, %v10490_v63, %v4233_v47 }
 0x607   :  { %v4272_v29 = vmax.f32 %v10143_v5, %v4256_v1  ;;  %v4384_v5 = vmax.f32 %v10174_v41, %v4368_v12 }
 0x608   :  { %v4797_v4 = vpop.f32.mrf.mxu3  ;;  %v10572_v57 = vpop.f32.mrf.mxu2 }
 0x609   :  { %v4280_v27 = vmax.f32 %v4184_v17, %v4272_v29  ;;  %v4834_v30 = vadd.f32 %v4818_v15, %v4797_v4  ;;  %v4824_v17 = vld [vmem:[#allocation4 + $0x78] sm:$0xff] }
 0x60b   :  { %v4288_v25 = vmax.f32 %v4280_v27, 0.0  ;;  %4850 = vst.msk [vmem:[#allocation4 + $0x48] sm:$0xff] %vm4648_vm6, %v4834_v30 }
 0x60c   :  { %v4433_v26 = vpop.permute.xlu1 %4432 }
 0x60d   :  { %4296 = vst.msk [vmem:[#allocation3 + $0x2a] sm:$0x1] %vm2293_vm4, %v4288_v25  ;;  %v4431_v63 = vpop.permute.xlu0 %4430  ;;  %v4153_v51 = vpop.permute.xlu2 %4152 }
 0x60e   :  { %v4456_v8 = vsel %vm2164_vm3, %v4431_v63, %v4433_v26 }
 0x60f   :  { %v4472_v56 = vmax.f32 %v10207_v13, %v4456_v8 }
 0x610   :  { %v4800_v42 = vpop.f32.mrf.mxu3  ;;  %v10582_v60 = vpop.f32.mrf.mxu2 }
 0x611   :  { %v4480_v35 = vmax.f32 %v4384_v5, %v4472_v56  ;;  %v4836_v19 = vadd.f32 %v4820_v10, %v4800_v42 }
 0x613   :  { %v4488_v9 = vmax.f32 %v4480_v35, 0.0  ;;  %4852 = vst.msk [vmem:[#allocation4 + $0x58] sm:$0xff] %vm4648_vm6, %v4836_v19 }
 0x614   :  { %v4235_v3 = vpop.permute.xlu1 %4234  ;;  %v5052_v43 = vld [vmem:[#allocation3 + $0x23] sm:$0xff] }
 0x615   :  { %4496 = vst.msk [vmem:[#allocation3 + $0x2b] sm:$0x1] %vm2293_vm4, %v4488_v9  ;;  %v4257_v44 = vsel %vm2164_vm3, %v4235_v3, %v4237_v40  ;;  %6944 = vmatmul.msk.f32.gmra.mxu0 %vm4540_vm5, %v5052_v43  ;;  %6952 = vmatmul.msk.f32.gmra.mxu1 %vm4540_vm5, %v5052_v43  ;;  %v4149_v41 = vpop.permute.xlu0 %4148  ;;  %v4351_v24 = vpop.permute.xlu2 %4350  ;;  %v5003_v43 = vld [vmem:[#allocation4 + $0x8] sm:$0xff] }
 0x616   :  { %v4273_v13 = vmax.f32 %v10229_v32, %v4257_v44  ;;  %v4169_v38 = vsel %vm2164_vm3, %v10531_v6, %v4149_v41 }
 0x617   :  { %v4185_v45 = vmax.f32 %v10205_v58, %v4169_v38 }
 0x618   :  { %v4803_v49 = vpop.f32.mrf.mxu3  ;;  %v10596_v6 = vpop.f32.mrf.mxu2 }
 0x619   :  { %v4281_v59 = vmax.f32 %v4185_v45, %v4273_v13  ;;  %v4838_v53 = vadd.f32 %v4822_v55, %v4803_v49 }
 0x61b   :  { %v4289_v47 = vmax.f32 %v4281_v59, 0.0  ;;  %4854 = vst.msk [vmem:[#allocation4 + $0x68] sm:$0xff] %vm4648_vm6, %v4838_v53 }
 0x61c   :  { %v4349_v40 = vpop.permute.xlu1 %4348  ;;  %v5245_v1 = vld [vmem:[#allocation3 + $0x24] sm:$0xff] }
 0x61d   :  { %4297 = vst.msk [vmem:[#allocation3 + $0x3a] sm:$0x1] %vm2293_vm4, %v4289_v47  ;;  %6990 = vmatmul.msk.f32.gmra.mxu2 %vm4540_vm5, %v5245_v1  ;;  %6998 = vmatmul.msk.f32.gmra.mxu3 %vm4540_vm5, %v5245_v1  ;;  %v4347_v32 = vpop.permute.xlu0 %4346  ;;  %v4441_v4 = vpop.permute.xlu2 %4440 }
 0x61e   :  { %v4369_v15 = vsel %vm2164_vm3, %v4347_v32, %v4349_v40  ;;  %v5005_v32 = vld [vmem:[#allocation4 + $0x18] sm:$0xff] }
 0x61f   :  { %v4385_v26 = vmax.f32 %v10264_v34, %v4369_v15 }
 0x620   :  { %v4806_v58 = vpop.f32.mrf.mxu3  ;;  %v10606_v8 = vpop.f32.mrf.mxu2 }
 0x621   :  { %v4840_v29 = vadd.f32 %v4824_v17, %v4806_v58 }
 0x623   :  { %4856 = vst.msk [vmem:[#allocation4 + $0x78] sm:$0xff] %vm4648_vm6, %v4840_v29 }
 0x624   :  { %v4151_v27 = vpop.permute.xlu1 %4150  ;;  %v5053_v30 = vld [vmem:[#allocation3 + $0x33] sm:$0xff] }
 0x625   :  { %6945 = vmatmul.msk.f32.gmra.mxu0 %vm4540_vm5, %v5053_v30  ;;  %6953 = vmatmul.msk.f32.gmra.mxu1 %vm4540_vm5, %v5053_v30  ;;  %v4437_v25 = vpop.permute.xlu0 %4436  ;;  %v4170_v42 = vsel %vm2164_vm3, %v4151_v27, %v4153_v51  ;;  %v4243_v35 = vpop.permute.xlu2 %4242 }
 0x626   :  { %v4457_v12 = vsel %vm2164_vm3, %v10564_v16, %v4437_v25  ;;  %v4186_v3 = vmax.f32 %v10301_v31, %v4170_v42  ;;  %v5007_v25 = vld [vmem:[#allocation4 + $0x28] sm:$0xff] }
 0x627   :  { %v4473_v63 = vmax.f32 %v10262_v52, %v4457_v12 }
 0x629   :  { %v4481_v5 = vmax.f32 %v4385_v26, %v4473_v63 }
 0x62b   :  { %v4489_v56 = vmax.f32 %v4481_v5, 0.0 }
 0x62c   :  { %v4241_v10 = vpop.permute.xlu1 %4240 }
 0x62d   :  { %4497 = vst.msk [vmem:[#allocation3 + $0x3b] sm:$0x1] %vm2293_vm4, %v4489_v56  ;;  %v4239_v19 = vpop.permute.xlu0 %4238  ;;  %v4357_v53 = vpop.permute.xlu2 %4356 }
 0x62e   :  { %v4258_v9 = vsel %vm2164_vm3, %v4239_v19, %v4241_v10  ;;  %v4815_v19 = vld [vmem:[#allocation4 + $0x30] sm:$0xff] }
 0x62f   :  { %v4274_v16 = vmax.f32 %v10335_v2, %v4258_v9  ;;  %v4811_v2 = vld [vmem:[#allocation4 + $0x10] sm:$0xff]  ;;  %v4831_v9 = vadd.f32 %v4815_v19, %v10554_v20 }
 0x630   :  { %v10613_v34 = vpop.f32.mrf.mxu2  ;;  %v4978_v52 = vpop.f32.mrf.mxu3  ;;  %v4827_v59 = vadd.f32 %v4811_v2, %v10520_v28 }
 0x631   :  { %v4282_v44 = vmax.f32 %v4186_v3, %v4274_v16  ;;  %v5019_v41 = vadd.f32 %v5003_v43, %v4978_v52 }
 0x633   :  { %v4290_v13 = vmax.f32 %v4282_v44, 0.0  ;;  %5035 = vst.msk [vmem:[#allocation4 + $0x8] sm:$0xff] %vm4648_vm6, %v5019_v41  ;;  %v5009_v44 = vld [vmem:[#allocation4 + $0x38] sm:$0xff] }
 0x634   :  { %v4439_v51 = vpop.permute.xlu1 %4438  ;;  %v5246_v38 = vld [vmem:[#allocation3 + $0x34] sm:$0xff] }
 0x635   :  { %4298 = vst.msk [vmem:[#allocation3 + $0x4a] sm:$0x1] %vm2293_vm4, %v4290_v13  ;;  %v4458_v45 = vsel %vm2164_vm3, %v4439_v51, %v4441_v4  ;;  %6991 = vmatmul.msk.f32.gmra.mxu2 %vm4540_vm5, %v5246_v38  ;;  %6999 = vmatmul.msk.f32.gmra.mxu3 %vm4540_vm5, %v5246_v38  ;;  %v4353_v31 = vpop.permute.xlu0 %4352  ;;  %v4159_v12 = vpop.permute.xlu2 %4158 }
 0x636   :  { %v4474_v49 = vmax.f32 %v10376_v33, %v4458_v45  ;;  %v4370_v55 = vsel %vm2164_vm3, %v4351_v24, %v4353_v31 }
 0x637   :  { %v4386_v47 = vmax.f32 %v10333_v54, %v4370_v55  ;;  %v4813_v54 = vld [vmem:[#allocation4 + $0x20] sm:$0xff] }
 0x638   :  { %v4940_v40 = vpop.f32.mrf.mxu2  ;;  %v4981_v1 = vpop.f32.mrf.mxu3  ;;  %v4829_v28 = vadd.f32 %v4813_v54, %v10539_v48 }
 0x639   :  { %v4482_v58 = vmax.f32 %v4386_v47, %v4474_v49  ;;  %v10624_v17 = vadd.f32 %v4940_v40, %v4827_v59  ;;  %v5021_v29 = vadd.f32 %v5005_v32, %v4981_v1  ;;  %v5011_v40 = vld [vmem:[#allocation4 + $0x48] sm:$0xff] }
 0x63b   :  { %v4490_v4 = vmax.f32 %v4482_v58, 0.0  ;;  %5037 = vst.msk [vmem:[#allocation4 + $0x18] sm:$0xff] %vm4648_vm6, %v5021_v29 }
 0x63c   :  { %v4157_v15 = vpop.permute.xlu1 %4156  ;;  %v5054_v27 = vld [vmem:[#allocation3 + $0x43] sm:$0xff] }
 0x63d   :  { %4498 = vst.msk [vmem:[#allocation3 + $0x4b] sm:$0x1] %vm2293_vm4, %v4490_v4  ;;  %6946 = vmatmul.msk.f32.gmra.mxu0 %vm4540_vm5, %v5054_v27  ;;  %6954 = vmatmul.msk.f32.gmra.mxu1 %vm4540_vm5, %v5054_v27  ;;  %v4155_v33 = vpop.permute.xlu0 %4154  ;;  %v4249_v38 = vpop.permute.xlu2 %4248 }
 0x63e   :  { %v4171_v5 = vsel %vm2164_vm3, %v4155_v33, %v4157_v15 }
 0x63f   :  { %v4187_v3 = vmax.f32 %v10415_v46, %v4171_v5  ;;  %v4817_v46 = vld [vmem:[#allocation4 + $0x40] sm:$0xff] }
 0x640   :  { %v4943_v24 = vpop.f32.mrf.mxu2  ;;  %v4984_v30 = vpop.f32.mrf.mxu3  ;;  %v4833_v2 = vadd.f32 %v4817_v46, %v10572_v57 }
 0x641   :  { %v10631_v26 = vadd.f32 %v4943_v24, %v4829_v28  ;;  %v5023_v63 = vadd.f32 %v5007_v25, %v4984_v30  ;;  %v5013_v25 = vld [vmem:[#allocation4 + $0x58] sm:$0xff] }
 0x643   :  { %5039 = vst.msk [vmem:[#allocation4 + $0x28] sm:$0xff] %vm4648_vm6, %v5023_v63 }
 0x644   :  { %v4355_v56 = vpop.permute.xlu1 %4354  ;;  %v5247_v42 = vld [vmem:[#allocation3 + $0x44] sm:$0xff] }
 0x645   :  { %6992 = vmatmul.msk.f32.gmra.mxu2 %vm4540_vm5, %v5247_v42  ;;  %7000 = vmatmul.msk.f32.gmra.mxu3 %vm4540_vm5, %v5247_v42  ;;  %v4245_v10 = vpop.permute.xlu0 %4244  ;;  %v4371_v31 = vsel %vm2164_vm3, %v4355_v56, %v4357_v53  ;;  %v4447_v15 = vpop.permute.xlu2 %4446 }
 0x646   :  { %v4259_v48 = vsel %vm2164_vm3, %v4243_v35, %v4245_v10  ;;  %v4387_v49 = vmax.f32 %v10443_v62, %v4371_v31 }
 0x647   :  { %v4275_v16 = vmax.f32 %v10413_v22, %v4259_v48 }
 0x648   :  { %v4946_v52 = vpop.f32.mrf.mxu2  ;;  %v4987_v43 = vpop.f32.mrf.mxu3 }
 0x649   :  { %v4283_v41 = vmax.f32 %v4187_v3, %v4275_v16  ;;  %v10641_v13 = vadd.f32 %v4946_v52, %v4831_v9  ;;  %v5025_v51 = vadd.f32 %v5009_v44, %v4987_v43  ;;  %v5015_v9 = vld [vmem:[#allocation4 + $0x68] sm:$0xff] }
 0x64a   :  { %v5196_v43 = vld [vmem:[#allocation4 + $0x8] sm:$0xff] }
 0x64b   :  { %v4291_v45 = vmax.f32 %v4283_v41, 0.0  ;;  %5041 = vst.msk [vmem:[#allocation4 + $0x38] sm:$0xff] %vm4648_vm6, %v5025_v51 }
 0x64c   :  { %v4445_v35 = vpop.permute.xlu1 %4444 }
 0x64d   :  { %4299 = vst.msk [vmem:[#allocation3 + $0x5a] sm:$0x1] %vm2293_vm4, %v4291_v45  ;;  %v4443_v20 = vpop.permute.xlu0 %4442  ;;  %v4839_v45 = vadd.f32 %v10606_v8, %v10481_v61 }
 0x64e   :  { %v4459_v22 = vsel %vm2164_vm3, %v4443_v20, %v4445_v35 }
 0x64f   :  { %v4475_v55 = vmax.f32 %v10472_v0, %v4459_v22  ;;  %v4819_v0 = vld [vmem:[#allocation4 + $0x50] sm:$0xff]  ;;  %v5017_v22 = vld [vmem:[#allocation4 + $0x78] sm:$0xff] }
 0x650   :  { %v4949_v59 = vpop.f32.mrf.mxu2  ;;  %v4990_v47 = vpop.f32.mrf.mxu3  ;;  %v4835_v54 = vadd.f32 %v4819_v0, %v10582_v60 }
 0x651   :  { %v4483_v1 = vmax.f32 %v4387_v49, %v4475_v55  ;;  %v10650_v32 = vadd.f32 %v4949_v59, %v4833_v2  ;;  %v5027_v53 = vadd.f32 %v5011_v40, %v4990_v47  ;;  %v4165_v60 = vpop.permute.xlu2 %4164 }
 0x653   :  { %v4491_v58 = vmax.f32 %v4483_v1, 0.0  ;;  %5043 = vst.msk [vmem:[#allocation4 + $0x48] sm:$0xff] %vm4648_vm6, %v5027_v53 }
 0x654   :  { %v4247_v29 = vpop.permute.xlu1 %4246  ;;  %v5055_v4 = vld [vmem:[#allocation3 + $0x53] sm:$0xff] }
 0x655   :  { %4499 = vst.msk [vmem:[#allocation3 + $0x5b] sm:$0x1] %vm2293_vm4, %v4491_v58  ;;  %v4260_v57 = vsel %vm2164_vm3, %v4247_v29, %v4249_v38  ;;  %6947 = vmatmul.msk.f32.gmra.mxu0 %vm4540_vm5, %v5055_v4  ;;  %6955 = vmatmul.msk.f32.gmra.mxu1 %vm4540_vm5, %v5055_v4  ;;  %v4161_v62 = vpop.permute.xlu0 %4160  ;;  %v4809_v58 = vld [vmem:[#allocation4] sm:$0xff] }
 0x656   :  { %v4276_v27 = vmax.f32 %v10483_v7, %v4260_v57  ;;  %v4172_v33 = vsel %vm2164_vm3, %v4159_v12, %v4161_v62  ;;  %v4825_v29 = vadd.f32 %v4809_v58, %v10500_v14 }
 0x657   :  { %v4188_v28 = vmax.f32 %v10470_v21, %v4172_v33  ;;  %v4837_v21 = vadd.f32 %v10596_v6, %v10466_v39 }
 0x658   :  { %v4952_v24 = vpop.f32.mrf.mxu2  ;;  %v4993_v30 = vpop.f32.mrf.mxu3 }
 0x659   :  { %v4284_v63 = vmax.f32 %v4188_v28, %v4276_v27  ;;  %v10661_v5 = vadd.f32 %v4952_v24, %v4835_v54  ;;  %v5029_v56 = vadd.f32 %v5013_v25, %v4993_v30  ;;  %v4363_v2 = vpop.permute.xlu2 %4362  ;;  %v5018_v27 = vadd.f32 %v10613_v34, %v4825_v29 }
 0x65b   :  { %v4292_v42 = vmax.f32 %v4284_v63, 0.0  ;;  %5045 = vst.msk [vmem:[#allocation4 + $0x58] sm:$0xff] %vm4648_vm6, %v5029_v56 }
 0x65c   :  { %v4361_v10 = vpop.permute.xlu1 %4360  ;;  %v5248_v19 = vld [vmem:[#allocation3 + $0x54] sm:$0xff] }
 0x65d   :  { %4300 = vst.msk [vmem:[#allocation3 + $0x6a] sm:$0x1] %vm2293_vm4, %v4292_v42  ;;  %6993 = vmatmul.msk.f32.gmra.mxu2 %vm4540_vm5, %v5248_v19  ;;  %7001 = vmatmul.msk.f32.gmra.mxu3 %vm4540_vm5, %v5248_v19  ;;  %v4359_v7 = vpop.permute.xlu0 %4358 }
 0x65e   :  { %v4372_v44 = vsel %vm2164_vm3, %v4359_v7, %v4361_v10  ;;  %v5198_v10 = vld [vmem:[#allocation4 + $0x18] sm:$0xff] }
 0x65f   :  { %v4388_v31 = vmax.f32 %v10505_v23, %v4372_v44 }
 0x660   :  { %v4955_v12 = vpop.f32.mrf.mxu2  ;;  %v4996_v48 = vpop.f32.mrf.mxu3 }
 0x661   :  { %v10669_v3 = vadd.f32 %v4955_v12, %v4837_v21  ;;  %v5031_v16 = vadd.f32 %v5015_v9, %v4996_v48  ;;  %v4453_v4 = vpop.permute.xlu2 %4452 }
 0x663   :  { %5047 = vst.msk [vmem:[#allocation4 + $0x68] sm:$0xff] %vm4648_vm6, %v5031_v16  ;;  %v5171_v52 = vpop.f32.mrf.mxu1  ;;  %v5130_v57 = vpop.f32.mrf.mxu0 }
 0x664   :  { %v5212_v41 = vadd.f32 %v5196_v43, %v5171_v52  ;;  %v4163_v51 = vpop.permute.xlu1 %4162  ;;  %v5056_v38 = vld [vmem:[#allocation3 + $0x63] sm:$0xff]  ;;  %v5211_v54 = vadd.f32 %v5130_v57, %v5018_v27 }
 0x665   :  { %6948 = vmatmul.msk.f32.gmra.mxu0 %vm4540_vm5, %v5056_v38  ;;  %6956 = vmatmul.msk.f32.gmra.mxu1 %vm4540_vm5, %v5056_v38  ;;  %v4449_v39 = vpop.permute.xlu0 %4448  ;;  %v4173_v40 = vsel %vm2164_vm3, %v4163_v51, %v4165_v60 }
 0x666   :  { %5228 = vst.msk [vmem:[#allocation4 + $0x8] sm:$0xff] %vm4648_vm6, %v5212_v41  ;;  %v4460_v6 = vsel %vm2164_vm3, %v4447_v15, %v4449_v39 }
 0x667   :  { %v4476_v35 = vmax.f32 %v10503_v18, %v4460_v6  ;;  %v4189_v18 = vmax.f32 %v10522_v36, %v4173_v40  ;;  %v5200_v6 = vld [vmem:[#allocation4 + $0x28] sm:$0xff] }
 0x668   :  { %v4958_v20 = vpop.f32.mrf.mxu2  ;;  %v4999_v46 = vpop.f32.mrf.mxu3 }
 0x669   :  { %v4484_v49 = vmax.f32 %v4388_v31, %v4476_v35  ;;  %v10681_v55 = vadd.f32 %v4958_v20, %v4839_v45  ;;  %v5033_v59 = vadd.f32 %v5017_v22, %v4999_v46 }
 0x66b   :  { %v4492_v47 = vmax.f32 %v4484_v49, 0.0  ;;  %5049 = vst.msk [vmem:[#allocation4 + $0x78] sm:$0xff] %vm4648_vm6, %v5033_v59 }
 0x66c   :  { %v4253_v1 = vpop.permute.xlu1 %4252 }
 0x66d   :  { %4500 = vst.msk [vmem:[#allocation3 + $0x6b] sm:$0x1] %vm2293_vm4, %v4492_v47  ;;  %v4251_v61 = vpop.permute.xlu0 %4250  ;;  %v5389_v25 = vld [vmem:[#allocation4 + $0x8] sm:$0xff] }
 0x66e   :  { %v4261_v23 = vsel %vm2164_vm3, %v4251_v61, %v4253_v1 }
 0x66f   :  { %v4277_v8 = vmax.f32 %v10544_v37, %v4261_v23 }
 0x671   :  { %v4285_v53 = vmax.f32 %v4189_v18, %v4277_v8  ;;  %v5202_v8 = vld [vmem:[#allocation4 + $0x38] sm:$0xff] }
 0x673   :  { %v4293_v15 = vmax.f32 %v4285_v53, 0.0 }
 0x674   :  { %v4451_v62 = vpop.permute.xlu1 %4450  ;;  %v5249_v0 = vld [vmem:[#allocation3 + $0x64] sm:$0xff] }
 0x675   :  { %4301 = vst.msk [vmem:[#allocation3 + $0x7a] sm:$0x1] %vm2293_vm4, %v4293_v15  ;;  %v4461_v33 = vsel %vm2164_vm3, %v4451_v62, %v4453_v4  ;;  %6994 = vmatmul.msk.f32.gmra.mxu2 %vm4540_vm5, %v5249_v0  ;;  %7002 = vmatmul.msk.f32.gmra.mxu3 %vm4540_vm5, %v5249_v0  ;;  %v4365_v36 = vpop.permute.xlu0 %4364 }
 0x676   :  { %v4477_v37 = vmax.f32 %v10556_v50, %v4461_v33  ;;  %v4373_v14 = vsel %vm2164_vm3, %v4363_v2, %v4365_v36 }
 0x677   :  { %v4389_v28 = vmax.f32 %v10542_v11, %v4373_v14 }
 0x678   :  { %v5323_v24 = vpop.f32.mrf.mxu2  ;;  %v5364_v30 = vpop.f32.mrf.mxu3 }
 0x679   :  { %v4485_v34 = vmax.f32 %v4389_v28, %v4477_v37  ;;  %v5404_v63 = vadd.f32 %v5323_v24, %v5211_v54  ;;  %v5405_v56 = vadd.f32 %v5389_v25, %v5364_v30  ;;  %v5204_v25 = vld [vmem:[#allocation4 + $0x48] sm:$0xff] }
 0x67a   :  { %v5174_v42 = vpop.f32.mrf.mxu1  ;;  %v5133_v12 = vpop.f32.mrf.mxu0 }
 0x67b   :  { %v4493_v19 = vmax.f32 %v4485_v34, 0.0  ;;  %5420 = vst [vmem:[#allocation4] sm:$0xff] %v5404_v63  ;;  %v5214_v7 = vadd.f32 %v5198_v10, %v5174_v42  ;;  %v5213_v9 = vadd.f32 %v5133_v12, %v10624_v17 }
 0x67c   :  { %5421 = vst.msk [vmem:[#allocation4 + $0x8] sm:$0xff] %vm4648_vm6, %v5405_v56  ;;  %v5057_v21 = vld [vmem:[#allocation3 + $0x73] sm:$0xff] }
 0x67d   :  { %4501 = vst.msk [vmem:[#allocation3 + $0x7b] sm:$0x1] %vm2293_vm4, %v4493_v19  ;;  %6949 = vmatmul.msk.f32.gmra.mxu0 %vm4540_vm5, %v5057_v21  ;;  %6957 = vmatmul.msk.f32.gmra.mxu1 %vm4540_vm5, %v5057_v21 }
 0x67e   :  { %5230 = vst.msk [vmem:[#allocation4 + $0x18] sm:$0xff] %vm4648_vm6, %v5214_v7 }
 0x682   :  { %v10703_v11 = vld [vmem:[#allocation4] ss:$0 sm:$0xff]  ;;  %v10712_v39 = vld [vmem:[#allocation4 + $0x1] ss:$0 sm:$0xff]  ;;  %v10719_v31 = vld [vmem:[#allocation4 + $0x5] ss:$0 sm:$0xff] }
 0x683   :  { %v5541_v50 = vld [vmem:[#allocation4 + $0x9] ss:$0 sm:$0xff]  ;;  %v5452_v60 = vld [vmem:[#allocation4 + $0x8] ss:$0 sm:$0xff]  ;;  %5476 = vrot.lane.b32.xlu0 %v10703_v11, %s7062_s2  ;;  %v6060_v51 = vld [vmem:[#allocation4 + $0xd] ss:$0 sm:$0xff] }
 0x684   :  { %5567 = vrot.lane.b32.xlu2 %v5541_v50, %s7062_s2  ;;  %5478 = vrot.lane.b32.xlu1 %v5452_v60, %s7062_s2  ;;  %v5250_v48 = vld [vmem:[#allocation3 + $0x74] sm:$0xff]  ;;  %v5972_v38 = vld [vmem:[#allocation4 + $0xc] ss:$0 sm:$0xff]  ;;  %v10721_v35 = vld [vmem:[#allocation4 + $0x4] ss:$0 sm:$0xff] }
 0x685   :  { %6995 = vmatmul.msk.f32.gmra.mxu2 %vm4540_vm5, %v5250_v48  ;;  %7003 = vmatmul.msk.f32.gmra.mxu3 %vm4540_vm5, %v5250_v48  ;;  %v5391_v43 = vld [vmem:[#allocation4 + $0x18] sm:$0xff] }
 0x688   :  { %v5326_v16 = vpop.f32.mrf.mxu2  ;;  %v5367_v52 = vpop.f32.mrf.mxu3 }
 0x689   :  { %v5406_v44 = vadd.f32 %v5326_v16, %v5213_v9  ;;  %v5407_v41 = vadd.f32 %v5391_v43, %v5367_v52 }
 0x68b   :  { %5422 = vst [vmem:[#allocation4 + $0x10] sm:$0xff] %v5406_v44  ;;  %6086 = vrot.lane.b32.xlu0 %v6060_v51, %s7062_s2  ;;  %v5206_v44 = vld [vmem:[#allocation4 + $0x58] sm:$0xff] }
 0x68c   :  { %5423 = vst.msk [vmem:[#allocation4 + $0x18] sm:$0xff] %vm4648_vm6, %v5407_v41  ;;  %5998 = vrot.lane.b32.xlu2 %v5972_v38, %s7062_s2  ;;  %5565 = vrot.lane.b32.xlu1 %v10712_v39, %s7062_s2 }
 0x692   :  { %v5177_v17 = vpop.f32.mrf.mxu1  ;;  %v10729_v22 = vld [vmem:[#allocation4 + $0x10] ss:$0 sm:$0xff]  ;;  %v5136_v2 = vpop.f32.mrf.mxu0  ;;  %v10732_v49 = vld [vmem:[#allocation4 + $0x11] ss:$0 sm:$0xff]  ;;  %v10739_v58 = vld [vmem:[#allocation4 + $0x14] ss:$0 sm:$0xff] }
 0x693   :  { %v5216_v45 = vadd.f32 %v5200_v6, %v5177_v17  ;;  %v5453_v20 = vld [vmem:[#allocation4 + $0x18] ss:$0 sm:$0xff]  ;;  %v5542_v46 = vld [vmem:[#allocation4 + $0x19] ss:$0 sm:$0xff]  ;;  %v5215_v59 = vadd.f32 %v5136_v2, %v10631_v26  ;;  %v5973_v29 = vld [vmem:[#allocation4 + $0x1c] ss:$0 sm:$0xff] }
 0x694   :  { %6084 = vrot.lane.b32.xlu2 %v10719_v31, %s7062_s2  ;;  %5996 = vrot.lane.b32.xlu1 %v10721_v35, %s7062_s2  ;;  %v10744_v4 = vld [vmem:[#allocation4 + $0x15] ss:$0 sm:$0xff]  ;;  %v6061_v26 = vld [vmem:[#allocation4 + $0x1d] ss:$0 sm:$0xff]  ;;  %v10750_v15 = vld [vmem:[#allocation4 + $0x17] ss:$0 sm:$0xff] }
 0x695   :  { %5232 = vst.msk [vmem:[#allocation4 + $0x28] sm:$0xff] %vm4648_vm6, %v5216_v45  ;;  %5482 = vrot.lane.b32.xlu0 %v5453_v20, %s7062_s2  ;;  %v10753_v57 = vld [vmem:[#allocation4 + $0x16] ss:$0 sm:$0xff]  ;;  %v6229_v62 = vld [vmem:[#allocation4 + $0x1e] ss:$0 sm:$0xff] }
 0x696   :  { %v6317_v33 = vld [vmem:[#allocation4 + $0x1f] ss:$0 sm:$0xff] }
 0x69c   :  { %5571 = vrot.lane.b32.xlu1 %v5542_v46, %s7062_s2  ;;  %5480 = vrot.lane.b32.xlu2 %v10729_v22, %s7062_s2  ;;  %v5393_v1 = vld [vmem:[#allocation4 + $0x28] sm:$0xff] }
 0x69d   :  { %5569 = vrot.lane.b32.xlu0 %v10732_v49, %s7062_s2 }
 0x6a0   :  { %v5329_v47 = vpop.f32.mrf.mxu2  ;;  %v5370_v40 = vpop.f32.mrf.mxu3 }
 0x6a1   :  { %v5408_v61 = vadd.f32 %v5329_v47, %v5215_v59  ;;  %v5409_v23 = vadd.f32 %v5393_v1, %v5370_v40 }
 0x6a2   :  { %v5180_v18 = vpop.f32.mrf.mxu1  ;;  %v5139_v27 = vpop.f32.mrf.mxu0 }
 0x6a3   :  { %5424 = vst [vmem:[#allocation4 + $0x20] sm:$0xff] %v5408_v61  ;;  %v5218_v53 = vadd.f32 %v5202_v8, %v5180_v18  ;;  %v5217_v36 = vadd.f32 %v5139_v27, %v10641_v13  ;;  %v5208_v8 = vld [vmem:[#allocation4 + $0x68] sm:$0xff] }
 0x6a4   :  { %5425 = vst.msk [vmem:[#allocation4 + $0x28] sm:$0xff] %vm4648_vm6, %v5409_v23  ;;  %6000 = vrot.lane.b32.xlu1 %v10739_v58, %s7062_s2  ;;  %6002 = vrot.lane.b32.xlu2 %v5973_v29, %s7062_s2 }
 0x6a5   :  { %5234 = vst.msk [vmem:[#allocation4 + $0x38] sm:$0xff] %vm4648_vm6, %v5218_v53  ;;  %6088 = vrot.lane.b32.xlu0 %v10744_v4, %s7062_s2 }
 0x6aa   :  { %v10763_v63 = vld [vmem:[#allocation4 + $0x21] ss:$0 sm:$0xff]  ;;  %v10765_v56 = vld [vmem:[#allocation4 + $0x20] ss:$0 sm:$0xff]  ;;  %v10774_v10 = vld [vmem:[#allocation4 + $0x24] ss:$0 sm:$0xff] }
 0x6ab   :  { %v5454_v0 = vld [vmem:[#allocation4 + $0x28] ss:$0 sm:$0xff]  ;;  %v5543_v42 = vld [vmem:[#allocation4 + $0x29] ss:$0 sm:$0xff]  ;;  %v5974_v13 = vld [vmem:[#allocation4 + $0x2c] ss:$0 sm:$0xff] }
 0x6ac   :  { %6090 = vrot.lane.b32.xlu1 %v6061_v26, %s7062_s2  ;;  %6344 = vrot.lane.b32.xlu2 %v10750_v15, %s7062_s2  ;;  %v5395_v54 = vld [vmem:[#allocation4 + $0x38] sm:$0xff]  ;;  %v10776_v7 = vld [vmem:[#allocation4 + $0x25] ss:$0 sm:$0xff]  ;;  %v10784_v16 = vld [vmem:[#allocation4 + $0x26] ss:$0 sm:$0xff] }
 0x6ad   :  { %6256 = vrot.lane.b32.xlu0 %v10753_v57, %s7062_s2  ;;  %v6062_v52 = vld [vmem:[#allocation4 + $0x2d] ss:$0 sm:$0xff]  ;;  %v6230_v43 = vld [vmem:[#allocation4 + $0x2e] ss:$0 sm:$0xff] }
 0x6b4   :  { %6258 = vrot.lane.b32.xlu1 %v6229_v62, %s7062_s2  ;;  %5486 = vrot.lane.b32.xlu2 %v5454_v0, %s7062_s2 }
 0x6b5   :  { %6346 = vrot.lane.b32.xlu0 %v6317_v33, %s7062_s2 }
 0x6b8   :  { %v5332_v37 = vpop.f32.mrf.mxu2  ;;  %v5373_v14 = vpop.f32.mrf.mxu3 }
 0x6b9   :  { %v5410_v28 = vadd.f32 %v5332_v37, %v5217_v36  ;;  %v5411_v24 = vadd.f32 %v5395_v54, %v5373_v14 }
 0x6ba   :  { %v5183_v30 = vpop.f32.mrf.mxu1  ;;  %v5142_v19 = vpop.f32.mrf.mxu0 }
 0x6bb   :  { %5426 = vst [vmem:[#allocation4 + $0x30] sm:$0xff] %v5410_v28  ;;  %v5220_v34 = vadd.f32 %v5204_v25, %v5183_v30  ;;  %v5219_v21 = vadd.f32 %v5142_v19, %v10650_v32 }
 0x6bc   :  { %5427 = vst.msk [vmem:[#allocation4 + $0x38] sm:$0xff] %vm4648_vm6, %v5411_v24  ;;  %5573 = vrot.lane.b32.xlu2 %v10763_v63, %s7062_s2  ;;  %5484 = vrot.lane.b32.xlu1 %v10765_v56, %s7062_s2 }
 0x6bd   :  { %5236 = vst.msk [vmem:[#allocation4 + $0x48] sm:$0xff] %vm4648_vm6, %v5220_v34  ;;  %5575 = vrot.lane.b32.xlu0 %v5543_v42, %s7062_s2 }
 0x6c2   :  { %v10793_v17 = vld [vmem:[#allocation4 + $0x30] ss:$0 sm:$0xff]  ;;  %v10798_v45 = vld [vmem:[#allocation4 + $0x31] ss:$0 sm:$0xff]  ;;  %v10803_v46 = vld [vmem:[#allocation4 + $0x34] ss:$0 sm:$0xff] }
 0x6c3   :  { %v5544_v51 = vld [vmem:[#allocation4 + $0x39] ss:$0 sm:$0xff]  ;;  %v5455_v38 = vld [vmem:[#allocation4 + $0x38] ss:$0 sm:$0xff]  ;;  %v6063_v6 = vld [vmem:[#allocation4 + $0x3d] ss:$0 sm:$0xff] }
 0x6c4   :  { %6006 = vrot.lane.b32.xlu2 %v5974_v13, %s7062_s2  ;;  %6004 = vrot.lane.b32.xlu1 %v10774_v10, %s7062_s2  ;;  %v5397_v12 = vld [vmem:[#allocation4 + $0x48] sm:$0xff]  ;;  %v5975_v29 = vld [vmem:[#allocation4 + $0x3c] ss:$0 sm:$0xff]  ;;  %v10816_v0 = vld [vmem:[#allocation4 + $0x35] ss:$0 sm:$0xff] }
 0x6c5   :  { %6092 = vrot.lane.b32.xlu0 %v10776_v7, %s7062_s2 }
 0x6c8   :  { %v5335_v50 = vpop.f32.mrf.mxu2  ;;  %v5376_v60 = vpop.f32.mrf.mxu3 }
 0x6c9   :  { %v5412_v48 = vadd.f32 %v5335_v50, %v5219_v21  ;;  %v5413_v9 = vadd.f32 %v5397_v12, %v5376_v60 }
 0x6cb   :  { %5428 = vst [vmem:[#allocation4 + $0x40] sm:$0xff] %v5412_v48  ;;  %v5210_v48 = vld [vmem:[#allocation4 + $0x78] sm:$0xff] }
 0x6cc   :  { %5429 = vst.msk [vmem:[#allocation4 + $0x48] sm:$0xff] %vm4648_vm6, %v5413_v9  ;;  %6260 = vrot.lane.b32.xlu2 %v10784_v16, %s7062_s2  ;;  %6094 = vrot.lane.b32.xlu1 %v6062_v52, %s7062_s2 }
 0x6cd   :  { %6262 = vrot.lane.b32.xlu0 %v6230_v43, %s7062_s2 }
 0x6d2   :  { %v5186_v32 = vpop.f32.mrf.mxu1  ;;  %v5145_v20 = vpop.f32.mrf.mxu0  ;;  %v10808_v26 = vld [vmem:[#allocation4 + $0x40] ss:$0 sm:$0xff]  ;;  %v10820_v33 = vld [vmem:[#allocation4 + $0x41] ss:$0 sm:$0xff]  ;;  %v10826_v28 = vld [vmem:[#allocation4 + $0x45] ss:$0 sm:$0xff] }
 0x6d3   :  { %v5222_v41 = vadd.f32 %v5206_v44, %v5186_v32  ;;  %v5221_v59 = vadd.f32 %v5145_v20, %v10661_v5  ;;  %v5456_v62 = vld [vmem:[#allocation4 + $0x48] ss:$0 sm:$0xff]  ;;  %v5976_v27 = vld [vmem:[#allocation4 + $0x4c] ss:$0 sm:$0xff]  ;;  %v5545_v37 = vld [vmem:[#allocation4 + $0x49] ss:$0 sm:$0xff] }
 0x6d4   :  { %5579 = vrot.lane.b32.xlu2 %v5544_v51, %s7062_s2  ;;  %5490 = vrot.lane.b32.xlu1 %v5455_v38, %s7062_s2  ;;  %v10833_v52 = vld [vmem:[#allocation4 + $0x44] ss:$0 sm:$0xff] }
 0x6d5   :  { %5238 = vst.msk [vmem:[#allocation4 + $0x58] sm:$0xff] %vm4648_vm6, %v5222_v41  ;;  %5488 = vrot.lane.b32.xlu0 %v10793_v17, %s7062_s2 }
 0x6dc   :  { %6098 = vrot.lane.b32.xlu2 %v6063_v6, %s7062_s2  ;;  %5577 = vrot.lane.b32.xlu1 %v10798_v45, %s7062_s2  ;;  %v5399_v1 = vld [vmem:[#allocation4 + $0x58] sm:$0xff] }
 0x6dd   :  { %6008 = vrot.lane.b32.xlu0 %v10803_v46, %s7062_s2 }
 0x6de   :  { %v5568_v2 = vpop.permute.xlu2 %5567 }
 0x6e0   :  { %v5338_v47 = vpop.f32.mrf.mxu2  ;;  %v5379_v40 = vpop.f32.mrf.mxu3 }
 0x6e1   :  { %v5414_v61 = vadd.f32 %v5338_v47, %v5221_v59  ;;  %v5415_v23 = vadd.f32 %v5399_v1, %v5379_v40  ;;  %v6064_v40 = vld [vmem:[#allocation4 + $0x4d] ss:$0 sm:$0xff]  ;;  %v6318_v1 = vld [vmem:[#allocation4 + $0x2f] ss:$0 sm:$0xff] }
 0x6e2   :  { %v5189_v18 = vpop.f32.mrf.mxu1  ;;  %v5148_v54 = vpop.f32.mrf.mxu0 }
 0x6e3   :  { %5430 = vst [vmem:[#allocation4 + $0x50] sm:$0xff] %v5414_v61  ;;  %v5224_v53 = vadd.f32 %v5208_v8, %v5189_v18  ;;  %v5223_v34 = vadd.f32 %v5148_v54, %v10669_v3 }
 0x6e4   :  { %5431 = vst.msk [vmem:[#allocation4 + $0x58] sm:$0xff] %vm4648_vm6, %v5415_v23  ;;  %6010 = vrot.lane.b32.xlu1 %v5975_v29, %s7062_s2  ;;  %5492 = vrot.lane.b32.xlu2 %v10808_v26, %s7062_s2 }
 0x6e5   :  { %5240 = vst.msk [vmem:[#allocation4 + $0x68] sm:$0xff] %vm4648_vm6, %v5224_v53  ;;  %5494 = vrot.lane.b32.xlu0 %v5456_v62, %s7062_s2 }
 0x6e6   :  { %v5999_v5 = vpop.permute.xlu2 %5998 }
 0x6ea   :  { %v10835_v43 = vld [vmem:[#allocation4 + $0x51] ss:$0 sm:$0xff] }
 0x6eb   :  { %v5457_v14 = vld [vmem:[#allocation4 + $0x58] ss:$0 sm:$0xff]  ;;  %v5546_v3 = vld [vmem:[#allocation4 + $0x59] ss:$0 sm:$0xff] }
 0x6ec   :  { %6096 = vrot.lane.b32.xlu1 %v10816_v0, %s7062_s2  ;;  %6014 = vrot.lane.b32.xlu2 %v5976_v27, %s7062_s2  ;;  %v5401_v21 = vld [vmem:[#allocation4 + $0x68] sm:$0xff] }
 0x6ed   :  { %5581 = vrot.lane.b32.xlu0 %v10820_v33, %s7062_s2 }
 0x6ee   :  { %v6085_v36 = vpop.permute.xlu2 %6084 }
 0x6f4   :  { %5583 = vrot.lane.b32.xlu1 %v5545_v37, %s7062_s2  ;;  %5498 = vrot.lane.b32.xlu2 %v5457_v14, %s7062_s2 }
 0x6f5   :  { %6100 = vrot.lane.b32.xlu0 %v10826_v28, %s7062_s2  ;;  %v5477_v24 = vpop.permute.xlu0 %5476 }
 0x6f6   :  { %v5479_v30 = vpop.permute.xlu1 %5478  ;;  %v5481_v25 = vpop.permute.xlu2 %5480 }
 0x6f7   :  { %v5509_v42 = vsel %vm5508_vm7, %v5477_v24, %v5479_v30  ;;  %v10861_v24 = vld [vmem:[#allocation4 + $0x50] ss:$0 sm:$0xff] }
 0x6f8   :  { %v5341_v13 = vpop.f32.mrf.mxu2  ;;  %v5382_v19 = vpop.f32.mrf.mxu3  ;;  %v5525_v6 = vmax.f32 %v10703_v11, %v5509_v42 }
 0x6f9   :  { %v5416_v50 = vadd.f32 %v5341_v13, %v5223_v34  ;;  %v5417_v60 = vadd.f32 %v5401_v21, %v5382_v19  ;;  %v10877_v34 = vld [vmem:[%s11535_s3] ss:$0 sm:$0xff] }
 0x6fa   :  { %v5192_v12 = vpop.f32.mrf.mxu1  ;;  %v5151_v61 = vpop.f32.mrf.mxu0 }
 0x6fb   :  { %5432 = vst [vmem:[#allocation4 + $0x60] sm:$0xff] %v5416_v50  ;;  %v5226_v9 = vadd.f32 %v5210_v48, %v5192_v12  ;;  %v5225_v11 = vadd.f32 %v5151_v61, %v10681_v55 }
 0x6fc   :  { %5433 = vst.msk [vmem:[#allocation4 + $0x68] sm:$0xff] %vm4648_vm6, %v5417_v60  ;;  %6012 = vrot.lane.b32.xlu1 %v10833_v52, %s7062_s2  ;;  %5585 = vrot.lane.b32.xlu2 %v10835_v43, %s7062_s2 }
 0x6fd   :  { %5242 = vst.msk [vmem:[#allocation4 + $0x78] sm:$0xff] %vm4648_vm6, %v5226_v9  ;;  %5587 = vrot.lane.b32.xlu0 %v5546_v3, %s7062_s2  ;;  %v6087_v32 = vpop.permute.xlu0 %6086 }
 0x6fe   :  { %v5566_v44 = vpop.permute.xlu1 %5565  ;;  %v6003_v41 = vpop.permute.xlu2 %6002  ;;  %v6116_v51 = vsel %vm5508_vm7, %v6085_v36, %v6087_v32 }
 0x6ff   :  { %v5597_v38 = vsel %vm5508_vm7, %v5566_v44, %v5568_v2  ;;  %v6132_v8 = vmax.f32 %v10719_v31, %v6116_v51 }
 0x700   :  { %v5613_v20 = vmax.f32 %v10712_v39, %v5597_v38 }
 0x702   :  { %v5621_v59 = vmax.f32 %v5525_v6, %v5613_v20  ;;  %v10848_v47 = vld [vmem:[#allocation4 + $0x60] ss:$0 sm:$0xff]  ;;  %v10863_v30 = vld [vmem:[#allocation4 + $0x61] ss:$0 sm:$0xff]  ;;  %v10893_v6 = vld [vmem:[#allocation4 + $0x27] ss:$0 sm:$0xff] }
 0x703   :  { %v5547_v55 = vld [vmem:[#allocation4 + $0x69] ss:$0 sm:$0xff]  ;;  %v5458_v50 = vld [vmem:[#allocation4 + $0x68] ss:$0 sm:$0xff] }
 0x704   :  { %6102 = vrot.lane.b32.xlu1 %v6064_v40, %s7062_s2  ;;  %6350 = vrot.lane.b32.xlu2 %v6318_v1, %s7062_s2  ;;  %v5403_v36 = vld [vmem:[#allocation4 + $0x78] sm:$0xff]  ;;  %v5629_v12 = vadd.f32 %v10877_v34, %v5621_v59 }
 0x705   :  { %5500 = vrot.lane.b32.xlu0 %v10848_v47, %s7062_s2 }
 0x706   :  { %v5997_v23 = vpop.permute.xlu1 %5996  ;;  %v10854_v18 = vpop.permute.xlu2 %6344  ;;  %v5637_v44 = vmax.f32 %v5629_v12, 0.0 }
 0x707   :  { %v6028_v39 = vsel %vm5508_vm7, %v5997_v23, %v5999_v5  ;;  %v5483_v2 = vpop.permute.xlu0 %5482 }
 0x708   :  { %v6044_v53 = vmax.f32 %v10721_v35, %v6028_v39  ;;  %v5510_v29 = vsel %vm5508_vm7, %v5481_v25, %v5483_v2  ;;  %v5344_v62 = vpop.f32.mrf.mxu2  ;;  %v5385_v27 = vpop.f32.mrf.mxu3  ;;  %v5717_v2 = vld [vmem:[#allocation4 + $0x1a] ss:$0 sm:$0xff] }
 0x709   :  { %v5418_v37 = vadd.f32 %v5344_v62, %v5225_v11  ;;  %v5419_v14 = vadd.f32 %v5403_v36, %v5385_v27  ;;  %v5526_v42 = vmax.f32 %v10729_v22, %v5510_v29  ;;  %v10910_v62 = vld [vmem:[#allocation4 + $0x12] ss:$0 sm:$0xff] }
 0x70a   :  { %v6140_v54 = vmax.f32 %v6044_v53, %v6132_v8  ;;  %v10905_v8 = vld [vmem:[#allocation4 + $0x13] ss:$0 sm:$0xff] }
 0x70b   :  { %5434 = vst [vmem:[#allocation4 + $0x70] sm:$0xff] %v5418_v37 }
 0x70c   :  { %5435 = vst.msk [vmem:[#allocation4 + $0x78] sm:$0xff] %vm4648_vm6, %v5419_v14  ;;  %5496 = vrot.lane.b32.xlu1 %v10861_v24, %s7062_s2  ;;  %5589 = vrot.lane.b32.xlu2 %v10863_v30, %s7062_s2  ;;  %v6148_v53 = vadd.f32 %v10877_v34, %v6140_v54 }
 0x70d   :  { %5591 = vrot.lane.b32.xlu0 %v5547_v55, %s7062_s2 }
 0x70e   :  { %v5572_v31 = vpop.permute.xlu1 %5571  ;;  %v10871_v35 = vpop.permute.xlu2 %5486  ;;  %v6156_v14 = vmax.f32 %v6148_v53, 0.0 }
 0x70f   :  { %v5570_v5 = vpop.permute.xlu0 %5569 }
 0x710   :  { %v5598_v25 = vsel %vm5508_vm7, %v5570_v5, %v5572_v31 }
 0x711   :  { %v5614_v13 = vmax.f32 %v10732_v49, %v5598_v25 }
 0x712   :  { %v10881_v19 = vld [vmem:[#allocation4 + $0x70] ss:$0 sm:$0xff]  ;;  %v10895_v20 = vld [vmem:[#allocation4 + $0x71] ss:$0 sm:$0xff] }
 0x713   :  { %v5622_v21 = vmax.f32 %v5526_v42, %v5614_v13  ;;  %v5459_v60 = vld [vmem:[#allocation4 + $0x78] ss:$0 sm:$0xff]  ;;  %v5548_v59 = vld [vmem:[#allocation4 + $0x79] ss:$0 sm:$0xff]  ;;  %v10924_v13 = vld [vmem:[#allocation4 + $0x54] ss:$0 sm:$0xff] }
 0x714   :  { %5502 = vrot.lane.b32.xlu1 %v5458_v50, %s7062_s2  ;;  %5504 = vrot.lane.b32.xlu2 %v10881_v19, %s7062_s2  ;;  %v5805_v50 = vld [vmem:[#allocation4 + $0x1b] ss:$0 sm:$0xff] }
 0x715   :  { %v5630_v48 = vadd.f32 %v10877_v34, %v5622_v21  ;;  %5506 = vrot.lane.b32.xlu0 %v5459_v60, %s7062_s2  ;;  %v5977_v21 = vld [vmem:[#allocation4 + $0x5c] ss:$0 sm:$0xff] }
 0x716   :  { %v6001_v9 = vpop.permute.xlu1 %6000  ;;  %v5574_v22 = vpop.permute.xlu2 %5573 }
 0x717   :  { %v5638_v3 = vmax.f32 %v5630_v48, 0.0  ;;  %v6029_v49 = vsel %vm5508_vm7, %v6001_v9, %v6003_v41  ;;  %v6089_v32 = vpop.permute.xlu0 %6088 }
 0x718   :  { %v6045_v23 = vmax.f32 %v10739_v58, %v6029_v49  ;;  %v6065_v49 = vld [vmem:[#allocation4 + $0x5d] ss:$0 sm:$0xff] }
 0x719   :  { %v5663_v51 = vrot.slane %v5638_v3, 7 }
 0x71b   :  { %v10891_v38 = vsel %vm5664_vm8, %v5663_v51, %v5637_v44  ;;  %v10938_v44 = vld [vmem:[#allocation4 + $0x55] ss:$0 sm:$0xff] }
 0x71c   :  { %6348 = vrot.lane.b32.xlu1 %v10893_v6, %s7062_s2  ;;  %5593 = vrot.lane.b32.xlu2 %v10895_v20, %s7062_s2 }
 0x71d   :  { %5595 = vrot.lane.b32.xlu0 %v5548_v59, %s7062_s2 }
 0x71e   :  { %v6091_v41 = vpop.permute.xlu1 %6090  ;;  %v6007_v40 = vpop.permute.xlu2 %6006 }
 0x71f   :  { %v6117_v1 = vsel %vm5508_vm7, %v6089_v32, %v6091_v41  ;;  %v6257_v61 = vpop.permute.xlu0 %6256  ;;  %v10935_v32 = vld [vmem:[#allocation4 + $0x6] ss:$0 sm:$0xff] }
 0x720   :  { %v6133_v11 = vmax.f32 %v10744_v4, %v6117_v1 }
 0x722   :  { %v6141_v39 = vmax.f32 %v6045_v23, %v6133_v11  ;;  %v6231_v23 = vld [vmem:[#allocation4 + $0x3e] ss:$0 sm:$0xff]  ;;  %v6228_v11 = vld [vmem:[#allocation4 + $0xe] ss:$0 sm:$0xff] }
 0x724   :  { %v6149_v29 = vadd.f32 %v10877_v34, %v6141_v39  ;;  %5746 = vrot.lane.b32.xlu1 %v5717_v2, %s7062_s2  ;;  %5832 = vrot.lane.b32.xlu2 %v10905_v8, %s7062_s2 }
 0x725   :  { %5744 = vrot.lane.b32.xlu0 %v10910_v62, %s7062_s2 }
 0x726   :  { %v6157_v58 = vmax.f32 %v6149_v29, 0.0  ;;  %v6259_v4 = vpop.permute.xlu1 %6258  ;;  %v6261_v27 = vpop.permute.xlu2 %6260 }
 0x727   :  { %v6285_v36 = vsel %vm5508_vm7, %v6257_v61, %v6259_v4  ;;  %v6347_v37 = vpop.permute.xlu0 %6346  ;;  %v10950_v61 = vld [vmem:[#allocation4 + $0x36] ss:$0 sm:$0xff] }
 0x728   :  { %v6183_v54 = vrot.slane %v6157_v58, 7  ;;  %v6301_v55 = vmax.f32 %v10753_v57, %v6285_v36  ;;  %v6373_v31 = vsel %vm5508_vm7, %v10854_v18, %v6347_v37  ;;  %v6316_v36 = vld [vmem:[#allocation4 + $0xf] ss:$0 sm:$0xff]  ;;  %v10964_v37 = vld [vmem:[#allocation4 + $0x37] ss:$0 sm:$0xff] }
 0x729   :  { %v6389_v5 = vmax.f32 %v10750_v15, %v6373_v31 }
 0x72a   :  { %v6184_v25 = vsel %vm5664_vm8, %v6183_v54, %v6156_v14  ;;  %v10968_v54 = vld [vmem:[#allocation4 + $0x7] ss:$0 sm:$0xff] }
 0x72b   :  { %v10922_v42 = vmax.f32 %v6301_v55, %v6389_v5 }
 0x72c   :  { %6016 = vrot.lane.b32.xlu1 %v10924_v13, %s7062_s2  ;;  %6018 = vrot.lane.b32.xlu2 %v5977_v21, %s7062_s2 }
 0x72d   :  { %5834 = vrot.lane.b32.xlu0 %v5805_v50, %s7062_s2  ;;  %v10978_v50 = vld [vmem:[#allocation4 + $0x22] ss:$0 sm:$0xff] }
 0x72e   :  { %v5485_v57 = vpop.permute.xlu1 %5484  ;;  %v5580_v60 = vpop.permute.xlu2 %5579 }
 0x72f   :  { %v5511_v15 = vsel %vm5508_vm7, %v5485_v57, %v10871_v35  ;;  %v5576_v18 = vpop.permute.xlu0 %5575  ;;  %v5718_v57 = vld [vmem:[#allocation4 + $0x2a] ss:$0 sm:$0xff] }
 0x730   :  { %v5527_v12 = vmax.f32 %v10765_v56, %v5511_v15  ;;  %v5599_v48 = vsel %vm5508_vm7, %v5574_v22, %v5576_v18  ;;  %v6319_v15 = vld [vmem:[#allocation4 + $0x3f] ss:$0 sm:$0xff] }
 0x731   :  { %v5615_v9 = vmax.f32 %v10763_v63, %v5599_v48 }
 0x733   :  { %v5623_v3 = vmax.f32 %v5527_v12, %v5615_v9 }
 0x734   :  { %6106 = vrot.lane.b32.xlu1 %v6065_v49, %s7062_s2  ;;  %6252 = vrot.lane.b32.xlu2 %v10935_v32, %s7062_s2 }
 0x735   :  { %v5631_v35 = vadd.f32 %v10877_v34, %v5623_v3  ;;  %6104 = vrot.lane.b32.xlu0 %v10938_v44, %s7062_s2 }
 0x736   :  { %v6005_v56 = vpop.permute.xlu1 %6004  ;;  %v10945_v22 = vpop.permute.xlu2 %6098 }
 0x737   :  { %v5639_v63 = vmax.f32 %v5631_v35, 0.0  ;;  %v6030_v51 = vsel %vm5508_vm7, %v6005_v56, %v6007_v40  ;;  %v6093_v59 = vpop.permute.xlu0 %6092  ;;  %v5806_v35 = vld [vmem:[#allocation4 + $0x2b] ss:$0 sm:$0xff]  ;;  %v10989_v56 = vld [vmem:[#allocation4 + $0x64] ss:$0 sm:$0xff] }
 0x738   :  { %v6046_v29 = vmax.f32 %v10774_v10, %v6030_v51  ;;  %v10993_v51 = vld [vmem:[#allocation4 + $0x23] ss:$0 sm:$0xff] }
 0x739   :  { %v5666_v41 = vrot.slane %v5639_v63, 6 }
 0x73b   :  { %v5668_v1 = vsel %vm5667_vm9, %v5666_v41, %v10891_v38 }
 0x73c   :  { %6264 = vrot.lane.b32.xlu1 %v10950_v61, %s7062_s2  ;;  %6266 = vrot.lane.b32.xlu2 %v6231_v23, %s7062_s2 }
 0x73d   :  { %6254 = vrot.lane.b32.xlu0 %v6228_v11, %s7062_s2 }
 0x73e   :  { %v6095_v39 = vpop.permute.xlu1 %6094  ;;  %v10956_v2 = vpop.permute.xlu2 %5492 }
 0x73f   :  { %v6118_v40 = vsel %vm5508_vm7, %v6093_v59, %v6095_v39  ;;  %v6263_v53 = vpop.permute.xlu0 %6262  ;;  %v11007_v39 = vld [vmem:[#allocation4 + $0x65] ss:$0 sm:$0xff] }
 0x740   :  { %v6134_v38 = vmax.f32 %v10776_v7, %v6118_v40  ;;  %v10962_v58 = vsel %vm5508_vm7, %v6261_v27, %v6263_v53  ;;  %v6066_v40 = vld [vmem:[#allocation4 + $0x6d] ss:$0 sm:$0xff]  ;;  %v5978_v53 = vld [vmem:[#allocation4 + $0x6c] ss:$0 sm:$0xff] }
 0x742   :  { %v6142_v4 = vmax.f32 %v6046_v29, %v6134_v38 }
 0x744   :  { %v6150_v14 = vadd.f32 %v10877_v34, %v6142_v4  ;;  %6342 = vrot.lane.b32.xlu1 %v6316_v36, %s7062_s2  ;;  %6352 = vrot.lane.b32.xlu2 %v10964_v37, %s7062_s2 }
 0x745   :  { %6340 = vrot.lane.b32.xlu0 %v10968_v54, %s7062_s2 }
 0x746   :  { %v6158_v10 = vmax.f32 %v6150_v14, 0.0  ;;  %v5491_v7 = vpop.permute.xlu1 %5490  ;;  %v10974_v27 = vpop.permute.xlu2 %6014 }
 0x747   :  { %v5489_v55 = vpop.permute.xlu0 %5488 }
 0x748   :  { %v6185_v31 = vrot.slane %v6158_v10, 6  ;;  %v5512_v5 = vsel %vm5508_vm7, %v5489_v55, %v5491_v7  ;;  %v6232_v7 = vld [vmem:[#allocation4 + $0x4e] ss:$0 sm:$0xff]  ;;  %v11021_v55 = vld [vmem:[#allocation4 + $0x47] ss:$0 sm:$0xff] }
 0x749   :  { %v5528_v3 = vmax.f32 %v10793_v17, %v5512_v5  ;;  %v11025_v5 = vld [vmem:[#allocation4 + $0x46] ss:$0 sm:$0xff] }
 0x74a   :  { %v6186_v21 = vsel %vm5667_vm9, %v6185_v31, %v6184_v25 }
 0x74c   :  { %5748 = vrot.lane.b32.xlu1 %v10978_v50, %s7062_s2  ;;  %5750 = vrot.lane.b32.xlu2 %v5718_v57, %s7062_s2 }
 0x74d   :  { %6354 = vrot.lane.b32.xlu0 %v6319_v15, %s7062_s2 }
 0x74e   :  { %v5578_v18 = vpop.permute.xlu1 %5577  ;;  %v10984_v12 = vpop.permute.xlu2 %5498 }
 0x74f   :  { %v5600_v48 = vsel %vm5508_vm7, %v5578_v18, %v5580_v60  ;;  %v6009_v9 = vpop.permute.xlu0 %6008 }
 0x750   :  { %v5616_v25 = vmax.f32 %v10798_v45, %v5600_v48  ;;  %v11034_v48 = vld [vmem:[#allocation4 + $0x2] ss:$0 sm:$0xff] }
 0x752   :  { %v5624_v49 = vmax.f32 %v5528_v3, %v5616_v25  ;;  %v6320_v3 = vld [vmem:[#allocation4 + $0x4f] ss:$0 sm:$0xff] }
 0x754   :  { %v5632_v63 = vadd.f32 %v10877_v34, %v5624_v49  ;;  %5838 = vrot.lane.b32.xlu1 %v5806_v35, %s7062_s2  ;;  %6020 = vrot.lane.b32.xlu2 %v10989_v56, %s7062_s2 }
 0x755   :  { %5836 = vrot.lane.b32.xlu0 %v10993_v51, %s7062_s2 }
 0x756   :  { %v5640_v60 = vmax.f32 %v5632_v63, 0.0  ;;  %v6011_v17 = vpop.permute.xlu1 %6010  ;;  %v10999_v59 = vpop.permute.xlu2 %5585 }
 0x757   :  { %v6031_v45 = vsel %vm5508_vm7, %v6009_v9, %v6011_v17  ;;  %v11002_v41 = vpop.permute.xlu0 %5494  ;;  %v5716_v9 = vld [vmem:[#allocation4 + $0xa] ss:$0 sm:$0xff]  ;;  %v5652_v17 = vld [vmem:[%s11536_s4 + $0x38] sm:$0xff] }
 0x758   :  { %v5669_v23 = vrot.slane %v5640_v60, 5  ;;  %v5653_v60 = vld [vmem:[%s11536_s4 + $0x40] sm:$0xff] }
 0x75a   :  { %v11005_v11 = vsel %vm5670_vm10, %v5669_v23, %v5668_v1  ;;  %v6047_v1 = vmax.f32 %v10803_v46, %v6031_v45  ;;  %v5719_v45 = vld [vmem:[#allocation4 + $0x3a] ss:$0 sm:$0xff]  ;;  %v11053_v23 = vld [vmem:[#allocation4 + $0x3] ss:$0 sm:$0xff] }
 0x75c   :  { %6108 = vrot.lane.b32.xlu1 %v11007_v39, %s7062_s2  ;;  %6110 = vrot.lane.b32.xlu2 %v6066_v40, %s7062_s2  ;;  %v5651_v40 = vld [vmem:[%s11536_s4 + $0x30] sm:$0xff] }
 0x75d   :  { %6022 = vrot.lane.b32.xlu0 %v5978_v53, %s7062_s2 }
 0x75e   :  { %v6097_v29 = vpop.permute.xlu1 %6096  ;;  %v11013_v38 = vpop.permute.xlu2 %6350 }
 0x75f   :  { %v6119_v4 = vsel %vm5508_vm7, %v6097_v29, %v10945_v22  ;;  %v11017_v36 = vpop.permute.xlu0 %5581 }
 0x760   :  { %v6135_v14 = vmax.f32 %v10816_v0, %v6119_v4 }
 0x762   :  { %v6143_v10 = vmax.f32 %v6047_v1, %v6135_v14 }
 0x764   :  { %v6151_v31 = vadd.f32 %v10877_v34, %v6143_v10  ;;  %6270 = vrot.lane.b32.xlu1 %v6232_v7, %s7062_s2  ;;  %6356 = vrot.lane.b32.xlu2 %v11021_v55, %s7062_s2  ;;  %v5650_v7 = vld [vmem:[%s11536_s4 + $0x28] sm:$0xff] }
 0x765   :  { %6268 = vrot.lane.b32.xlu0 %v11025_v5, %s7062_s2 }
 0x766   :  { %v6159_v22 = vmax.f32 %v6151_v31, 0.0  ;;  %v5584_v46 = vpop.permute.xlu1 %5583  ;;  %v11031_v57 = vpop.permute.xlu2 %5589 }
 0x767   :  { %v6101_v0 = vpop.permute.xlu0 %6100 }
 0x768   :  { %v6187_v15 = vrot.slane %v6159_v22, 5  ;;  %v5649_v22 = vld [vmem:[%s11536_s4 + $0x20] sm:$0xff] }
 0x76a   :  { %v6188_v18 = vsel %vm5670_vm10, %v6187_v15, %v6186_v21  ;;  %v5654_v21 = vld [vmem:[%s11536_s4 + $0x48] sm:$0xff]  ;;  %v11076_v15 = vld [vmem:[#allocation4 + $0x33] ss:$0 sm:$0xff] }
 0x76b   :  { %5693 = vmatpush.msra.mxu1 %v5654_v21  ;;  %v5647_v21 = vld [vmem:[%s11536_s4 + $0x10] sm:$0xff] }
 0x76c   :  { %5740 = vrot.lane.b32.xlu1 %v11034_v48, %s7062_s2  ;;  %5742 = vrot.lane.b32.xlu2 %v5716_v9, %s7062_s2  ;;  %v5807_v9 = vld [vmem:[#allocation4 + $0x3b] ss:$0 sm:$0xff] }
 0x76d   :  { %6358 = vrot.lane.b32.xlu0 %v6320_v3, %s7062_s2  ;;  %5694 = vmatpush.msra.mxu1 %v5653_v60 }
 0x76e   :  { %v6013_v25 = vpop.permute.xlu1 %6012  ;;  %v11040_v49 = vpop.permute.xlu2 %5504 }
 0x76f   :  { %v6032_v35 = vsel %vm5508_vm7, %v6013_v25, %v10974_v27  ;;  %v5588_v63 = vpop.permute.xlu0 %5587  ;;  %v11056_v27 = vld [vmem:[#allocation4 + $0x32] ss:$0 sm:$0xff]  ;;  %5695 = vmatpush.msra.mxu1 %v5652_v17 }
 0x770   :  { %v6048_v14 = vmax.f32 %v10833_v52, %v6032_v35  ;;  %v5804_v52 = vld [vmem:[#allocation4 + $0xb] ss:$0 sm:$0xff] }
 0x771   :  { %5696 = vmatpush.msra.mxu1 %v5651_v40  ;;  %v5601_v40 = vsel %vm5508_vm7, %v11017_v36, %v5584_v46  ;;  %v5602_v46 = vsel %vm5508_vm7, %v10999_v59, %v5588_v63 }
 0x772   :  { %v5617_v36 = vmax.f32 %v10820_v33, %v5601_v40  ;;  %v5618_v63 = vmax.f32 %v10835_v43, %v5602_v46  ;;  %v6302_v40 = vmax.f32 %v10784_v16, %v10962_v58  ;;  %v11156_v16 = vld [vmem:[#allocation4 + $0x57] ss:$0 sm:$0xff] }
 0x773   :  { %5697 = vmatpush.msra.mxu1 %v5650_v7  ;;  %v5979_v7 = vld [vmem:[#allocation4 + $0x7c] ss:$0 sm:$0xff] }
 0x774   :  { %5754 = vrot.lane.b32.xlu1 %v5719_v45, %s7062_s2  ;;  %5828 = vrot.lane.b32.xlu2 %v11053_v23, %s7062_s2  ;;  %v5646_v45 = vld [vmem:[%s11536_s4 + $0x8] sm:$0xff] }
 0x775   :  { %5752 = vrot.lane.b32.xlu0 %v11056_v27, %s7062_s2  ;;  %5698 = vmatpush.msra.mxu1 %v5649_v22 }
 0x776   :  { %v6103_v53 = vpop.permute.xlu1 %6102  ;;  %v11065_v29 = vpop.permute.xlu2 %5593 }
 0x777   :  { %v6120_v4 = vsel %vm5508_vm7, %v6101_v0, %v6103_v53  ;;  %v5501_v1 = vpop.permute.xlu0 %5500 }
 0x778   :  { %v6136_v10 = vmax.f32 %v10826_v28, %v6120_v4  ;;  %v5648_v28 = vld [vmem:[%s11536_s4 + $0x18] sm:$0xff] }
 0x779   :  { %5699 = vmatpush.msra.mxu1 %v5648_v28 }
 0x77a   :  { %v6144_v31 = vmax.f32 %v6048_v14, %v6136_v10  ;;  %v5645_v14 = vld [vmem:[%s11536_s4] sm:$0xff]  ;;  %v5513_v10 = vsel %vm5508_vm7, %v10956_v2, %v11002_v41 }
 0x77b   :  { %5700 = vmatpush.msra.mxu1 %v5647_v21  ;;  %v5529_v33 = vmax.f32 %v10808_v26, %v5513_v10  ;;  %v6067_v21 = vld [vmem:[#allocation4 + $0x7d] ss:$0 sm:$0xff] }
 0x77c   :  { %v6152_v0 = vadd.f32 %v10877_v34, %v6144_v31  ;;  %5840 = vrot.lane.b32.xlu1 %v11076_v15, %s7062_s2  ;;  %5842 = vrot.lane.b32.xlu2 %v5807_v9, %s7062_s2  ;;  %v11107_v31 = vld [vmem:[#allocation4 + $0x75] ss:$0 sm:$0xff] }
 0x77d   :  { %5830 = vrot.lane.b32.xlu0 %v5804_v52, %s7062_s2  ;;  %5701 = vmatpush.msra.mxu1 %v5646_v45 }
 0x77e   :  { %v6160_v3 = vmax.f32 %v6152_v0, 0.0  ;;  %v5497_v25 = vpop.permute.xlu1 %5496  ;;  %v11086_v35 = vpop.permute.xlu2 %5832  ;;  %v5625_v0 = vmax.f32 %v5529_v33, %v5617_v36  ;;  %v11153_v33 = vld [vmem:[#allocation4 + $0x42] ss:$0 sm:$0xff] }
 0x77f   :  { %v5592_v60 = vpop.permute.xlu0 %5591  ;;  %v5514_v4 = vsel %vm5508_vm7, %v5497_v25, %v10984_v12  ;;  %v11113_v12 = vld [vmem:[#allocation4 + $0x74] ss:$0 sm:$0xff]  ;;  %5702 = vmatpush.msra.mxu1 %v5645_v14  ;;  %v6233_v25 = vld [vmem:[#allocation4 + $0x5e] ss:$0 sm:$0xff] }
 0x780   :  { %v6189_v17 = vrot.slane %v6160_v3, 4  ;;  %v5603_v2 = vsel %vm5508_vm7, %v11031_v57, %v5592_v60  ;;  %v11129_v3 = vld [vmem:[#allocation4 + $0x56] ss:$0 sm:$0xff]  ;;  %v5633_v26 = vadd.f32 %v10877_v34, %v5625_v0 }
 0x782   :  { %v11097_v53 = vsel %vm5673_vm11, %v6189_v17, %v6188_v18  ;;  %v5530_v18 = vmax.f32 %v10861_v24, %v5514_v4  ;;  %v5619_v24 = vmax.f32 %v10863_v30, %v5603_v2  ;;  %v5641_v4 = vmax.f32 %v5633_v26, 0.0  ;;  %v5720_v26 = vld [vmem:[#allocation4 + $0x4a] ss:$0 sm:$0xff] }
 0x784   :  { %6026 = vrot.lane.b32.xlu1 %v5979_v7, %s7062_s2  ;;  %6112 = vrot.lane.b32.xlu2 %v11107_v31, %s7062_s2  ;;  %v5626_v57 = vmax.f32 %v5530_v18, %v5618_v63 }
 0x785   :  { %6024 = vrot.lane.b32.xlu0 %v11113_v12, %s7062_s2 }
 0x786   :  { %v5503_v41 = vpop.permute.xlu1 %5502  ;;  %v11123_v59 = vpop.permute.xlu2 %6018  ;;  %v5634_v43 = vadd.f32 %v10877_v34, %v5626_v57 }
 0x787   :  { %v5515_v22 = vsel %vm5508_vm7, %v5501_v1, %v5503_v41  ;;  %v5507_v9 = vpop.permute.xlu0 %5506  ;;  %v5672_v41 = vrot.slane %v5641_v4, 4  ;;  %v6234_v4 = vld [vmem:[#allocation4 + $0x6e] ss:$0 sm:$0xff] }
 0x788   :  { %v5531_v52 = vmax.f32 %v10848_v47, %v5515_v22  ;;  %v5516_v47 = vsel %vm5508_vm7, %v11040_v49, %v5507_v9  ;;  %v5642_v7 = vmax.f32 %v5634_v43, 0.0 }
 0x789   :  { %v5532_v36 = vmax.f32 %v10881_v19, %v5516_v47  ;;  %v5674_v9 = vsel %vm5673_vm11, %v5672_v41, %v11005_v11  ;;  %v5808_v11 = vld [vmem:[#allocation4 + $0x4b] ss:$0 sm:$0xff] }
 0x78a   :  { %v5627_v28 = vmax.f32 %v5531_v52, %v5619_v24 }
 0x78c   :  { %6272 = vrot.lane.b32.xlu1 %v11129_v3, %s7062_s2  ;;  %6274 = vrot.lane.b32.xlu2 %v6233_v25, %s7062_s2  ;;  %v5635_v30 = vadd.f32 %v10877_v34, %v5627_v28  ;;  %v11169_v25 = vld [vmem:[#allocation4 + $0x43] ss:$0 sm:$0xff] }
 0x78d   :  { %6114 = vrot.lane.b32.xlu0 %v6067_v21, %s7062_s2 }
 0x78e   :  { %v6349_v1 = vpop.permute.xlu1 %6348  ;;  %v11140_v60 = vpop.permute.xlu2 %6252  ;;  %v5643_v46 = vmax.f32 %v5635_v30, 0.0 }
 0x78f   :  { %v6374_v17 = vsel %vm5508_vm7, %v6349_v1, %v11013_v38  ;;  %v5596_v45 = vpop.permute.xlu0 %5595  ;;  %v6321_v38 = vld [vmem:[#allocation4 + $0x5f] ss:$0 sm:$0xff] }
 0x790   :  { %v6390_v14 = vmax.f32 %v10893_v6, %v6374_v17  ;;  %v5604_v10 = vsel %vm5508_vm7, %v11065_v29, %v5596_v45  ;;  %v5675_v6 = vrot.slane %v5642_v7, 3 }
 0x791   :  { %v5620_v49 = vmax.f32 %v10895_v20, %v5604_v10  ;;  %v5678_v20 = vrot.slane %v5643_v46, 2  ;;  %v11189_v10 = vld [vmem:[#allocation4 + $0x67] ss:$0 sm:$0xff]  ;;  %v11198_v46 = vld [vmem:[#allocation4 + $0x52] ss:$0 sm:$0xff] }
 0x792   :  { %v11151_v18 = vmax.f32 %v6302_v40, %v6390_v14  ;;  %v5677_v24 = vsel %vm5676_vm12, %v5675_v6, %v5674_v9  ;;  %v11187_v14 = vld [vmem:[#allocation4 + $0x66] ss:$0 sm:$0xff]  ;;  %v5809_v9 = vld [vmem:[#allocation4 + $0x5b] ss:$0 sm:$0xff] }
 0x793   :  { %v5628_v2 = vmax.f32 %v5532_v36, %v5620_v49  ;;  %v5680_v57 = vsel %vm5679_vm13, %v5678_v20, %v5677_v24  ;;  %v11217_v24 = vld [vmem:[#allocation4 + $0x76] ss:$0 sm:$0xff] }
 0x794   :  { %6362 = vrot.lane.b32.xlu1 %v6321_v38, %s7062_s2  ;;  %5756 = vrot.lane.b32.xlu2 %v11153_v33, %s7062_s2  ;;  %v5721_v38 = vld [vmem:[#allocation4 + $0x5a] ss:$0 sm:$0xff] }
 0x795   :  { %v5636_v19 = vadd.f32 %v10877_v34, %v5628_v2  ;;  %6360 = vrot.lane.b32.xlu0 %v11156_v16, %s7062_s2  ;;  %v6322_v2 = vld [vmem:[#allocation4 + $0x6f] ss:$0 sm:$0xff] }
 0x796   :  { %v5747_v58 = vpop.permute.xlu1 %5746  ;;  %v6267_v29 = vpop.permute.xlu2 %6266 }
 0x797   :  { %v5644_v63 = vmax.f32 %v5636_v19, 0.0  ;;  %v5745_v22 = vpop.permute.xlu0 %5744 }
 0x798   :  { %v5773_v0 = vsel %vm5508_vm7, %v5745_v22, %v5747_v58 }
 0x799   :  { %v5681_v52 = vrot.slane %v5644_v63, 1  ;;  %v5789_v17 = vmax.f32 %v10910_v62, %v5773_v0  ;;  %v11215_v0 = vld [vmem:[#allocation4 + $0x53] ss:$0 sm:$0xff] }
 0x79b   :  { %v5683_v28 = vsel %vm5682_vm14, %v5681_v52, %v5680_v57  ;;  %v6406_v57 = vadd.f32 %v10877_v34, %v11151_v18 }
 0x79c   :  { %7004 = vmatmul.msk.f32.vlgmr.msra.gmra.mxu1 %vm5684_vm15, %v5683_v28  ;;  %5844 = vrot.lane.b32.xlu1 %v11169_v25, %s7062_s2 }
 0x79d   :  { %5758 = vrot.lane.b32.xlu0 %v5720_v26, %s7062_s2  ;;  %5846 = vrot.lane.b32.xlu2 %v5808_v11, %s7062_s2 }
 0x79e   :  { %v6017_v21 = vpop.permute.xlu1 %6016  ;;  %v11176_v43 = vpop.permute.xlu2 %6352 }
 0x79f   :  { %v6033_v30 = vsel %vm5508_vm7, %v6017_v21, %v11123_v59  ;;  %v5835_v47 = vpop.permute.xlu0 %5834 }
 0x7a0   :  { %v5861_v1 = vsel %vm5508_vm7, %v11086_v35, %v5835_v47  ;;  %v6049_v7 = vmax.f32 %v10924_v13, %v6033_v30  ;;  %v11232_v47 = vld [vmem:[#allocation4 + $0x77] ss:$0 sm:$0xff] }
 0x7a1   :  { %v5877_v45 = vmax.f32 %v10905_v8, %v5861_v1  ;;  %v6414_v1 = vmax.f32 %v6406_v57, 0.0  ;;  %v11260_v57 = vld [vmem:[#allocation4 + $0x72] ss:$0 sm:$0xff] }
 0x7a3   :  { %v11184_v40 = vmax.f32 %v5789_v17, %v5877_v45  ;;  %v6235_v17 = vld [vmem:[#allocation4 + $0x7e] ss:$0 sm:$0xff] }
 0x7a4   :  { %6278 = vrot.lane.b32.xlu1 %v6234_v4, %s7062_s2 }
 0x7a5   :  { %6276 = vrot.lane.b32.xlu0 %v11187_v14, %s7062_s2  ;;  %6364 = vrot.lane.b32.xlu2 %v11189_v10, %s7062_s2 }
 0x7a6   :  { %v6107_v35 = vpop.permute.xlu1 %6106  ;;  %v5751_v59 = vpop.permute.xlu2 %5750 }
 0x7a7   :  { %v6105_v62 = vpop.permute.xlu0 %6104 }
 0x7a8   :  { %v6121_v8 = vsel %vm5508_vm7, %v6105_v62, %v6107_v35  ;;  %v6441_v62 = vrot.slane %v6414_v1, 6 }
 0x7a9   :  { %v6137_v36 = vmax.f32 %v10938_v44, %v6121_v8 }
 0x7ab   :  { %v6145_v49 = vmax.f32 %v6049_v7, %v6137_v36 }
 0x7ac   :  { %5760 = vrot.lane.b32.xlu1 %v11198_v46, %s7062_s2 }
 0x7ad   :  { %v6153_v41 = vadd.f32 %v10877_v34, %v6145_v49  ;;  %6366 = vrot.lane.b32.xlu0 %v6322_v2, %s7062_s2  ;;  %5762 = vrot.lane.b32.xlu2 %v5721_v38, %s7062_s2 }
 0x7ae   :  { %v6265_v6 = vpop.permute.xlu1 %6264  ;;  %v11205_v19 = vpop.permute.xlu2 %6020 }
 0x7af   :  { %v6161_v13 = vmax.f32 %v6153_v41, 0.0  ;;  %v6287_v44 = vsel %vm5508_vm7, %v6265_v6, %v6267_v29  ;;  %v6255_v20 = vpop.permute.xlu0 %6254  ;;  %v5722_v6 = vld [vmem:[#allocation4 + $0x6a] ss:$0 sm:$0xff] }
 0x7b0   :  { %v6284_v58 = vsel %vm5508_vm7, %v11140_v60, %v6255_v20  ;;  %v6303_v36 = vmax.f32 %v10950_v61, %v6287_v44 }
 0x7b1   :  { %v6191_v63 = vrot.slane %v6161_v13, 3  ;;  %v6300_v26 = vmax.f32 %v10935_v32, %v6284_v58  ;;  %v11247_v13 = vld [vmem:[#allocation4 + $0x62] ss:$0 sm:$0xff] }
 0x7b3   :  { %v11212_v22 = vsel %vm5676_vm12, %v6191_v63, %v11097_v53  ;;  %v6405_v53 = vadd.f32 %v10877_v34, %v10922_v42  ;;  %v6323_v42 = vld [vmem:[#allocation4 + $0x7f] ss:$0 sm:$0xff] }
 0x7b4   :  { %5850 = vrot.lane.b32.xlu1 %v5809_v9, %s7062_s2 }
 0x7b5   :  { %5848 = vrot.lane.b32.xlu0 %v11215_v0, %s7062_s2  ;;  %6280 = vrot.lane.b32.xlu2 %v11217_v24, %s7062_s2  ;;  %v6413_v21 = vmax.f32 %v6405_v53, 0.0 }
 0x7b6   :  { %v6343_v29 = vpop.permute.xlu1 %6342  ;;  %v11223_v60 = vpop.permute.xlu2 %6110 }
 0x7b7   :  { %v6341_v52 = vpop.permute.xlu0 %6340  ;;  %v6439_v32 = vrot.slane %v6413_v21, 7  ;;  %v5811_v21 = vld [vmem:[#allocation4 + $0x7b] ss:$0 sm:$0xff] }
 0x7b8   :  { %v6372_v28 = vsel %vm5508_vm7, %v6341_v52, %v6343_v29 }
 0x7b9   :  { %v6388_v11 = vmax.f32 %v10968_v54, %v6372_v28  ;;  %v5810_v28 = vld [vmem:[#allocation4 + $0x6b] ss:$0 sm:$0xff] }
 0x7bb   :  { %v6396_v30 = vmax.f32 %v6300_v26, %v6388_v11  ;;  %v5723_v26 = vld [vmem:[#allocation4 + $0x7a] ss:$0 sm:$0xff] }
 0x7bc   :  { %6368 = vrot.lane.b32.xlu1 %v11232_v47, %s7062_s2 }
 0x7bd   :  { %v6404_v45 = vadd.f32 %v10877_v34, %v6396_v30  ;;  %6282 = vrot.lane.b32.xlu0 %v6235_v17, %s7062_s2  ;;  %6370 = vrot.lane.b32.xlu2 %v6323_v42, %s7062_s2 }
 0x7be   :  { %v5749_v18 = vpop.permute.xlu1 %5748  ;;  %v6357_v8 = vpop.permute.xlu2 %6356 }
 0x7bf   :  { %v6412_v4 = vmax.f32 %v6404_v45, 0.0  ;;  %v5774_v54 = vsel %vm5508_vm7, %v5749_v18, %v5751_v59  ;;  %v6355_v35 = vpop.permute.xlu0 %6354  ;;  %v11249_v59 = vld [vmem:[#allocation4 + $0x63] ss:$0 sm:$0xff]  ;;  %v7025_v45 = vld [vmem:[%s11536_s4 + $0xe8] sm:$0xff] }
 0x7c0   :  { %v6375_v7 = vsel %vm5508_vm7, %v11176_v43, %v6355_v35  ;;  %v5790_v58 = vmax.f32 %v10978_v50, %v5774_v54  ;;  %v7024_v18 = vld [vmem:[%s11536_s4 + $0xe0] sm:$0xff]  ;;  %6205 = vmatpush.msra.mxu2 %v7025_v45  ;;  %v7022_v35 = vld [vmem:[%s11536_s4 + $0xd0] sm:$0xff] }
 0x7c1   :  { %v6440_v49 = vsel %vm5664_vm8, %v6439_v32, %v6412_v4  ;;  %v6391_v2 = vmax.f32 %v10964_v37, %v6375_v7  ;;  %v7023_v32 = vld [vmem:[%s11536_s4 + $0xd8] sm:$0xff] }
 0x7c2   :  { %v6442_v38 = vsel %vm5667_vm9, %v6441_v62, %v6440_v49  ;;  %6206 = vmatpush.msra.mxu2 %v7024_v18 }
 0x7c3   :  { %v6399_v41 = vmax.f32 %v6303_v36, %v6391_v2 }
 0x7c4   :  { %5766 = vrot.lane.b32.xlu1 %v5722_v6, %s7062_s2  ;;  %6207 = vmatpush.msra.mxu2 %v7023_v32 }
 0x7c5   :  { %v6407_v20 = vadd.f32 %v10877_v34, %v6399_v41  ;;  %5764 = vrot.lane.b32.xlu0 %v11247_v13, %s7062_s2  ;;  %5852 = vrot.lane.b32.xlu2 %v11249_v59, %s7062_s2 }
 0x7c6   :  { %v5839_v61 = vpop.permute.xlu1 %5838  ;;  %v5743_v29 = vpop.permute.xlu2 %5742  ;;  %6208 = vmatpush.msra.mxu2 %v7022_v35 }
 0x7c7   :  { %v6415_v37 = vmax.f32 %v6407_v20, 0.0  ;;  %v5837_v43 = vpop.permute.xlu0 %5836 }
 0x7c8   :  { %v5862_v44 = vsel %vm5508_vm7, %v5837_v43, %v5839_v61 }
 0x7c9   :  { %v6443_v63 = vrot.slane %v6415_v37, 5  ;;  %v5878_v9 = vmax.f32 %v10993_v51, %v5862_v44  ;;  %v11266_v51 = vld [vmem:[#allocation4 + $0x73] ss:$0 sm:$0xff] }
 0x7cb   :  { %v6444_v53 = vsel %vm5670_vm10, %v6443_v63, %v6442_v38  ;;  %v5886_v52 = vmax.f32 %v5790_v58, %v5878_v9  ;;  %v7021_v58 = vld [vmem:[%s11536_s4 + $0xc8] sm:$0xff]  ;;  %v7018_v63 = vld [vmem:[%s11536_s4 + $0xb0] sm:$0xff] }
 0x7cc   :  { %5768 = vrot.lane.b32.xlu1 %v11260_v57, %s7062_s2  ;;  %6209 = vmatpush.msra.mxu2 %v7021_v58 }
 0x7cd   :  { %5854 = vrot.lane.b32.xlu0 %v5810_v28, %s7062_s2  ;;  %5770 = vrot.lane.b32.xlu2 %v5723_v26, %s7062_s2 }
 0x7ce   :  { %v6109_v11 = vpop.permute.xlu1 %6108  ;;  %v5829_v30 = vpop.permute.xlu2 %5828 }
 0x7cf   :  { %v6023_v50 = vpop.permute.xlu0 %6022 }
 0x7d4   :  { %5858 = vrot.lane.b32.xlu1 %v5811_v21, %s7062_s2 }
 0x7d5   :  { %5856 = vrot.lane.b32.xlu0 %v11266_v51, %s7062_s2 }
 0x7d6   :  { %v6271_v1 = vpop.permute.xlu1 %6270  ;;  %v5843_v4 = vpop.permute.xlu2 %5842 }
 0x7d7   :  { %v6269_v17 = vpop.permute.xlu0 %6268 }
 0x7d8   :  { %v6288_v42 = vsel %vm5508_vm7, %v6269_v17, %v6271_v1 }
 0x7d9   :  { %v6304_v49 = vmax.f32 %v11025_v5, %v6288_v42  ;;  %v7020_v5 = vld [vmem:[%s11536_s4 + $0xc0] sm:$0xff] }
 0x7da   :  { %6210 = vmatpush.msra.mxu2 %v7020_v5 }
 0x7de   :  { %v5741_v54 = vpop.permute.xlu1 %5740  ;;  %v6113_v37 = vpop.permute.xlu2 %6112 }
 0x7df   :  { %v5772_v62 = vsel %vm5508_vm7, %v5741_v54, %v5743_v29  ;;  %v6359_v7 = vpop.permute.xlu0 %6358  ;;  %v5893_v29 = vadd.f32 %v10877_v34, %v11184_v40  ;;  %v7017_v40 = vld [vmem:[%s11536_s4 + $0xa8] sm:$0xff] }
 0x7e0   :  { %v6376_v36 = vsel %vm5508_vm7, %v6357_v8, %v6359_v7  ;;  %v7019_v8 = vld [vmem:[%s11536_s4 + $0xb8] sm:$0xff]  ;;  %v5788_v42 = vmax.f32 %v11034_v48, %v5772_v62  ;;  %v7016_v48 = vld [vmem:[%s11536_s4 + $0xa0] sm:$0xff] }
 0x7e1   :  { %v6392_v2 = vmax.f32 %v11021_v55, %v6376_v36  ;;  %6211 = vmatpush.msra.mxu2 %v7019_v8 }
 0x7e3   :  { %v6400_v38 = vmax.f32 %v6304_v49, %v6392_v2  ;;  %6212 = vmatpush.msra.mxu2 %v7018_v63 }
 0x7e5   :  { %v6408_v41 = vadd.f32 %v10877_v34, %v6400_v38  ;;  %6213 = vmatpush.msra.mxu2 %v7017_v40 }
 0x7e6   :  { %v5755_v6 = vpop.permute.xlu1 %5754  ;;  %v11314_v18 = vpop.permute.xlu2 %6274 }
 0x7e7   :  { %v6416_v20 = vmax.f32 %v6408_v41, 0.0  ;;  %v5753_v61 = vpop.permute.xlu0 %5752  ;;  %6214 = vmatpush.msra.mxu2 %v7016_v48 }
 0x7e8   :  { %v5775_v43 = vsel %vm5508_vm7, %v5753_v61, %v5755_v6  ;;  %v7034_v61 = vld [vmem:[%s11536_s4 + $0x128] sm:$0xff] }
 0x7e9   :  { %v6445_v44 = vrot.slane %v6416_v20, 4  ;;  %v5791_v21 = vmax.f32 %v11056_v27, %v5775_v43  ;;  %v6122_v27 = vsel %vm5508_vm7, %v6109_v11, %v11223_v60 }
 0x7ea   :  { %v6138_v35 = vmax.f32 %v11007_v39, %v6122_v27  ;;  %v7036_v39 = vld [vmem:[%s11536_s4 + $0x138] sm:$0xff] }
 0x7eb   :  { %v11297_v55 = vsel %vm5673_vm11, %v6445_v44, %v6444_v53  ;;  %v5894_v53 = vadd.f32 %v10877_v34, %v5886_v52  ;;  %6461 = vmatpush.msra.mxu3 %v7036_v39 }
 0x7ee   :  { %v5841_v9 = vpop.permute.xlu1 %5840  ;;  %v11341_v20 = vpop.permute.xlu2 %5756 }
 0x7ef   :  { %v5863_v28 = vsel %vm5508_vm7, %v5841_v9, %v5843_v4  ;;  %v5831_v26 = vpop.permute.xlu0 %5830  ;;  %v5901_v4 = vmax.f32 %v5893_v29, 0.0 }
 0x7f0   :  { %v5879_v1 = vmax.f32 %v11076_v15, %v5863_v28  ;;  %v5860_v17 = vsel %vm5508_vm7, %v5829_v30, %v5831_v26  ;;  %v6034_v15 = vsel %vm5508_vm7, %v11205_v19, %v6023_v50 }
 0x7f1   :  { %v5876_v45 = vmax.f32 %v11053_v23, %v5860_v17  ;;  %v5902_v23 = vmax.f32 %v5894_v53, 0.0  ;;  %v6050_v62 = vmax.f32 %v10989_v56, %v6034_v15  ;;  %v5927_v7 = vrot.slane %v5901_v4, 7  ;;  %v7035_v56 = vld [vmem:[%s11536_s4 + $0x130] sm:$0xff]  ;;  %v7032_v4 = vld [vmem:[%s11536_s4 + $0x118] sm:$0xff] }
 0x7f2   :  { %v5887_v32 = vmax.f32 %v5791_v21, %v5879_v1  ;;  %6462 = vmatpush.msra.mxu3 %v7035_v56 }
 0x7f3   :  { %v5884_v52 = vmax.f32 %v5788_v42, %v5876_v45  ;;  %v5929_v36 = vrot.slane %v5902_v23, 6  ;;  %v6146_v38 = vmax.f32 %v6050_v62, %v6138_v35  ;;  %v7029_v23 = vld [vmem:[%s11536_s4 + $0x100] sm:$0xff]  ;;  %v7027_v62 = vld [vmem:[%s11536_s4 + $0xf0] sm:$0xff] }
 0x7f4   :  { %v5895_v30 = vadd.f32 %v10877_v34, %v5887_v32  ;;  %6463 = vmatpush.msra.mxu3 %v7034_v61  ;;  %v7014_v61 = vld [vmem:[%s11536_s4 + $0x98] sm:$0xff] }
 0x7f5   :  { %v5892_v54 = vadd.f32 %v10877_v34, %v5884_v52  ;;  %v6154_v43 = vadd.f32 %v10877_v34, %v6146_v38  ;;  %v7030_v52 = vld [vmem:[%s11536_s4 + $0x108] sm:$0xff]  ;;  %5949 = vmatpush.msrb.mxu1 %v7014_v61 }
 0x7f6   :  { %v5903_v60 = vmax.f32 %v5895_v30, 0.0  ;;  %v6027_v11 = vpop.permute.xlu1 %6026  ;;  %v7028_v30 = vld [vmem:[%s11536_s4 + $0xf8] sm:$0xff] }
 0x7f7   :  { %v5900_v19 = vmax.f32 %v5892_v54, 0.0  ;;  %v6025_v50 = vpop.permute.xlu0 %6024  ;;  %v6162_v29 = vmax.f32 %v6154_v43, 0.0  ;;  %v11352_v21 = vpop.permute.xlu2 %5846  ;;  %v7011_v43 = vld [vmem:[%s11536_s4 + $0x80] sm:$0xff] }
 0x7f8   :  { %v5931_v49 = vrot.slane %v5903_v60, 5  ;;  %v6035_v44 = vsel %vm5508_vm7, %v6025_v50, %v6027_v11 }
 0x7f9   :  { %v5928_v2 = vsel %vm5664_vm8, %v5927_v7, %v5900_v19  ;;  %v6051_v63 = vmax.f32 %v11113_v12, %v6035_v44  ;;  %v6193_v53 = vrot.slane %v6162_v29, 2 }
 0x7fa   :  { %v5930_v41 = vsel %vm5667_vm9, %v5929_v36, %v5928_v2 }
 0x7fb   :  { %v11333_v6 = vsel %vm5670_vm10, %v5931_v49, %v5930_v41  ;;  %v6194_v12 = vsel %vm5679_vm13, %v6193_v53, %v11212_v22  ;;  %v7031_v22 = vld [vmem:[%s11536_s4 + $0x110] sm:$0xff]  ;;  %v7010_v53 = vld [vmem:[%s11536_s4 + $0x78] sm:$0xff] }
 0x7fe   :  { %v6273_v58 = vpop.permute.xlu1 %6272 }
 0x7ff   :  { %v6115_v5 = vpop.permute.xlu0 %6114  ;;  %v6365_v40 = vpop.permute.xlu2 %6364  ;;  %v6289_v7 = vsel %vm5508_vm7, %v6273_v58, %v11314_v18  ;;  %v7013_v18 = vld [vmem:[%s11536_s4 + $0x90] sm:$0xff] }
 0x800   :  { %v6123_v8 = vsel %vm5508_vm7, %v6113_v37, %v6115_v5  ;;  %v7033_v37 = vld [vmem:[%s11536_s4 + $0x120] sm:$0xff]  ;;  %v6305_v38 = vmax.f32 %v11129_v3, %v6289_v7  ;;  %5950 = vmatpush.msrb.mxu1 %v7013_v18 }
 0x801   :  { %v6139_v9 = vmax.f32 %v11107_v31, %v6123_v8  ;;  %6464 = vmatpush.msra.mxu3 %v7033_v37  ;;  %v11408_v3 = vld [vmem:[%s11535_s3] ss:$0 sm:$0xff] }
 0x803   :  { %v6147_v28 = vmax.f32 %v6051_v63, %v6139_v9  ;;  %6465 = vmatpush.msra.mxu3 %v7032_v4 }
 0x805   :  { %v6155_v26 = vadd.f32 %v10877_v34, %v6147_v28  ;;  %6466 = vmatpush.msra.mxu3 %v7031_v22 }
 0x806   :  { %v6363_v1 = vpop.permute.xlu1 %6362 }
 0x807   :  { %v6163_v17 = vmax.f32 %v6155_v26, 0.0  ;;  %v6361_v42 = vpop.permute.xlu0 %6360  ;;  %v11374_v48 = vpop.permute.xlu2 %5762  ;;  %6467 = vmatpush.msra.mxu3 %v7030_v52 }
 0x808   :  { %v6377_v60 = vsel %vm5508_vm7, %v6361_v42, %v6363_v1  ;;  %v7009_v1 = vld [vmem:[%s11536_s4 + $0x70] sm:$0xff] }
 0x809   :  { %v6195_v45 = vrot.slane %v6163_v17, 1  ;;  %6468 = vmatpush.msra.mxu3 %v7029_v23  ;;  %v6393_v50 = vmax.f32 %v11156_v16, %v6377_v60 }
 0x80b   :  { %v6196_v31 = vsel %vm5682_vm14, %v6195_v45, %v6194_v12  ;;  %6469 = vmatpush.msra.mxu3 %v7028_v30  ;;  %v6401_v56 = vmax.f32 %v6305_v38, %v6393_v50  ;;  %v7005_v30 = vld [vmem:[%s11536_s4 + $0x50] sm:$0xff] }
 0x80c   :  { %7026 = vmatmul.msk.f32.vlgmr.msra.gmra.mxu2 %vm5684_vm15, %v6196_v31 }
 0x80d   :  { %6470 = vmatpush.msra.mxu3 %v7027_v62 }
 0x80e   :  { %v11361_v34 = vpop.permute.xlu1 %5844 }
 0x80f   :  { %v11363_v32 = vpop.permute.xlu0 %5758  ;;  %v6281_v19 = vpop.permute.xlu2 %6280  ;;  %v5864_v22 = vsel %vm5508_vm7, %v11361_v34, %v11352_v21 }
 0x810   :  { %v5776_v52 = vsel %vm5508_vm7, %v11341_v20, %v11363_v32 }
 0x811   :  { %v5792_v21 = vmax.f32 %v11153_v33, %v5776_v52 }
 0x816   :  { %v6279_v27 = vpop.permute.xlu1 %6278 }
 0x817   :  { %v6277_v15 = vpop.permute.xlu0 %6276  ;;  %v6371_v44 = vpop.permute.xlu2 %6370 }
 0x818   :  { %v6290_v36 = vsel %vm5508_vm7, %v6277_v15, %v6279_v27  ;;  %v7006_v27 = vld [vmem:[%s11536_s4 + $0x58] sm:$0xff] }
 0x819   :  { %v6306_v39 = vmax.f32 %v11187_v14, %v6290_v36  ;;  %v6409_v14 = vadd.f32 %v11408_v3, %v6401_v56 }
 0x81b   :  { %v6417_v28 = vmax.f32 %v6409_v14, 0.0 }
 0x81d   :  { %v6447_v45 = vrot.slane %v6417_v28, 3 }
 0x81e   :  { %v11382_v54 = vpop.permute.xlu1 %5760 }
 0x81f   :  { %v6367_v35 = vpop.permute.xlu0 %6366  ;;  %v6448_v15 = vsel %vm5676_vm12, %v6447_v45, %v11297_v55  ;;  %v5853_v60 = vpop.permute.xlu2 %5852  ;;  %v5777_v20 = vsel %vm5508_vm7, %v11382_v54, %v11374_v48  ;;  %v6483_v45 = vld [vmem:[%s11539_s6 + $0x30] sm:$0xff] }
 0x820   :  { %v6378_v11 = vsel %vm5508_vm7, %v6365_v40, %v6367_v35 }
 0x821   :  { %v6394_v49 = vmax.f32 %v11189_v10, %v6378_v11  ;;  %v7012_v10 = vld [vmem:[%s11536_s4 + $0x88] sm:$0xff]  ;;  %v5880_v11 = vmax.f32 %v11169_v25, %v5864_v22 }
 0x822   :  { %5951 = vmatpush.msrb.mxu1 %v7012_v10 }
 0x823   :  { %v6402_v16 = vmax.f32 %v6306_v39, %v6394_v49  ;;  %v5888_v36 = vmax.f32 %v5792_v21, %v5880_v11  ;;  %v7046_v11 = vld [vmem:[%s11538_s7] ss:$0 sm:$0xff] }
 0x824   :  { %5952 = vmatpush.msrb.mxu1 %v7011_v43 }
 0x825   :  { %v6410_v58 = vadd.f32 %v11408_v3, %v6402_v16  ;;  %v5896_v54 = vadd.f32 %v11408_v3, %v5888_v36 }
 0x826   :  { %v5851_v2 = vpop.permute.xlu1 %5850  ;;  %5953 = vmatpush.msrb.mxu1 %v7010_v53  ;;  %v6488_v53 = vld [vmem:[%s11539_s6 + $0x58] sm:$0xff] }
 0x827   :  { %v5849_v41 = vpop.permute.xlu0 %5848  ;;  %v6418_v17 = vmax.f32 %v6410_v58, 0.0  ;;  %v5771_v38 = vpop.permute.xlu2 %5770  ;;  %v5904_v61 = vmax.f32 %v5896_v54, 0.0 }
 0x828   :  { %5954 = vmatpush.msrb.mxu1 %v7009_v1  ;;  %v5865_v35 = vsel %vm5508_vm7, %v5849_v41, %v5851_v2  ;;  %v6487_v1 = vld [vmem:[%s11539_s6 + $0x50] sm:$0xff] }
 0x829   :  { %v6449_v12 = vrot.slane %v6418_v17, 2  ;;  %v5881_v34 = vmax.f32 %v11215_v0, %v5865_v35  ;;  %v5933_v43 = vrot.slane %v5904_v61, 4  ;;  %v6486_v17 = vld [vmem:[%s11539_s6 + $0x48] sm:$0xff] }
 0x82b   :  { %v6450_v62 = vsel %vm5679_vm13, %v6449_v12, %v6448_v15  ;;  %v6480_v12 = vld [vmem:[%s11539_s6 + $0x18] sm:$0xff]  ;;  %v7045_v15 = vld [vmem:[%s11537_s5] ss:$0 sm:$0xff] }
 0x82e   :  { %v6369_v5 = vpop.permute.xlu1 %6368 }
 0x82f   :  { %v6379_v8 = vsel %vm5508_vm7, %v6369_v5, %v6371_v44  ;;  %v6283_v63 = vpop.permute.xlu0 %6282 }
 0x830   :  { %v6395_v9 = vmax.f32 %v11232_v47, %v6379_v8  ;;  %v6291_v29 = vsel %vm5508_vm7, %v6281_v19, %v6283_v63  ;;  %v7008_v47 = vld [vmem:[%s11536_s4 + $0x68] sm:$0xff]  ;;  %v5793_v19 = vmax.f32 %v11198_v46, %v5777_v20  ;;  %v5934_v63 = vsel %vm5673_vm11, %v5933_v43, %v11333_v6 }
 0x831   :  { %v6307_v26 = vmax.f32 %v11217_v24, %v6291_v29  ;;  %v7007_v24 = vld [vmem:[%s11536_s4 + $0x60] sm:$0xff]  ;;  %5955 = vmatpush.msrb.mxu1 %v7008_v47  ;;  %v6490_v6 = vld [vmem:[%s11539_s6 + $0x68] sm:$0xff]  ;;  %v6484_v47 = vld [vmem:[%s11539_s6 + $0x38] sm:$0xff] }
 0x832   :  { %v5889_v49 = vmax.f32 %v5793_v19, %v5881_v34 }
 0x833   :  { %v6403_v42 = vmax.f32 %v6307_v26, %v6395_v9  ;;  %5956 = vmatpush.msrb.mxu1 %v7007_v24  ;;  %v6489_v26 = vld [vmem:[%s11539_s6 + $0x60] sm:$0xff] }
 0x834   :  { %v5897_v0 = vadd.f32 %v11408_v3, %v5889_v49  ;;  %v6481_v24 = vld [vmem:[%s11539_s6 + $0x20] sm:$0xff] }
 0x835   :  { %v6411_v37 = vadd.f32 %v11408_v3, %v6403_v42  ;;  %5957 = vmatpush.msrb.mxu1 %v7006_v27  ;;  %v6485_v42 = vld [vmem:[%s11539_s6 + $0x40] sm:$0xff]  ;;  %v5704_v27 = vpop.f32.mrf.mxu1 }
 0x836   :  { %v5767_v31 = vpop.permute.xlu1 %5766  ;;  %v5905_v16 = vmax.f32 %v5897_v0, 0.0  ;;  %v5707_v22 = vadd.f32 %v7045_v15, %v5704_v27 }
 0x837   :  { %v6419_v40 = vmax.f32 %v6411_v37, 0.0  ;;  %v5765_v4 = vpop.permute.xlu0 %5764  ;;  %5958 = vmatpush.msrb.mxu1 %v7005_v30  ;;  %v6482_v37 = vld [vmem:[%s11539_s6 + $0x28] sm:$0xff] }
 0x838   :  { %v5778_v32 = vsel %vm5508_vm7, %v5765_v4, %v5767_v31  ;;  %v5935_v44 = vrot.slane %v5905_v16, 3  ;;  %v6479_v31 = vld [vmem:[%s11539_s6 + $0x10] sm:$0xff]  ;;  %v6477_v4 = vld [vmem:[%s11539_s6] sm:$0xff] }
 0x839   :  { %v6451_v23 = vrot.slane %v6419_v40, 1  ;;  %v5794_v33 = vmax.f32 %v11247_v13, %v5778_v32  ;;  %v6478_v40 = vld [vmem:[%s11539_s6 + $0x8] sm:$0xff] }
 0x83a   :  { %v5936_v9 = vsel %vm5676_vm12, %v5935_v44, %v5934_v63 }
 0x83b   :  { %v6452_v55 = vsel %vm5682_vm14, %v6451_v23, %v6450_v62 }
 0x83c   :  { %7037 = vmatmul.msk.f32.vlgmr.msra.gmra.mxu3 %vm5684_vm15, %v6452_v55 }
 0x83e   :  { %v5769_v7 = vpop.permute.xlu1 %5768 }
 0x83f   :  { %v5855_v50 = vpop.permute.xlu0 %5854  ;;  %v5779_v41 = vsel %vm5508_vm7, %v5769_v7, %v5771_v38 }
 0x840   :  { %v5866_v25 = vsel %vm5508_vm7, %v5853_v60, %v5855_v50  ;;  %v5795_v13 = vmax.f32 %v11260_v57, %v5779_v41 }
 0x841   :  { %v5882_v2 = vmax.f32 %v11249_v59, %v5866_v25 }
 0x843   :  { %v5890_v48 = vmax.f32 %v5794_v33, %v5882_v2 }
 0x845   :  { %v5898_v39 = vadd.f32 %v11408_v3, %v5890_v48 }
 0x846   :  { %v5859_v46 = vpop.permute.xlu1 %5858 }
 0x847   :  { %v5857_v56 = vpop.permute.xlu0 %5856  ;;  %v5906_v10 = vmax.f32 %v5898_v39, 0.0 }
 0x848   :  { %v5867_v18 = vsel %vm5508_vm7, %v5857_v56, %v5859_v46 }
 0x849   :  { %v5883_v59 = vmax.f32 %v11266_v51, %v5867_v18  ;;  %v5937_v5 = vrot.slane %v5906_v10, 2  ;;  %v6492_v51 = vld [vmem:[%s11539_s6 + $0x78] sm:$0xff] }
 0x84a   :  { %6497 = vmatpush.msrb.mxu0 %v6492_v51 }
 0x84b   :  { %v5891_v14 = vmax.f32 %v5795_v13, %v5883_v59  ;;  %v5938_v28 = vsel %vm5679_vm13, %v5937_v5, %v5936_v9 }
 0x84d   :  { %v5899_v58 = vadd.f32 %v11408_v3, %v5891_v14  ;;  %v6491_v3 = vld [vmem:[%s11539_s6 + $0x70] sm:$0xff] }
 0x84e   :  { %6498 = vmatpush.msrb.mxu0 %v6491_v3 }
 0x84f   :  { %v5907_v8 = vmax.f32 %v5899_v58, 0.0 }
 0x850   :  { %6499 = vmatpush.msrb.mxu0 %v6490_v6 }
 0x851   :  { %v5939_v29 = vrot.slane %v5907_v8, 1 }
 0x852   :  { %6500 = vmatpush.msrb.mxu0 %v6489_v26 }
 0x853   :  { %v5940_v57 = vsel %vm5682_vm14, %v5939_v29, %v5938_v28 }
 0x854   :  { %7015 = vmatmul.msk.f32.vlgmr.msrb.gmra.mxu1 %vm5684_vm15, %v5940_v57  ;;  %6501 = vmatpush.msrb.mxu0 %v6488_v53 }
 0x856   :  { %6502 = vmatpush.msrb.mxu0 %v6487_v1 }
 0x858   :  { %6503 = vmatpush.msrb.mxu0 %v6486_v17 }
 0x85a   :  { %6504 = vmatpush.msrb.mxu0 %v6485_v42 }
 0x85c   :  { %6505 = vmatpush.msrb.mxu0 %v6484_v47 }
 0x85e   :  { %6506 = vmatpush.msrb.mxu0 %v6483_v45 }
 0x860   :  { %6507 = vmatpush.msrb.mxu0 %v6482_v37 }
 0x862   :  { %6508 = vmatpush.msrb.mxu0 %v6481_v24 }
 0x864   :  { %6509 = vmatpush.msrb.mxu0 %v6480_v12 }
 0x866   :  { %6510 = vmatpush.msrb.mxu0 %v6479_v31 }
 0x868   :  { %6511 = vmatpush.msrb.mxu0 %v6478_v40 }
 0x86a   :  { %6512 = vmatpush.msrb.mxu0 %v6477_v4 }
 0x88f   :  { %v6216_v30 = vpop.f32.mrf.mxu2 }
 0x8bf   :  { %v6472_v62 = vpop.f32.mrf.mxu3 }
 0x8d1   :  { %v5960_v52 = vpop.f32.mrf.mxu1 }
 0x8d2   :  { %v5963_v23 = vadd.f32 %v5960_v52, %v5707_v22 }
 0x8d4   :  { %v6219_v35 = vadd.f32 %v6216_v30, %v5963_v23 }
 0x8d6   :  { %v6475_v60 = vadd.f32 %v6472_v62, %v6219_v35 }
 0x8d8   :  { %v6476_v55 = vmax.f32 %v6475_v60, 0.0 }
 0x8da   :  { %6513 = vmatmul.f32.vlgmr.msrb.gmra.mxu0 %v6476_v55 }
 0x957   :  { %v6514_v21 = vpop.f32.mrf.mxu0 }
 0x958   :  { %v6515_v20 = vadd.f32 %v7046_v11, %v6514_v21 }
 0x95a   :  { %6517 = vst [vmem:[%s11540_s8] sm:$0xff] %v6515_v20 }

</bundles_post_ra>
